<compile_context>
chip_gen: v7x
topology: tpu7x:2x2x1
jax: 0.10.0
libtpu: 0.0.40
codegen_flags: <defaults>
</compile_context>

<pallas_src>
import jax
import jax.numpy as jnp
from jax.experimental import pallas as pl
from jax.experimental.pallas import tpu as pltpu


def _pad_amount(W):
    # Largest flat shift is dilation 8 * (W + 1); round up to a lane multiple
    # so the staging store into the scratch is lane-aligned.
    return ((8 * W + 8 + 127) // 128) * 128


def _make_cex_kernel(H, W):
    HW = H * W
    PAD = _pad_amount(W)

    def kernel(*refs):
        (x_ref,
         cr1_w, cr1_b, cr2_w, cr2_b, cr3_w, cr3_b, cr4_w, cr4_b,
         p1_w, p1_b,
         p1dc_w, p1dc_b,
         p2_w, p2_b, p2dc_w, p2dc_b,
         p3_w, p3_b, p3dc_w, p3dc_b,
         p4_w, p4_b, p4dc_w, p4dc_b,
         f1_w, f2_w, f3_w, f4_w, f_b,
         o_ref, pad_ref) = refs

        x = x_ref[0]                                   # (C, HW) bf16
        cs_scr = pad_ref.shape[0]

        # Zero only the left/right halo columns; the centre [PAD:PAD+HW] is
        # fully rewritten by every k x k conv before it is read.  Done every
        # grid step (tiny) so it is safe under megacore grid sharding.
        pad_ref[:, :PAD] = jnp.zeros((cs_scr, PAD), pad_ref.dtype)
        pad_ref[:, PAD + HW:] = jnp.zeros((cs_scr, PAD), pad_ref.dtype)

        # Column index of every flattened spatial position (for border masks).
        col = jax.lax.broadcasted_iota(jnp.int32, (1, HW), 1) % W
        mask_cache = {}

        def col_mask(dx):
            if dx not in mask_cache:
                mask_cache[dx] = ((col + dx) >= 0) & ((col + dx) < W)
            return mask_cache[dx]

        def cbr_1x1(feat_bf16, w_ref, b_ref):
            acc = jnp.dot(w_ref[...], feat_bf16,
                          preferred_element_type=jnp.float32)
            return jnp.maximum(acc + b_ref[...], 0.0)

        def cbr_kxk(feat_f32, w_ref, b_ref, ksize, dil):
            # Stage the (Cs, HW) feature into the zero-haloed flat scratch
            # as bf16 (single cast for all taps).
            pad_ref[:, PAD:PAD + HW] = feat_f32.astype(jnp.bfloat16)
            c0 = (ksize - 1) // 2
            acc = None
            # Group taps by dx: the wrap-around mask only depends on dx, and
            # masking RHS columns == masking the matching output columns, so
            # one f32 select per dx group replaces one per tap.
            for kx in range(ksize):
                dx = dil * (kx - c0)
                gacc = None
                for ky in range(ksize):
                    dy = dil * (ky - c0)
                    start = PAD + dy * W + dx
                    tap = pad_ref[:, start:start + HW]        # (Cs, HW) bf16
                    part = jnp.dot(w_ref[ky * ksize + kx], tap,
                                   preferred_element_type=jnp.float32)
                    gacc = part if gacc is None else gacc + part
                if dx != 0:   # kill wrap-around at left/right image borders
                    gacc = jnp.where(col_mask(dx), gacc, 0.0)
                acc = gacc if acc is None else acc + gacc
            return jnp.maximum(acc + b_ref[...], 0.0)

        # --- four 1x1 channel reductions (all read x) ---
        cr1 = cbr_1x1(x, cr1_w, cr1_b)                 # (Cs, HW) f32
        cr2 = cbr_1x1(x, cr2_w, cr2_b)
        cr3 = cbr_1x1(x, cr3_w, cr3_b)
        cr4 = cbr_1x1(x, cr4_w, cr4_b)

        # --- branch 1 ---
        p1 = cbr_1x1(cr1.astype(jnp.bfloat16), p1_w, p1_b)
        p1_dc = cbr_kxk(p1, p1dc_w, p1dc_b, 3, 1)
        # --- branch 2 ---
        p2 = cbr_kxk(cr2 + p1_dc, p2_w, p2_b, 3, 1)
        p2_dc = cbr_kxk(p2, p2dc_w, p2dc_b, 3, 2)
        # --- branch 3 ---
        p3 = cbr_kxk(cr3 + p2_dc, p3_w, p3_b, 5, 1)
        p3_dc = cbr_kxk(p3, p3dc_w, p3dc_b, 3, 4)
        # --- branch 4 ---
        p4 = cbr_kxk(cr4 + p3_dc, p4_w, p4_b, 7, 1)
        p4_dc = cbr_kxk(p4, p4dc_w, p4dc_b, 3, 8)

        # --- fusion 1x1 over concat(p1_dc..p4_dc): the concat is folded into
        #     four column blocks of the fusion weight (no in-kernel concat).
        ce = (jnp.dot(f1_w[...], p1_dc.astype(jnp.bfloat16),
                      preferred_element_type=jnp.float32)
              + jnp.dot(f2_w[...], p2_dc.astype(jnp.bfloat16),
                        preferred_element_type=jnp.float32)
              + jnp.dot(f3_w[...], p3_dc.astype(jnp.bfloat16),
                        preferred_element_type=jnp.float32)
              + jnp.dot(f4_w[...], p4_dc.astype(jnp.bfloat16),
                        preferred_element_type=jnp.float32)
              + f_b[...])
        o_ref[0] = jnp.maximum(ce, 0.0)

    return kernel


def _fold_bn(w, b, gamma, beta, mean, var, eps=1e-5):
    """Fold an eval-mode BatchNorm2d into the preceding conv (w: OIHW)."""
    scale = gamma / jnp.sqrt(var + eps)
    w_f = w * scale[:, None, None, None]
    b_f = (b - mean) * scale + beta
    return w_f.astype(jnp.float32), b_f.astype(jnp.float32)


_LAYERS = (
    ("cr1", "C", "Cs", 1, 1), ("cr2", "C", "Cs", 1, 1),
    ("cr3", "C", "Cs", 1, 1), ("cr4", "C", "Cs", 1, 1),
    ("p1", "Cs", "Cs", 1, 1), ("p1_dc", "Cs", "Cs", 3, 1),
    ("p2", "Cs", "Cs", 3, 1), ("p2_dc", "Cs", "Cs", 3, 2),
    ("p3", "Cs", "Cs", 5, 1), ("p3_dc", "Cs", "Cs", 3, 4),
    ("p4", "Cs", "Cs", 7, 1), ("p4_dc", "Cs", "Cs", 3, 8),
    ("fusion", "C", "C", 1, 1),
)


def make_params(key, C):
    """Deterministic synthetic Conv+BN parameters, BN folded (eval mode)."""
    Cs = C // 4
    dims = {"C": C, "Cs": Cs}
    params = {}
    keys = jax.random.split(key, len(_LAYERS))
    for kk, (name, cin_k, cout_k, ksz, dil) in zip(keys, _LAYERS):
        cin, cout = dims[cin_k], dims[cout_k]
        k1, k2, k3, k4, k5, k6 = jax.random.split(kk, 6)
        w = jax.random.normal(k1, (cout, cin, ksz, ksz), jnp.float32)
        w = w / jnp.sqrt(float(cin * ksz * ksz))
        b = 0.1 * jax.random.normal(k2, (cout,), jnp.float32)
        gamma = 1.0 + 0.1 * jax.random.normal(k3, (cout,), jnp.float32)
        beta = 0.1 * jax.random.normal(k4, (cout,), jnp.float32)
        mean = 0.1 * jax.random.normal(k5, (cout,), jnp.float32)
        var = 1.0 + 0.1 * jnp.abs(jax.random.normal(k6, (cout,), jnp.float32))
        wf, bf = _fold_bn(w, b, gamma, beta, mean, var)
        params[name] = dict(w=wf, b=bf, k=ksz, dil=dil)
    return params


def _pack_kernel_inputs(params, C):
    """Kernel-layout (bf16 weights / f32 biases) args + replicated BlockSpecs."""
    Cs = C // 4
    args, specs = [], []

    def rep(a):
        a = jnp.asarray(a)
        nd = a.ndim
        args.append(a)
        specs.append(pl.BlockSpec(a.shape, lambda b, _n=nd: (0,) * _n))

    def add_1x1(name):
        p = params[name]
        rep(p["w"][:, :, 0, 0].astype(jnp.bfloat16))          # (Cout, Cin)
        rep(p["b"][:, None].astype(jnp.float32))              # (Cout, 1)

    def add_kxk(name):
        p = params[name]
        cout, cin, ksz, _ = p["w"].shape
        taps = jnp.transpose(p["w"], (2, 3, 0, 1)).reshape(ksz * ksz, cout, cin)
        rep(taps.astype(jnp.bfloat16))                        # (K*K, Cout, Cin)
        rep(p["b"][:, None].astype(jnp.float32))

    for n in ("cr1", "cr2", "cr3", "cr4"):
        add_1x1(n)
    add_1x1("p1")
    for n in ("p1_dc", "p2", "p2_dc", "p3", "p3_dc", "p4", "p4_dc"):
        add_kxk(n)
    wf = params["fusion"]["w"][:, :, 0, 0]                    # (C, C)
    for i in range(4):
        rep(wf[:, i * Cs:(i + 1) * Cs].astype(jnp.bfloat16))  # (C, Cs)
    rep(params["fusion"]["b"][:, None].astype(jnp.float32))   # (C, 1)
    return args, specs


def context_exploration_forward(x_nchw, params):
    """x_nchw: (B, C, H, W) float32 -> ce: (B, C, H, W) float32."""
    B, C, H, W = x_nchw.shape
    Cs = C // 4
    HW = H * W
    PAD = _pad_amount(W)

    # NCHW is already channel-major: flattening (H, W) is a free reshape (no
    # transpose), and HW becomes the lane-dense last dimension.
    x = x_nchw.reshape(B, C, HW).astype(jnp.bfloat16)

    w_args, w_specs = _pack_kernel_inputs(params, C)

    flops = 0
    for p in params.values():
        cout, cin, ksz, _ = p["w"].shape
        flops += 2 * cout * cin * ksz * ksz * HW
    flops *= B
    bytes_accessed = (x.size * x.dtype.itemsize + B * C * HW * 4
                      + sum(int(a.size) * a.dtype.itemsize for a in w_args))

    out = pl.pallas_call(
        _make_cex_kernel(H, W),
        out_shape=jax.ShapeDtypeStruct((B, C, HW), jnp.float32),
        grid_spec=pltpu.PrefetchScalarGridSpec(
            num_scalar_prefetch=0,
            grid=(B,),
            in_specs=[pl.BlockSpec((1, C, HW), lambda b: (b, 0, 0))] + w_specs,
            out_specs=pl.BlockSpec((1, C, HW), lambda b: (b, 0, 0)),
            scratch_shapes=[pltpu.VMEM((Cs, HW + 2 * PAD), jnp.bfloat16)],
        ),
        compiler_params=pltpu.CompilerParams(
            dimension_semantics=("parallel",)),
        cost_estimate=pl.CostEstimate(flops=int(flops), transcendentals=0,
                                      bytes_accessed=int(bytes_accessed)),
    )(x, *w_args)

    return out.reshape(B, C, H, W)


def _reference(x_nchw, params):
    """Pure-JAX reference with the same BN-folded weights and the same
    bf16-operand / f32-accumulate convention as the kernel."""
    def cbr(h, p):
        ksz, dil = p["k"], p["dil"]
        pad = dil * (ksz - 1) // 2
        y = jax.lax.conv_general_dilated(
            h.astype(jnp.bfloat16), p["w"].astype(jnp.bfloat16),
            window_strides=(1, 1),
            padding=((pad, pad), (pad, pad)),
            rhs_dilation=(dil, dil),
            dimension_numbers=("NCHW", "OIHW", "NCHW"),
            preferred_element_type=jnp.float32)
        return jnp.maximum(y + p["b"][None, :, None, None], 0.0)

    p1_in = cbr(x_nchw, params["cr1"])
    p1 = cbr(p1_in, params["p1"])
    p1_dc = cbr(p1, params["p1_dc"])
    p2_in = cbr(x_nchw, params["cr2"]) + p1_dc
    p2 = cbr(p2_in, params["p2"])
    p2_dc = cbr(p2, params["p2_dc"])
    p3_in = cbr(x_nchw, params["cr3"]) + p2_dc
    p3 = cbr(p3_in, params["p3"])
    p3_dc = cbr(p3, params["p3_dc"])
    p4_in = cbr(x_nchw, params["cr4"]) + p3_dc
    p4 = cbr(p4_in, params["p4"])
    p4_dc = cbr(p4, params["p4_dc"])
    cat = jnp.concatenate([p1_dc, p2_dc, p3_dc, p4_dc], axis=1)
    return cbr(cat, params["fusion"])


if __name__ == "__main__":
    B, C, H, W = 2, 16, 16, 16      # input_channels=16 -> channels_single=4
    key = jax.random.PRNGKey(0)
    kx, kp = jax.random.split(key)
    x = jax.random.normal(kx, (B, C, H, W), jnp.float32)
    params = make_params(kp, C)

    ce = context_exploration_forward(x, params)
    ce = jax.block_until_ready(ce)

    ref = _reference(x, params)
    assert ce.shape == (B, C, H, W)
    # Kernel and reference both use bf16 MXU operands with f32 accumulation;
    # residual differences come only from f32 summation order / bf16 rounding
    # of identical intermediates.
    max_err = float(jnp.max(jnp.abs(ce - ref)))
    assert jnp.allclose(ce, ref, atol=2e-2, rtol=2e-2), f"max abs err {max_err}"
    print("KERNEL_OK")
</pallas_src>

<mosaic_0001>
module attributes {stable_mosaic.version = 11 : i64} {
  func.func @kernel(%arg0: i32, %arg1: memref<1x16x256xbf16, #tpu.memory_space<vmem>>, %arg2: memref<4x16xbf16, #tpu.memory_space<vmem>>, %arg3: memref<4x1xf32, #tpu.memory_space<vmem>>, %arg4: memref<4x16xbf16, #tpu.memory_space<vmem>>, %arg5: memref<4x1xf32, #tpu.memory_space<vmem>>, %arg6: memref<4x16xbf16, #tpu.memory_space<vmem>>, %arg7: memref<4x1xf32, #tpu.memory_space<vmem>>, %arg8: memref<4x16xbf16, #tpu.memory_space<vmem>>, %arg9: memref<4x1xf32, #tpu.memory_space<vmem>>, %arg10: memref<4x4xbf16, #tpu.memory_space<vmem>>, %arg11: memref<4x1xf32, #tpu.memory_space<vmem>>, %arg12: memref<9x4x4xbf16, #tpu.memory_space<vmem>>, %arg13: memref<4x1xf32, #tpu.memory_space<vmem>>, %arg14: memref<9x4x4xbf16, #tpu.memory_space<vmem>>, %arg15: memref<4x1xf32, #tpu.memory_space<vmem>>, %arg16: memref<9x4x4xbf16, #tpu.memory_space<vmem>>, %arg17: memref<4x1xf32, #tpu.memory_space<vmem>>, %arg18: memref<25x4x4xbf16, #tpu.memory_space<vmem>>, %arg19: memref<4x1xf32, #tpu.memory_space<vmem>>, %arg20: memref<9x4x4xbf16, #tpu.memory_space<vmem>>, %arg21: memref<4x1xf32, #tpu.memory_space<vmem>>, %arg22: memref<49x4x4xbf16, #tpu.memory_space<vmem>>, %arg23: memref<4x1xf32, #tpu.memory_space<vmem>>, %arg24: memref<9x4x4xbf16, #tpu.memory_space<vmem>>, %arg25: memref<4x1xf32, #tpu.memory_space<vmem>>, %arg26: memref<16x4xbf16, #tpu.memory_space<vmem>>, %arg27: memref<16x4xbf16, #tpu.memory_space<vmem>>, %arg28: memref<16x4xbf16, #tpu.memory_space<vmem>>, %arg29: memref<16x4xbf16, #tpu.memory_space<vmem>>, %arg30: memref<16x1xf32, #tpu.memory_space<vmem>>, %arg31: memref<1x16x256xf32, #tpu.memory_space<vmem>>, %arg32: memref<4x768xbf16, #tpu.memory_space<vmem>>) attributes {dimension_semantics = [#tpu.dimension_semantics<parallel>], iteration_bounds = array<i64: 2>, scalar_prefetch = 0 : i64, scratch_operands = 1 : i64, tpu.core_type = #tpu.core_type<tc>, window_params = [{transform_indices = @transform_0, window_bounds = array<i64: 1, 16, 256>}, {pipeline_mode = #tpu.pipeline_mode<synchronous>, transform_indices = @transform_1, window_bounds = array<i64: 4, 16>}, {pipeline_mode = #tpu.pipeline_mode<synchronous>, transform_indices = @transform_2, window_bounds = array<i64: 4, 1>}, {pipeline_mode = #tpu.pipeline_mode<synchronous>, transform_indices = @transform_3, window_bounds = array<i64: 4, 16>}, {pipeline_mode = #tpu.pipeline_mode<synchronous>, transform_indices = @transform_4, window_bounds = array<i64: 4, 1>}, {pipeline_mode = #tpu.pipeline_mode<synchronous>, transform_indices = @transform_5, window_bounds = array<i64: 4, 16>}, {pipeline_mode = #tpu.pipeline_mode<synchronous>, transform_indices = @transform_6, window_bounds = array<i64: 4, 1>}, {pipeline_mode = #tpu.pipeline_mode<synchronous>, transform_indices = @transform_7, window_bounds = array<i64: 4, 16>}, {pipeline_mode = #tpu.pipeline_mode<synchronous>, transform_indices = @transform_8, window_bounds = array<i64: 4, 1>}, {pipeline_mode = #tpu.pipeline_mode<synchronous>, transform_indices = @transform_9, window_bounds = array<i64: 4, 4>}, {pipeline_mode = #tpu.pipeline_mode<synchronous>, transform_indices = @transform_10, window_bounds = array<i64: 4, 1>}, {pipeline_mode = #tpu.pipeline_mode<synchronous>, transform_indices = @transform_11, window_bounds = array<i64: 9, 4, 4>}, {pipeline_mode = #tpu.pipeline_mode<synchronous>, transform_indices = @transform_12, window_bounds = array<i64: 4, 1>}, {pipeline_mode = #tpu.pipeline_mode<synchronous>, transform_indices = @transform_13, window_bounds = array<i64: 9, 4, 4>}, {pipeline_mode = #tpu.pipeline_mode<synchronous>, transform_indices = @transform_14, window_bounds = array<i64: 4, 1>}, {pipeline_mode = #tpu.pipeline_mode<synchronous>, transform_indices = @transform_15, window_bounds = array<i64: 9, 4, 4>}, {pipeline_mode = #tpu.pipeline_mode<synchronous>, transform_indices = @transform_16, window_bounds = array<i64: 4, 1>}, {pipeline_mode = #tpu.pipeline_mode<synchronous>, transform_indices = @transform_17, window_bounds = array<i64: 25, 4, 4>}, {pipeline_mode = #tpu.pipeline_mode<synchronous>, transform_indices = @transform_18, window_bounds = array<i64: 4, 1>}, {pipeline_mode = #tpu.pipeline_mode<synchronous>, transform_indices = @transform_19, window_bounds = array<i64: 9, 4, 4>}, {pipeline_mode = #tpu.pipeline_mode<synchronous>, transform_indices = @transform_20, window_bounds = array<i64: 4, 1>}, {pipeline_mode = #tpu.pipeline_mode<synchronous>, transform_indices = @transform_21, window_bounds = array<i64: 49, 4, 4>}, {pipeline_mode = #tpu.pipeline_mode<synchronous>, transform_indices = @transform_22, window_bounds = array<i64: 4, 1>}, {pipeline_mode = #tpu.pipeline_mode<synchronous>, transform_indices = @transform_23, window_bounds = array<i64: 9, 4, 4>}, {pipeline_mode = #tpu.pipeline_mode<synchronous>, transform_indices = @transform_24, window_bounds = array<i64: 4, 1>}, {pipeline_mode = #tpu.pipeline_mode<synchronous>, transform_indices = @transform_25, window_bounds = array<i64: 16, 4>}, {pipeline_mode = #tpu.pipeline_mode<synchronous>, transform_indices = @transform_26, window_bounds = array<i64: 16, 4>}, {pipeline_mode = #tpu.pipeline_mode<synchronous>, transform_indices = @transform_27, window_bounds = array<i64: 16, 4>}, {pipeline_mode = #tpu.pipeline_mode<synchronous>, transform_indices = @transform_28, window_bounds = array<i64: 16, 4>}, {pipeline_mode = #tpu.pipeline_mode<synchronous>, transform_indices = @transform_29, window_bounds = array<i64: 16, 1>}, {transform_indices = @transform_30, window_bounds = array<i64: 1, 16, 256>}]} {
    %c0 = arith.constant 0 : index
    %c0_0 = arith.constant 0 : index
    %c0_1 = arith.constant 0 : index
    %0 = vector.load %arg1[%c0, %c0_0, %c0_1] : memref<1x16x256xbf16, #tpu.memory_space<vmem>>, vector<1x16x256xbf16>
    %1 = vector.shape_cast %0 : vector<1x16x256xbf16> to vector<16x256xbf16>
    %cst = arith.constant 0.000000e+00 : bf16
    %2 = vector.broadcast %cst : bf16 to vector<4x256xbf16>
    %c0_2 = arith.constant 0 : index
    %c0_3 = arith.constant 0 : index
    %3 = vector.load %arg32[%c0_2, %c0_3] : memref<4x768xbf16, #tpu.memory_space<vmem>>, vector<4x256xbf16>
    tpu.vector_store %arg32[%c0_2, %c0_3], %2 {strides = array<i32>} : memref<4x768xbf16, #tpu.memory_space<vmem>>, vector<4x256xbf16>,
    %cst_4 = arith.constant 0.000000e+00 : bf16
    %4 = vector.broadcast %cst_4 : bf16 to vector<4x256xbf16>
    %c0_5 = arith.constant 0 : index
    %c512 = arith.constant 512 : index
    %5 = vector.load %arg32[%c0_5, %c512] : memref<4x768xbf16, #tpu.memory_space<vmem>>, vector<4x256xbf16>
    tpu.vector_store %arg32[%c0_5, %c512], %4 {strides = array<i32>} : memref<4x768xbf16, #tpu.memory_space<vmem>>, vector<4x256xbf16>,
    %6 = tpu.iota {dimensions = array<i32: 1>} : vector<1x256xi32>
    %c16_i32 = arith.constant 16 : i32
    %c0_i32 = arith.constant 0 : i32
    %7 = arith.cmpi eq, %c16_i32, %c0_i32 : i32
    %c1_i32 = arith.constant 1 : i32
    %8 = arith.select %7, %c1_i32, %c16_i32 : i32
    %9 = vector.broadcast %8 : i32 to vector<1x256xi32>
    %10 = arith.remsi %6, %9 : vector<1x256xi32>
    %c0_i32_6 = arith.constant 0 : i32
    %11 = vector.broadcast %c0_i32_6 : i32 to vector<1x256xi32>
    %12 = arith.cmpi ne, %10, %11 : vector<1x256xi32>
    %c0_i32_7 = arith.constant 0 : i32
    %13 = vector.broadcast %c0_i32_7 : i32 to vector<1x256xi32>
    %14 = arith.cmpi slt, %10, %13 : vector<1x256xi32>
    %c0_i32_8 = arith.constant 0 : i32
    %15 = arith.cmpi slt, %8, %c0_i32_8 : i32
    %16 = vector.broadcast %15 : i1 to vector<1x256xi1>
    %17 = vector.broadcast %16 : vector<1x256xi1> to vector<1x256xi1>
    %18 = arith.xori %14, %17 : vector<1x256xi1>
    %19 = arith.andi %18, %12 : vector<1x256xi1>
    %20 = vector.broadcast %8 : i32 to vector<1x256xi32>
    %21 = arith.addi %10, %20 : vector<1x256xi32>
    %22 = arith.select %19, %21, %10 : vector<1x256xi1>, vector<1x256xi32>
    %c0_9 = arith.constant 0 : index
    %c0_10 = arith.constant 0 : index
    %23 = vector.load %arg2[%c0_9, %c0_10] : memref<4x16xbf16, #tpu.memory_space<vmem>>, vector<4x16xbf16>
    %cst_11 = arith.constant dense<0.000000e+00> : vector<4x256xf32>
    %24 = tpu.matmul %23, %1, %cst_11 {dimension_numbers = #tpu.dot_dimension_numbers<[1], [0], [0], [1], [0, 0, 1, 1], [], []>} : vector<4x16xbf16>, vector<16x256xbf16>, vector<4x256xf32> -> vector<4x256xf32>
    %c0_12 = arith.constant 0 : index
    %c0_13 = arith.constant 0 : index
    %25 = vector.load %arg3[%c0_12, %c0_13] : memref<4x1xf32, #tpu.memory_space<vmem>>, vector<4x1xf32>
    %26 = vector.broadcast %25 : vector<4x1xf32> to vector<4x256xf32>
    %27 = arith.addf %24, %26 : vector<4x256xf32>
    %cst_14 = arith.constant 0.000000e+00 : f32
    %28 = vector.broadcast %cst_14 : f32 to vector<4x256xf32>
    %29 = arith.maximumf %27, %28 : vector<4x256xf32>
    %c0_15 = arith.constant 0 : index
    %c0_16 = arith.constant 0 : index
    %30 = vector.load %arg4[%c0_15, %c0_16] : memref<4x16xbf16, #tpu.memory_space<vmem>>, vector<4x16xbf16>
    %cst_17 = arith.constant dense<0.000000e+00> : vector<4x256xf32>
    %31 = tpu.matmul %30, %1, %cst_17 {dimension_numbers = #tpu.dot_dimension_numbers<[1], [0], [0], [1], [0, 0, 1, 1], [], []>} : vector<4x16xbf16>, vector<16x256xbf16>, vector<4x256xf32> -> vector<4x256xf32>
    %c0_18 = arith.constant 0 : index
    %c0_19 = arith.constant 0 : index
    %32 = vector.load %arg5[%c0_18, %c0_19] : memref<4x1xf32, #tpu.memory_space<vmem>>, vector<4x1xf32>
    %33 = vector.broadcast %32 : vector<4x1xf32> to vector<4x256xf32>
    %34 = arith.addf %31, %33 : vector<4x256xf32>
    %cst_20 = arith.constant 0.000000e+00 : f32
    %35 = vector.broadcast %cst_20 : f32 to vector<4x256xf32>
    %36 = arith.maximumf %34, %35 : vector<4x256xf32>
    %c0_21 = arith.constant 0 : index
    %c0_22 = arith.constant 0 : index
    %37 = vector.load %arg6[%c0_21, %c0_22] : memref<4x16xbf16, #tpu.memory_space<vmem>>, vector<4x16xbf16>
    %cst_23 = arith.constant dense<0.000000e+00> : vector<4x256xf32>
    %38 = tpu.matmul %37, %1, %cst_23 {dimension_numbers = #tpu.dot_dimension_numbers<[1], [0], [0], [1], [0, 0, 1, 1], [], []>} : vector<4x16xbf16>, vector<16x256xbf16>, vector<4x256xf32> -> vector<4x256xf32>
    %c0_24 = arith.constant 0 : index
    %c0_25 = arith.constant 0 : index
    %39 = vector.load %arg7[%c0_24, %c0_25] : memref<4x1xf32, #tpu.memory_space<vmem>>, vector<4x1xf32>
    %40 = vector.broadcast %39 : vector<4x1xf32> to vector<4x256xf32>
    %41 = arith.addf %38, %40 : vector<4x256xf32>
    %cst_26 = arith.constant 0.000000e+00 : f32
    %42 = vector.broadcast %cst_26 : f32 to vector<4x256xf32>
    %43 = arith.maximumf %41, %42 : vector<4x256xf32>
    %c0_27 = arith.constant 0 : index
    %c0_28 = arith.constant 0 : index
    %44 = vector.load %arg8[%c0_27, %c0_28] : memref<4x16xbf16, #tpu.memory_space<vmem>>, vector<4x16xbf16>
    %cst_29 = arith.constant dense<0.000000e+00> : vector<4x256xf32>
    %45 = tpu.matmul %44, %1, %cst_29 {dimension_numbers = #tpu.dot_dimension_numbers<[1], [0], [0], [1], [0, 0, 1, 1], [], []>} : vector<4x16xbf16>, vector<16x256xbf16>, vector<4x256xf32> -> vector<4x256xf32>
    %c0_30 = arith.constant 0 : index
    %c0_31 = arith.constant 0 : index
    %46 = vector.load %arg9[%c0_30, %c0_31] : memref<4x1xf32, #tpu.memory_space<vmem>>, vector<4x1xf32>
    %47 = vector.broadcast %46 : vector<4x1xf32> to vector<4x256xf32>
    %48 = arith.addf %45, %47 : vector<4x256xf32>
    %cst_32 = arith.constant 0.000000e+00 : f32
    %49 = vector.broadcast %cst_32 : f32 to vector<4x256xf32>
    %50 = arith.maximumf %48, %49 : vector<4x256xf32>
    %51 = arith.truncf %29 : vector<4x256xf32> to vector<4x256xbf16>
    %c0_33 = arith.constant 0 : index
    %c0_34 = arith.constant 0 : index
    %52 = vector.load %arg10[%c0_33, %c0_34] : memref<4x4xbf16, #tpu.memory_space<vmem>>, vector<4x4xbf16>
    %cst_35 = arith.constant dense<0.000000e+00> : vector<4x256xf32>
    %53 = tpu.matmul %52, %51, %cst_35 {dimension_numbers = #tpu.dot_dimension_numbers<[1], [0], [0], [1], [0, 0, 1, 1], [], []>} : vector<4x4xbf16>, vector<4x256xbf16>, vector<4x256xf32> -> vector<4x256xf32>
    %c0_36 = arith.constant 0 : index
    %c0_37 = arith.constant 0 : index
    %54 = vector.load %arg11[%c0_36, %c0_37] : memref<4x1xf32, #tpu.memory_space<vmem>>, vector<4x1xf32>
    %55 = vector.broadcast %54 : vector<4x1xf32> to vector<4x256xf32>
    %56 = arith.addf %53, %55 : vector<4x256xf32>
    %cst_38 = arith.constant 0.000000e+00 : f32
    %57 = vector.broadcast %cst_38 : f32 to vector<4x256xf32>
    %58 = arith.maximumf %56, %57 : vector<4x256xf32>
    %59 = arith.truncf %58 : vector<4x256xf32> to vector<4x256xbf16>
    %c0_39 = arith.constant 0 : index
    %c256 = arith.constant 256 : index
    %60 = vector.load %arg32[%c0_39, %c256] : memref<4x768xbf16, #tpu.memory_space<vmem>>, vector<4x256xbf16>
    tpu.vector_store %arg32[%c0_39, %c256], %59 {strides = array<i32>} : memref<4x768xbf16, #tpu.memory_space<vmem>>, vector<4x256xbf16>,
    %c0_40 = arith.constant 0 : index
    %c239 = arith.constant 239 : index
    %61 = vector.load %arg32[%c0_40, %c239] : memref<4x768xbf16, #tpu.memory_space<vmem>>, vector<4x256xbf16>
    %c0_41 = arith.constant 0 : index
    %c0_42 = arith.constant 0 : index
    %c0_43 = arith.constant 0 : index
    %62 = vector.load %arg12[%c0_41, %c0_42, %c0_43] : memref<9x4x4xbf16, #tpu.memory_space<vmem>>, vector<1x4x4xbf16>
    %63 = vector.shape_cast %62 : vector<1x4x4xbf16> to vector<4x4xbf16>
    %cst_44 = arith.constant dense<0.000000e+00> : vector<4x256xf32>
    %64 = tpu.matmul %63, %61, %cst_44 {dimension_numbers = #tpu.dot_dimension_numbers<[1], [0], [0], [1], [0, 0, 1, 1], [], []>} : vector<4x4xbf16>, vector<4x256xbf16>, vector<4x256xf32> -> vector<4x256xf32>
    %c0_45 = arith.constant 0 : index
    %c255 = arith.constant 255 : index
    %65 = vector.load %arg32[%c0_45, %c255] : memref<4x768xbf16, #tpu.memory_space<vmem>>, vector<4x256xbf16>
    %c3 = arith.constant 3 : index
    %c0_46 = arith.constant 0 : index
    %c0_47 = arith.constant 0 : index
    %66 = vector.load %arg12[%c3, %c0_46, %c0_47] : memref<9x4x4xbf16, #tpu.memory_space<vmem>>, vector<1x4x4xbf16>
    %67 = vector.shape_cast %66 : vector<1x4x4xbf16> to vector<4x4xbf16>
    %cst_48 = arith.constant dense<0.000000e+00> : vector<4x256xf32>
    %68 = tpu.matmul %67, %65, %cst_48 {dimension_numbers = #tpu.dot_dimension_numbers<[1], [0], [0], [1], [0, 0, 1, 1], [], []>} : vector<4x4xbf16>, vector<4x256xbf16>, vector<4x256xf32> -> vector<4x256xf32>
    %69 = arith.addf %64, %68 : vector<4x256xf32>
    %c0_49 = arith.constant 0 : index
    %c271 = arith.constant 271 : index
    %70 = vector.load %arg32[%c0_49, %c271] : memref<4x768xbf16, #tpu.memory_space<vmem>>, vector<4x256xbf16>
    %c6 = arith.constant 6 : index
    %c0_50 = arith.constant 0 : index
    %c0_51 = arith.constant 0 : index
    %71 = vector.load %arg12[%c6, %c0_50, %c0_51] : memref<9x4x4xbf16, #tpu.memory_space<vmem>>, vector<1x4x4xbf16>
    %72 = vector.shape_cast %71 : vector<1x4x4xbf16> to vector<4x4xbf16>
    %cst_52 = arith.constant dense<0.000000e+00> : vector<4x256xf32>
    %73 = tpu.matmul %72, %70, %cst_52 {dimension_numbers = #tpu.dot_dimension_numbers<[1], [0], [0], [1], [0, 0, 1, 1], [], []>} : vector<4x4xbf16>, vector<4x256xbf16>, vector<4x256xf32> -> vector<4x256xf32>
    %74 = arith.addf %69, %73 : vector<4x256xf32>
    %c-1_i32 = arith.constant -1 : i32
    %75 = vector.broadcast %c-1_i32 : i32 to vector<1x256xi32>
    %76 = arith.addi %22, %75 : vector<1x256xi32>
    %c0_i32_53 = arith.constant 0 : i32
    %77 = vector.broadcast %c0_i32_53 : i32 to vector<1x256xi32>
    %78 = arith.cmpi sge, %76, %77 : vector<1x256xi32>
    %c-1_i32_54 = arith.constant -1 : i32
    %79 = vector.broadcast %c-1_i32_54 : i32 to vector<1x256xi32>
    %80 = arith.addi %22, %79 : vector<1x256xi32>
    %c16_i32_55 = arith.constant 16 : i32
    %81 = vector.broadcast %c16_i32_55 : i32 to vector<1x256xi32>
    %82 = arith.cmpi slt, %80, %81 : vector<1x256xi32>
    %83 = arith.andi %78, %82 : vector<1x256xi1>
    %cst_56 = arith.constant 0.000000e+00 : f32
    %84 = vector.shape_cast %83 : vector<1x256xi1> to vector<1x256xi1>
    %85 = vector.broadcast %84 : vector<1x256xi1> to vector<4x256xi1>
    %86 = vector.broadcast %cst_56 : f32 to vector<4x256xf32>
    %87 = arith.select %85, %74, %86 : vector<4x256xi1>, vector<4x256xf32>
    %c0_57 = arith.constant 0 : index
    %c240 = arith.constant 240 : index
    %88 = vector.load %arg32[%c0_57, %c240] : memref<4x768xbf16, #tpu.memory_space<vmem>>, vector<4x256xbf16>
    %c1 = arith.constant 1 : index
    %c0_58 = arith.constant 0 : index
    %c0_59 = arith.constant 0 : index
    %89 = vector.load %arg12[%c1, %c0_58, %c0_59] : memref<9x4x4xbf16, #tpu.memory_space<vmem>>, vector<1x4x4xbf16>
    %90 = vector.shape_cast %89 : vector<1x4x4xbf16> to vector<4x4xbf16>
    %cst_60 = arith.constant dense<0.000000e+00> : vector<4x256xf32>
    %91 = tpu.matmul %90, %88, %cst_60 {dimension_numbers = #tpu.dot_dimension_numbers<[1], [0], [0], [1], [0, 0, 1, 1], [], []>} : vector<4x4xbf16>, vector<4x256xbf16>, vector<4x256xf32> -> vector<4x256xf32>
    %c0_61 = arith.constant 0 : index
    %c256_62 = arith.constant 256 : index
    %92 = vector.load %arg32[%c0_61, %c256_62] : memref<4x768xbf16, #tpu.memory_space<vmem>>, vector<4x256xbf16>
    %c4 = arith.constant 4 : index
    %c0_63 = arith.constant 0 : index
    %c0_64 = arith.constant 0 : index
    %93 = vector.load %arg12[%c4, %c0_63, %c0_64] : memref<9x4x4xbf16, #tpu.memory_space<vmem>>, vector<1x4x4xbf16>
    %94 = vector.shape_cast %93 : vector<1x4x4xbf16> to vector<4x4xbf16>
    %cst_65 = arith.constant dense<0.000000e+00> : vector<4x256xf32>
    %95 = tpu.matmul %94, %92, %cst_65 {dimension_numbers = #tpu.dot_dimension_numbers<[1], [0], [0], [1], [0, 0, 1, 1], [], []>} : vector<4x4xbf16>, vector<4x256xbf16>, vector<4x256xf32> -> vector<4x256xf32>
    %96 = arith.addf %91, %95 : vector<4x256xf32>
    %c0_66 = arith.constant 0 : index
    %c272 = arith.constant 272 : index
    %97 = vector.load %arg32[%c0_66, %c272] : memref<4x768xbf16, #tpu.memory_space<vmem>>, vector<4x256xbf16>
    %c7 = arith.constant 7 : index
    %c0_67 = arith.constant 0 : index
    %c0_68 = arith.constant 0 : index
    %98 = vector.load %arg12[%c7, %c0_67, %c0_68] : memref<9x4x4xbf16, #tpu.memory_space<vmem>>, vector<1x4x4xbf16>
    %99 = vector.shape_cast %98 : vector<1x4x4xbf16> to vector<4x4xbf16>
    %cst_69 = arith.constant dense<0.000000e+00> : vector<4x256xf32>
    %100 = tpu.matmul %99, %97, %cst_69 {dimension_numbers = #tpu.dot_dimension_numbers<[1], [0], [0], [1], [0, 0, 1, 1], [], []>} : vector<4x4xbf16>, vector<4x256xbf16>, vector<4x256xf32> -> vector<4x256xf32>
    %101 = arith.addf %96, %100 : vector<4x256xf32>
    %102 = arith.addf %87, %101 : vector<4x256xf32>
    %c0_70 = arith.constant 0 : index
    %c241 = arith.constant 241 : index
    %103 = vector.load %arg32[%c0_70, %c241] : memref<4x768xbf16, #tpu.memory_space<vmem>>, vector<4x256xbf16>
    %c2 = arith.constant 2 : index
    %c0_71 = arith.constant 0 : index
    %c0_72 = arith.constant 0 : index
    %104 = vector.load %arg12[%c2, %c0_71, %c0_72] : memref<9x4x4xbf16, #tpu.memory_space<vmem>>, vector<1x4x4xbf16>
    %105 = vector.shape_cast %104 : vector<1x4x4xbf16> to vector<4x4xbf16>
    %cst_73 = arith.constant dense<0.000000e+00> : vector<4x256xf32>
    %106 = tpu.matmul %105, %103, %cst_73 {dimension_numbers = #tpu.dot_dimension_numbers<[1], [0], [0], [1], [0, 0, 1, 1], [], []>} : vector<4x4xbf16>, vector<4x256xbf16>, vector<4x256xf32> -> vector<4x256xf32>
    %c0_74 = arith.constant 0 : index
    %c257 = arith.constant 257 : index
    %107 = vector.load %arg32[%c0_74, %c257] : memref<4x768xbf16, #tpu.memory_space<vmem>>, vector<4x256xbf16>
    %c5 = arith.constant 5 : index
    %c0_75 = arith.constant 0 : index
    %c0_76 = arith.constant 0 : index
    %108 = vector.load %arg12[%c5, %c0_75, %c0_76] : memref<9x4x4xbf16, #tpu.memory_space<vmem>>, vector<1x4x4xbf16>
    %109 = vector.shape_cast %108 : vector<1x4x4xbf16> to vector<4x4xbf16>
    %cst_77 = arith.constant dense<0.000000e+00> : vector<4x256xf32>
    %110 = tpu.matmul %109, %107, %cst_77 {dimension_numbers = #tpu.dot_dimension_numbers<[1], [0], [0], [1], [0, 0, 1, 1], [], []>} : vector<4x4xbf16>, vector<4x256xbf16>, vector<4x256xf32> -> vector<4x256xf32>
    %111 = arith.addf %106, %110 : vector<4x256xf32>
    %c0_78 = arith.constant 0 : index
    %c273 = arith.constant 273 : index
    %112 = vector.load %arg32[%c0_78, %c273] : memref<4x768xbf16, #tpu.memory_space<vmem>>, vector<4x256xbf16>
    %c8 = arith.constant 8 : index
    %c0_79 = arith.constant 0 : index
    %c0_80 = arith.constant 0 : index
    %113 = vector.load %arg12[%c8, %c0_79, %c0_80] : memref<9x4x4xbf16, #tpu.memory_space<vmem>>, vector<1x4x4xbf16>
    %114 = vector.shape_cast %113 : vector<1x4x4xbf16> to vector<4x4xbf16>
    %cst_81 = arith.constant dense<0.000000e+00> : vector<4x256xf32>
    %115 = tpu.matmul %114, %112, %cst_81 {dimension_numbers = #tpu.dot_dimension_numbers<[1], [0], [0], [1], [0, 0, 1, 1], [], []>} : vector<4x4xbf16>, vector<4x256xbf16>, vector<4x256xf32> -> vector<4x256xf32>
    %116 = arith.addf %111, %115 : vector<4x256xf32>
    %c1_i32_82 = arith.constant 1 : i32
    %117 = vector.broadcast %c1_i32_82 : i32 to vector<1x256xi32>
    %118 = arith.addi %22, %117 : vector<1x256xi32>
    %c0_i32_83 = arith.constant 0 : i32
    %119 = vector.broadcast %c0_i32_83 : i32 to vector<1x256xi32>
    %120 = arith.cmpi sge, %118, %119 : vector<1x256xi32>
    %c1_i32_84 = arith.constant 1 : i32
    %121 = vector.broadcast %c1_i32_84 : i32 to vector<1x256xi32>
    %122 = arith.addi %22, %121 : vector<1x256xi32>
    %c16_i32_85 = arith.constant 16 : i32
    %123 = vector.broadcast %c16_i32_85 : i32 to vector<1x256xi32>
    %124 = arith.cmpi slt, %122, %123 : vector<1x256xi32>
    %125 = arith.andi %120, %124 : vector<1x256xi1>
    %cst_86 = arith.constant 0.000000e+00 : f32
    %126 = vector.shape_cast %125 : vector<1x256xi1> to vector<1x256xi1>
    %127 = vector.broadcast %126 : vector<1x256xi1> to vector<4x256xi1>
    %128 = vector.broadcast %cst_86 : f32 to vector<4x256xf32>
    %129 = arith.select %127, %116, %128 : vector<4x256xi1>, vector<4x256xf32>
    %130 = arith.addf %102, %129 : vector<4x256xf32>
    %c0_87 = arith.constant 0 : index
    %c0_88 = arith.constant 0 : index
    %131 = vector.load %arg13[%c0_87, %c0_88] : memref<4x1xf32, #tpu.memory_space<vmem>>, vector<4x1xf32>
    %132 = vector.broadcast %131 : vector<4x1xf32> to vector<4x256xf32>
    %133 = arith.addf %130, %132 : vector<4x256xf32>
    %cst_89 = arith.constant 0.000000e+00 : f32
    %134 = vector.broadcast %cst_89 : f32 to vector<4x256xf32>
    %135 = arith.maximumf %133, %134 : vector<4x256xf32>
    %136 = arith.addf %36, %135 : vector<4x256xf32>
    %137 = arith.truncf %136 : vector<4x256xf32> to vector<4x256xbf16>
    %c0_90 = arith.constant 0 : index
    %c256_91 = arith.constant 256 : index
    %138 = vector.load %arg32[%c0_90, %c256_91] : memref<4x768xbf16, #tpu.memory_space<vmem>>, vector<4x256xbf16>
    tpu.vector_store %arg32[%c0_90, %c256_91], %137 {strides = array<i32>} : memref<4x768xbf16, #tpu.memory_space<vmem>>, vector<4x256xbf16>,
    %c0_92 = arith.constant 0 : index
    %c239_93 = arith.constant 239 : index
    %139 = vector.load %arg32[%c0_92, %c239_93] : memref<4x768xbf16, #tpu.memory_space<vmem>>, vector<4x256xbf16>
    %c0_94 = arith.constant 0 : index
    %c0_95 = arith.constant 0 : index
    %c0_96 = arith.constant 0 : index
    %140 = vector.load %arg14[%c0_94, %c0_95, %c0_96] : memref<9x4x4xbf16, #tpu.memory_space<vmem>>, vector<1x4x4xbf16>
    %141 = vector.shape_cast %140 : vector<1x4x4xbf16> to vector<4x4xbf16>
    %cst_97 = arith.constant dense<0.000000e+00> : vector<4x256xf32>
    %142 = tpu.matmul %141, %139, %cst_97 {dimension_numbers = #tpu.dot_dimension_numbers<[1], [0], [0], [1], [0, 0, 1, 1], [], []>} : vector<4x4xbf16>, vector<4x256xbf16>, vector<4x256xf32> -> vector<4x256xf32>
    %c0_98 = arith.constant 0 : index
    %c255_99 = arith.constant 255 : index
    %143 = vector.load %arg32[%c0_98, %c255_99] : memref<4x768xbf16, #tpu.memory_space<vmem>>, vector<4x256xbf16>
    %c3_100 = arith.constant 3 : index
    %c0_101 = arith.constant 0 : index
    %c0_102 = arith.constant 0 : index
    %144 = vector.load %arg14[%c3_100, %c0_101, %c0_102] : memref<9x4x4xbf16, #tpu.memory_space<vmem>>, vector<1x4x4xbf16>
    %145 = vector.shape_cast %144 : vector<1x4x4xbf16> to vector<4x4xbf16>
    %cst_103 = arith.constant dense<0.000000e+00> : vector<4x256xf32>
    %146 = tpu.matmul %145, %143, %cst_103 {dimension_numbers = #tpu.dot_dimension_numbers<[1], [0], [0], [1], [0, 0, 1, 1], [], []>} : vector<4x4xbf16>, vector<4x256xbf16>, vector<4x256xf32> -> vector<4x256xf32>
    %147 = arith.addf %142, %146 : vector<4x256xf32>
    %c0_104 = arith.constant 0 : index
    %c271_105 = arith.constant 271 : index
    %148 = vector.load %arg32[%c0_104, %c271_105] : memref<4x768xbf16, #tpu.memory_space<vmem>>, vector<4x256xbf16>
    %c6_106 = arith.constant 6 : index
    %c0_107 = arith.constant 0 : index
    %c0_108 = arith.constant 0 : index
    %149 = vector.load %arg14[%c6_106, %c0_107, %c0_108] : memref<9x4x4xbf16, #tpu.memory_space<vmem>>, vector<1x4x4xbf16>
    %150 = vector.shape_cast %149 : vector<1x4x4xbf16> to vector<4x4xbf16>
    %cst_109 = arith.constant dense<0.000000e+00> : vector<4x256xf32>
    %151 = tpu.matmul %150, %148, %cst_109 {dimension_numbers = #tpu.dot_dimension_numbers<[1], [0], [0], [1], [0, 0, 1, 1], [], []>} : vector<4x4xbf16>, vector<4x256xbf16>, vector<4x256xf32> -> vector<4x256xf32>
    %152 = arith.addf %147, %151 : vector<4x256xf32>
    %cst_110 = arith.constant 0.000000e+00 : f32
    %153 = vector.shape_cast %83 : vector<1x256xi1> to vector<1x256xi1>
    %154 = vector.broadcast %153 : vector<1x256xi1> to vector<4x256xi1>
    %155 = vector.broadcast %cst_110 : f32 to vector<4x256xf32>
    %156 = arith.select %154, %152, %155 : vector<4x256xi1>, vector<4x256xf32>
    %c0_111 = arith.constant 0 : index
    %c240_112 = arith.constant 240 : index
    %157 = vector.load %arg32[%c0_111, %c240_112] : memref<4x768xbf16, #tpu.memory_space<vmem>>, vector<4x256xbf16>
    %c1_113 = arith.constant 1 : index
    %c0_114 = arith.constant 0 : index
    %c0_115 = arith.constant 0 : index
    %158 = vector.load %arg14[%c1_113, %c0_114, %c0_115] : memref<9x4x4xbf16, #tpu.memory_space<vmem>>, vector<1x4x4xbf16>
    %159 = vector.shape_cast %158 : vector<1x4x4xbf16> to vector<4x4xbf16>
    %cst_116 = arith.constant dense<0.000000e+00> : vector<4x256xf32>
    %160 = tpu.matmul %159, %157, %cst_116 {dimension_numbers = #tpu.dot_dimension_numbers<[1], [0], [0], [1], [0, 0, 1, 1], [], []>} : vector<4x4xbf16>, vector<4x256xbf16>, vector<4x256xf32> -> vector<4x256xf32>
    %c0_117 = arith.constant 0 : index
    %c256_118 = arith.constant 256 : index
    %161 = vector.load %arg32[%c0_117, %c256_118] : memref<4x768xbf16, #tpu.memory_space<vmem>>, vector<4x256xbf16>
    %c4_119 = arith.constant 4 : index
    %c0_120 = arith.constant 0 : index
    %c0_121 = arith.constant 0 : index
    %162 = vector.load %arg14[%c4_119, %c0_120, %c0_121] : memref<9x4x4xbf16, #tpu.memory_space<vmem>>, vector<1x4x4xbf16>
    %163 = vector.shape_cast %162 : vector<1x4x4xbf16> to vector<4x4xbf16>
    %cst_122 = arith.constant dense<0.000000e+00> : vector<4x256xf32>
    %164 = tpu.matmul %163, %161, %cst_122 {dimension_numbers = #tpu.dot_dimension_numbers<[1], [0], [0], [1], [0, 0, 1, 1], [], []>} : vector<4x4xbf16>, vector<4x256xbf16>, vector<4x256xf32> -> vector<4x256xf32>
    %165 = arith.addf %160, %164 : vector<4x256xf32>
    %c0_123 = arith.constant 0 : index
    %c272_124 = arith.constant 272 : index
    %166 = vector.load %arg32[%c0_123, %c272_124] : memref<4x768xbf16, #tpu.memory_space<vmem>>, vector<4x256xbf16>
    %c7_125 = arith.constant 7 : index
    %c0_126 = arith.constant 0 : index
    %c0_127 = arith.constant 0 : index
    %167 = vector.load %arg14[%c7_125, %c0_126, %c0_127] : memref<9x4x4xbf16, #tpu.memory_space<vmem>>, vector<1x4x4xbf16>
    %168 = vector.shape_cast %167 : vector<1x4x4xbf16> to vector<4x4xbf16>
    %cst_128 = arith.constant dense<0.000000e+00> : vector<4x256xf32>
    %169 = tpu.matmul %168, %166, %cst_128 {dimension_numbers = #tpu.dot_dimension_numbers<[1], [0], [0], [1], [0, 0, 1, 1], [], []>} : vector<4x4xbf16>, vector<4x256xbf16>, vector<4x256xf32> -> vector<4x256xf32>
    %170 = arith.addf %165, %169 : vector<4x256xf32>
    %171 = arith.addf %156, %170 : vector<4x256xf32>
    %c0_129 = arith.constant 0 : index
    %c241_130 = arith.constant 241 : index
    %172 = vector.load %arg32[%c0_129, %c241_130] : memref<4x768xbf16, #tpu.memory_space<vmem>>, vector<4x256xbf16>
    %c2_131 = arith.constant 2 : index
    %c0_132 = arith.constant 0 : index
    %c0_133 = arith.constant 0 : index
    %173 = vector.load %arg14[%c2_131, %c0_132, %c0_133] : memref<9x4x4xbf16, #tpu.memory_space<vmem>>, vector<1x4x4xbf16>
    %174 = vector.shape_cast %173 : vector<1x4x4xbf16> to vector<4x4xbf16>
    %cst_134 = arith.constant dense<0.000000e+00> : vector<4x256xf32>
    %175 = tpu.matmul %174, %172, %cst_134 {dimension_numbers = #tpu.dot_dimension_numbers<[1], [0], [0], [1], [0, 0, 1, 1], [], []>} : vector<4x4xbf16>, vector<4x256xbf16>, vector<4x256xf32> -> vector<4x256xf32>
    %c0_135 = arith.constant 0 : index
    %c257_136 = arith.constant 257 : index
    %176 = vector.load %arg32[%c0_135, %c257_136] : memref<4x768xbf16, #tpu.memory_space<vmem>>, vector<4x256xbf16>
    %c5_137 = arith.constant 5 : index
    %c0_138 = arith.constant 0 : index
    %c0_139 = arith.constant 0 : index
    %177 = vector.load %arg14[%c5_137, %c0_138, %c0_139] : memref<9x4x4xbf16, #tpu.memory_space<vmem>>, vector<1x4x4xbf16>
    %178 = vector.shape_cast %177 : vector<1x4x4xbf16> to vector<4x4xbf16>
    %cst_140 = arith.constant dense<0.000000e+00> : vector<4x256xf32>
    %179 = tpu.matmul %178, %176, %cst_140 {dimension_numbers = #tpu.dot_dimension_numbers<[1], [0], [0], [1], [0, 0, 1, 1], [], []>} : vector<4x4xbf16>, vector<4x256xbf16>, vector<4x256xf32> -> vector<4x256xf32>
    %180 = arith.addf %175, %179 : vector<4x256xf32>
    %c0_141 = arith.constant 0 : index
    %c273_142 = arith.constant 273 : index
    %181 = vector.load %arg32[%c0_141, %c273_142] : memref<4x768xbf16, #tpu.memory_space<vmem>>, vector<4x256xbf16>
    %c8_143 = arith.constant 8 : index
    %c0_144 = arith.constant 0 : index
    %c0_145 = arith.constant 0 : index
    %182 = vector.load %arg14[%c8_143, %c0_144, %c0_145] : memref<9x4x4xbf16, #tpu.memory_space<vmem>>, vector<1x4x4xbf16>
    %183 = vector.shape_cast %182 : vector<1x4x4xbf16> to vector<4x4xbf16>
    %cst_146 = arith.constant dense<0.000000e+00> : vector<4x256xf32>
    %184 = tpu.matmul %183, %181, %cst_146 {dimension_numbers = #tpu.dot_dimension_numbers<[1], [0], [0], [1], [0, 0, 1, 1], [], []>} : vector<4x4xbf16>, vector<4x256xbf16>, vector<4x256xf32> -> vector<4x256xf32>
    %185 = arith.addf %180, %184 : vector<4x256xf32>
    %cst_147 = arith.constant 0.000000e+00 : f32
    %186 = vector.shape_cast %125 : vector<1x256xi1> to vector<1x256xi1>
    %187 = vector.broadcast %186 : vector<1x256xi1> to vector<4x256xi1>
    %188 = vector.broadcast %cst_147 : f32 to vector<4x256xf32>
    %189 = arith.select %187, %185, %188 : vector<4x256xi1>, vector<4x256xf32>
    %190 = arith.addf %171, %189 : vector<4x256xf32>
    %c0_148 = arith.constant 0 : index
    %c0_149 = arith.constant 0 : index
    %191 = vector.load %arg15[%c0_148, %c0_149] : memref<4x1xf32, #tpu.memory_space<vmem>>, vector<4x1xf32>
    %192 = vector.broadcast %191 : vector<4x1xf32> to vector<4x256xf32>
    %193 = arith.addf %190, %192 : vector<4x256xf32>
    %cst_150 = arith.constant 0.000000e+00 : f32
    %194 = vector.broadcast %cst_150 : f32 to vector<4x256xf32>
    %195 = arith.maximumf %193, %194 : vector<4x256xf32>
    %196 = arith.truncf %195 : vector<4x256xf32> to vector<4x256xbf16>
    %c0_151 = arith.constant 0 : index
    %c256_152 = arith.constant 256 : index
    %197 = vector.load %arg32[%c0_151, %c256_152] : memref<4x768xbf16, #tpu.memory_space<vmem>>, vector<4x256xbf16>
    tpu.vector_store %arg32[%c0_151, %c256_152], %196 {strides = array<i32>} : memref<4x768xbf16, #tpu.memory_space<vmem>>, vector<4x256xbf16>,
    %c0_153 = arith.constant 0 : index
    %c222 = arith.constant 222 : index
    %198 = vector.load %arg32[%c0_153, %c222] : memref<4x768xbf16, #tpu.memory_space<vmem>>, vector<4x256xbf16>
    %c0_154 = arith.constant 0 : index
    %c0_155 = arith.constant 0 : index
    %c0_156 = arith.constant 0 : index
    %199 = vector.load %arg16[%c0_154, %c0_155, %c0_156] : memref<9x4x4xbf16, #tpu.memory_space<vmem>>, vector<1x4x4xbf16>
    %200 = vector.shape_cast %199 : vector<1x4x4xbf16> to vector<4x4xbf16>
    %cst_157 = arith.constant dense<0.000000e+00> : vector<4x256xf32>
    %201 = tpu.matmul %200, %198, %cst_157 {dimension_numbers = #tpu.dot_dimension_numbers<[1], [0], [0], [1], [0, 0, 1, 1], [], []>} : vector<4x4xbf16>, vector<4x256xbf16>, vector<4x256xf32> -> vector<4x256xf32>
    %c0_158 = arith.constant 0 : index
    %c254 = arith.constant 254 : index
    %202 = vector.load %arg32[%c0_158, %c254] : memref<4x768xbf16, #tpu.memory_space<vmem>>, vector<4x256xbf16>
    %c3_159 = arith.constant 3 : index
    %c0_160 = arith.constant 0 : index
    %c0_161 = arith.constant 0 : index
    %203 = vector.load %arg16[%c3_159, %c0_160, %c0_161] : memref<9x4x4xbf16, #tpu.memory_space<vmem>>, vector<1x4x4xbf16>
    %204 = vector.shape_cast %203 : vector<1x4x4xbf16> to vector<4x4xbf16>
    %cst_162 = arith.constant dense<0.000000e+00> : vector<4x256xf32>
    %205 = tpu.matmul %204, %202, %cst_162 {dimension_numbers = #tpu.dot_dimension_numbers<[1], [0], [0], [1], [0, 0, 1, 1], [], []>} : vector<4x4xbf16>, vector<4x256xbf16>, vector<4x256xf32> -> vector<4x256xf32>
    %206 = arith.addf %201, %205 : vector<4x256xf32>
    %c0_163 = arith.constant 0 : index
    %c286 = arith.constant 286 : index
    %207 = vector.load %arg32[%c0_163, %c286] : memref<4x768xbf16, #tpu.memory_space<vmem>>, vector<4x256xbf16>
    %c6_164 = arith.constant 6 : index
    %c0_165 = arith.constant 0 : index
    %c0_166 = arith.constant 0 : index
    %208 = vector.load %arg16[%c6_164, %c0_165, %c0_166] : memref<9x4x4xbf16, #tpu.memory_space<vmem>>, vector<1x4x4xbf16>
    %209 = vector.shape_cast %208 : vector<1x4x4xbf16> to vector<4x4xbf16>
    %cst_167 = arith.constant dense<0.000000e+00> : vector<4x256xf32>
    %210 = tpu.matmul %209, %207, %cst_167 {dimension_numbers = #tpu.dot_dimension_numbers<[1], [0], [0], [1], [0, 0, 1, 1], [], []>} : vector<4x4xbf16>, vector<4x256xbf16>, vector<4x256xf32> -> vector<4x256xf32>
    %211 = arith.addf %206, %210 : vector<4x256xf32>
    %c-2_i32 = arith.constant -2 : i32
    %212 = vector.broadcast %c-2_i32 : i32 to vector<1x256xi32>
    %213 = arith.addi %22, %212 : vector<1x256xi32>
    %c0_i32_168 = arith.constant 0 : i32
    %214 = vector.broadcast %c0_i32_168 : i32 to vector<1x256xi32>
    %215 = arith.cmpi sge, %213, %214 : vector<1x256xi32>
    %c-2_i32_169 = arith.constant -2 : i32
    %216 = vector.broadcast %c-2_i32_169 : i32 to vector<1x256xi32>
    %217 = arith.addi %22, %216 : vector<1x256xi32>
    %c16_i32_170 = arith.constant 16 : i32
    %218 = vector.broadcast %c16_i32_170 : i32 to vector<1x256xi32>
    %219 = arith.cmpi slt, %217, %218 : vector<1x256xi32>
    %220 = arith.andi %215, %219 : vector<1x256xi1>
    %cst_171 = arith.constant 0.000000e+00 : f32
    %221 = vector.shape_cast %220 : vector<1x256xi1> to vector<1x256xi1>
    %222 = vector.broadcast %221 : vector<1x256xi1> to vector<4x256xi1>
    %223 = vector.broadcast %cst_171 : f32 to vector<4x256xf32>
    %224 = arith.select %222, %211, %223 : vector<4x256xi1>, vector<4x256xf32>
    %c0_172 = arith.constant 0 : index
    %c224 = arith.constant 224 : index
    %225 = vector.load %arg32[%c0_172, %c224] : memref<4x768xbf16, #tpu.memory_space<vmem>>, vector<4x256xbf16>
    %c1_173 = arith.constant 1 : index
    %c0_174 = arith.constant 0 : index
    %c0_175 = arith.constant 0 : index
    %226 = vector.load %arg16[%c1_173, %c0_174, %c0_175] : memref<9x4x4xbf16, #tpu.memory_space<vmem>>, vector<1x4x4xbf16>
    %227 = vector.shape_cast %226 : vector<1x4x4xbf16> to vector<4x4xbf16>
    %cst_176 = arith.constant dense<0.000000e+00> : vector<4x256xf32>
    %228 = tpu.matmul %227, %225, %cst_176 {dimension_numbers = #tpu.dot_dimension_numbers<[1], [0], [0], [1], [0, 0, 1, 1], [], []>} : vector<4x4xbf16>, vector<4x256xbf16>, vector<4x256xf32> -> vector<4x256xf32>
    %c0_177 = arith.constant 0 : index
    %c256_178 = arith.constant 256 : index
    %229 = vector.load %arg32[%c0_177, %c256_178] : memref<4x768xbf16, #tpu.memory_space<vmem>>, vector<4x256xbf16>
    %c4_179 = arith.constant 4 : index
    %c0_180 = arith.constant 0 : index
    %c0_181 = arith.constant 0 : index
    %230 = vector.load %arg16[%c4_179, %c0_180, %c0_181] : memref<9x4x4xbf16, #tpu.memory_space<vmem>>, vector<1x4x4xbf16>
    %231 = vector.shape_cast %230 : vector<1x4x4xbf16> to vector<4x4xbf16>
    %cst_182 = arith.constant dense<0.000000e+00> : vector<4x256xf32>
    %232 = tpu.matmul %231, %229, %cst_182 {dimension_numbers = #tpu.dot_dimension_numbers<[1], [0], [0], [1], [0, 0, 1, 1], [], []>} : vector<4x4xbf16>, vector<4x256xbf16>, vector<4x256xf32> -> vector<4x256xf32>
    %233 = arith.addf %228, %232 : vector<4x256xf32>
    %c0_183 = arith.constant 0 : index
    %c288 = arith.constant 288 : index
    %234 = vector.load %arg32[%c0_183, %c288] : memref<4x768xbf16, #tpu.memory_space<vmem>>, vector<4x256xbf16>
    %c7_184 = arith.constant 7 : index
    %c0_185 = arith.constant 0 : index
    %c0_186 = arith.constant 0 : index
    %235 = vector.load %arg16[%c7_184, %c0_185, %c0_186] : memref<9x4x4xbf16, #tpu.memory_space<vmem>>, vector<1x4x4xbf16>
    %236 = vector.shape_cast %235 : vector<1x4x4xbf16> to vector<4x4xbf16>
    %cst_187 = arith.constant dense<0.000000e+00> : vector<4x256xf32>
    %237 = tpu.matmul %236, %234, %cst_187 {dimension_numbers = #tpu.dot_dimension_numbers<[1], [0], [0], [1], [0, 0, 1, 1], [], []>} : vector<4x4xbf16>, vector<4x256xbf16>, vector<4x256xf32> -> vector<4x256xf32>
    %238 = arith.addf %233, %237 : vector<4x256xf32>
    %239 = arith.addf %224, %238 : vector<4x256xf32>
    %c0_188 = arith.constant 0 : index
    %c226 = arith.constant 226 : index
    %240 = vector.load %arg32[%c0_188, %c226] : memref<4x768xbf16, #tpu.memory_space<vmem>>, vector<4x256xbf16>
    %c2_189 = arith.constant 2 : index
    %c0_190 = arith.constant 0 : index
    %c0_191 = arith.constant 0 : index
    %241 = vector.load %arg16[%c2_189, %c0_190, %c0_191] : memref<9x4x4xbf16, #tpu.memory_space<vmem>>, vector<1x4x4xbf16>
    %242 = vector.shape_cast %241 : vector<1x4x4xbf16> to vector<4x4xbf16>
    %cst_192 = arith.constant dense<0.000000e+00> : vector<4x256xf32>
    %243 = tpu.matmul %242, %240, %cst_192 {dimension_numbers = #tpu.dot_dimension_numbers<[1], [0], [0], [1], [0, 0, 1, 1], [], []>} : vector<4x4xbf16>, vector<4x256xbf16>, vector<4x256xf32> -> vector<4x256xf32>
    %c0_193 = arith.constant 0 : index
    %c258 = arith.constant 258 : index
    %244 = vector.load %arg32[%c0_193, %c258] : memref<4x768xbf16, #tpu.memory_space<vmem>>, vector<4x256xbf16>
    %c5_194 = arith.constant 5 : index
    %c0_195 = arith.constant 0 : index
    %c0_196 = arith.constant 0 : index
    %245 = vector.load %arg16[%c5_194, %c0_195, %c0_196] : memref<9x4x4xbf16, #tpu.memory_space<vmem>>, vector<1x4x4xbf16>
    %246 = vector.shape_cast %245 : vector<1x4x4xbf16> to vector<4x4xbf16>
    %cst_197 = arith.constant dense<0.000000e+00> : vector<4x256xf32>
    %247 = tpu.matmul %246, %244, %cst_197 {dimension_numbers = #tpu.dot_dimension_numbers<[1], [0], [0], [1], [0, 0, 1, 1], [], []>} : vector<4x4xbf16>, vector<4x256xbf16>, vector<4x256xf32> -> vector<4x256xf32>
    %248 = arith.addf %243, %247 : vector<4x256xf32>
    %c0_198 = arith.constant 0 : index
    %c290 = arith.constant 290 : index
    %249 = vector.load %arg32[%c0_198, %c290] : memref<4x768xbf16, #tpu.memory_space<vmem>>, vector<4x256xbf16>
    %c8_199 = arith.constant 8 : index
    %c0_200 = arith.constant 0 : index
    %c0_201 = arith.constant 0 : index
    %250 = vector.load %arg16[%c8_199, %c0_200, %c0_201] : memref<9x4x4xbf16, #tpu.memory_space<vmem>>, vector<1x4x4xbf16>
    %251 = vector.shape_cast %250 : vector<1x4x4xbf16> to vector<4x4xbf16>
    %cst_202 = arith.constant dense<0.000000e+00> : vector<4x256xf32>
    %252 = tpu.matmul %251, %249, %cst_202 {dimension_numbers = #tpu.dot_dimension_numbers<[1], [0], [0], [1], [0, 0, 1, 1], [], []>} : vector<4x4xbf16>, vector<4x256xbf16>, vector<4x256xf32> -> vector<4x256xf32>
    %253 = arith.addf %248, %252 : vector<4x256xf32>
    %c2_i32 = arith.constant 2 : i32
    %254 = vector.broadcast %c2_i32 : i32 to vector<1x256xi32>
    %255 = arith.addi %22, %254 : vector<1x256xi32>
    %c0_i32_203 = arith.constant 0 : i32
    %256 = vector.broadcast %c0_i32_203 : i32 to vector<1x256xi32>
    %257 = arith.cmpi sge, %255, %256 : vector<1x256xi32>
    %c2_i32_204 = arith.constant 2 : i32
    %258 = vector.broadcast %c2_i32_204 : i32 to vector<1x256xi32>
    %259 = arith.addi %22, %258 : vector<1x256xi32>
    %c16_i32_205 = arith.constant 16 : i32
    %260 = vector.broadcast %c16_i32_205 : i32 to vector<1x256xi32>
    %261 = arith.cmpi slt, %259, %260 : vector<1x256xi32>
    %262 = arith.andi %257, %261 : vector<1x256xi1>
    %cst_206 = arith.constant 0.000000e+00 : f32
    %263 = vector.shape_cast %262 : vector<1x256xi1> to vector<1x256xi1>
    %264 = vector.broadcast %263 : vector<1x256xi1> to vector<4x256xi1>
    %265 = vector.broadcast %cst_206 : f32 to vector<4x256xf32>
    %266 = arith.select %264, %253, %265 : vector<4x256xi1>, vector<4x256xf32>
    %267 = arith.addf %239, %266 : vector<4x256xf32>
    %c0_207 = arith.constant 0 : index
    %c0_208 = arith.constant 0 : index
    %268 = vector.load %arg17[%c0_207, %c0_208] : memref<4x1xf32, #tpu.memory_space<vmem>>, vector<4x1xf32>
    %269 = vector.broadcast %268 : vector<4x1xf32> to vector<4x256xf32>
    %270 = arith.addf %267, %269 : vector<4x256xf32>
    %cst_209 = arith.constant 0.000000e+00 : f32
    %271 = vector.broadcast %cst_209 : f32 to vector<4x256xf32>
    %272 = arith.maximumf %270, %271 : vector<4x256xf32>
    %273 = arith.addf %43, %272 : vector<4x256xf32>
    %274 = arith.truncf %273 : vector<4x256xf32> to vector<4x256xbf16>
    %c0_210 = arith.constant 0 : index
    %c256_211 = arith.constant 256 : index
    %275 = vector.load %arg32[%c0_210, %c256_211] : memref<4x768xbf16, #tpu.memory_space<vmem>>, vector<4x256xbf16>
    tpu.vector_store %arg32[%c0_210, %c256_211], %274 {strides = array<i32>} : memref<4x768xbf16, #tpu.memory_space<vmem>>, vector<4x256xbf16>,
    %c0_212 = arith.constant 0 : index
    %c222_213 = arith.constant 222 : index
    %276 = vector.load %arg32[%c0_212, %c222_213] : memref<4x768xbf16, #tpu.memory_space<vmem>>, vector<4x256xbf16>
    %c0_214 = arith.constant 0 : index
    %c0_215 = arith.constant 0 : index
    %c0_216 = arith.constant 0 : index
    %277 = vector.load %arg18[%c0_214, %c0_215, %c0_216] : memref<25x4x4xbf16, #tpu.memory_space<vmem>>, vector<1x4x4xbf16>
    %278 = vector.shape_cast %277 : vector<1x4x4xbf16> to vector<4x4xbf16>
    %cst_217 = arith.constant dense<0.000000e+00> : vector<4x256xf32>
    %279 = tpu.matmul %278, %276, %cst_217 {dimension_numbers = #tpu.dot_dimension_numbers<[1], [0], [0], [1], [0, 0, 1, 1], [], []>} : vector<4x4xbf16>, vector<4x256xbf16>, vector<4x256xf32> -> vector<4x256xf32>
    %c0_218 = arith.constant 0 : index
    %c238 = arith.constant 238 : index
    %280 = vector.load %arg32[%c0_218, %c238] : memref<4x768xbf16, #tpu.memory_space<vmem>>, vector<4x256xbf16>
    %c5_219 = arith.constant 5 : index
    %c0_220 = arith.constant 0 : index
    %c0_221 = arith.constant 0 : index
    %281 = vector.load %arg18[%c5_219, %c0_220, %c0_221] : memref<25x4x4xbf16, #tpu.memory_space<vmem>>, vector<1x4x4xbf16>
    %282 = vector.shape_cast %281 : vector<1x4x4xbf16> to vector<4x4xbf16>
    %cst_222 = arith.constant dense<0.000000e+00> : vector<4x256xf32>
    %283 = tpu.matmul %282, %280, %cst_222 {dimension_numbers = #tpu.dot_dimension_numbers<[1], [0], [0], [1], [0, 0, 1, 1], [], []>} : vector<4x4xbf16>, vector<4x256xbf16>, vector<4x256xf32> -> vector<4x256xf32>
    %284 = arith.addf %279, %283 : vector<4x256xf32>
    %c0_223 = arith.constant 0 : index
    %c254_224 = arith.constant 254 : index
    %285 = vector.load %arg32[%c0_223, %c254_224] : memref<4x768xbf16, #tpu.memory_space<vmem>>, vector<4x256xbf16>
    %c10 = arith.constant 10 : index
    %c0_225 = arith.constant 0 : index
    %c0_226 = arith.constant 0 : index
    %286 = vector.load %arg18[%c10, %c0_225, %c0_226] : memref<25x4x4xbf16, #tpu.memory_space<vmem>>, vector<1x4x4xbf16>
    %287 = vector.shape_cast %286 : vector<1x4x4xbf16> to vector<4x4xbf16>
    %cst_227 = arith.constant dense<0.000000e+00> : vector<4x256xf32>
    %288 = tpu.matmul %287, %285, %cst_227 {dimension_numbers = #tpu.dot_dimension_numbers<[1], [0], [0], [1], [0, 0, 1, 1], [], []>} : vector<4x4xbf16>, vector<4x256xbf16>, vector<4x256xf32> -> vector<4x256xf32>
    %289 = arith.addf %284, %288 : vector<4x256xf32>
    %c0_228 = arith.constant 0 : index
    %c270 = arith.constant 270 : index
    %290 = vector.load %arg32[%c0_228, %c270] : memref<4x768xbf16, #tpu.memory_space<vmem>>, vector<4x256xbf16>
    %c15 = arith.constant 15 : index
    %c0_229 = arith.constant 0 : index
    %c0_230 = arith.constant 0 : index
    %291 = vector.load %arg18[%c15, %c0_229, %c0_230] : memref<25x4x4xbf16, #tpu.memory_space<vmem>>, vector<1x4x4xbf16>
    %292 = vector.shape_cast %291 : vector<1x4x4xbf16> to vector<4x4xbf16>
    %cst_231 = arith.constant dense<0.000000e+00> : vector<4x256xf32>
    %293 = tpu.matmul %292, %290, %cst_231 {dimension_numbers = #tpu.dot_dimension_numbers<[1], [0], [0], [1], [0, 0, 1, 1], [], []>} : vector<4x4xbf16>, vector<4x256xbf16>, vector<4x256xf32> -> vector<4x256xf32>
    %294 = arith.addf %289, %293 : vector<4x256xf32>
    %c0_232 = arith.constant 0 : index
    %c286_233 = arith.constant 286 : index
    %295 = vector.load %arg32[%c0_232, %c286_233] : memref<4x768xbf16, #tpu.memory_space<vmem>>, vector<4x256xbf16>
    %c20 = arith.constant 20 : index
    %c0_234 = arith.constant 0 : index
    %c0_235 = arith.constant 0 : index
    %296 = vector.load %arg18[%c20, %c0_234, %c0_235] : memref<25x4x4xbf16, #tpu.memory_space<vmem>>, vector<1x4x4xbf16>
    %297 = vector.shape_cast %296 : vector<1x4x4xbf16> to vector<4x4xbf16>
    %cst_236 = arith.constant dense<0.000000e+00> : vector<4x256xf32>
    %298 = tpu.matmul %297, %295, %cst_236 {dimension_numbers = #tpu.dot_dimension_numbers<[1], [0], [0], [1], [0, 0, 1, 1], [], []>} : vector<4x4xbf16>, vector<4x256xbf16>, vector<4x256xf32> -> vector<4x256xf32>
    %299 = arith.addf %294, %298 : vector<4x256xf32>
    %cst_237 = arith.constant 0.000000e+00 : f32
    %300 = vector.shape_cast %220 : vector<1x256xi1> to vector<1x256xi1>
    %301 = vector.broadcast %300 : vector<1x256xi1> to vector<4x256xi1>
    %302 = vector.broadcast %cst_237 : f32 to vector<4x256xf32>
    %303 = arith.select %301, %299, %302 : vector<4x256xi1>, vector<4x256xf32>
    %c0_238 = arith.constant 0 : index
    %c223 = arith.constant 223 : index
    %304 = vector.load %arg32[%c0_238, %c223] : memref<4x768xbf16, #tpu.memory_space<vmem>>, vector<4x256xbf16>
    %c1_239 = arith.constant 1 : index
    %c0_240 = arith.constant 0 : index
    %c0_241 = arith.constant 0 : index
    %305 = vector.load %arg18[%c1_239, %c0_240, %c0_241] : memref<25x4x4xbf16, #tpu.memory_space<vmem>>, vector<1x4x4xbf16>
    %306 = vector.shape_cast %305 : vector<1x4x4xbf16> to vector<4x4xbf16>
    %cst_242 = arith.constant dense<0.000000e+00> : vector<4x256xf32>
    %307 = tpu.matmul %306, %304, %cst_242 {dimension_numbers = #tpu.dot_dimension_numbers<[1], [0], [0], [1], [0, 0, 1, 1], [], []>} : vector<4x4xbf16>, vector<4x256xbf16>, vector<4x256xf32> -> vector<4x256xf32>
    %c0_243 = arith.constant 0 : index
    %c239_244 = arith.constant 239 : index
    %308 = vector.load %arg32[%c0_243, %c239_244] : memref<4x768xbf16, #tpu.memory_space<vmem>>, vector<4x256xbf16>
    %c6_245 = arith.constant 6 : index
    %c0_246 = arith.constant 0 : index
    %c0_247 = arith.constant 0 : index
    %309 = vector.load %arg18[%c6_245, %c0_246, %c0_247] : memref<25x4x4xbf16, #tpu.memory_space<vmem>>, vector<1x4x4xbf16>
    %310 = vector.shape_cast %309 : vector<1x4x4xbf16> to vector<4x4xbf16>
    %cst_248 = arith.constant dense<0.000000e+00> : vector<4x256xf32>
    %311 = tpu.matmul %310, %308, %cst_248 {dimension_numbers = #tpu.dot_dimension_numbers<[1], [0], [0], [1], [0, 0, 1, 1], [], []>} : vector<4x4xbf16>, vector<4x256xbf16>, vector<4x256xf32> -> vector<4x256xf32>
    %312 = arith.addf %307, %311 : vector<4x256xf32>
    %c0_249 = arith.constant 0 : index
    %c255_250 = arith.constant 255 : index
    %313 = vector.load %arg32[%c0_249, %c255_250] : memref<4x768xbf16, #tpu.memory_space<vmem>>, vector<4x256xbf16>
    %c11 = arith.constant 11 : index
    %c0_251 = arith.constant 0 : index
    %c0_252 = arith.constant 0 : index
    %314 = vector.load %arg18[%c11, %c0_251, %c0_252] : memref<25x4x4xbf16, #tpu.memory_space<vmem>>, vector<1x4x4xbf16>
    %315 = vector.shape_cast %314 : vector<1x4x4xbf16> to vector<4x4xbf16>
    %cst_253 = arith.constant dense<0.000000e+00> : vector<4x256xf32>
    %316 = tpu.matmul %315, %313, %cst_253 {dimension_numbers = #tpu.dot_dimension_numbers<[1], [0], [0], [1], [0, 0, 1, 1], [], []>} : vector<4x4xbf16>, vector<4x256xbf16>, vector<4x256xf32> -> vector<4x256xf32>
    %317 = arith.addf %312, %316 : vector<4x256xf32>
    %c0_254 = arith.constant 0 : index
    %c271_255 = arith.constant 271 : index
    %318 = vector.load %arg32[%c0_254, %c271_255] : memref<4x768xbf16, #tpu.memory_space<vmem>>, vector<4x256xbf16>
    %c16 = arith.constant 16 : index
    %c0_256 = arith.constant 0 : index
    %c0_257 = arith.constant 0 : index
    %319 = vector.load %arg18[%c16, %c0_256, %c0_257] : memref<25x4x4xbf16, #tpu.memory_space<vmem>>, vector<1x4x4xbf16>
    %320 = vector.shape_cast %319 : vector<1x4x4xbf16> to vector<4x4xbf16>
    %cst_258 = arith.constant dense<0.000000e+00> : vector<4x256xf32>
    %321 = tpu.matmul %320, %318, %cst_258 {dimension_numbers = #tpu.dot_dimension_numbers<[1], [0], [0], [1], [0, 0, 1, 1], [], []>} : vector<4x4xbf16>, vector<4x256xbf16>, vector<4x256xf32> -> vector<4x256xf32>
    %322 = arith.addf %317, %321 : vector<4x256xf32>
    %c0_259 = arith.constant 0 : index
    %c287 = arith.constant 287 : index
    %323 = vector.load %arg32[%c0_259, %c287] : memref<4x768xbf16, #tpu.memory_space<vmem>>, vector<4x256xbf16>
    %c21 = arith.constant 21 : index
    %c0_260 = arith.constant 0 : index
    %c0_261 = arith.constant 0 : index
    %324 = vector.load %arg18[%c21, %c0_260, %c0_261] : memref<25x4x4xbf16, #tpu.memory_space<vmem>>, vector<1x4x4xbf16>
    %325 = vector.shape_cast %324 : vector<1x4x4xbf16> to vector<4x4xbf16>
    %cst_262 = arith.constant dense<0.000000e+00> : vector<4x256xf32>
    %326 = tpu.matmul %325, %323, %cst_262 {dimension_numbers = #tpu.dot_dimension_numbers<[1], [0], [0], [1], [0, 0, 1, 1], [], []>} : vector<4x4xbf16>, vector<4x256xbf16>, vector<4x256xf32> -> vector<4x256xf32>
    %327 = arith.addf %322, %326 : vector<4x256xf32>
    %cst_263 = arith.constant 0.000000e+00 : f32
    %328 = vector.shape_cast %83 : vector<1x256xi1> to vector<1x256xi1>
    %329 = vector.broadcast %328 : vector<1x256xi1> to vector<4x256xi1>
    %330 = vector.broadcast %cst_263 : f32 to vector<4x256xf32>
    %331 = arith.select %329, %327, %330 : vector<4x256xi1>, vector<4x256xf32>
    %332 = arith.addf %303, %331 : vector<4x256xf32>
    %c0_264 = arith.constant 0 : index
    %c224_265 = arith.constant 224 : index
    %333 = vector.load %arg32[%c0_264, %c224_265] : memref<4x768xbf16, #tpu.memory_space<vmem>>, vector<4x256xbf16>
    %c2_266 = arith.constant 2 : index
    %c0_267 = arith.constant 0 : index
    %c0_268 = arith.constant 0 : index
    %334 = vector.load %arg18[%c2_266, %c0_267, %c0_268] : memref<25x4x4xbf16, #tpu.memory_space<vmem>>, vector<1x4x4xbf16>
    %335 = vector.shape_cast %334 : vector<1x4x4xbf16> to vector<4x4xbf16>
    %cst_269 = arith.constant dense<0.000000e+00> : vector<4x256xf32>
    %336 = tpu.matmul %335, %333, %cst_269 {dimension_numbers = #tpu.dot_dimension_numbers<[1], [0], [0], [1], [0, 0, 1, 1], [], []>} : vector<4x4xbf16>, vector<4x256xbf16>, vector<4x256xf32> -> vector<4x256xf32>
    %c0_270 = arith.constant 0 : index
    %c240_271 = arith.constant 240 : index
    %337 = vector.load %arg32[%c0_270, %c240_271] : memref<4x768xbf16, #tpu.memory_space<vmem>>, vector<4x256xbf16>
    %c7_272 = arith.constant 7 : index
    %c0_273 = arith.constant 0 : index
    %c0_274 = arith.constant 0 : index
    %338 = vector.load %arg18[%c7_272, %c0_273, %c0_274] : memref<25x4x4xbf16, #tpu.memory_space<vmem>>, vector<1x4x4xbf16>
    %339 = vector.shape_cast %338 : vector<1x4x4xbf16> to vector<4x4xbf16>
    %cst_275 = arith.constant dense<0.000000e+00> : vector<4x256xf32>
    %340 = tpu.matmul %339, %337, %cst_275 {dimension_numbers = #tpu.dot_dimension_numbers<[1], [0], [0], [1], [0, 0, 1, 1], [], []>} : vector<4x4xbf16>, vector<4x256xbf16>, vector<4x256xf32> -> vector<4x256xf32>
    %341 = arith.addf %336, %340 : vector<4x256xf32>
    %c0_276 = arith.constant 0 : index
    %c256_277 = arith.constant 256 : index
    %342 = vector.load %arg32[%c0_276, %c256_277] : memref<4x768xbf16, #tpu.memory_space<vmem>>, vector<4x256xbf16>
    %c12 = arith.constant 12 : index
    %c0_278 = arith.constant 0 : index
    %c0_279 = arith.constant 0 : index
    %343 = vector.load %arg18[%c12, %c0_278, %c0_279] : memref<25x4x4xbf16, #tpu.memory_space<vmem>>, vector<1x4x4xbf16>
    %344 = vector.shape_cast %343 : vector<1x4x4xbf16> to vector<4x4xbf16>
    %cst_280 = arith.constant dense<0.000000e+00> : vector<4x256xf32>
    %345 = tpu.matmul %344, %342, %cst_280 {dimension_numbers = #tpu.dot_dimension_numbers<[1], [0], [0], [1], [0, 0, 1, 1], [], []>} : vector<4x4xbf16>, vector<4x256xbf16>, vector<4x256xf32> -> vector<4x256xf32>
    %346 = arith.addf %341, %345 : vector<4x256xf32>
    %c0_281 = arith.constant 0 : index
    %c272_282 = arith.constant 272 : index
    %347 = vector.load %arg32[%c0_281, %c272_282] : memref<4x768xbf16, #tpu.memory_space<vmem>>, vector<4x256xbf16>
    %c17 = arith.constant 17 : index
    %c0_283 = arith.constant 0 : index
    %c0_284 = arith.constant 0 : index
    %348 = vector.load %arg18[%c17, %c0_283, %c0_284] : memref<25x4x4xbf16, #tpu.memory_space<vmem>>, vector<1x4x4xbf16>
    %349 = vector.shape_cast %348 : vector<1x4x4xbf16> to vector<4x4xbf16>
    %cst_285 = arith.constant dense<0.000000e+00> : vector<4x256xf32>
    %350 = tpu.matmul %349, %347, %cst_285 {dimension_numbers = #tpu.dot_dimension_numbers<[1], [0], [0], [1], [0, 0, 1, 1], [], []>} : vector<4x4xbf16>, vector<4x256xbf16>, vector<4x256xf32> -> vector<4x256xf32>
    %351 = arith.addf %346, %350 : vector<4x256xf32>
    %c0_286 = arith.constant 0 : index
    %c288_287 = arith.constant 288 : index
    %352 = vector.load %arg32[%c0_286, %c288_287] : memref<4x768xbf16, #tpu.memory_space<vmem>>, vector<4x256xbf16>
    %c22 = arith.constant 22 : index
    %c0_288 = arith.constant 0 : index
    %c0_289 = arith.constant 0 : index
    %353 = vector.load %arg18[%c22, %c0_288, %c0_289] : memref<25x4x4xbf16, #tpu.memory_space<vmem>>, vector<1x4x4xbf16>
    %354 = vector.shape_cast %353 : vector<1x4x4xbf16> to vector<4x4xbf16>
    %cst_290 = arith.constant dense<0.000000e+00> : vector<4x256xf32>
    %355 = tpu.matmul %354, %352, %cst_290 {dimension_numbers = #tpu.dot_dimension_numbers<[1], [0], [0], [1], [0, 0, 1, 1], [], []>} : vector<4x4xbf16>, vector<4x256xbf16>, vector<4x256xf32> -> vector<4x256xf32>
    %356 = arith.addf %351, %355 : vector<4x256xf32>
    %357 = arith.addf %332, %356 : vector<4x256xf32>
    %c0_291 = arith.constant 0 : index
    %c225 = arith.constant 225 : index
    %358 = vector.load %arg32[%c0_291, %c225] : memref<4x768xbf16, #tpu.memory_space<vmem>>, vector<4x256xbf16>
    %c3_292 = arith.constant 3 : index
    %c0_293 = arith.constant 0 : index
    %c0_294 = arith.constant 0 : index
    %359 = vector.load %arg18[%c3_292, %c0_293, %c0_294] : memref<25x4x4xbf16, #tpu.memory_space<vmem>>, vector<1x4x4xbf16>
    %360 = vector.shape_cast %359 : vector<1x4x4xbf16> to vector<4x4xbf16>
    %cst_295 = arith.constant dense<0.000000e+00> : vector<4x256xf32>
    %361 = tpu.matmul %360, %358, %cst_295 {dimension_numbers = #tpu.dot_dimension_numbers<[1], [0], [0], [1], [0, 0, 1, 1], [], []>} : vector<4x4xbf16>, vector<4x256xbf16>, vector<4x256xf32> -> vector<4x256xf32>
    %c0_296 = arith.constant 0 : index
    %c241_297 = arith.constant 241 : index
    %362 = vector.load %arg32[%c0_296, %c241_297] : memref<4x768xbf16, #tpu.memory_space<vmem>>, vector<4x256xbf16>
    %c8_298 = arith.constant 8 : index
    %c0_299 = arith.constant 0 : index
    %c0_300 = arith.constant 0 : index
    %363 = vector.load %arg18[%c8_298, %c0_299, %c0_300] : memref<25x4x4xbf16, #tpu.memory_space<vmem>>, vector<1x4x4xbf16>
    %364 = vector.shape_cast %363 : vector<1x4x4xbf16> to vector<4x4xbf16>
    %cst_301 = arith.constant dense<0.000000e+00> : vector<4x256xf32>
    %365 = tpu.matmul %364, %362, %cst_301 {dimension_numbers = #tpu.dot_dimension_numbers<[1], [0], [0], [1], [0, 0, 1, 1], [], []>} : vector<4x4xbf16>, vector<4x256xbf16>, vector<4x256xf32> -> vector<4x256xf32>
    %366 = arith.addf %361, %365 : vector<4x256xf32>
    %c0_302 = arith.constant 0 : index
    %c257_303 = arith.constant 257 : index
    %367 = vector.load %arg32[%c0_302, %c257_303] : memref<4x768xbf16, #tpu.memory_space<vmem>>, vector<4x256xbf16>
    %c13 = arith.constant 13 : index
    %c0_304 = arith.constant 0 : index
    %c0_305 = arith.constant 0 : index
    %368 = vector.load %arg18[%c13, %c0_304, %c0_305] : memref<25x4x4xbf16, #tpu.memory_space<vmem>>, vector<1x4x4xbf16>
    %369 = vector.shape_cast %368 : vector<1x4x4xbf16> to vector<4x4xbf16>
    %cst_306 = arith.constant dense<0.000000e+00> : vector<4x256xf32>
    %370 = tpu.matmul %369, %367, %cst_306 {dimension_numbers = #tpu.dot_dimension_numbers<[1], [0], [0], [1], [0, 0, 1, 1], [], []>} : vector<4x4xbf16>, vector<4x256xbf16>, vector<4x256xf32> -> vector<4x256xf32>
    %371 = arith.addf %366, %370 : vector<4x256xf32>
    %c0_307 = arith.constant 0 : index
    %c273_308 = arith.constant 273 : index
    %372 = vector.load %arg32[%c0_307, %c273_308] : memref<4x768xbf16, #tpu.memory_space<vmem>>, vector<4x256xbf16>
    %c18 = arith.constant 18 : index
    %c0_309 = arith.constant 0 : index
    %c0_310 = arith.constant 0 : index
    %373 = vector.load %arg18[%c18, %c0_309, %c0_310] : memref<25x4x4xbf16, #tpu.memory_space<vmem>>, vector<1x4x4xbf16>
    %374 = vector.shape_cast %373 : vector<1x4x4xbf16> to vector<4x4xbf16>
    %cst_311 = arith.constant dense<0.000000e+00> : vector<4x256xf32>
    %375 = tpu.matmul %374, %372, %cst_311 {dimension_numbers = #tpu.dot_dimension_numbers<[1], [0], [0], [1], [0, 0, 1, 1], [], []>} : vector<4x4xbf16>, vector<4x256xbf16>, vector<4x256xf32> -> vector<4x256xf32>
    %376 = arith.addf %371, %375 : vector<4x256xf32>
    %c0_312 = arith.constant 0 : index
    %c289 = arith.constant 289 : index
    %377 = vector.load %arg32[%c0_312, %c289] : memref<4x768xbf16, #tpu.memory_space<vmem>>, vector<4x256xbf16>
    %c23 = arith.constant 23 : index
    %c0_313 = arith.constant 0 : index
    %c0_314 = arith.constant 0 : index
    %378 = vector.load %arg18[%c23, %c0_313, %c0_314] : memref<25x4x4xbf16, #tpu.memory_space<vmem>>, vector<1x4x4xbf16>
    %379 = vector.shape_cast %378 : vector<1x4x4xbf16> to vector<4x4xbf16>
    %cst_315 = arith.constant dense<0.000000e+00> : vector<4x256xf32>
    %380 = tpu.matmul %379, %377, %cst_315 {dimension_numbers = #tpu.dot_dimension_numbers<[1], [0], [0], [1], [0, 0, 1, 1], [], []>} : vector<4x4xbf16>, vector<4x256xbf16>, vector<4x256xf32> -> vector<4x256xf32>
    %381 = arith.addf %376, %380 : vector<4x256xf32>
    %cst_316 = arith.constant 0.000000e+00 : f32
    %382 = vector.shape_cast %125 : vector<1x256xi1> to vector<1x256xi1>
    %383 = vector.broadcast %382 : vector<1x256xi1> to vector<4x256xi1>
    %384 = vector.broadcast %cst_316 : f32 to vector<4x256xf32>
    %385 = arith.select %383, %381, %384 : vector<4x256xi1>, vector<4x256xf32>
    %386 = arith.addf %357, %385 : vector<4x256xf32>
    %c0_317 = arith.constant 0 : index
    %c226_318 = arith.constant 226 : index
    %387 = vector.load %arg32[%c0_317, %c226_318] : memref<4x768xbf16, #tpu.memory_space<vmem>>, vector<4x256xbf16>
    %c4_319 = arith.constant 4 : index
    %c0_320 = arith.constant 0 : index
    %c0_321 = arith.constant 0 : index
    %388 = vector.load %arg18[%c4_319, %c0_320, %c0_321] : memref<25x4x4xbf16, #tpu.memory_space<vmem>>, vector<1x4x4xbf16>
    %389 = vector.shape_cast %388 : vector<1x4x4xbf16> to vector<4x4xbf16>
    %cst_322 = arith.constant dense<0.000000e+00> : vector<4x256xf32>
    %390 = tpu.matmul %389, %387, %cst_322 {dimension_numbers = #tpu.dot_dimension_numbers<[1], [0], [0], [1], [0, 0, 1, 1], [], []>} : vector<4x4xbf16>, vector<4x256xbf16>, vector<4x256xf32> -> vector<4x256xf32>
    %c0_323 = arith.constant 0 : index
    %c242 = arith.constant 242 : index
    %391 = vector.load %arg32[%c0_323, %c242] : memref<4x768xbf16, #tpu.memory_space<vmem>>, vector<4x256xbf16>
    %c9 = arith.constant 9 : index
    %c0_324 = arith.constant 0 : index
    %c0_325 = arith.constant 0 : index
    %392 = vector.load %arg18[%c9, %c0_324, %c0_325] : memref<25x4x4xbf16, #tpu.memory_space<vmem>>, vector<1x4x4xbf16>
    %393 = vector.shape_cast %392 : vector<1x4x4xbf16> to vector<4x4xbf16>
    %cst_326 = arith.constant dense<0.000000e+00> : vector<4x256xf32>
    %394 = tpu.matmul %393, %391, %cst_326 {dimension_numbers = #tpu.dot_dimension_numbers<[1], [0], [0], [1], [0, 0, 1, 1], [], []>} : vector<4x4xbf16>, vector<4x256xbf16>, vector<4x256xf32> -> vector<4x256xf32>
    %395 = arith.addf %390, %394 : vector<4x256xf32>
    %c0_327 = arith.constant 0 : index
    %c258_328 = arith.constant 258 : index
    %396 = vector.load %arg32[%c0_327, %c258_328] : memref<4x768xbf16, #tpu.memory_space<vmem>>, vector<4x256xbf16>
    %c14 = arith.constant 14 : index
    %c0_329 = arith.constant 0 : index
    %c0_330 = arith.constant 0 : index
    %397 = vector.load %arg18[%c14, %c0_329, %c0_330] : memref<25x4x4xbf16, #tpu.memory_space<vmem>>, vector<1x4x4xbf16>
    %398 = vector.shape_cast %397 : vector<1x4x4xbf16> to vector<4x4xbf16>
    %cst_331 = arith.constant dense<0.000000e+00> : vector<4x256xf32>
    %399 = tpu.matmul %398, %396, %cst_331 {dimension_numbers = #tpu.dot_dimension_numbers<[1], [0], [0], [1], [0, 0, 1, 1], [], []>} : vector<4x4xbf16>, vector<4x256xbf16>, vector<4x256xf32> -> vector<4x256xf32>
    %400 = arith.addf %395, %399 : vector<4x256xf32>
    %c0_332 = arith.constant 0 : index
    %c274 = arith.constant 274 : index
    %401 = vector.load %arg32[%c0_332, %c274] : memref<4x768xbf16, #tpu.memory_space<vmem>>, vector<4x256xbf16>
    %c19 = arith.constant 19 : index
    %c0_333 = arith.constant 0 : index
    %c0_334 = arith.constant 0 : index
    %402 = vector.load %arg18[%c19, %c0_333, %c0_334] : memref<25x4x4xbf16, #tpu.memory_space<vmem>>, vector<1x4x4xbf16>
    %403 = vector.shape_cast %402 : vector<1x4x4xbf16> to vector<4x4xbf16>
    %cst_335 = arith.constant dense<0.000000e+00> : vector<4x256xf32>
    %404 = tpu.matmul %403, %401, %cst_335 {dimension_numbers = #tpu.dot_dimension_numbers<[1], [0], [0], [1], [0, 0, 1, 1], [], []>} : vector<4x4xbf16>, vector<4x256xbf16>, vector<4x256xf32> -> vector<4x256xf32>
    %405 = arith.addf %400, %404 : vector<4x256xf32>
    %c0_336 = arith.constant 0 : index
    %c290_337 = arith.constant 290 : index
    %406 = vector.load %arg32[%c0_336, %c290_337] : memref<4x768xbf16, #tpu.memory_space<vmem>>, vector<4x256xbf16>
    %c24 = arith.constant 24 : index
    %c0_338 = arith.constant 0 : index
    %c0_339 = arith.constant 0 : index
    %407 = vector.load %arg18[%c24, %c0_338, %c0_339] : memref<25x4x4xbf16, #tpu.memory_space<vmem>>, vector<1x4x4xbf16>
    %408 = vector.shape_cast %407 : vector<1x4x4xbf16> to vector<4x4xbf16>
    %cst_340 = arith.constant dense<0.000000e+00> : vector<4x256xf32>
    %409 = tpu.matmul %408, %406, %cst_340 {dimension_numbers = #tpu.dot_dimension_numbers<[1], [0], [0], [1], [0, 0, 1, 1], [], []>} : vector<4x4xbf16>, vector<4x256xbf16>, vector<4x256xf32> -> vector<4x256xf32>
    %410 = arith.addf %405, %409 : vector<4x256xf32>
    %cst_341 = arith.constant 0.000000e+00 : f32
    %411 = vector.shape_cast %262 : vector<1x256xi1> to vector<1x256xi1>
    %412 = vector.broadcast %411 : vector<1x256xi1> to vector<4x256xi1>
    %413 = vector.broadcast %cst_341 : f32 to vector<4x256xf32>
    %414 = arith.select %412, %410, %413 : vector<4x256xi1>, vector<4x256xf32>
    %415 = arith.addf %386, %414 : vector<4x256xf32>
    %c0_342 = arith.constant 0 : index
    %c0_343 = arith.constant 0 : index
    %416 = vector.load %arg19[%c0_342, %c0_343] : memref<4x1xf32, #tpu.memory_space<vmem>>, vector<4x1xf32>
    %417 = vector.broadcast %416 : vector<4x1xf32> to vector<4x256xf32>
    %418 = arith.addf %415, %417 : vector<4x256xf32>
    %cst_344 = arith.constant 0.000000e+00 : f32
    %419 = vector.broadcast %cst_344 : f32 to vector<4x256xf32>
    %420 = arith.maximumf %418, %419 : vector<4x256xf32>
    %421 = arith.truncf %420 : vector<4x256xf32> to vector<4x256xbf16>
    %c0_345 = arith.constant 0 : index
    %c256_346 = arith.constant 256 : index
    %422 = vector.load %arg32[%c0_345, %c256_346] : memref<4x768xbf16, #tpu.memory_space<vmem>>, vector<4x256xbf16>
    tpu.vector_store %arg32[%c0_345, %c256_346], %421 {strides = array<i32>} : memref<4x768xbf16, #tpu.memory_space<vmem>>, vector<4x256xbf16>,
    %c0_347 = arith.constant 0 : index
    %c188 = arith.constant 188 : index
    %423 = vector.load %arg32[%c0_347, %c188] : memref<4x768xbf16, #tpu.memory_space<vmem>>, vector<4x256xbf16>
    %c0_348 = arith.constant 0 : index
    %c0_349 = arith.constant 0 : index
    %c0_350 = arith.constant 0 : index
    %424 = vector.load %arg20[%c0_348, %c0_349, %c0_350] : memref<9x4x4xbf16, #tpu.memory_space<vmem>>, vector<1x4x4xbf16>
    %425 = vector.shape_cast %424 : vector<1x4x4xbf16> to vector<4x4xbf16>
    %cst_351 = arith.constant dense<0.000000e+00> : vector<4x256xf32>
    %426 = tpu.matmul %425, %423, %cst_351 {dimension_numbers = #tpu.dot_dimension_numbers<[1], [0], [0], [1], [0, 0, 1, 1], [], []>} : vector<4x4xbf16>, vector<4x256xbf16>, vector<4x256xf32> -> vector<4x256xf32>
    %c0_352 = arith.constant 0 : index
    %c252 = arith.constant 252 : index
    %427 = vector.load %arg32[%c0_352, %c252] : memref<4x768xbf16, #tpu.memory_space<vmem>>, vector<4x256xbf16>
    %c3_353 = arith.constant 3 : index
    %c0_354 = arith.constant 0 : index
    %c0_355 = arith.constant 0 : index
    %428 = vector.load %arg20[%c3_353, %c0_354, %c0_355] : memref<9x4x4xbf16, #tpu.memory_space<vmem>>, vector<1x4x4xbf16>
    %429 = vector.shape_cast %428 : vector<1x4x4xbf16> to vector<4x4xbf16>
    %cst_356 = arith.constant dense<0.000000e+00> : vector<4x256xf32>
    %430 = tpu.matmul %429, %427, %cst_356 {dimension_numbers = #tpu.dot_dimension_numbers<[1], [0], [0], [1], [0, 0, 1, 1], [], []>} : vector<4x4xbf16>, vector<4x256xbf16>, vector<4x256xf32> -> vector<4x256xf32>
    %431 = arith.addf %426, %430 : vector<4x256xf32>
    %c0_357 = arith.constant 0 : index
    %c316 = arith.constant 316 : index
    %432 = vector.load %arg32[%c0_357, %c316] : memref<4x768xbf16, #tpu.memory_space<vmem>>, vector<4x256xbf16>
    %c6_358 = arith.constant 6 : index
    %c0_359 = arith.constant 0 : index
    %c0_360 = arith.constant 0 : index
    %433 = vector.load %arg20[%c6_358, %c0_359, %c0_360] : memref<9x4x4xbf16, #tpu.memory_space<vmem>>, vector<1x4x4xbf16>
    %434 = vector.shape_cast %433 : vector<1x4x4xbf16> to vector<4x4xbf16>
    %cst_361 = arith.constant dense<0.000000e+00> : vector<4x256xf32>
    %435 = tpu.matmul %434, %432, %cst_361 {dimension_numbers = #tpu.dot_dimension_numbers<[1], [0], [0], [1], [0, 0, 1, 1], [], []>} : vector<4x4xbf16>, vector<4x256xbf16>, vector<4x256xf32> -> vector<4x256xf32>
    %436 = arith.addf %431, %435 : vector<4x256xf32>
    %c-4_i32 = arith.constant -4 : i32
    %437 = vector.broadcast %c-4_i32 : i32 to vector<1x256xi32>
    %438 = arith.addi %22, %437 : vector<1x256xi32>
    %c0_i32_362 = arith.constant 0 : i32
    %439 = vector.broadcast %c0_i32_362 : i32 to vector<1x256xi32>
    %440 = arith.cmpi sge, %438, %439 : vector<1x256xi32>
    %c-4_i32_363 = arith.constant -4 : i32
    %441 = vector.broadcast %c-4_i32_363 : i32 to vector<1x256xi32>
    %442 = arith.addi %22, %441 : vector<1x256xi32>
    %c16_i32_364 = arith.constant 16 : i32
    %443 = vector.broadcast %c16_i32_364 : i32 to vector<1x256xi32>
    %444 = arith.cmpi slt, %442, %443 : vector<1x256xi32>
    %445 = arith.andi %440, %444 : vector<1x256xi1>
    %cst_365 = arith.constant 0.000000e+00 : f32
    %446 = vector.shape_cast %445 : vector<1x256xi1> to vector<1x256xi1>
    %447 = vector.broadcast %446 : vector<1x256xi1> to vector<4x256xi1>
    %448 = vector.broadcast %cst_365 : f32 to vector<4x256xf32>
    %449 = arith.select %447, %436, %448 : vector<4x256xi1>, vector<4x256xf32>
    %c0_366 = arith.constant 0 : index
    %c192 = arith.constant 192 : index
    %450 = vector.load %arg32[%c0_366, %c192] : memref<4x768xbf16, #tpu.memory_space<vmem>>, vector<4x256xbf16>
    %c1_367 = arith.constant 1 : index
    %c0_368 = arith.constant 0 : index
    %c0_369 = arith.constant 0 : index
    %451 = vector.load %arg20[%c1_367, %c0_368, %c0_369] : memref<9x4x4xbf16, #tpu.memory_space<vmem>>, vector<1x4x4xbf16>
    %452 = vector.shape_cast %451 : vector<1x4x4xbf16> to vector<4x4xbf16>
    %cst_370 = arith.constant dense<0.000000e+00> : vector<4x256xf32>
    %453 = tpu.matmul %452, %450, %cst_370 {dimension_numbers = #tpu.dot_dimension_numbers<[1], [0], [0], [1], [0, 0, 1, 1], [], []>} : vector<4x4xbf16>, vector<4x256xbf16>, vector<4x256xf32> -> vector<4x256xf32>
    %c0_371 = arith.constant 0 : index
    %c256_372 = arith.constant 256 : index
    %454 = vector.load %arg32[%c0_371, %c256_372] : memref<4x768xbf16, #tpu.memory_space<vmem>>, vector<4x256xbf16>
    %c4_373 = arith.constant 4 : index
    %c0_374 = arith.constant 0 : index
    %c0_375 = arith.constant 0 : index
    %455 = vector.load %arg20[%c4_373, %c0_374, %c0_375] : memref<9x4x4xbf16, #tpu.memory_space<vmem>>, vector<1x4x4xbf16>
    %456 = vector.shape_cast %455 : vector<1x4x4xbf16> to vector<4x4xbf16>
    %cst_376 = arith.constant dense<0.000000e+00> : vector<4x256xf32>
    %457 = tpu.matmul %456, %454, %cst_376 {dimension_numbers = #tpu.dot_dimension_numbers<[1], [0], [0], [1], [0, 0, 1, 1], [], []>} : vector<4x4xbf16>, vector<4x256xbf16>, vector<4x256xf32> -> vector<4x256xf32>
    %458 = arith.addf %453, %457 : vector<4x256xf32>
    %c0_377 = arith.constant 0 : index
    %c320 = arith.constant 320 : index
    %459 = vector.load %arg32[%c0_377, %c320] : memref<4x768xbf16, #tpu.memory_space<vmem>>, vector<4x256xbf16>
    %c7_378 = arith.constant 7 : index
    %c0_379 = arith.constant 0 : index
    %c0_380 = arith.constant 0 : index
    %460 = vector.load %arg20[%c7_378, %c0_379, %c0_380] : memref<9x4x4xbf16, #tpu.memory_space<vmem>>, vector<1x4x4xbf16>
    %461 = vector.shape_cast %460 : vector<1x4x4xbf16> to vector<4x4xbf16>
    %cst_381 = arith.constant dense<0.000000e+00> : vector<4x256xf32>
    %462 = tpu.matmul %461, %459, %cst_381 {dimension_numbers = #tpu.dot_dimension_numbers<[1], [0], [0], [1], [0, 0, 1, 1], [], []>} : vector<4x4xbf16>, vector<4x256xbf16>, vector<4x256xf32> -> vector<4x256xf32>
    %463 = arith.addf %458, %462 : vector<4x256xf32>
    %464 = arith.addf %449, %463 : vector<4x256xf32>
    %c0_382 = arith.constant 0 : index
    %c196 = arith.constant 196 : index
    %465 = vector.load %arg32[%c0_382, %c196] : memref<4x768xbf16, #tpu.memory_space<vmem>>, vector<4x256xbf16>
    %c2_383 = arith.constant 2 : index
    %c0_384 = arith.constant 0 : index
    %c0_385 = arith.constant 0 : index
    %466 = vector.load %arg20[%c2_383, %c0_384, %c0_385] : memref<9x4x4xbf16, #tpu.memory_space<vmem>>, vector<1x4x4xbf16>
    %467 = vector.shape_cast %466 : vector<1x4x4xbf16> to vector<4x4xbf16>
    %cst_386 = arith.constant dense<0.000000e+00> : vector<4x256xf32>
    %468 = tpu.matmul %467, %465, %cst_386 {dimension_numbers = #tpu.dot_dimension_numbers<[1], [0], [0], [1], [0, 0, 1, 1], [], []>} : vector<4x4xbf16>, vector<4x256xbf16>, vector<4x256xf32> -> vector<4x256xf32>
    %c0_387 = arith.constant 0 : index
    %c260 = arith.constant 260 : index
    %469 = vector.load %arg32[%c0_387, %c260] : memref<4x768xbf16, #tpu.memory_space<vmem>>, vector<4x256xbf16>
    %c5_388 = arith.constant 5 : index
    %c0_389 = arith.constant 0 : index
    %c0_390 = arith.constant 0 : index
    %470 = vector.load %arg20[%c5_388, %c0_389, %c0_390] : memref<9x4x4xbf16, #tpu.memory_space<vmem>>, vector<1x4x4xbf16>
    %471 = vector.shape_cast %470 : vector<1x4x4xbf16> to vector<4x4xbf16>
    %cst_391 = arith.constant dense<0.000000e+00> : vector<4x256xf32>
    %472 = tpu.matmul %471, %469, %cst_391 {dimension_numbers = #tpu.dot_dimension_numbers<[1], [0], [0], [1], [0, 0, 1, 1], [], []>} : vector<4x4xbf16>, vector<4x256xbf16>, vector<4x256xf32> -> vector<4x256xf32>
    %473 = arith.addf %468, %472 : vector<4x256xf32>
    %c0_392 = arith.constant 0 : index
    %c324 = arith.constant 324 : index
    %474 = vector.load %arg32[%c0_392, %c324] : memref<4x768xbf16, #tpu.memory_space<vmem>>, vector<4x256xbf16>
    %c8_393 = arith.constant 8 : index
    %c0_394 = arith.constant 0 : index
    %c0_395 = arith.constant 0 : index
    %475 = vector.load %arg20[%c8_393, %c0_394, %c0_395] : memref<9x4x4xbf16, #tpu.memory_space<vmem>>, vector<1x4x4xbf16>
    %476 = vector.shape_cast %475 : vector<1x4x4xbf16> to vector<4x4xbf16>
    %cst_396 = arith.constant dense<0.000000e+00> : vector<4x256xf32>
    %477 = tpu.matmul %476, %474, %cst_396 {dimension_numbers = #tpu.dot_dimension_numbers<[1], [0], [0], [1], [0, 0, 1, 1], [], []>} : vector<4x4xbf16>, vector<4x256xbf16>, vector<4x256xf32> -> vector<4x256xf32>
    %478 = arith.addf %473, %477 : vector<4x256xf32>
    %c4_i32 = arith.constant 4 : i32
    %479 = vector.broadcast %c4_i32 : i32 to vector<1x256xi32>
    %480 = arith.addi %22, %479 : vector<1x256xi32>
    %c0_i32_397 = arith.constant 0 : i32
    %481 = vector.broadcast %c0_i32_397 : i32 to vector<1x256xi32>
    %482 = arith.cmpi sge, %480, %481 : vector<1x256xi32>
    %c4_i32_398 = arith.constant 4 : i32
    %483 = vector.broadcast %c4_i32_398 : i32 to vector<1x256xi32>
    %484 = arith.addi %22, %483 : vector<1x256xi32>
    %c16_i32_399 = arith.constant 16 : i32
    %485 = vector.broadcast %c16_i32_399 : i32 to vector<1x256xi32>
    %486 = arith.cmpi slt, %484, %485 : vector<1x256xi32>
    %487 = arith.andi %482, %486 : vector<1x256xi1>
    %cst_400 = arith.constant 0.000000e+00 : f32
    %488 = vector.shape_cast %487 : vector<1x256xi1> to vector<1x256xi1>
    %489 = vector.broadcast %488 : vector<1x256xi1> to vector<4x256xi1>
    %490 = vector.broadcast %cst_400 : f32 to vector<4x256xf32>
    %491 = arith.select %489, %478, %490 : vector<4x256xi1>, vector<4x256xf32>
    %492 = arith.addf %464, %491 : vector<4x256xf32>
    %c0_401 = arith.constant 0 : index
    %c0_402 = arith.constant 0 : index
    %493 = vector.load %arg21[%c0_401, %c0_402] : memref<4x1xf32, #tpu.memory_space<vmem>>, vector<4x1xf32>
    %494 = vector.broadcast %493 : vector<4x1xf32> to vector<4x256xf32>
    %495 = arith.addf %492, %494 : vector<4x256xf32>
    %cst_403 = arith.constant 0.000000e+00 : f32
    %496 = vector.broadcast %cst_403 : f32 to vector<4x256xf32>
    %497 = arith.maximumf %495, %496 : vector<4x256xf32>
    %498 = arith.addf %50, %497 : vector<4x256xf32>
    %499 = arith.truncf %498 : vector<4x256xf32> to vector<4x256xbf16>
    %c0_404 = arith.constant 0 : index
    %c256_405 = arith.constant 256 : index
    %500 = vector.load %arg32[%c0_404, %c256_405] : memref<4x768xbf16, #tpu.memory_space<vmem>>, vector<4x256xbf16>
    tpu.vector_store %arg32[%c0_404, %c256_405], %499 {strides = array<i32>} : memref<4x768xbf16, #tpu.memory_space<vmem>>, vector<4x256xbf16>,
    %c0_406 = arith.constant 0 : index
    %c205 = arith.constant 205 : index
    %501 = vector.load %arg32[%c0_406, %c205] : memref<4x768xbf16, #tpu.memory_space<vmem>>, vector<4x256xbf16>
    %c0_407 = arith.constant 0 : index
    %c0_408 = arith.constant 0 : index
    %c0_409 = arith.constant 0 : index
    %502 = vector.load %arg22[%c0_407, %c0_408, %c0_409] : memref<49x4x4xbf16, #tpu.memory_space<vmem>>, vector<1x4x4xbf16>
    %503 = vector.shape_cast %502 : vector<1x4x4xbf16> to vector<4x4xbf16>
    %cst_410 = arith.constant dense<0.000000e+00> : vector<4x256xf32>
    %504 = tpu.matmul %503, %501, %cst_410 {dimension_numbers = #tpu.dot_dimension_numbers<[1], [0], [0], [1], [0, 0, 1, 1], [], []>} : vector<4x4xbf16>, vector<4x256xbf16>, vector<4x256xf32> -> vector<4x256xf32>
    %c0_411 = arith.constant 0 : index
    %c221 = arith.constant 221 : index
    %505 = vector.load %arg32[%c0_411, %c221] : memref<4x768xbf16, #tpu.memory_space<vmem>>, vector<4x256xbf16>
    %c7_412 = arith.constant 7 : index
    %c0_413 = arith.constant 0 : index
    %c0_414 = arith.constant 0 : index
    %506 = vector.load %arg22[%c7_412, %c0_413, %c0_414] : memref<49x4x4xbf16, #tpu.memory_space<vmem>>, vector<1x4x4xbf16>
    %507 = vector.shape_cast %506 : vector<1x4x4xbf16> to vector<4x4xbf16>
    %cst_415 = arith.constant dense<0.000000e+00> : vector<4x256xf32>
    %508 = tpu.matmul %507, %505, %cst_415 {dimension_numbers = #tpu.dot_dimension_numbers<[1], [0], [0], [1], [0, 0, 1, 1], [], []>} : vector<4x4xbf16>, vector<4x256xbf16>, vector<4x256xf32> -> vector<4x256xf32>
    %509 = arith.addf %504, %508 : vector<4x256xf32>
    %c0_416 = arith.constant 0 : index
    %c237 = arith.constant 237 : index
    %510 = vector.load %arg32[%c0_416, %c237] : memref<4x768xbf16, #tpu.memory_space<vmem>>, vector<4x256xbf16>
    %c14_417 = arith.constant 14 : index
    %c0_418 = arith.constant 0 : index
    %c0_419 = arith.constant 0 : index
    %511 = vector.load %arg22[%c14_417, %c0_418, %c0_419] : memref<49x4x4xbf16, #tpu.memory_space<vmem>>, vector<1x4x4xbf16>
    %512 = vector.shape_cast %511 : vector<1x4x4xbf16> to vector<4x4xbf16>
    %cst_420 = arith.constant dense<0.000000e+00> : vector<4x256xf32>
    %513 = tpu.matmul %512, %510, %cst_420 {dimension_numbers = #tpu.dot_dimension_numbers<[1], [0], [0], [1], [0, 0, 1, 1], [], []>} : vector<4x4xbf16>, vector<4x256xbf16>, vector<4x256xf32> -> vector<4x256xf32>
    %514 = arith.addf %509, %513 : vector<4x256xf32>
    %c0_421 = arith.constant 0 : index
    %c253 = arith.constant 253 : index
    %515 = vector.load %arg32[%c0_421, %c253] : memref<4x768xbf16, #tpu.memory_space<vmem>>, vector<4x256xbf16>
    %c21_422 = arith.constant 21 : index
    %c0_423 = arith.constant 0 : index
    %c0_424 = arith.constant 0 : index
    %516 = vector.load %arg22[%c21_422, %c0_423, %c0_424] : memref<49x4x4xbf16, #tpu.memory_space<vmem>>, vector<1x4x4xbf16>
    %517 = vector.shape_cast %516 : vector<1x4x4xbf16> to vector<4x4xbf16>
    %cst_425 = arith.constant dense<0.000000e+00> : vector<4x256xf32>
    %518 = tpu.matmul %517, %515, %cst_425 {dimension_numbers = #tpu.dot_dimension_numbers<[1], [0], [0], [1], [0, 0, 1, 1], [], []>} : vector<4x4xbf16>, vector<4x256xbf16>, vector<4x256xf32> -> vector<4x256xf32>
    %519 = arith.addf %514, %518 : vector<4x256xf32>
    %c0_426 = arith.constant 0 : index
    %c269 = arith.constant 269 : index
    %520 = vector.load %arg32[%c0_426, %c269] : memref<4x768xbf16, #tpu.memory_space<vmem>>, vector<4x256xbf16>
    %c28 = arith.constant 28 : index
    %c0_427 = arith.constant 0 : index
    %c0_428 = arith.constant 0 : index
    %521 = vector.load %arg22[%c28, %c0_427, %c0_428] : memref<49x4x4xbf16, #tpu.memory_space<vmem>>, vector<1x4x4xbf16>
    %522 = vector.shape_cast %521 : vector<1x4x4xbf16> to vector<4x4xbf16>
    %cst_429 = arith.constant dense<0.000000e+00> : vector<4x256xf32>
    %523 = tpu.matmul %522, %520, %cst_429 {dimension_numbers = #tpu.dot_dimension_numbers<[1], [0], [0], [1], [0, 0, 1, 1], [], []>} : vector<4x4xbf16>, vector<4x256xbf16>, vector<4x256xf32> -> vector<4x256xf32>
    %524 = arith.addf %519, %523 : vector<4x256xf32>
    %c0_430 = arith.constant 0 : index
    %c285 = arith.constant 285 : index
    %525 = vector.load %arg32[%c0_430, %c285] : memref<4x768xbf16, #tpu.memory_space<vmem>>, vector<4x256xbf16>
    %c35 = arith.constant 35 : index
    %c0_431 = arith.constant 0 : index
    %c0_432 = arith.constant 0 : index
    %526 = vector.load %arg22[%c35, %c0_431, %c0_432] : memref<49x4x4xbf16, #tpu.memory_space<vmem>>, vector<1x4x4xbf16>
    %527 = vector.shape_cast %526 : vector<1x4x4xbf16> to vector<4x4xbf16>
    %cst_433 = arith.constant dense<0.000000e+00> : vector<4x256xf32>
    %528 = tpu.matmul %527, %525, %cst_433 {dimension_numbers = #tpu.dot_dimension_numbers<[1], [0], [0], [1], [0, 0, 1, 1], [], []>} : vector<4x4xbf16>, vector<4x256xbf16>, vector<4x256xf32> -> vector<4x256xf32>
    %529 = arith.addf %524, %528 : vector<4x256xf32>
    %c0_434 = arith.constant 0 : index
    %c301 = arith.constant 301 : index
    %530 = vector.load %arg32[%c0_434, %c301] : memref<4x768xbf16, #tpu.memory_space<vmem>>, vector<4x256xbf16>
    %c42 = arith.constant 42 : index
    %c0_435 = arith.constant 0 : index
    %c0_436 = arith.constant 0 : index
    %531 = vector.load %arg22[%c42, %c0_435, %c0_436] : memref<49x4x4xbf16, #tpu.memory_space<vmem>>, vector<1x4x4xbf16>
    %532 = vector.shape_cast %531 : vector<1x4x4xbf16> to vector<4x4xbf16>
    %cst_437 = arith.constant dense<0.000000e+00> : vector<4x256xf32>
    %533 = tpu.matmul %532, %530, %cst_437 {dimension_numbers = #tpu.dot_dimension_numbers<[1], [0], [0], [1], [0, 0, 1, 1], [], []>} : vector<4x4xbf16>, vector<4x256xbf16>, vector<4x256xf32> -> vector<4x256xf32>
    %534 = arith.addf %529, %533 : vector<4x256xf32>
    %c-3_i32 = arith.constant -3 : i32
    %535 = vector.broadcast %c-3_i32 : i32 to vector<1x256xi32>
    %536 = arith.addi %22, %535 : vector<1x256xi32>
    %c0_i32_438 = arith.constant 0 : i32
    %537 = vector.broadcast %c0_i32_438 : i32 to vector<1x256xi32>
    %538 = arith.cmpi sge, %536, %537 : vector<1x256xi32>
    %c-3_i32_439 = arith.constant -3 : i32
    %539 = vector.broadcast %c-3_i32_439 : i32 to vector<1x256xi32>
    %540 = arith.addi %22, %539 : vector<1x256xi32>
    %c16_i32_440 = arith.constant 16 : i32
    %541 = vector.broadcast %c16_i32_440 : i32 to vector<1x256xi32>
    %542 = arith.cmpi slt, %540, %541 : vector<1x256xi32>
    %543 = arith.andi %538, %542 : vector<1x256xi1>
    %cst_441 = arith.constant 0.000000e+00 : f32
    %544 = vector.shape_cast %543 : vector<1x256xi1> to vector<1x256xi1>
    %545 = vector.broadcast %544 : vector<1x256xi1> to vector<4x256xi1>
    %546 = vector.broadcast %cst_441 : f32 to vector<4x256xf32>
    %547 = arith.select %545, %534, %546 : vector<4x256xi1>, vector<4x256xf32>
    %c0_442 = arith.constant 0 : index
    %c206 = arith.constant 206 : index
    %548 = vector.load %arg32[%c0_442, %c206] : memref<4x768xbf16, #tpu.memory_space<vmem>>, vector<4x256xbf16>
    %c1_443 = arith.constant 1 : index
    %c0_444 = arith.constant 0 : index
    %c0_445 = arith.constant 0 : index
    %549 = vector.load %arg22[%c1_443, %c0_444, %c0_445] : memref<49x4x4xbf16, #tpu.memory_space<vmem>>, vector<1x4x4xbf16>
    %550 = vector.shape_cast %549 : vector<1x4x4xbf16> to vector<4x4xbf16>
    %cst_446 = arith.constant dense<0.000000e+00> : vector<4x256xf32>
    %551 = tpu.matmul %550, %548, %cst_446 {dimension_numbers = #tpu.dot_dimension_numbers<[1], [0], [0], [1], [0, 0, 1, 1], [], []>} : vector<4x4xbf16>, vector<4x256xbf16>, vector<4x256xf32> -> vector<4x256xf32>
    %c0_447 = arith.constant 0 : index
    %c222_448 = arith.constant 222 : index
    %552 = vector.load %arg32[%c0_447, %c222_448] : memref<4x768xbf16, #tpu.memory_space<vmem>>, vector<4x256xbf16>
    %c8_449 = arith.constant 8 : index
    %c0_450 = arith.constant 0 : index
    %c0_451 = arith.constant 0 : index
    %553 = vector.load %arg22[%c8_449, %c0_450, %c0_451] : memref<49x4x4xbf16, #tpu.memory_space<vmem>>, vector<1x4x4xbf16>
    %554 = vector.shape_cast %553 : vector<1x4x4xbf16> to vector<4x4xbf16>
    %cst_452 = arith.constant dense<0.000000e+00> : vector<4x256xf32>
    %555 = tpu.matmul %554, %552, %cst_452 {dimension_numbers = #tpu.dot_dimension_numbers<[1], [0], [0], [1], [0, 0, 1, 1], [], []>} : vector<4x4xbf16>, vector<4x256xbf16>, vector<4x256xf32> -> vector<4x256xf32>
    %556 = arith.addf %551, %555 : vector<4x256xf32>
    %c0_453 = arith.constant 0 : index
    %c238_454 = arith.constant 238 : index
    %557 = vector.load %arg32[%c0_453, %c238_454] : memref<4x768xbf16, #tpu.memory_space<vmem>>, vector<4x256xbf16>
    %c15_455 = arith.constant 15 : index
    %c0_456 = arith.constant 0 : index
    %c0_457 = arith.constant 0 : index
    %558 = vector.load %arg22[%c15_455, %c0_456, %c0_457] : memref<49x4x4xbf16, #tpu.memory_space<vmem>>, vector<1x4x4xbf16>
    %559 = vector.shape_cast %558 : vector<1x4x4xbf16> to vector<4x4xbf16>
    %cst_458 = arith.constant dense<0.000000e+00> : vector<4x256xf32>
    %560 = tpu.matmul %559, %557, %cst_458 {dimension_numbers = #tpu.dot_dimension_numbers<[1], [0], [0], [1], [0, 0, 1, 1], [], []>} : vector<4x4xbf16>, vector<4x256xbf16>, vector<4x256xf32> -> vector<4x256xf32>
    %561 = arith.addf %556, %560 : vector<4x256xf32>
    %c0_459 = arith.constant 0 : index
    %c254_460 = arith.constant 254 : index
    %562 = vector.load %arg32[%c0_459, %c254_460] : memref<4x768xbf16, #tpu.memory_space<vmem>>, vector<4x256xbf16>
    %c22_461 = arith.constant 22 : index
    %c0_462 = arith.constant 0 : index
    %c0_463 = arith.constant 0 : index
    %563 = vector.load %arg22[%c22_461, %c0_462, %c0_463] : memref<49x4x4xbf16, #tpu.memory_space<vmem>>, vector<1x4x4xbf16>
    %564 = vector.shape_cast %563 : vector<1x4x4xbf16> to vector<4x4xbf16>
    %cst_464 = arith.constant dense<0.000000e+00> : vector<4x256xf32>
    %565 = tpu.matmul %564, %562, %cst_464 {dimension_numbers = #tpu.dot_dimension_numbers<[1], [0], [0], [1], [0, 0, 1, 1], [], []>} : vector<4x4xbf16>, vector<4x256xbf16>, vector<4x256xf32> -> vector<4x256xf32>
    %566 = arith.addf %561, %565 : vector<4x256xf32>
    %c0_465 = arith.constant 0 : index
    %c270_466 = arith.constant 270 : index
    %567 = vector.load %arg32[%c0_465, %c270_466] : memref<4x768xbf16, #tpu.memory_space<vmem>>, vector<4x256xbf16>
    %c29 = arith.constant 29 : index
    %c0_467 = arith.constant 0 : index
    %c0_468 = arith.constant 0 : index
    %568 = vector.load %arg22[%c29, %c0_467, %c0_468] : memref<49x4x4xbf16, #tpu.memory_space<vmem>>, vector<1x4x4xbf16>
    %569 = vector.shape_cast %568 : vector<1x4x4xbf16> to vector<4x4xbf16>
    %cst_469 = arith.constant dense<0.000000e+00> : vector<4x256xf32>
    %570 = tpu.matmul %569, %567, %cst_469 {dimension_numbers = #tpu.dot_dimension_numbers<[1], [0], [0], [1], [0, 0, 1, 1], [], []>} : vector<4x4xbf16>, vector<4x256xbf16>, vector<4x256xf32> -> vector<4x256xf32>
    %571 = arith.addf %566, %570 : vector<4x256xf32>
    %c0_470 = arith.constant 0 : index
    %c286_471 = arith.constant 286 : index
    %572 = vector.load %arg32[%c0_470, %c286_471] : memref<4x768xbf16, #tpu.memory_space<vmem>>, vector<4x256xbf16>
    %c36 = arith.constant 36 : index
    %c0_472 = arith.constant 0 : index
    %c0_473 = arith.constant 0 : index
    %573 = vector.load %arg22[%c36, %c0_472, %c0_473] : memref<49x4x4xbf16, #tpu.memory_space<vmem>>, vector<1x4x4xbf16>
    %574 = vector.shape_cast %573 : vector<1x4x4xbf16> to vector<4x4xbf16>
    %cst_474 = arith.constant dense<0.000000e+00> : vector<4x256xf32>
    %575 = tpu.matmul %574, %572, %cst_474 {dimension_numbers = #tpu.dot_dimension_numbers<[1], [0], [0], [1], [0, 0, 1, 1], [], []>} : vector<4x4xbf16>, vector<4x256xbf16>, vector<4x256xf32> -> vector<4x256xf32>
    %576 = arith.addf %571, %575 : vector<4x256xf32>
    %c0_475 = arith.constant 0 : index
    %c302 = arith.constant 302 : index
    %577 = vector.load %arg32[%c0_475, %c302] : memref<4x768xbf16, #tpu.memory_space<vmem>>, vector<4x256xbf16>
    %c43 = arith.constant 43 : index
    %c0_476 = arith.constant 0 : index
    %c0_477 = arith.constant 0 : index
    %578 = vector.load %arg22[%c43, %c0_476, %c0_477] : memref<49x4x4xbf16, #tpu.memory_space<vmem>>, vector<1x4x4xbf16>
    %579 = vector.shape_cast %578 : vector<1x4x4xbf16> to vector<4x4xbf16>
    %cst_478 = arith.constant dense<0.000000e+00> : vector<4x256xf32>
    %580 = tpu.matmul %579, %577, %cst_478 {dimension_numbers = #tpu.dot_dimension_numbers<[1], [0], [0], [1], [0, 0, 1, 1], [], []>} : vector<4x4xbf16>, vector<4x256xbf16>, vector<4x256xf32> -> vector<4x256xf32>
    %581 = arith.addf %576, %580 : vector<4x256xf32>
    %cst_479 = arith.constant 0.000000e+00 : f32
    %582 = vector.shape_cast %220 : vector<1x256xi1> to vector<1x256xi1>
    %583 = vector.broadcast %582 : vector<1x256xi1> to vector<4x256xi1>
    %584 = vector.broadcast %cst_479 : f32 to vector<4x256xf32>
    %585 = arith.select %583, %581, %584 : vector<4x256xi1>, vector<4x256xf32>
    %586 = arith.addf %547, %585 : vector<4x256xf32>
    %c0_480 = arith.constant 0 : index
    %c207 = arith.constant 207 : index
    %587 = vector.load %arg32[%c0_480, %c207] : memref<4x768xbf16, #tpu.memory_space<vmem>>, vector<4x256xbf16>
    %c2_481 = arith.constant 2 : index
    %c0_482 = arith.constant 0 : index
    %c0_483 = arith.constant 0 : index
    %588 = vector.load %arg22[%c2_481, %c0_482, %c0_483] : memref<49x4x4xbf16, #tpu.memory_space<vmem>>, vector<1x4x4xbf16>
    %589 = vector.shape_cast %588 : vector<1x4x4xbf16> to vector<4x4xbf16>
    %cst_484 = arith.constant dense<0.000000e+00> : vector<4x256xf32>
    %590 = tpu.matmul %589, %587, %cst_484 {dimension_numbers = #tpu.dot_dimension_numbers<[1], [0], [0], [1], [0, 0, 1, 1], [], []>} : vector<4x4xbf16>, vector<4x256xbf16>, vector<4x256xf32> -> vector<4x256xf32>
    %c0_485 = arith.constant 0 : index
    %c223_486 = arith.constant 223 : index
    %591 = vector.load %arg32[%c0_485, %c223_486] : memref<4x768xbf16, #tpu.memory_space<vmem>>, vector<4x256xbf16>
    %c9_487 = arith.constant 9 : index
    %c0_488 = arith.constant 0 : index
    %c0_489 = arith.constant 0 : index
    %592 = vector.load %arg22[%c9_487, %c0_488, %c0_489] : memref<49x4x4xbf16, #tpu.memory_space<vmem>>, vector<1x4x4xbf16>
    %593 = vector.shape_cast %592 : vector<1x4x4xbf16> to vector<4x4xbf16>
    %cst_490 = arith.constant dense<0.000000e+00> : vector<4x256xf32>
    %594 = tpu.matmul %593, %591, %cst_490 {dimension_numbers = #tpu.dot_dimension_numbers<[1], [0], [0], [1], [0, 0, 1, 1], [], []>} : vector<4x4xbf16>, vector<4x256xbf16>, vector<4x256xf32> -> vector<4x256xf32>
    %595 = arith.addf %590, %594 : vector<4x256xf32>
    %c0_491 = arith.constant 0 : index
    %c239_492 = arith.constant 239 : index
    %596 = vector.load %arg32[%c0_491, %c239_492] : memref<4x768xbf16, #tpu.memory_space<vmem>>, vector<4x256xbf16>
    %c16_493 = arith.constant 16 : index
    %c0_494 = arith.constant 0 : index
    %c0_495 = arith.constant 0 : index
    %597 = vector.load %arg22[%c16_493, %c0_494, %c0_495] : memref<49x4x4xbf16, #tpu.memory_space<vmem>>, vector<1x4x4xbf16>
    %598 = vector.shape_cast %597 : vector<1x4x4xbf16> to vector<4x4xbf16>
    %cst_496 = arith.constant dense<0.000000e+00> : vector<4x256xf32>
    %599 = tpu.matmul %598, %596, %cst_496 {dimension_numbers = #tpu.dot_dimension_numbers<[1], [0], [0], [1], [0, 0, 1, 1], [], []>} : vector<4x4xbf16>, vector<4x256xbf16>, vector<4x256xf32> -> vector<4x256xf32>
    %600 = arith.addf %595, %599 : vector<4x256xf32>
    %c0_497 = arith.constant 0 : index
    %c255_498 = arith.constant 255 : index
    %601 = vector.load %arg32[%c0_497, %c255_498] : memref<4x768xbf16, #tpu.memory_space<vmem>>, vector<4x256xbf16>
    %c23_499 = arith.constant 23 : index
    %c0_500 = arith.constant 0 : index
    %c0_501 = arith.constant 0 : index
    %602 = vector.load %arg22[%c23_499, %c0_500, %c0_501] : memref<49x4x4xbf16, #tpu.memory_space<vmem>>, vector<1x4x4xbf16>
    %603 = vector.shape_cast %602 : vector<1x4x4xbf16> to vector<4x4xbf16>
    %cst_502 = arith.constant dense<0.000000e+00> : vector<4x256xf32>
    %604 = tpu.matmul %603, %601, %cst_502 {dimension_numbers = #tpu.dot_dimension_numbers<[1], [0], [0], [1], [0, 0, 1, 1], [], []>} : vector<4x4xbf16>, vector<4x256xbf16>, vector<4x256xf32> -> vector<4x256xf32>
    %605 = arith.addf %600, %604 : vector<4x256xf32>
    %c0_503 = arith.constant 0 : index
    %c271_504 = arith.constant 271 : index
    %606 = vector.load %arg32[%c0_503, %c271_504] : memref<4x768xbf16, #tpu.memory_space<vmem>>, vector<4x256xbf16>
    %c30 = arith.constant 30 : index
    %c0_505 = arith.constant 0 : index
    %c0_506 = arith.constant 0 : index
    %607 = vector.load %arg22[%c30, %c0_505, %c0_506] : memref<49x4x4xbf16, #tpu.memory_space<vmem>>, vector<1x4x4xbf16>
    %608 = vector.shape_cast %607 : vector<1x4x4xbf16> to vector<4x4xbf16>
    %cst_507 = arith.constant dense<0.000000e+00> : vector<4x256xf32>
    %609 = tpu.matmul %608, %606, %cst_507 {dimension_numbers = #tpu.dot_dimension_numbers<[1], [0], [0], [1], [0, 0, 1, 1], [], []>} : vector<4x4xbf16>, vector<4x256xbf16>, vector<4x256xf32> -> vector<4x256xf32>
    %610 = arith.addf %605, %609 : vector<4x256xf32>
    %c0_508 = arith.constant 0 : index
    %c287_509 = arith.constant 287 : index
    %611 = vector.load %arg32[%c0_508, %c287_509] : memref<4x768xbf16, #tpu.memory_space<vmem>>, vector<4x256xbf16>
    %c37 = arith.constant 37 : index
    %c0_510 = arith.constant 0 : index
    %c0_511 = arith.constant 0 : index
    %612 = vector.load %arg22[%c37, %c0_510, %c0_511] : memref<49x4x4xbf16, #tpu.memory_space<vmem>>, vector<1x4x4xbf16>
    %613 = vector.shape_cast %612 : vector<1x4x4xbf16> to vector<4x4xbf16>
    %cst_512 = arith.constant dense<0.000000e+00> : vector<4x256xf32>
    %614 = tpu.matmul %613, %611, %cst_512 {dimension_numbers = #tpu.dot_dimension_numbers<[1], [0], [0], [1], [0, 0, 1, 1], [], []>} : vector<4x4xbf16>, vector<4x256xbf16>, vector<4x256xf32> -> vector<4x256xf32>
    %615 = arith.addf %610, %614 : vector<4x256xf32>
    %c0_513 = arith.constant 0 : index
    %c303 = arith.constant 303 : index
    %616 = vector.load %arg32[%c0_513, %c303] : memref<4x768xbf16, #tpu.memory_space<vmem>>, vector<4x256xbf16>
    %c44 = arith.constant 44 : index
    %c0_514 = arith.constant 0 : index
    %c0_515 = arith.constant 0 : index
    %617 = vector.load %arg22[%c44, %c0_514, %c0_515] : memref<49x4x4xbf16, #tpu.memory_space<vmem>>, vector<1x4x4xbf16>
    %618 = vector.shape_cast %617 : vector<1x4x4xbf16> to vector<4x4xbf16>
    %cst_516 = arith.constant dense<0.000000e+00> : vector<4x256xf32>
    %619 = tpu.matmul %618, %616, %cst_516 {dimension_numbers = #tpu.dot_dimension_numbers<[1], [0], [0], [1], [0, 0, 1, 1], [], []>} : vector<4x4xbf16>, vector<4x256xbf16>, vector<4x256xf32> -> vector<4x256xf32>
    %620 = arith.addf %615, %619 : vector<4x256xf32>
    %cst_517 = arith.constant 0.000000e+00 : f32
    %621 = vector.shape_cast %83 : vector<1x256xi1> to vector<1x256xi1>
    %622 = vector.broadcast %621 : vector<1x256xi1> to vector<4x256xi1>
    %623 = vector.broadcast %cst_517 : f32 to vector<4x256xf32>
    %624 = arith.select %622, %620, %623 : vector<4x256xi1>, vector<4x256xf32>
    %625 = arith.addf %586, %624 : vector<4x256xf32>
    %c0_518 = arith.constant 0 : index
    %c208 = arith.constant 208 : index
    %626 = vector.load %arg32[%c0_518, %c208] : memref<4x768xbf16, #tpu.memory_space<vmem>>, vector<4x256xbf16>
    %c3_519 = arith.constant 3 : index
    %c0_520 = arith.constant 0 : index
    %c0_521 = arith.constant 0 : index
    %627 = vector.load %arg22[%c3_519, %c0_520, %c0_521] : memref<49x4x4xbf16, #tpu.memory_space<vmem>>, vector<1x4x4xbf16>
    %628 = vector.shape_cast %627 : vector<1x4x4xbf16> to vector<4x4xbf16>
    %cst_522 = arith.constant dense<0.000000e+00> : vector<4x256xf32>
    %629 = tpu.matmul %628, %626, %cst_522 {dimension_numbers = #tpu.dot_dimension_numbers<[1], [0], [0], [1], [0, 0, 1, 1], [], []>} : vector<4x4xbf16>, vector<4x256xbf16>, vector<4x256xf32> -> vector<4x256xf32>
    %c0_523 = arith.constant 0 : index
    %c224_524 = arith.constant 224 : index
    %630 = vector.load %arg32[%c0_523, %c224_524] : memref<4x768xbf16, #tpu.memory_space<vmem>>, vector<4x256xbf16>
    %c10_525 = arith.constant 10 : index
    %c0_526 = arith.constant 0 : index
    %c0_527 = arith.constant 0 : index
    %631 = vector.load %arg22[%c10_525, %c0_526, %c0_527] : memref<49x4x4xbf16, #tpu.memory_space<vmem>>, vector<1x4x4xbf16>
    %632 = vector.shape_cast %631 : vector<1x4x4xbf16> to vector<4x4xbf16>
    %cst_528 = arith.constant dense<0.000000e+00> : vector<4x256xf32>
    %633 = tpu.matmul %632, %630, %cst_528 {dimension_numbers = #tpu.dot_dimension_numbers<[1], [0], [0], [1], [0, 0, 1, 1], [], []>} : vector<4x4xbf16>, vector<4x256xbf16>, vector<4x256xf32> -> vector<4x256xf32>
    %634 = arith.addf %629, %633 : vector<4x256xf32>
    %c0_529 = arith.constant 0 : index
    %c240_530 = arith.constant 240 : index
    %635 = vector.load %arg32[%c0_529, %c240_530] : memref<4x768xbf16, #tpu.memory_space<vmem>>, vector<4x256xbf16>
    %c17_531 = arith.constant 17 : index
    %c0_532 = arith.constant 0 : index
    %c0_533 = arith.constant 0 : index
    %636 = vector.load %arg22[%c17_531, %c0_532, %c0_533] : memref<49x4x4xbf16, #tpu.memory_space<vmem>>, vector<1x4x4xbf16>
    %637 = vector.shape_cast %636 : vector<1x4x4xbf16> to vector<4x4xbf16>
    %cst_534 = arith.constant dense<0.000000e+00> : vector<4x256xf32>
    %638 = tpu.matmul %637, %635, %cst_534 {dimension_numbers = #tpu.dot_dimension_numbers<[1], [0], [0], [1], [0, 0, 1, 1], [], []>} : vector<4x4xbf16>, vector<4x256xbf16>, vector<4x256xf32> -> vector<4x256xf32>
    %639 = arith.addf %634, %638 : vector<4x256xf32>
    %c0_535 = arith.constant 0 : index
    %c256_536 = arith.constant 256 : index
    %640 = vector.load %arg32[%c0_535, %c256_536] : memref<4x768xbf16, #tpu.memory_space<vmem>>, vector<4x256xbf16>
    %c24_537 = arith.constant 24 : index
    %c0_538 = arith.constant 0 : index
    %c0_539 = arith.constant 0 : index
    %641 = vector.load %arg22[%c24_537, %c0_538, %c0_539] : memref<49x4x4xbf16, #tpu.memory_space<vmem>>, vector<1x4x4xbf16>
    %642 = vector.shape_cast %641 : vector<1x4x4xbf16> to vector<4x4xbf16>
    %cst_540 = arith.constant dense<0.000000e+00> : vector<4x256xf32>
    %643 = tpu.matmul %642, %640, %cst_540 {dimension_numbers = #tpu.dot_dimension_numbers<[1], [0], [0], [1], [0, 0, 1, 1], [], []>} : vector<4x4xbf16>, vector<4x256xbf16>, vector<4x256xf32> -> vector<4x256xf32>
    %644 = arith.addf %639, %643 : vector<4x256xf32>
    %c0_541 = arith.constant 0 : index
    %c272_542 = arith.constant 272 : index
    %645 = vector.load %arg32[%c0_541, %c272_542] : memref<4x768xbf16, #tpu.memory_space<vmem>>, vector<4x256xbf16>
    %c31 = arith.constant 31 : index
    %c0_543 = arith.constant 0 : index
    %c0_544 = arith.constant 0 : index
    %646 = vector.load %arg22[%c31, %c0_543, %c0_544] : memref<49x4x4xbf16, #tpu.memory_space<vmem>>, vector<1x4x4xbf16>
    %647 = vector.shape_cast %646 : vector<1x4x4xbf16> to vector<4x4xbf16>
    %cst_545 = arith.constant dense<0.000000e+00> : vector<4x256xf32>
    %648 = tpu.matmul %647, %645, %cst_545 {dimension_numbers = #tpu.dot_dimension_numbers<[1], [0], [0], [1], [0, 0, 1, 1], [], []>} : vector<4x4xbf16>, vector<4x256xbf16>, vector<4x256xf32> -> vector<4x256xf32>
    %649 = arith.addf %644, %648 : vector<4x256xf32>
    %c0_546 = arith.constant 0 : index
    %c288_547 = arith.constant 288 : index
    %650 = vector.load %arg32[%c0_546, %c288_547] : memref<4x768xbf16, #tpu.memory_space<vmem>>, vector<4x256xbf16>
    %c38 = arith.constant 38 : index
    %c0_548 = arith.constant 0 : index
    %c0_549 = arith.constant 0 : index
    %651 = vector.load %arg22[%c38, %c0_548, %c0_549] : memref<49x4x4xbf16, #tpu.memory_space<vmem>>, vector<1x4x4xbf16>
    %652 = vector.shape_cast %651 : vector<1x4x4xbf16> to vector<4x4xbf16>
    %cst_550 = arith.constant dense<0.000000e+00> : vector<4x256xf32>
    %653 = tpu.matmul %652, %650, %cst_550 {dimension_numbers = #tpu.dot_dimension_numbers<[1], [0], [0], [1], [0, 0, 1, 1], [], []>} : vector<4x4xbf16>, vector<4x256xbf16>, vector<4x256xf32> -> vector<4x256xf32>
    %654 = arith.addf %649, %653 : vector<4x256xf32>
    %c0_551 = arith.constant 0 : index
    %c304 = arith.constant 304 : index
    %655 = vector.load %arg32[%c0_551, %c304] : memref<4x768xbf16, #tpu.memory_space<vmem>>, vector<4x256xbf16>
    %c45 = arith.constant 45 : index
    %c0_552 = arith.constant 0 : index
    %c0_553 = arith.constant 0 : index
    %656 = vector.load %arg22[%c45, %c0_552, %c0_553] : memref<49x4x4xbf16, #tpu.memory_space<vmem>>, vector<1x4x4xbf16>
    %657 = vector.shape_cast %656 : vector<1x4x4xbf16> to vector<4x4xbf16>
    %cst_554 = arith.constant dense<0.000000e+00> : vector<4x256xf32>
    %658 = tpu.matmul %657, %655, %cst_554 {dimension_numbers = #tpu.dot_dimension_numbers<[1], [0], [0], [1], [0, 0, 1, 1], [], []>} : vector<4x4xbf16>, vector<4x256xbf16>, vector<4x256xf32> -> vector<4x256xf32>
    %659 = arith.addf %654, %658 : vector<4x256xf32>
    %660 = arith.addf %625, %659 : vector<4x256xf32>
    %c0_555 = arith.constant 0 : index
    %c209 = arith.constant 209 : index
    %661 = vector.load %arg32[%c0_555, %c209] : memref<4x768xbf16, #tpu.memory_space<vmem>>, vector<4x256xbf16>
    %c4_556 = arith.constant 4 : index
    %c0_557 = arith.constant 0 : index
    %c0_558 = arith.constant 0 : index
    %662 = vector.load %arg22[%c4_556, %c0_557, %c0_558] : memref<49x4x4xbf16, #tpu.memory_space<vmem>>, vector<1x4x4xbf16>
    %663 = vector.shape_cast %662 : vector<1x4x4xbf16> to vector<4x4xbf16>
    %cst_559 = arith.constant dense<0.000000e+00> : vector<4x256xf32>
    %664 = tpu.matmul %663, %661, %cst_559 {dimension_numbers = #tpu.dot_dimension_numbers<[1], [0], [0], [1], [0, 0, 1, 1], [], []>} : vector<4x4xbf16>, vector<4x256xbf16>, vector<4x256xf32> -> vector<4x256xf32>
    %c0_560 = arith.constant 0 : index
    %c225_561 = arith.constant 225 : index
    %665 = vector.load %arg32[%c0_560, %c225_561] : memref<4x768xbf16, #tpu.memory_space<vmem>>, vector<4x256xbf16>
    %c11_562 = arith.constant 11 : index
    %c0_563 = arith.constant 0 : index
    %c0_564 = arith.constant 0 : index
    %666 = vector.load %arg22[%c11_562, %c0_563, %c0_564] : memref<49x4x4xbf16, #tpu.memory_space<vmem>>, vector<1x4x4xbf16>
    %667 = vector.shape_cast %666 : vector<1x4x4xbf16> to vector<4x4xbf16>
    %cst_565 = arith.constant dense<0.000000e+00> : vector<4x256xf32>
    %668 = tpu.matmul %667, %665, %cst_565 {dimension_numbers = #tpu.dot_dimension_numbers<[1], [0], [0], [1], [0, 0, 1, 1], [], []>} : vector<4x4xbf16>, vector<4x256xbf16>, vector<4x256xf32> -> vector<4x256xf32>
    %669 = arith.addf %664, %668 : vector<4x256xf32>
    %c0_566 = arith.constant 0 : index
    %c241_567 = arith.constant 241 : index
    %670 = vector.load %arg32[%c0_566, %c241_567] : memref<4x768xbf16, #tpu.memory_space<vmem>>, vector<4x256xbf16>
    %c18_568 = arith.constant 18 : index
    %c0_569 = arith.constant 0 : index
    %c0_570 = arith.constant 0 : index
    %671 = vector.load %arg22[%c18_568, %c0_569, %c0_570] : memref<49x4x4xbf16, #tpu.memory_space<vmem>>, vector<1x4x4xbf16>
    %672 = vector.shape_cast %671 : vector<1x4x4xbf16> to vector<4x4xbf16>
    %cst_571 = arith.constant dense<0.000000e+00> : vector<4x256xf32>
    %673 = tpu.matmul %672, %670, %cst_571 {dimension_numbers = #tpu.dot_dimension_numbers<[1], [0], [0], [1], [0, 0, 1, 1], [], []>} : vector<4x4xbf16>, vector<4x256xbf16>, vector<4x256xf32> -> vector<4x256xf32>
    %674 = arith.addf %669, %673 : vector<4x256xf32>
    %c0_572 = arith.constant 0 : index
    %c257_573 = arith.constant 257 : index
    %675 = vector.load %arg32[%c0_572, %c257_573] : memref<4x768xbf16, #tpu.memory_space<vmem>>, vector<4x256xbf16>
    %c25 = arith.constant 25 : index
    %c0_574 = arith.constant 0 : index
    %c0_575 = arith.constant 0 : index
    %676 = vector.load %arg22[%c25, %c0_574, %c0_575] : memref<49x4x4xbf16, #tpu.memory_space<vmem>>, vector<1x4x4xbf16>
    %677 = vector.shape_cast %676 : vector<1x4x4xbf16> to vector<4x4xbf16>
    %cst_576 = arith.constant dense<0.000000e+00> : vector<4x256xf32>
    %678 = tpu.matmul %677, %675, %cst_576 {dimension_numbers = #tpu.dot_dimension_numbers<[1], [0], [0], [1], [0, 0, 1, 1], [], []>} : vector<4x4xbf16>, vector<4x256xbf16>, vector<4x256xf32> -> vector<4x256xf32>
    %679 = arith.addf %674, %678 : vector<4x256xf32>
    %c0_577 = arith.constant 0 : index
    %c273_578 = arith.constant 273 : index
    %680 = vector.load %arg32[%c0_577, %c273_578] : memref<4x768xbf16, #tpu.memory_space<vmem>>, vector<4x256xbf16>
    %c32 = arith.constant 32 : index
    %c0_579 = arith.constant 0 : index
    %c0_580 = arith.constant 0 : index
    %681 = vector.load %arg22[%c32, %c0_579, %c0_580] : memref<49x4x4xbf16, #tpu.memory_space<vmem>>, vector<1x4x4xbf16>
    %682 = vector.shape_cast %681 : vector<1x4x4xbf16> to vector<4x4xbf16>
    %cst_581 = arith.constant dense<0.000000e+00> : vector<4x256xf32>
    %683 = tpu.matmul %682, %680, %cst_581 {dimension_numbers = #tpu.dot_dimension_numbers<[1], [0], [0], [1], [0, 0, 1, 1], [], []>} : vector<4x4xbf16>, vector<4x256xbf16>, vector<4x256xf32> -> vector<4x256xf32>
    %684 = arith.addf %679, %683 : vector<4x256xf32>
    %c0_582 = arith.constant 0 : index
    %c289_583 = arith.constant 289 : index
    %685 = vector.load %arg32[%c0_582, %c289_583] : memref<4x768xbf16, #tpu.memory_space<vmem>>, vector<4x256xbf16>
    %c39 = arith.constant 39 : index
    %c0_584 = arith.constant 0 : index
    %c0_585 = arith.constant 0 : index
    %686 = vector.load %arg22[%c39, %c0_584, %c0_585] : memref<49x4x4xbf16, #tpu.memory_space<vmem>>, vector<1x4x4xbf16>
    %687 = vector.shape_cast %686 : vector<1x4x4xbf16> to vector<4x4xbf16>
    %cst_586 = arith.constant dense<0.000000e+00> : vector<4x256xf32>
    %688 = tpu.matmul %687, %685, %cst_586 {dimension_numbers = #tpu.dot_dimension_numbers<[1], [0], [0], [1], [0, 0, 1, 1], [], []>} : vector<4x4xbf16>, vector<4x256xbf16>, vector<4x256xf32> -> vector<4x256xf32>
    %689 = arith.addf %684, %688 : vector<4x256xf32>
    %c0_587 = arith.constant 0 : index
    %c305 = arith.constant 305 : index
    %690 = vector.load %arg32[%c0_587, %c305] : memref<4x768xbf16, #tpu.memory_space<vmem>>, vector<4x256xbf16>
    %c46 = arith.constant 46 : index
    %c0_588 = arith.constant 0 : index
    %c0_589 = arith.constant 0 : index
    %691 = vector.load %arg22[%c46, %c0_588, %c0_589] : memref<49x4x4xbf16, #tpu.memory_space<vmem>>, vector<1x4x4xbf16>
    %692 = vector.shape_cast %691 : vector<1x4x4xbf16> to vector<4x4xbf16>
    %cst_590 = arith.constant dense<0.000000e+00> : vector<4x256xf32>
    %693 = tpu.matmul %692, %690, %cst_590 {dimension_numbers = #tpu.dot_dimension_numbers<[1], [0], [0], [1], [0, 0, 1, 1], [], []>} : vector<4x4xbf16>, vector<4x256xbf16>, vector<4x256xf32> -> vector<4x256xf32>
    %694 = arith.addf %689, %693 : vector<4x256xf32>
    %cst_591 = arith.constant 0.000000e+00 : f32
    %695 = vector.shape_cast %125 : vector<1x256xi1> to vector<1x256xi1>
    %696 = vector.broadcast %695 : vector<1x256xi1> to vector<4x256xi1>
    %697 = vector.broadcast %cst_591 : f32 to vector<4x256xf32>
    %698 = arith.select %696, %694, %697 : vector<4x256xi1>, vector<4x256xf32>
    %699 = arith.addf %660, %698 : vector<4x256xf32>
    %c0_592 = arith.constant 0 : index
    %c210 = arith.constant 210 : index
    %700 = vector.load %arg32[%c0_592, %c210] : memref<4x768xbf16, #tpu.memory_space<vmem>>, vector<4x256xbf16>
    %c5_593 = arith.constant 5 : index
    %c0_594 = arith.constant 0 : index
    %c0_595 = arith.constant 0 : index
    %701 = vector.load %arg22[%c5_593, %c0_594, %c0_595] : memref<49x4x4xbf16, #tpu.memory_space<vmem>>, vector<1x4x4xbf16>
    %702 = vector.shape_cast %701 : vector<1x4x4xbf16> to vector<4x4xbf16>
    %cst_596 = arith.constant dense<0.000000e+00> : vector<4x256xf32>
    %703 = tpu.matmul %702, %700, %cst_596 {dimension_numbers = #tpu.dot_dimension_numbers<[1], [0], [0], [1], [0, 0, 1, 1], [], []>} : vector<4x4xbf16>, vector<4x256xbf16>, vector<4x256xf32> -> vector<4x256xf32>
    %c0_597 = arith.constant 0 : index
    %c226_598 = arith.constant 226 : index
    %704 = vector.load %arg32[%c0_597, %c226_598] : memref<4x768xbf16, #tpu.memory_space<vmem>>, vector<4x256xbf16>
    %c12_599 = arith.constant 12 : index
    %c0_600 = arith.constant 0 : index
    %c0_601 = arith.constant 0 : index
    %705 = vector.load %arg22[%c12_599, %c0_600, %c0_601] : memref<49x4x4xbf16, #tpu.memory_space<vmem>>, vector<1x4x4xbf16>
    %706 = vector.shape_cast %705 : vector<1x4x4xbf16> to vector<4x4xbf16>
    %cst_602 = arith.constant dense<0.000000e+00> : vector<4x256xf32>
    %707 = tpu.matmul %706, %704, %cst_602 {dimension_numbers = #tpu.dot_dimension_numbers<[1], [0], [0], [1], [0, 0, 1, 1], [], []>} : vector<4x4xbf16>, vector<4x256xbf16>, vector<4x256xf32> -> vector<4x256xf32>
    %708 = arith.addf %703, %707 : vector<4x256xf32>
    %c0_603 = arith.constant 0 : index
    %c242_604 = arith.constant 242 : index
    %709 = vector.load %arg32[%c0_603, %c242_604] : memref<4x768xbf16, #tpu.memory_space<vmem>>, vector<4x256xbf16>
    %c19_605 = arith.constant 19 : index
    %c0_606 = arith.constant 0 : index
    %c0_607 = arith.constant 0 : index
    %710 = vector.load %arg22[%c19_605, %c0_606, %c0_607] : memref<49x4x4xbf16, #tpu.memory_space<vmem>>, vector<1x4x4xbf16>
    %711 = vector.shape_cast %710 : vector<1x4x4xbf16> to vector<4x4xbf16>
    %cst_608 = arith.constant dense<0.000000e+00> : vector<4x256xf32>
    %712 = tpu.matmul %711, %709, %cst_608 {dimension_numbers = #tpu.dot_dimension_numbers<[1], [0], [0], [1], [0, 0, 1, 1], [], []>} : vector<4x4xbf16>, vector<4x256xbf16>, vector<4x256xf32> -> vector<4x256xf32>
    %713 = arith.addf %708, %712 : vector<4x256xf32>
    %c0_609 = arith.constant 0 : index
    %c258_610 = arith.constant 258 : index
    %714 = vector.load %arg32[%c0_609, %c258_610] : memref<4x768xbf16, #tpu.memory_space<vmem>>, vector<4x256xbf16>
    %c26 = arith.constant 26 : index
    %c0_611 = arith.constant 0 : index
    %c0_612 = arith.constant 0 : index
    %715 = vector.load %arg22[%c26, %c0_611, %c0_612] : memref<49x4x4xbf16, #tpu.memory_space<vmem>>, vector<1x4x4xbf16>
    %716 = vector.shape_cast %715 : vector<1x4x4xbf16> to vector<4x4xbf16>
    %cst_613 = arith.constant dense<0.000000e+00> : vector<4x256xf32>
    %717 = tpu.matmul %716, %714, %cst_613 {dimension_numbers = #tpu.dot_dimension_numbers<[1], [0], [0], [1], [0, 0, 1, 1], [], []>} : vector<4x4xbf16>, vector<4x256xbf16>, vector<4x256xf32> -> vector<4x256xf32>
    %718 = arith.addf %713, %717 : vector<4x256xf32>
    %c0_614 = arith.constant 0 : index
    %c274_615 = arith.constant 274 : index
    %719 = vector.load %arg32[%c0_614, %c274_615] : memref<4x768xbf16, #tpu.memory_space<vmem>>, vector<4x256xbf16>
    %c33 = arith.constant 33 : index
    %c0_616 = arith.constant 0 : index
    %c0_617 = arith.constant 0 : index
    %720 = vector.load %arg22[%c33, %c0_616, %c0_617] : memref<49x4x4xbf16, #tpu.memory_space<vmem>>, vector<1x4x4xbf16>
    %721 = vector.shape_cast %720 : vector<1x4x4xbf16> to vector<4x4xbf16>
    %cst_618 = arith.constant dense<0.000000e+00> : vector<4x256xf32>
    %722 = tpu.matmul %721, %719, %cst_618 {dimension_numbers = #tpu.dot_dimension_numbers<[1], [0], [0], [1], [0, 0, 1, 1], [], []>} : vector<4x4xbf16>, vector<4x256xbf16>, vector<4x256xf32> -> vector<4x256xf32>
    %723 = arith.addf %718, %722 : vector<4x256xf32>
    %c0_619 = arith.constant 0 : index
    %c290_620 = arith.constant 290 : index
    %724 = vector.load %arg32[%c0_619, %c290_620] : memref<4x768xbf16, #tpu.memory_space<vmem>>, vector<4x256xbf16>
    %c40 = arith.constant 40 : index
    %c0_621 = arith.constant 0 : index
    %c0_622 = arith.constant 0 : index
    %725 = vector.load %arg22[%c40, %c0_621, %c0_622] : memref<49x4x4xbf16, #tpu.memory_space<vmem>>, vector<1x4x4xbf16>
    %726 = vector.shape_cast %725 : vector<1x4x4xbf16> to vector<4x4xbf16>
    %cst_623 = arith.constant dense<0.000000e+00> : vector<4x256xf32>
    %727 = tpu.matmul %726, %724, %cst_623 {dimension_numbers = #tpu.dot_dimension_numbers<[1], [0], [0], [1], [0, 0, 1, 1], [], []>} : vector<4x4xbf16>, vector<4x256xbf16>, vector<4x256xf32> -> vector<4x256xf32>
    %728 = arith.addf %723, %727 : vector<4x256xf32>
    %c0_624 = arith.constant 0 : index
    %c306 = arith.constant 306 : index
    %729 = vector.load %arg32[%c0_624, %c306] : memref<4x768xbf16, #tpu.memory_space<vmem>>, vector<4x256xbf16>
    %c47 = arith.constant 47 : index
    %c0_625 = arith.constant 0 : index
    %c0_626 = arith.constant 0 : index
    %730 = vector.load %arg22[%c47, %c0_625, %c0_626] : memref<49x4x4xbf16, #tpu.memory_space<vmem>>, vector<1x4x4xbf16>
    %731 = vector.shape_cast %730 : vector<1x4x4xbf16> to vector<4x4xbf16>
    %cst_627 = arith.constant dense<0.000000e+00> : vector<4x256xf32>
    %732 = tpu.matmul %731, %729, %cst_627 {dimension_numbers = #tpu.dot_dimension_numbers<[1], [0], [0], [1], [0, 0, 1, 1], [], []>} : vector<4x4xbf16>, vector<4x256xbf16>, vector<4x256xf32> -> vector<4x256xf32>
    %733 = arith.addf %728, %732 : vector<4x256xf32>
    %cst_628 = arith.constant 0.000000e+00 : f32
    %734 = vector.shape_cast %262 : vector<1x256xi1> to vector<1x256xi1>
    %735 = vector.broadcast %734 : vector<1x256xi1> to vector<4x256xi1>
    %736 = vector.broadcast %cst_628 : f32 to vector<4x256xf32>
    %737 = arith.select %735, %733, %736 : vector<4x256xi1>, vector<4x256xf32>
    %738 = arith.addf %699, %737 : vector<4x256xf32>
    %c0_629 = arith.constant 0 : index
    %c211 = arith.constant 211 : index
    %739 = vector.load %arg32[%c0_629, %c211] : memref<4x768xbf16, #tpu.memory_space<vmem>>, vector<4x256xbf16>
    %c6_630 = arith.constant 6 : index
    %c0_631 = arith.constant 0 : index
    %c0_632 = arith.constant 0 : index
    %740 = vector.load %arg22[%c6_630, %c0_631, %c0_632] : memref<49x4x4xbf16, #tpu.memory_space<vmem>>, vector<1x4x4xbf16>
    %741 = vector.shape_cast %740 : vector<1x4x4xbf16> to vector<4x4xbf16>
    %cst_633 = arith.constant dense<0.000000e+00> : vector<4x256xf32>
    %742 = tpu.matmul %741, %739, %cst_633 {dimension_numbers = #tpu.dot_dimension_numbers<[1], [0], [0], [1], [0, 0, 1, 1], [], []>} : vector<4x4xbf16>, vector<4x256xbf16>, vector<4x256xf32> -> vector<4x256xf32>
    %c0_634 = arith.constant 0 : index
    %c227 = arith.constant 227 : index
    %743 = vector.load %arg32[%c0_634, %c227] : memref<4x768xbf16, #tpu.memory_space<vmem>>, vector<4x256xbf16>
    %c13_635 = arith.constant 13 : index
    %c0_636 = arith.constant 0 : index
    %c0_637 = arith.constant 0 : index
    %744 = vector.load %arg22[%c13_635, %c0_636, %c0_637] : memref<49x4x4xbf16, #tpu.memory_space<vmem>>, vector<1x4x4xbf16>
    %745 = vector.shape_cast %744 : vector<1x4x4xbf16> to vector<4x4xbf16>
    %cst_638 = arith.constant dense<0.000000e+00> : vector<4x256xf32>
    %746 = tpu.matmul %745, %743, %cst_638 {dimension_numbers = #tpu.dot_dimension_numbers<[1], [0], [0], [1], [0, 0, 1, 1], [], []>} : vector<4x4xbf16>, vector<4x256xbf16>, vector<4x256xf32> -> vector<4x256xf32>
    %747 = arith.addf %742, %746 : vector<4x256xf32>
    %c0_639 = arith.constant 0 : index
    %c243 = arith.constant 243 : index
    %748 = vector.load %arg32[%c0_639, %c243] : memref<4x768xbf16, #tpu.memory_space<vmem>>, vector<4x256xbf16>
    %c20_640 = arith.constant 20 : index
    %c0_641 = arith.constant 0 : index
    %c0_642 = arith.constant 0 : index
    %749 = vector.load %arg22[%c20_640, %c0_641, %c0_642] : memref<49x4x4xbf16, #tpu.memory_space<vmem>>, vector<1x4x4xbf16>
    %750 = vector.shape_cast %749 : vector<1x4x4xbf16> to vector<4x4xbf16>
    %cst_643 = arith.constant dense<0.000000e+00> : vector<4x256xf32>
    %751 = tpu.matmul %750, %748, %cst_643 {dimension_numbers = #tpu.dot_dimension_numbers<[1], [0], [0], [1], [0, 0, 1, 1], [], []>} : vector<4x4xbf16>, vector<4x256xbf16>, vector<4x256xf32> -> vector<4x256xf32>
    %752 = arith.addf %747, %751 : vector<4x256xf32>
    %c0_644 = arith.constant 0 : index
    %c259 = arith.constant 259 : index
    %753 = vector.load %arg32[%c0_644, %c259] : memref<4x768xbf16, #tpu.memory_space<vmem>>, vector<4x256xbf16>
    %c27 = arith.constant 27 : index
    %c0_645 = arith.constant 0 : index
    %c0_646 = arith.constant 0 : index
    %754 = vector.load %arg22[%c27, %c0_645, %c0_646] : memref<49x4x4xbf16, #tpu.memory_space<vmem>>, vector<1x4x4xbf16>
    %755 = vector.shape_cast %754 : vector<1x4x4xbf16> to vector<4x4xbf16>
    %cst_647 = arith.constant dense<0.000000e+00> : vector<4x256xf32>
    %756 = tpu.matmul %755, %753, %cst_647 {dimension_numbers = #tpu.dot_dimension_numbers<[1], [0], [0], [1], [0, 0, 1, 1], [], []>} : vector<4x4xbf16>, vector<4x256xbf16>, vector<4x256xf32> -> vector<4x256xf32>
    %757 = arith.addf %752, %756 : vector<4x256xf32>
    %c0_648 = arith.constant 0 : index
    %c275 = arith.constant 275 : index
    %758 = vector.load %arg32[%c0_648, %c275] : memref<4x768xbf16, #tpu.memory_space<vmem>>, vector<4x256xbf16>
    %c34 = arith.constant 34 : index
    %c0_649 = arith.constant 0 : index
    %c0_650 = arith.constant 0 : index
    %759 = vector.load %arg22[%c34, %c0_649, %c0_650] : memref<49x4x4xbf16, #tpu.memory_space<vmem>>, vector<1x4x4xbf16>
    %760 = vector.shape_cast %759 : vector<1x4x4xbf16> to vector<4x4xbf16>
    %cst_651 = arith.constant dense<0.000000e+00> : vector<4x256xf32>
    %761 = tpu.matmul %760, %758, %cst_651 {dimension_numbers = #tpu.dot_dimension_numbers<[1], [0], [0], [1], [0, 0, 1, 1], [], []>} : vector<4x4xbf16>, vector<4x256xbf16>, vector<4x256xf32> -> vector<4x256xf32>
    %762 = arith.addf %757, %761 : vector<4x256xf32>
    %c0_652 = arith.constant 0 : index
    %c291 = arith.constant 291 : index
    %763 = vector.load %arg32[%c0_652, %c291] : memref<4x768xbf16, #tpu.memory_space<vmem>>, vector<4x256xbf16>
    %c41 = arith.constant 41 : index
    %c0_653 = arith.constant 0 : index
    %c0_654 = arith.constant 0 : index
    %764 = vector.load %arg22[%c41, %c0_653, %c0_654] : memref<49x4x4xbf16, #tpu.memory_space<vmem>>, vector<1x4x4xbf16>
    %765 = vector.shape_cast %764 : vector<1x4x4xbf16> to vector<4x4xbf16>
    %cst_655 = arith.constant dense<0.000000e+00> : vector<4x256xf32>
    %766 = tpu.matmul %765, %763, %cst_655 {dimension_numbers = #tpu.dot_dimension_numbers<[1], [0], [0], [1], [0, 0, 1, 1], [], []>} : vector<4x4xbf16>, vector<4x256xbf16>, vector<4x256xf32> -> vector<4x256xf32>
    %767 = arith.addf %762, %766 : vector<4x256xf32>
    %c0_656 = arith.constant 0 : index
    %c307 = arith.constant 307 : index
    %768 = vector.load %arg32[%c0_656, %c307] : memref<4x768xbf16, #tpu.memory_space<vmem>>, vector<4x256xbf16>
    %c48 = arith.constant 48 : index
    %c0_657 = arith.constant 0 : index
    %c0_658 = arith.constant 0 : index
    %769 = vector.load %arg22[%c48, %c0_657, %c0_658] : memref<49x4x4xbf16, #tpu.memory_space<vmem>>, vector<1x4x4xbf16>
    %770 = vector.shape_cast %769 : vector<1x4x4xbf16> to vector<4x4xbf16>
    %cst_659 = arith.constant dense<0.000000e+00> : vector<4x256xf32>
    %771 = tpu.matmul %770, %768, %cst_659 {dimension_numbers = #tpu.dot_dimension_numbers<[1], [0], [0], [1], [0, 0, 1, 1], [], []>} : vector<4x4xbf16>, vector<4x256xbf16>, vector<4x256xf32> -> vector<4x256xf32>
    %772 = arith.addf %767, %771 : vector<4x256xf32>
    %c3_i32 = arith.constant 3 : i32
    %773 = vector.broadcast %c3_i32 : i32 to vector<1x256xi32>
    %774 = arith.addi %22, %773 : vector<1x256xi32>
    %c0_i32_660 = arith.constant 0 : i32
    %775 = vector.broadcast %c0_i32_660 : i32 to vector<1x256xi32>
    %776 = arith.cmpi sge, %774, %775 : vector<1x256xi32>
    %c3_i32_661 = arith.constant 3 : i32
    %777 = vector.broadcast %c3_i32_661 : i32 to vector<1x256xi32>
    %778 = arith.addi %22, %777 : vector<1x256xi32>
    %c16_i32_662 = arith.constant 16 : i32
    %779 = vector.broadcast %c16_i32_662 : i32 to vector<1x256xi32>
    %780 = arith.cmpi slt, %778, %779 : vector<1x256xi32>
    %781 = arith.andi %776, %780 : vector<1x256xi1>
    %cst_663 = arith.constant 0.000000e+00 : f32
    %782 = vector.shape_cast %781 : vector<1x256xi1> to vector<1x256xi1>
    %783 = vector.broadcast %782 : vector<1x256xi1> to vector<4x256xi1>
    %784 = vector.broadcast %cst_663 : f32 to vector<4x256xf32>
    %785 = arith.select %783, %772, %784 : vector<4x256xi1>, vector<4x256xf32>
    %786 = arith.addf %738, %785 : vector<4x256xf32>
    %c0_664 = arith.constant 0 : index
    %c0_665 = arith.constant 0 : index
    %787 = vector.load %arg23[%c0_664, %c0_665] : memref<4x1xf32, #tpu.memory_space<vmem>>, vector<4x1xf32>
    %788 = vector.broadcast %787 : vector<4x1xf32> to vector<4x256xf32>
    %789 = arith.addf %786, %788 : vector<4x256xf32>
    %cst_666 = arith.constant 0.000000e+00 : f32
    %790 = vector.broadcast %cst_666 : f32 to vector<4x256xf32>
    %791 = arith.maximumf %789, %790 : vector<4x256xf32>
    %792 = arith.truncf %791 : vector<4x256xf32> to vector<4x256xbf16>
    %c0_667 = arith.constant 0 : index
    %c256_668 = arith.constant 256 : index
    %793 = vector.load %arg32[%c0_667, %c256_668] : memref<4x768xbf16, #tpu.memory_space<vmem>>, vector<4x256xbf16>
    tpu.vector_store %arg32[%c0_667, %c256_668], %792 {strides = array<i32>} : memref<4x768xbf16, #tpu.memory_space<vmem>>, vector<4x256xbf16>,
    %c0_669 = arith.constant 0 : index
    %c120 = arith.constant 120 : index
    %794 = vector.load %arg32[%c0_669, %c120] : memref<4x768xbf16, #tpu.memory_space<vmem>>, vector<4x256xbf16>
    %c0_670 = arith.constant 0 : index
    %c0_671 = arith.constant 0 : index
    %c0_672 = arith.constant 0 : index
    %795 = vector.load %arg24[%c0_670, %c0_671, %c0_672] : memref<9x4x4xbf16, #tpu.memory_space<vmem>>, vector<1x4x4xbf16>
    %796 = vector.shape_cast %795 : vector<1x4x4xbf16> to vector<4x4xbf16>
    %cst_673 = arith.constant dense<0.000000e+00> : vector<4x256xf32>
    %797 = tpu.matmul %796, %794, %cst_673 {dimension_numbers = #tpu.dot_dimension_numbers<[1], [0], [0], [1], [0, 0, 1, 1], [], []>} : vector<4x4xbf16>, vector<4x256xbf16>, vector<4x256xf32> -> vector<4x256xf32>
    %c0_674 = arith.constant 0 : index
    %c248 = arith.constant 248 : index
    %798 = vector.load %arg32[%c0_674, %c248] : memref<4x768xbf16, #tpu.memory_space<vmem>>, vector<4x256xbf16>
    %c3_675 = arith.constant 3 : index
    %c0_676 = arith.constant 0 : index
    %c0_677 = arith.constant 0 : index
    %799 = vector.load %arg24[%c3_675, %c0_676, %c0_677] : memref<9x4x4xbf16, #tpu.memory_space<vmem>>, vector<1x4x4xbf16>
    %800 = vector.shape_cast %799 : vector<1x4x4xbf16> to vector<4x4xbf16>
    %cst_678 = arith.constant dense<0.000000e+00> : vector<4x256xf32>
    %801 = tpu.matmul %800, %798, %cst_678 {dimension_numbers = #tpu.dot_dimension_numbers<[1], [0], [0], [1], [0, 0, 1, 1], [], []>} : vector<4x4xbf16>, vector<4x256xbf16>, vector<4x256xf32> -> vector<4x256xf32>
    %802 = arith.addf %797, %801 : vector<4x256xf32>
    %c0_679 = arith.constant 0 : index
    %c376 = arith.constant 376 : index
    %803 = vector.load %arg32[%c0_679, %c376] : memref<4x768xbf16, #tpu.memory_space<vmem>>, vector<4x256xbf16>
    %c6_680 = arith.constant 6 : index
    %c0_681 = arith.constant 0 : index
    %c0_682 = arith.constant 0 : index
    %804 = vector.load %arg24[%c6_680, %c0_681, %c0_682] : memref<9x4x4xbf16, #tpu.memory_space<vmem>>, vector<1x4x4xbf16>
    %805 = vector.shape_cast %804 : vector<1x4x4xbf16> to vector<4x4xbf16>
    %cst_683 = arith.constant dense<0.000000e+00> : vector<4x256xf32>
    %806 = tpu.matmul %805, %803, %cst_683 {dimension_numbers = #tpu.dot_dimension_numbers<[1], [0], [0], [1], [0, 0, 1, 1], [], []>} : vector<4x4xbf16>, vector<4x256xbf16>, vector<4x256xf32> -> vector<4x256xf32>
    %807 = arith.addf %802, %806 : vector<4x256xf32>
    %c-8_i32 = arith.constant -8 : i32
    %808 = vector.broadcast %c-8_i32 : i32 to vector<1x256xi32>
    %809 = arith.addi %22, %808 : vector<1x256xi32>
    %c0_i32_684 = arith.constant 0 : i32
    %810 = vector.broadcast %c0_i32_684 : i32 to vector<1x256xi32>
    %811 = arith.cmpi sge, %809, %810 : vector<1x256xi32>
    %c-8_i32_685 = arith.constant -8 : i32
    %812 = vector.broadcast %c-8_i32_685 : i32 to vector<1x256xi32>
    %813 = arith.addi %22, %812 : vector<1x256xi32>
    %c16_i32_686 = arith.constant 16 : i32
    %814 = vector.broadcast %c16_i32_686 : i32 to vector<1x256xi32>
    %815 = arith.cmpi slt, %813, %814 : vector<1x256xi32>
    %816 = arith.andi %811, %815 : vector<1x256xi1>
    %cst_687 = arith.constant 0.000000e+00 : f32
    %817 = vector.shape_cast %816 : vector<1x256xi1> to vector<1x256xi1>
    %818 = vector.broadcast %817 : vector<1x256xi1> to vector<4x256xi1>
    %819 = vector.broadcast %cst_687 : f32 to vector<4x256xf32>
    %820 = arith.select %818, %807, %819 : vector<4x256xi1>, vector<4x256xf32>
    %c0_688 = arith.constant 0 : index
    %c128 = arith.constant 128 : index
    %821 = vector.load %arg32[%c0_688, %c128] : memref<4x768xbf16, #tpu.memory_space<vmem>>, vector<4x256xbf16>
    %c1_689 = arith.constant 1 : index
    %c0_690 = arith.constant 0 : index
    %c0_691 = arith.constant 0 : index
    %822 = vector.load %arg24[%c1_689, %c0_690, %c0_691] : memref<9x4x4xbf16, #tpu.memory_space<vmem>>, vector<1x4x4xbf16>
    %823 = vector.shape_cast %822 : vector<1x4x4xbf16> to vector<4x4xbf16>
    %cst_692 = arith.constant dense<0.000000e+00> : vector<4x256xf32>
    %824 = tpu.matmul %823, %821, %cst_692 {dimension_numbers = #tpu.dot_dimension_numbers<[1], [0], [0], [1], [0, 0, 1, 1], [], []>} : vector<4x4xbf16>, vector<4x256xbf16>, vector<4x256xf32> -> vector<4x256xf32>
    %c0_693 = arith.constant 0 : index
    %c256_694 = arith.constant 256 : index
    %825 = vector.load %arg32[%c0_693, %c256_694] : memref<4x768xbf16, #tpu.memory_space<vmem>>, vector<4x256xbf16>
    %c4_695 = arith.constant 4 : index
    %c0_696 = arith.constant 0 : index
    %c0_697 = arith.constant 0 : index
    %826 = vector.load %arg24[%c4_695, %c0_696, %c0_697] : memref<9x4x4xbf16, #tpu.memory_space<vmem>>, vector<1x4x4xbf16>
    %827 = vector.shape_cast %826 : vector<1x4x4xbf16> to vector<4x4xbf16>
    %cst_698 = arith.constant dense<0.000000e+00> : vector<4x256xf32>
    %828 = tpu.matmul %827, %825, %cst_698 {dimension_numbers = #tpu.dot_dimension_numbers<[1], [0], [0], [1], [0, 0, 1, 1], [], []>} : vector<4x4xbf16>, vector<4x256xbf16>, vector<4x256xf32> -> vector<4x256xf32>
    %829 = arith.addf %824, %828 : vector<4x256xf32>
    %c0_699 = arith.constant 0 : index
    %c384 = arith.constant 384 : index
    %830 = vector.load %arg32[%c0_699, %c384] : memref<4x768xbf16, #tpu.memory_space<vmem>>, vector<4x256xbf16>
    %c7_700 = arith.constant 7 : index
    %c0_701 = arith.constant 0 : index
    %c0_702 = arith.constant 0 : index
    %831 = vector.load %arg24[%c7_700, %c0_701, %c0_702] : memref<9x4x4xbf16, #tpu.memory_space<vmem>>, vector<1x4x4xbf16>
    %832 = vector.shape_cast %831 : vector<1x4x4xbf16> to vector<4x4xbf16>
    %cst_703 = arith.constant dense<0.000000e+00> : vector<4x256xf32>
    %833 = tpu.matmul %832, %830, %cst_703 {dimension_numbers = #tpu.dot_dimension_numbers<[1], [0], [0], [1], [0, 0, 1, 1], [], []>} : vector<4x4xbf16>, vector<4x256xbf16>, vector<4x256xf32> -> vector<4x256xf32>
    %834 = arith.addf %829, %833 : vector<4x256xf32>
    %835 = arith.addf %820, %834 : vector<4x256xf32>
    %c0_704 = arith.constant 0 : index
    %c136 = arith.constant 136 : index
    %836 = vector.load %arg32[%c0_704, %c136] : memref<4x768xbf16, #tpu.memory_space<vmem>>, vector<4x256xbf16>
    %c2_705 = arith.constant 2 : index
    %c0_706 = arith.constant 0 : index
    %c0_707 = arith.constant 0 : index
    %837 = vector.load %arg24[%c2_705, %c0_706, %c0_707] : memref<9x4x4xbf16, #tpu.memory_space<vmem>>, vector<1x4x4xbf16>
    %838 = vector.shape_cast %837 : vector<1x4x4xbf16> to vector<4x4xbf16>
    %cst_708 = arith.constant dense<0.000000e+00> : vector<4x256xf32>
    %839 = tpu.matmul %838, %836, %cst_708 {dimension_numbers = #tpu.dot_dimension_numbers<[1], [0], [0], [1], [0, 0, 1, 1], [], []>} : vector<4x4xbf16>, vector<4x256xbf16>, vector<4x256xf32> -> vector<4x256xf32>
    %c0_709 = arith.constant 0 : index
    %c264 = arith.constant 264 : index
    %840 = vector.load %arg32[%c0_709, %c264] : memref<4x768xbf16, #tpu.memory_space<vmem>>, vector<4x256xbf16>
    %c5_710 = arith.constant 5 : index
    %c0_711 = arith.constant 0 : index
    %c0_712 = arith.constant 0 : index
    %841 = vector.load %arg24[%c5_710, %c0_711, %c0_712] : memref<9x4x4xbf16, #tpu.memory_space<vmem>>, vector<1x4x4xbf16>
    %842 = vector.shape_cast %841 : vector<1x4x4xbf16> to vector<4x4xbf16>
    %cst_713 = arith.constant dense<0.000000e+00> : vector<4x256xf32>
    %843 = tpu.matmul %842, %840, %cst_713 {dimension_numbers = #tpu.dot_dimension_numbers<[1], [0], [0], [1], [0, 0, 1, 1], [], []>} : vector<4x4xbf16>, vector<4x256xbf16>, vector<4x256xf32> -> vector<4x256xf32>
    %844 = arith.addf %839, %843 : vector<4x256xf32>
    %c0_714 = arith.constant 0 : index
    %c392 = arith.constant 392 : index
    %845 = vector.load %arg32[%c0_714, %c392] : memref<4x768xbf16, #tpu.memory_space<vmem>>, vector<4x256xbf16>
    %c8_715 = arith.constant 8 : index
    %c0_716 = arith.constant 0 : index
    %c0_717 = arith.constant 0 : index
    %846 = vector.load %arg24[%c8_715, %c0_716, %c0_717] : memref<9x4x4xbf16, #tpu.memory_space<vmem>>, vector<1x4x4xbf16>
    %847 = vector.shape_cast %846 : vector<1x4x4xbf16> to vector<4x4xbf16>
    %cst_718 = arith.constant dense<0.000000e+00> : vector<4x256xf32>
    %848 = tpu.matmul %847, %845, %cst_718 {dimension_numbers = #tpu.dot_dimension_numbers<[1], [0], [0], [1], [0, 0, 1, 1], [], []>} : vector<4x4xbf16>, vector<4x256xbf16>, vector<4x256xf32> -> vector<4x256xf32>
    %849 = arith.addf %844, %848 : vector<4x256xf32>
    %c8_i32 = arith.constant 8 : i32
    %850 = vector.broadcast %c8_i32 : i32 to vector<1x256xi32>
    %851 = arith.addi %22, %850 : vector<1x256xi32>
    %c0_i32_719 = arith.constant 0 : i32
    %852 = vector.broadcast %c0_i32_719 : i32 to vector<1x256xi32>
    %853 = arith.cmpi sge, %851, %852 : vector<1x256xi32>
    %c8_i32_720 = arith.constant 8 : i32
    %854 = vector.broadcast %c8_i32_720 : i32 to vector<1x256xi32>
    %855 = arith.addi %22, %854 : vector<1x256xi32>
    %c16_i32_721 = arith.constant 16 : i32
    %856 = vector.broadcast %c16_i32_721 : i32 to vector<1x256xi32>
    %857 = arith.cmpi slt, %855, %856 : vector<1x256xi32>
    %858 = arith.andi %853, %857 : vector<1x256xi1>
    %cst_722 = arith.constant 0.000000e+00 : f32
    %859 = vector.shape_cast %858 : vector<1x256xi1> to vector<1x256xi1>
    %860 = vector.broadcast %859 : vector<1x256xi1> to vector<4x256xi1>
    %861 = vector.broadcast %cst_722 : f32 to vector<4x256xf32>
    %862 = arith.select %860, %849, %861 : vector<4x256xi1>, vector<4x256xf32>
    %863 = arith.addf %835, %862 : vector<4x256xf32>
    %c0_723 = arith.constant 0 : index
    %c0_724 = arith.constant 0 : index
    %864 = vector.load %arg25[%c0_723, %c0_724] : memref<4x1xf32, #tpu.memory_space<vmem>>, vector<4x1xf32>
    %865 = vector.broadcast %864 : vector<4x1xf32> to vector<4x256xf32>
    %866 = arith.addf %863, %865 : vector<4x256xf32>
    %cst_725 = arith.constant 0.000000e+00 : f32
    %867 = vector.broadcast %cst_725 : f32 to vector<4x256xf32>
    %868 = arith.maximumf %866, %867 : vector<4x256xf32>
    %c0_726 = arith.constant 0 : index
    %c0_727 = arith.constant 0 : index
    %869 = vector.load %arg26[%c0_726, %c0_727] : memref<16x4xbf16, #tpu.memory_space<vmem>>, vector<16x4xbf16>
    %870 = arith.truncf %135 : vector<4x256xf32> to vector<4x256xbf16>
    %cst_728 = arith.constant dense<0.000000e+00> : vector<16x256xf32>
    %871 = tpu.matmul %869, %870, %cst_728 {dimension_numbers = #tpu.dot_dimension_numbers<[1], [0], [0], [1], [0, 0, 1, 1], [], []>} : vector<16x4xbf16>, vector<4x256xbf16>, vector<16x256xf32> -> vector<16x256xf32>
    %c0_729 = arith.constant 0 : index
    %c0_730 = arith.constant 0 : index
    %872 = vector.load %arg27[%c0_729, %c0_730] : memref<16x4xbf16, #tpu.memory_space<vmem>>, vector<16x4xbf16>
    %873 = arith.truncf %272 : vector<4x256xf32> to vector<4x256xbf16>
    %cst_731 = arith.constant dense<0.000000e+00> : vector<16x256xf32>
    %874 = tpu.matmul %872, %873, %cst_731 {dimension_numbers = #tpu.dot_dimension_numbers<[1], [0], [0], [1], [0, 0, 1, 1], [], []>} : vector<16x4xbf16>, vector<4x256xbf16>, vector<16x256xf32> -> vector<16x256xf32>
    %875 = arith.addf %871, %874 : vector<16x256xf32>
    %c0_732 = arith.constant 0 : index
    %c0_733 = arith.constant 0 : index
    %876 = vector.load %arg28[%c0_732, %c0_733] : memref<16x4xbf16, #tpu.memory_space<vmem>>, vector<16x4xbf16>
    %877 = arith.truncf %497 : vector<4x256xf32> to vector<4x256xbf16>
    %cst_734 = arith.constant dense<0.000000e+00> : vector<16x256xf32>
    %878 = tpu.matmul %876, %877, %cst_734 {dimension_numbers = #tpu.dot_dimension_numbers<[1], [0], [0], [1], [0, 0, 1, 1], [], []>} : vector<16x4xbf16>, vector<4x256xbf16>, vector<16x256xf32> -> vector<16x256xf32>
    %879 = arith.addf %875, %878 : vector<16x256xf32>
    %c0_735 = arith.constant 0 : index
    %c0_736 = arith.constant 0 : index
    %880 = vector.load %arg29[%c0_735, %c0_736] : memref<16x4xbf16, #tpu.memory_space<vmem>>, vector<16x4xbf16>
    %881 = arith.truncf %868 : vector<4x256xf32> to vector<4x256xbf16>
    %cst_737 = arith.constant dense<0.000000e+00> : vector<16x256xf32>
    %882 = tpu.matmul %880, %881, %cst_737 {dimension_numbers = #tpu.dot_dimension_numbers<[1], [0], [0], [1], [0, 0, 1, 1], [], []>} : vector<16x4xbf16>, vector<4x256xbf16>, vector<16x256xf32> -> vector<16x256xf32>
    %883 = arith.addf %879, %882 : vector<16x256xf32>
    %c0_738 = arith.constant 0 : index
    %c0_739 = arith.constant 0 : index
    %884 = vector.load %arg30[%c0_738, %c0_739] : memref<16x1xf32, #tpu.memory_space<vmem>>, vector<16x1xf32>
    %885 = vector.broadcast %884 : vector<16x1xf32> to vector<16x256xf32>
    %886 = arith.addf %883, %885 : vector<16x256xf32>
    %cst_740 = arith.constant 0.000000e+00 : f32
    %887 = vector.broadcast %cst_740 : f32 to vector<16x256xf32>
    %888 = arith.maximumf %886, %887 : vector<16x256xf32>
    %c0_741 = arith.constant 0 : index
    %c0_742 = arith.constant 0 : index
    %c0_743 = arith.constant 0 : index
    %889 = vector.load %arg31[%c0_741, %c0_742, %c0_743] : memref<1x16x256xf32, #tpu.memory_space<vmem>>, vector<1x16x256xf32>
    %890 = vector.shape_cast %889 : vector<1x16x256xf32> to vector<16x256xf32>
    %891 = vector.shape_cast %888 : vector<16x256xf32> to vector<1x16x256xf32>
    tpu.vector_store %arg31[%c0_741, %c0_742, %c0_743], %891 {strides = array<i32>} : memref<1x16x256xf32, #tpu.memory_space<vmem>>, vector<1x16x256xf32>,
    return
  }
  func.func @transform_0(%arg0: i32) -> (i32, i32, i32) {
    %c0_i32 = arith.constant 0 : i32
    %c0_i32_0 = arith.constant 0 : i32
    %c0_i32_1 = arith.constant 0 : i32
    return %arg0, %c0_i32, %c0_i32_0 : i32, i32, i32
  }
  func.func @transform_1(%arg0: i32) -> (i32, i32) {
    %c0_i32 = arith.constant 0 : i32
    %c0_i32_0 = arith.constant 0 : i32
    %c0_i32_1 = arith.constant 0 : i32
    return %c0_i32, %c0_i32_0 : i32, i32
  }
  func.func @transform_2(%arg0: i32) -> (i32, i32) {
    %c0_i32 = arith.constant 0 : i32
    %c0_i32_0 = arith.constant 0 : i32
    %c0_i32_1 = arith.constant 0 : i32
    return %c0_i32, %c0_i32_0 : i32, i32
  }
  func.func @transform_3(%arg0: i32) -> (i32, i32) {
    %c0_i32 = arith.constant 0 : i32
    %c0_i32_0 = arith.constant 0 : i32
    %c0_i32_1 = arith.constant 0 : i32
    return %c0_i32, %c0_i32_0 : i32, i32
  }
  func.func @transform_4(%arg0: i32) -> (i32, i32) {
    %c0_i32 = arith.constant 0 : i32
    %c0_i32_0 = arith.constant 0 : i32
    %c0_i32_1 = arith.constant 0 : i32
    return %c0_i32, %c0_i32_0 : i32, i32
  }
  func.func @transform_5(%arg0: i32) -> (i32, i32) {
    %c0_i32 = arith.constant 0 : i32
    %c0_i32_0 = arith.constant 0 : i32
    %c0_i32_1 = arith.constant 0 : i32
    return %c0_i32, %c0_i32_0 : i32, i32
  }
  func.func @transform_6(%arg0: i32) -> (i32, i32) {
    %c0_i32 = arith.constant 0 : i32
    %c0_i32_0 = arith.constant 0 : i32
    %c0_i32_1 = arith.constant 0 : i32
    return %c0_i32, %c0_i32_0 : i32, i32
  }
  func.func @transform_7(%arg0: i32) -> (i32, i32) {
    %c0_i32 = arith.constant 0 : i32
    %c0_i32_0 = arith.constant 0 : i32
    %c0_i32_1 = arith.constant 0 : i32
    return %c0_i32, %c0_i32_0 : i32, i32
  }
  func.func @transform_8(%arg0: i32) -> (i32, i32) {
    %c0_i32 = arith.constant 0 : i32
    %c0_i32_0 = arith.constant 0 : i32
    %c0_i32_1 = arith.constant 0 : i32
    return %c0_i32, %c0_i32_0 : i32, i32
  }
  func.func @transform_9(%arg0: i32) -> (i32, i32) {
    %c0_i32 = arith.constant 0 : i32
    %c0_i32_0 = arith.constant 0 : i32
    %c0_i32_1 = arith.constant 0 : i32
    return %c0_i32, %c0_i32_0 : i32, i32
  }
  func.func @transform_10(%arg0: i32) -> (i32, i32) {
    %c0_i32 = arith.constant 0 : i32
    %c0_i32_0 = arith.constant 0 : i32
    %c0_i32_1 = arith.constant 0 : i32
    return %c0_i32, %c0_i32_0 : i32, i32
  }
  func.func @transform_11(%arg0: i32) -> (i32, i32, i32) {
    %c0_i32 = arith.constant 0 : i32
    %c0_i32_0 = arith.constant 0 : i32
    %c0_i32_1 = arith.constant 0 : i32
    %c0_i32_2 = arith.constant 0 : i32
    return %c0_i32, %c0_i32_0, %c0_i32_1 : i32, i32, i32
  }
  func.func @transform_12(%arg0: i32) -> (i32, i32) {
    %c0_i32 = arith.constant 0 : i32
    %c0_i32_0 = arith.constant 0 : i32
    %c0_i32_1 = arith.constant 0 : i32
    return %c0_i32, %c0_i32_0 : i32, i32
  }
  func.func @transform_13(%arg0: i32) -> (i32, i32, i32) {
    %c0_i32 = arith.constant 0 : i32
    %c0_i32_0 = arith.constant 0 : i32
    %c0_i32_1 = arith.constant 0 : i32
    %c0_i32_2 = arith.constant 0 : i32
    return %c0_i32, %c0_i32_0, %c0_i32_1 : i32, i32, i32
  }
  func.func @transform_14(%arg0: i32) -> (i32, i32) {
    %c0_i32 = arith.constant 0 : i32
    %c0_i32_0 = arith.constant 0 : i32
    %c0_i32_1 = arith.constant 0 : i32
    return %c0_i32, %c0_i32_0 : i32, i32
  }
  func.func @transform_15(%arg0: i32) -> (i32, i32, i32) {
    %c0_i32 = arith.constant 0 : i32
    %c0_i32_0 = arith.constant 0 : i32
    %c0_i32_1 = arith.constant 0 : i32
    %c0_i32_2 = arith.constant 0 : i32
    return %c0_i32, %c0_i32_0, %c0_i32_1 : i32, i32, i32
  }
  func.func @transform_16(%arg0: i32) -> (i32, i32) {
    %c0_i32 = arith.constant 0 : i32
    %c0_i32_0 = arith.constant 0 : i32
    %c0_i32_1 = arith.constant 0 : i32
    return %c0_i32, %c0_i32_0 : i32, i32
  }
  func.func @transform_17(%arg0: i32) -> (i32, i32, i32) {
    %c0_i32 = arith.constant 0 : i32
    %c0_i32_0 = arith.constant 0 : i32
    %c0_i32_1 = arith.constant 0 : i32
    %c0_i32_2 = arith.constant 0 : i32
    return %c0_i32, %c0_i32_0, %c0_i32_1 : i32, i32, i32
  }
  func.func @transform_18(%arg0: i32) -> (i32, i32) {
    %c0_i32 = arith.constant 0 : i32
    %c0_i32_0 = arith.constant 0 : i32
    %c0_i32_1 = arith.constant 0 : i32
    return %c0_i32, %c0_i32_0 : i32, i32
  }
  func.func @transform_19(%arg0: i32) -> (i32, i32, i32) {
    %c0_i32 = arith.constant 0 : i32
    %c0_i32_0 = arith.constant 0 : i32
    %c0_i32_1 = arith.constant 0 : i32
    %c0_i32_2 = arith.constant 0 : i32
    return %c0_i32, %c0_i32_0, %c0_i32_1 : i32, i32, i32
  }
  func.func @transform_20(%arg0: i32) -> (i32, i32) {
    %c0_i32 = arith.constant 0 : i32
    %c0_i32_0 = arith.constant 0 : i32
    %c0_i32_1 = arith.constant 0 : i32
    return %c0_i32, %c0_i32_0 : i32, i32
  }
  func.func @transform_21(%arg0: i32) -> (i32, i32, i32) {
    %c0_i32 = arith.constant 0 : i32
    %c0_i32_0 = arith.constant 0 : i32
    %c0_i32_1 = arith.constant 0 : i32
    %c0_i32_2 = arith.constant 0 : i32
    return %c0_i32, %c0_i32_0, %c0_i32_1 : i32, i32, i32
  }
  func.func @transform_22(%arg0: i32) -> (i32, i32) {
    %c0_i32 = arith.constant 0 : i32
    %c0_i32_0 = arith.constant 0 : i32
    %c0_i32_1 = arith.constant 0 : i32
    return %c0_i32, %c0_i32_0 : i32, i32
  }
  func.func @transform_23(%arg0: i32) -> (i32, i32, i32) {
    %c0_i32 = arith.constant 0 : i32
    %c0_i32_0 = arith.constant 0 : i32
    %c0_i32_1 = arith.constant 0 : i32
    %c0_i32_2 = arith.constant 0 : i32
    return %c0_i32, %c0_i32_0, %c0_i32_1 : i32, i32, i32
  }
  func.func @transform_24(%arg0: i32) -> (i32, i32) {
    %c0_i32 = arith.constant 0 : i32
    %c0_i32_0 = arith.constant 0 : i32
    %c0_i32_1 = arith.constant 0 : i32
    return %c0_i32, %c0_i32_0 : i32, i32
  }
  func.func @transform_25(%arg0: i32) -> (i32, i32) {
    %c0_i32 = arith.constant 0 : i32
    %c0_i32_0 = arith.constant 0 : i32
    %c0_i32_1 = arith.constant 0 : i32
    return %c0_i32, %c0_i32_0 : i32, i32
  }
  func.func @transform_26(%arg0: i32) -> (i32, i32) {
    %c0_i32 = arith.constant 0 : i32
    %c0_i32_0 = arith.constant 0 : i32
    %c0_i32_1 = arith.constant 0 : i32
    return %c0_i32, %c0_i32_0 : i32, i32
  }
  func.func @transform_27(%arg0: i32) -> (i32, i32) {
    %c0_i32 = arith.constant 0 : i32
    %c0_i32_0 = arith.constant 0 : i32
    %c0_i32_1 = arith.constant 0 : i32
    return %c0_i32, %c0_i32_0 : i32, i32
  }
  func.func @transform_28(%arg0: i32) -> (i32, i32) {
    %c0_i32 = arith.constant 0 : i32
    %c0_i32_0 = arith.constant 0 : i32
    %c0_i32_1 = arith.constant 0 : i32
    return %c0_i32, %c0_i32_0 : i32, i32
  }
  func.func @transform_29(%arg0: i32) -> (i32, i32) {
    %c0_i32 = arith.constant 0 : i32
    %c0_i32_0 = arith.constant 0 : i32
    %c0_i32_1 = arith.constant 0 : i32
    return %c0_i32, %c0_i32_0 : i32, i32
  }
  func.func @transform_30(%arg0: i32) -> (i32, i32, i32) {
    %c0_i32 = arith.constant 0 : i32
    %c0_i32_0 = arith.constant 0 : i32
    %c0_i32_1 = arith.constant 0 : i32
    return %arg0, %c0_i32, %c0_i32_0 : i32, i32, i32
  }
}

</mosaic_0001>

<bundles_post_ra>
// kernel: tpu_custom_call.1
= control target key start
LH: loop header
LB: loop body
LE: loop exit
PB: predicated region body
PF: predicated region fallthrough
CT: control target
= control target key end

     0   :  { %s12032_s6 = smov 1   ;;  %s12033_s10 = smov 2   ;;  %s14143_s0 = inlined_call_operand.smem [shape: u32[31], index: -1, kind: input, shape index: {}] }
   0x1   :  { %s12129_s5 = sld [smem:[%s14143_s0]]   ;;  %s12034_s14 = smov 3  }
   0x2   :  { %s12134_s9 = sld [smem:[%s14143_s0 + %s12032_s6]]   ;;  %s12035_s18 = smov 4  }
   0x3   :  { %s12139_s13 = sld [smem:[%s14143_s0 + %s12033_s10]]   ;;  %s12036_s22 = smov 5  }
   0x4   :  { %s12144_s17 = sld [smem:[%s14143_s0 + %s12034_s14]]   ;;  %s12037_s26 = smov 6  }
   0x5   :  { %s12149_s21 = sld [smem:[%s14143_s0 + %s12035_s18]]   ;;  %s12038_s30 = smov 7  }
   0x6   :  { %s12154_s25 = sld [smem:[%s14143_s0 + %s12036_s22]]   ;;  %s12039_s4 = smov 8  }
   0x7   :  { %14226 = sst [smem:[#allocation6_spill]] %s12129_s5  ;;  %s12040_s10 = smov 9  }
   0x8   :  { %14227 = sst [smem:[#allocation7_spill]] %s12134_s9  ;;  %s12041_s15 = smov 10  }
   0x9   :  { %14228 = sst [smem:[#allocation8_spill]] %s12139_s13  ;;  %s12042_s20 = smov 11  }
   0xa   :  { %14229 = sst [smem:[#allocation9_spill]] %s12144_s17  ;;  %s12044_s1 = smov 13  }
   0xb   :  { %14230 = sst [smem:[#allocation10_spill]] %s12149_s21  ;;  %s12045_s7 = smov 14  }
   0xc   :  { %14231 = sst [smem:[#allocation11_spill]] %s12154_s25  ;;  %s12047_s22 = smov 16  }
   0xd   :  { %s12159_s29 = sld [smem:[%s14143_s0 + %s12037_s26]]   ;;  %s12043_s26 = smov 12  }
   0xe   :  { %s12164_s3 = sld [smem:[%s14143_s0 + %s12038_s30]]   ;;  %s12048_s28 = smov 17  }
   0xf   :  { %s12169_s8 = sld [smem:[%s14143_s0 + %s12039_s4]]  }
  0x10   :  { %s12174_s14 = sld [smem:[%s14143_s0 + %s12040_s10]]  }
  0x11   :  { %s12179_s19 = sld [smem:[%s14143_s0 + %s12041_s15]]   ;;  %s12046_s15 = smov 15  }
  0x12   :  { %s12184_s24 = sld [smem:[%s14143_s0 + %s12042_s20]]  }
  0x13   :  { %14232 = sst [smem:[#allocation12_spill]] %s12159_s29 }
  0x14   :  { %14233 = sst [smem:[#allocation13_spill]] %s12164_s3 }
  0x15   :  { %14234 = sst [smem:[#allocation14_spill]] %s12169_s8 }
  0x16   :  { %14235 = sst [smem:[#allocation15_spill]] %s12174_s14 }
  0x17   :  { %14236 = sst [smem:[#allocation16_spill]] %s12179_s19 }
  0x18   :  { %14237 = sst [smem:[#allocation17_spill]] %s12184_s24 }
  0x19   :  { %s12189_s30 = sld [smem:[%s14143_s0 + %s12043_s26]]  }
  0x1a   :  { %s12194_s6 = sld [smem:[%s14143_s0 + %s12044_s1]]  }
  0x1b   :  { %s12199_s12 = sld [smem:[%s14143_s0 + %s12045_s7]]   ;;  %s12049_s7 = smov 18  }
  0x1c   :  { %s12204_s20 = sld [smem:[%s14143_s0 + %s12046_s15]]   ;;  %s12050_s15 = smov 19  }
  0x1d   :  { %s12209_s27 = sld [smem:[%s14143_s0 + %s12047_s22]]   ;;  %s12051_s22 = smov 20  }
  0x1e   :  { %s12214_s4 = sld [smem:[%s14143_s0 + %s12048_s28]]   ;;  %s12052_s28 = smov 21  }
  0x1f   :  { %14238 = sst [smem:[#allocation18_spill]] %s12189_s30 }
  0x20   :  { %14239 = sst [smem:[#allocation19_spill]] %s12194_s6 }
  0x21   :  { %14240 = sst [smem:[#allocation20_spill]] %s12199_s12 }
  0x22   :  { %14241 = sst [smem:[#allocation21_spill]] %s12204_s20 }
  0x23   :  { %14242 = sst [smem:[#allocation22_spill]] %s12209_s27 }
  0x24   :  { %14243 = sst [smem:[#allocation23_spill]] %s12214_s4 }
  0x25   :  { %s12219_s8 = sld [smem:[%s14143_s0 + %s12049_s7]]   ;;  %s12053_s7 = smov 22  }
  0x26   :  { %s12224_s29 = sld [smem:[%s14143_s0 + %s12050_s15]]   ;;  %s12054_s15 = smov 23  }
  0x27   :  { %s12229_s27 = sld [smem:[%s14143_s0 + %s12051_s22]]   ;;  %s12055_s22 = smov 24  }
  0x28   :  { %s12234_s4 = sld [smem:[%s14143_s0 + %s12052_s28]]   ;;  %s12056_s28 = smov 25  }
  0x2b   :  { %14244 = sst [smem:[#allocation24_spill]] %s12219_s8 }
  0x2c   :  { %14245 = sst [smem:[#allocation25_spill]] %s12224_s29 }
  0x2d   :  { %14246 = sst [smem:[#allocation26_spill]] %s12229_s27 }
  0x2e   :  { %14247 = sst [smem:[#allocation27_spill]] %s12234_s4 }
  0x2f   :  { %s12239_s8 = sld [smem:[%s14143_s0 + %s12053_s7]]   ;;  %s12057_s7 = smov 26  }
  0x30   :  { %s12244_s29 = sld [smem:[%s14143_s0 + %s12054_s15]]   ;;  %s12058_s15 = smov 27  }
  0x31   :  { %s12249_s27 = sld [smem:[%s14143_s0 + %s12055_s22]]   ;;  %s12059_s22 = smov 28  }
  0x32   :  { %s12254_s4 = sld [smem:[%s14143_s0 + %s12056_s28]]   ;;  %s12060_s28 = smov 29  }
  0x35   :  { %14248 = sst [smem:[#allocation28_spill]] %s12239_s8 }
  0x36   :  { %14249 = sst [smem:[#allocation29_spill]] %s12244_s29 }
  0x37   :  { %14250 = sst [smem:[#allocation30_spill]] %s12249_s27 }
  0x38   :  { %14251 = sst [smem:[#allocation31_spill]] %s12254_s4 }
  0x39   :  { %s12259_s8 = sld [smem:[%s14143_s0 + %s12057_s7]]   ;;  %s12061_s7 = smov 30  }
  0x3a   :  { %s12264_s29 = sld [smem:[%s14143_s0 + %s12058_s15]]  }
  0x3b   :  { %s12269_s27 = sld [smem:[%s14143_s0 + %s12059_s22]]  }
  0x3c   :  { %s12274_s4 = sld [smem:[%s14143_s0 + %s12060_s28]]  }
  0x3f   :  { %14252 = sst [smem:[#allocation32_spill]] %s12259_s8 }
  0x40   :  { %s12279_s8 = sld [smem:[%s14143_s0 + %s12061_s7]]  }
  0x41   :  { %66 = vsyncpa [#allocation4], 0 }
  0x42   :  { %68 = vsyncpa [#allocation4 + $0x1], 0  ;;  %s12281_s15 = smov 0   ;;  %s12283_s16 = smov 0  }
  0x43   :  { %s12285_s18 = smov 0   ;;  %s12287_s22 = smov 0  }
  0x44 LB: > { %s14253_s24 = sld [smem:[#allocation17_spill]]  ;;  %s14254_s20 = sld [smem:[#allocation21_spill]]  ;;  %s12026_s18 = sphi %s12285_s18, %s14368_s18   ;;  %s12022_s16 = sphi %s12283_s16, %s14370_s16   ;;  %s12018_s15 = sphi %s12281_s15, %s14369_s15   ;;  %s12030_s22 = sphi %s12287_s22, %s14366_s22  }
  0x45   : > { %s14255_s6 = sld [smem:[#allocation19_spill]]  ;;  %14256 = sst [smem:[#allocation33_spill]] %s12026_s18 }
  0x46   : > { %s12302_s0 = sadd.s32 4294967295, %s12030_s22   ;;  %s11031_s23 = sadd.s32 4294967294, %s12030_s22  }
  0x47   : > { %s12306_s26 = sadd.s32 1, %s12030_s22   ;;  %s716_s28 = sadd.s32 1, %s12026_s18 }
  0x48   : > { %14257 = sst [smem:[#allocation34_spill]] %s12306_s26  ;;  %s713_s1 = ssub.s32 %s12030_s22, %s12306_s26 }
  0x49   : > { %p726_p0 = scmp.ne.s32.totalorder %s12026_s18, %s12022_s16  ;;  %p714_p1 = scmp.eq.s32.totalorder %s713_s1, 0 }
  0x4a   : > { %p727_p2 = scmp.eq.s32.totalorder %s12302_s0, 1  ;;  %p732_p3 = scmp.ne.s32.totalorder %s12022_s16, %s12018_s15 }
  0x4b   : > { %p733_p4 = scmp.eq.s32.totalorder %s11031_s23, 1  ;;  %p11034_p7 = scmp.ge.s32.totalorder %s12030_s22, 1 }
  0x4c   : > { %s12317_s2 = scalar_select %p714_p1, %s12026_s18, %s716_s28  }
  0x4d   : > { %p12319_p5 = por %p727_p2, %p726_p0  ;;  %p12323_p6 = por %p733_p4, %p732_p3 }
  0x4e   : > { %14258 = sst [smem:[#allocation35_spill]] %s12317_s2  ;;  %p846_p8 = scmp.lt.s32.totalorder %s12030_s22, 3 }
  0x4f   : > { %s14260_s10 = scalar_select %p12323_p6, 1, 0 }
  0x50   : > { %p847_p9 = pnand %p11034_p7, %p846_p8 }
  0x51   : > { %14261 = sst [smem:[#allocation36_spill]] %s14260_s10  ;;  %s14262_s13 = sld [smem:[#allocation8_spill]] (!%p847_p9)  ;;  %v12062_v0 = vmov (!%p847_p9), 0   ;;  %vm14211_vm0 = vcmask (!%p847_p9), 130048   ;;  %vm1197_vm1 = vcmask (!%p847_p9), 1041408   ;;  %vm1193_vm2 = vcmask (!%p847_p9), 31744  }
  0x52   : > { %850 = sbr.rel (%p847_p9) target bundleno = 4057 (0xfd9), region = 140  ;;  %s14263_s19 = sld [smem:[#allocation16_spill]] (!%p847_p9)  ;;  %1014 = vmatprep.mubr.bf16.mxu1 (!%p847_p9), %v12062_v0  ;;  %932 = vst [vmem:[#allocation2] sm:$0xf] (!%p847_p9), %v12062_v0  ;;  %933 = vst [vmem:[#allocation2 + $0x8] sm:$0xf] (!%p847_p9), %v12062_v0  ;;  %11865 = vset.pattern.permute.xlu0 (!%p847_p9), %v12062_v0  ;;  %v934_v35 = vlaneseq (!%p847_p9) }
  0x53   : > { %s14264_s5 = sld [smem:[#allocation6_spill]] (!%p847_p9)  ;;  %p924_p10 = scmp.lt.s32.totalorder (!%p847_p9), %s12302_s0, 1  ;;  %1120 = vmatprep.mubr.bf16.mxu0 (!%p847_p9), %v12062_v0  ;;  %11866 = vset.pattern.permute.xlu1 (!%p847_p9), %v12062_v0  ;;  %v12063_v36 = vmov (!%p847_p9), 1983009808   ;;  %v11057_v62 = vld [vmem:[%s14253_s24 + $0x8] sm:$0x3] (!%p847_p9) }
  0x54   : > { %s14265_s9 = sld [smem:[#allocation7_spill]] (!%p847_p9)  ;;  %s14266_s25 = sld [smem:[#allocation11_spill]] (!%p847_p9)  ;;  %v1268_v37 = vunpack.c.l.s4 (!%p847_p9), %v12063_v36  ;;  %v1271_v40 = vshrl.u32 (!%p847_p9), %v934_v35, 7  ;;  %vm1288_vm3 = vcmask (!%p847_p9), 7168   ;;  %vm1347_vm4 = vcmask (!%p847_p9), 138240  }
  0x55   : > { %s14267_s17 = sld [smem:[#allocation9_spill]] (!%p847_p9)  ;;  %s14268_s14 = sld [smem:[#allocation15_spill]] (!%p847_p9)  ;;  %vm1426_vm5 = vcmask (!%p847_p9), 924672   ;;  %vm14182_vm6 = vcmask (!%p847_p9), 1039360   ;;  %vm14184_vm7 = vcmask (!%p847_p9), 121856   ;;  %vm14212_vm8 = vcmask (!%p847_p9), 916480  }
  0x56   : > { %s14269_s3 = sld [smem:[#allocation13_spill]] (!%p847_p9)  ;;  %v1269_v39 = vunpack.c.0.s8 (!%p847_p9), %v1268_v37  ;;  %s14160_s1 = smov (!%p847_p9), 1   ;;  %vm14179_vm9 = vcmask (!%p847_p9), 908288   ;;  %vm14210_vm14 = vcmask (!%p847_p9), 15360   ;;  %vm2791_vm15 = vcmask (!%p847_p9), 277504  }
  0x57   : > { %v962_v1 = vld [vmem:[%s14262_s13] sm:$0xf] (!%p847_p9)  ;;  %s14270_s21 = sld [smem:[#allocation10_spill]] (!%p847_p9)  ;;  %s14276_s12 = sld [smem:[#allocation20_spill]] (!%p847_p9) }
  0x58   : > { %v1187_v2 = vld [vmem:[%s14263_s19] sm:$0xf] (!%p847_p9)  ;;  %965 = vperm.xlu0 (!%p847_p9), %11865, %v962_v1   ;;  %v12362_v41 = vsub.s32 (!%p847_p9), %v1269_v39, %v1271_v40  ;;  %s14271_s30 = sld [smem:[#allocation18_spill]] (!%p847_p9)  ;;  %s14280_s13 = sld [smem:[#allocation22_spill]] (!%p847_p9) }
  0x59   : > { %s925_s11 = scalar_select %p924_p10, %s12302_s0, 1 }
  0x5a   : > { %v961_v5 = vld [vmem:[%s14265_s9] sm:$0x3]  ;;  %s14167_s9 = smov 34   ;;  %s14286_s19 = smov 114  }
  0x5b   : > { %s11436_s23 = sshll.u32 %s925_s11, 4  ;;  %v1078_v6 = vld [vmem:[%s14266_s25] sm:$0x3]  ;;  %s14148_s11 = smov 17  }
  0x5c   : > { %s928_s28 = scalar_lea.vmem %s14264_s5, %s11436_s23  ;;  %1190 = vperm.xlu0 %11865, %v1187_v2   ;;  %v1025_v7 = vld [vmem:[%s14267_s17] sm:$0x3]  ;;  %s14150_s23 = smov 113  }
  0x5d   : > { %v11867_v3 = vld [vmem:[%s928_s28 + $0x4] ss:$8 sps:$4 sm:$0xff]   ;;  %v11869_v4 = vld [vmem:[%s928_s28] ss:$8 sps:$4 sm:$0xff]   ;;  %s14152_s28 = smov 127   ;;  %s14278_s5 = smov 111  }
  0x5e   : > { %982 = vmatprep.subr.bf16.mxu1 %v11867_v3  ;;  %1088 = vmatprep.subr.bf16.mxu0 %v11867_v3  ;;  %v1186_v20 = vld [vmem:[%s14268_s14] sm:$0x3]  ;;  %s14189_s14 = smov 96   ;;  %s14284_s17 = smov 1  }
  0x5f   : > { %983 = vmatpush1.bf16.msra.mxu1 %v11869_v4  ;;  %1089 = vmatpush1.bf16.msra.mxu0 %v11869_v4  ;;  %v1131_v25 = vld [vmem:[%s14269_s3] sm:$0x3]  ;;  %s14277_s3 = smov 112   ;;  %s14204_s25 = smov 31  }
  0x60   : > { %1035 = vmatprep.subr.bf16.mxu1 %v11867_v3  ;;  %s14292_s2 = smov 94   ;;  %s14219_s18 = smov 95  }
  0x61   : > { %s12089_s26 = smov 68   ;;  %s12091_s10 = smov 60  }
  0x62   : > { %11040 = vmatmul.mubr.msk.bf16.vlgmr.msra.gmra.mrb[0].mxu1 %vm14211_vm0, %v961_v5  ;;  %11042 = vmatmul.mubr.msk.bf16.vlgmr.msra.gmra.mrb[0].mxu0 %vm14211_vm0, %v1078_v6 }
  0x63   : > { %1036 = vmatpush1.bf16.msra.mxu1 %v11869_v4  ;;  %1067 = vmatprep.mubr.bf16.mxu1 %v12062_v0 }
  0x64   : > { %1141 = vmatprep.subr.bf16.mxu1 %v11867_v3  ;;  %1236 = vmatprep.mubr.bf16.mxu0 %v12062_v0 }
  0x6a   : > { %11041 = vmatmul.mubr.msk.bf16.vlgmr.msra.gmra.mrb[4].mxu1 %vm14211_vm0, %v1025_v7 }
  0x6b   : > { %1142 = vmatpush1.bf16.msra.mxu1 %v11869_v4  ;;  %1173 = vmatprep.mubr.bf16.mxu1 %v12062_v0 }
  0x72   : > { %11043 = vmatmul.mubr.msk.bf16.vlgmr.msra.gmra.mrb[8].mxu1 %vm14211_vm0, %v1131_v25  ;;  %v1974_v25 = vld [vmem:[%s14271_s30] sm:$0xf]  ;;  %s14207_s30 = smov 110  }
  0x73   : > { %1332 = vmatprep.mubr.bf16.mxu1 %v12062_v0 }
  0xd7   : > { %v966_v8 = vpop.permute.xlu0 %965 }
  0xdb   : > { %v1191_v26 = vpop.permute.xlu0 %1190 }
 0x135   : > { %v1016_v9 = vpop.f32.mrb[0].mxu1  ;;  %v12354_v21 = vpop.f32.mrb[0].mxu0 }
 0x136   : > { %v1017_v10 = vadd.f32 %v1016_v9, %v966_v8  ;;  %v1018_v11 = vpop.f32.mrb[1].mxu1  ;;  %v12356_v22 = vpop.f32.mrb[1].mxu0 }
 0x137   : > { %v1019_v12 = vadd.f32 %v1018_v11, %v966_v8  ;;  %v1020_v13 = vpop.f32.mrb[2].mxu1  ;;  %v1126_v23 = vpop.f32.mrb[2].mxu0 }
 0x138   : > { %v1023_v14 = vmax.f32 %v1017_v10, 0.0  ;;  %v1021_v15 = vpop.f32.mrb[3].mxu1  ;;  %v1127_v24 = vpop.f32.mrb[3].mxu0 }
 0x139   : > { %v1024_v16 = vmax.f32 %v1019_v12, 0.0 }
 0x13a   : > { %v1184_v17 = vpack.c.bf16 %v1023_v14, %v1023_v14 }
 0x13b   : > { %v1185_v18 = vpack.c.bf16 %v1024_v16, %v1024_v16 }
 0x13c   : > { %v1199_v19 = vsel %vm1197_vm1, %v1184_v17, 0 }
 0x13d   : > { %11044 = vmatprep.subr.msk.bf16.mxu0 %vm1197_vm1, %v1185_v18  ;;  %v12403_v15 = vpop.f32.mrb[4].mxu1 }
 0x13e   : > { %1205 = vmatpush1.bf16.msra.mxu0 %v1199_v19  ;;  %v12406_v18 = vpop.f32.mrb[5].mxu1  ;;  %v1026_v19 = vld [vmem:[%s14270_s21] sm:$0xf]  ;;  %s14287_s21 = smov 32  }
 0x141   : > { %11045 = vmatmul.mubr.msk.bf16.vlgmr.msra.gmra.mrb[4].mxu0 %vm1193_vm2, %v1186_v20  ;;  %v1073_v20 = vpop.f32.mrb[6].mxu1 }
 0x142   : > { %1551 = vmatprep.mubr.bf16.mxu0 %v12062_v0  ;;  %v1074_v23 = vpop.f32.mrb[7].mxu1 }
 0x214   : > { %v1238_v27 = vpop.f32.mrb[4].mxu0 }
 0x215   : > { %v1239_v28 = vadd.f32 %v1238_v27, %v1191_v26  ;;  %v1240_v29 = vpop.f32.mrb[5].mxu0 }
 0x216   : > { %v1241_v30 = vadd.f32 %v1240_v29, %v1191_v26  ;;  %v1242_v31 = vpop.f32.mrb[6].mxu0 }
 0x217   : > { %v1245_v32 = vmax.f32 %v1239_v28, 0.0  ;;  %v1243_v33 = vpop.f32.mrb[7].mxu0 }
 0x218   : > { %v1246_v34 = vmax.f32 %v1241_v30, 0.0  ;;  %v11048_v33 = vld [vmem:[%s14253_s24 + $0x6] sm:$0x3] }
 0x21a   : > { %v11046_v38 = vpack.c.bf16 %v1246_v34, %v1245_v32 }
 0x21c   : > { %11047 = vst.sshfl [vmem:[#allocation2 + $0x4] sm:$0x33 pattern:$0x76325410] %v11046_v38 }
 0x223   : > { %v11058_v42 = vld.sshfl [vmem:[#allocation2 + $0x4] sm:$0x33 pattern:$0x76325410] }
 0x224   : > { %v1261_v43 = vld [vmem:[#allocation2 + $0x2] sm:$0x3f]  ;;  %v1509_v44 = vcombine.high %v11058_v42, %v11058_v42  ;;  %v1514_v47 = vsel %vm1197_vm1, %v11058_v42, 0 }
 0x225   : > { %v1273_v45 = vrot.slane %v1261_v43, %v12362_v41  ;;  %v1266_v46 = vcombine.high %v1261_v43, %v1261_v43  ;;  %v1400_v50 = vld [vmem:[#allocation2 + $0x4] sm:$0x3f] }
 0x226   : > { %11059 = vmatprep.subr.msk.bf16.mxu0 %vm1197_vm1, %v1509_v44  ;;  %v1411_v51 = vrot.slane %v1400_v50, %v12362_v41  ;;  %v1404_v52 = vcombine.high %v1400_v50, %v1400_v50  ;;  %v1722_v53 = vld [vmem:[#allocation2 + $0x4] sm:$0x3f] }
 0x227   : > { %1282 = vrot.lane.b32.xlu1 %v1273_v45, %s14160_s1  ;;  %v1280_v48 = vrot.slane %v1266_v46, %v12362_v41  ;;  %1520 = vmatpush1.bf16.msra.mxu0 %v1514_v47  ;;  %v1281_v49 = vcombine.high %v1273_v45, %v1273_v45  ;;  %v1733_v55 = vrot.slane %v1722_v53, %v12362_v41  ;;  %v1719_v58 = vld [vmem:[#allocation2 + $0x2] sm:$0x3f]  ;;  %v12426_v46 = vpop.f32.mrb[8].mxu1 }
 0x228   : > { %v1418_v54 = vrot.slane %v1404_v52, %v12362_v41  ;;  %v1419_v56 = vcombine.high %v1411_v51, %v1411_v51  ;;  %v1726_v59 = vcombine.high %v1722_v53, %v1722_v53  ;;  %v1809_v60 = vrot.slane %v1719_v58, %v12362_v41  ;;  %v1495_v63 = vld [vmem:[#allocation2 + $0x2] sm:$0x3f] }
 0x229   : > { %1286 = vrot.lane.b32.xlu0 %v1280_v48, %s14160_s1  ;;  %v1741_v57 = vcombine.high %v1733_v55, %v1733_v55  ;;  %v1802_v61 = vcombine.high %v1719_v58, %v1719_v58  ;;  %v1568_v3 = vrot.slane %v1495_v63, %v12362_v41  ;;  %v1636_v5 = vld [vmem:[#allocation2 + $0x4] sm:$0x3f]  ;;  %v1561_v7 = vcombine.high %v1495_v63, %v1495_v63 }
 0x22a   : > { %11060 = vmatmul.mubr.msk.bf16.vlgmr.msra.gmra.mrb[8].mxu0 %vm1193_vm2, %v11057_v62  ;;  %v1740_v1 = vrot.slane %v1726_v59, %v12362_v41  ;;  %v1817_v6 = vcombine.high %v1809_v60, %v1809_v60  ;;  %v1647_v8 = vrot.slane %v1636_v5, %v12362_v41  ;;  %v1640_v9 = vcombine.high %v1636_v5, %v1636_v5  ;;  %v1877_v10 = vld [vmem:[#allocation2 + $0x4] sm:$0x3f] }
 0x22b   : > { %1284 = vrot.lane.b32.xlu1 %v1281_v49, %s14160_s1  ;;  %1627 = vmatprep.mubr.bf16.mxu0 %v12062_v0  ;;  %v1816_v2 = vrot.slane %v1802_v61, %v12362_v41  ;;  %v1576_v4 = vcombine.high %v1568_v3, %v1568_v3  ;;  %v1575_v11 = vrot.slane %v1561_v7, %v12362_v41  ;;  %v11053_v61 = vld [vmem:[%s14253_s24 + $0xc] sm:$0x3] }
 0x22c   : > { %v1654_v12 = vrot.slane %v1640_v9, %v12362_v41  ;;  %v1888_v13 = vrot.slane %v1877_v10, %v12362_v41  ;;  %v1655_v16 = vcombine.high %v1647_v8, %v1647_v8  ;;  %v1881_v17 = vcombine.high %v1877_v10, %v1877_v10  ;;  %v11067_v9 = vld [vmem:[%s14253_s24 + $0xa] sm:$0x3] }
 0x22d   : > { %1343 = vrot.lane.b32.xlu0 %v1281_v49, %s14148_s11  ;;  %v12430_v49 = vpop.f32.mrb[9].mxu1 }
 0x22e   : > { %v1896_v14 = vcombine.high %v1888_v13, %v1888_v13  ;;  %v1895_v24 = vrot.slane %v1881_v17, %v12362_v41 }
 0x22f   : > { %1341 = vrot.lane.b32.xlu1 %v1273_v45, %s14148_s11 }
 0x231   : > { %1420 = vrot.lane.b32.xlu0 %v1411_v51, %s14150_s23  ;;  %v1179_v51 = vpop.f32.mrb[10].mxu1 }
 0x232   : > { %v1180_v52 = vpop.f32.mrb[11].mxu1 }
 0x233   : > { %1345 = vrot.lane.b32.xlu1 %v1280_v48, %s14148_s11  ;;  %s14154_s11 = smov 15   ;;  %v1262_v48 = vld [vmem:[%s14253_s24] sm:$0x3] }
 0x235   : > { %1424 = vrot.lane.b32.xlu0 %v1418_v54, %s14150_s23 }
 0x237   : > { %1422 = vrot.lane.b32.xlu1 %v1419_v56, %s14150_s23  ;;  %s14162_s23 = smov 16  }
 0x239   : > { %1744 = vrot.lane.b32.xlu0 %v1741_v57, %s14152_s28 }
 0x23b   : > { %1742 = vrot.lane.b32.xlu1 %v1733_v55, %s14152_s28 }
 0x23d   : > { %1818 = vrot.lane.b32.xlu0 %v1809_v60, %s14154_s11 }
 0x23f   : > { %1746 = vrot.lane.b32.xlu1 %v1740_v1, %s14152_s28  ;;  %s14158_s28 = smov 112  }
 0x241   : > { %1822 = vrot.lane.b32.xlu0 %v1816_v2, %s14154_s11 }
 0x243   : > { %1577 = vrot.lane.b32.xlu1 %v1568_v3, %s14162_s23 }
 0x245   : > { %1579 = vrot.lane.b32.xlu0 %v1576_v4, %s14162_s23 }
 0x247   : > { %1820 = vrot.lane.b32.xlu1 %v1817_v6, %s14154_s11  ;;  %s14156_s11 = smov 111  }
 0x249   : > { %1656 = vrot.lane.b32.xlu0 %v1647_v8, %s14158_s28  ;;  %v11056_v8 = vld [vmem:[%s14253_s24 + $0x2] sm:$0x3] }
 0x24b   : > { %1581 = vrot.lane.b32.xlu1 %v1575_v11, %s14162_s23 }
 0x24d   : > { %1660 = vrot.lane.b32.xlu0 %v1654_v12, %s14158_s28 }
 0x24f   : > { %1897 = vrot.lane.b32.xlu1 %v1888_v13, %s14156_s11 }
 0x251   : > { %1899 = vrot.lane.b32.xlu0 %v1896_v14, %s14156_s11 }
 0x253   : > { %1658 = vrot.lane.b32.xlu1 %v1655_v16, %s14158_s28  ;;  %s14273_s28 = smov 113  }
 0x255   : > { %1029 = vperm.xlu0 %11865, %v1026_v19   ;;  %v11063_v19 = vld [vmem:[%s14253_s24 + $0xe] sm:$0x3] }
 0x257   : > { %1901 = vrot.lane.b32.xlu1 %v1895_v24, %s14156_s11  ;;  %s14272_s11 = smov 17  }
 0x25b   : > { %1977 = vperm.xlu1 %11866, %v1974_v25  }
 0x299   : > { %v1283_v26 = vpop.permute.xlu1 %1282 }
 0x29b   : > { %v1287_v27 = vpop.permute.xlu0 %1286 }
 0x29d   : > { %v1285_v28 = vpop.permute.xlu1 %1284 }
 0x29e   : > { %v1289_v29 = vsel %vm1288_vm3, %v1283_v26, %v1285_v28  ;;  %v1290_v30 = vsel %vm1288_vm3, %v1285_v28, %v1287_v27  ;;  %v11066_v26 = vld [vmem:[%s14253_s24 + $0x4] sm:$0x3]  ;;  %v11072_v28 = vld [vmem:[%s14253_s24 + $0x10] sm:$0x3]  ;;  %s14201_s24 = smov 14  }
 0x29f   : > { %11049 = vmatprep.subr.msk.bf16.mxu1 %vm1197_vm1, %v1290_v30  ;;  %v1344_v31 = vpop.permute.xlu0 %1343  ;;  %v1295_v32 = vsel %vm1197_vm1, %v1289_v29, 0 }
 0x2a0   : > { %1301 = vmatpush1.bf16.msra.mxu1 %v1295_v32 }
 0x2a1   : > { %v1342_v34 = vpop.permute.xlu1 %1341 }
 0x2a2   : > { %v1348_v37 = vsel %vm1347_vm4, %v1342_v34, %v1344_v31 }
 0x2a3   : > { %11050 = vmatmul.mubr.msk.bf16.vlgmr.msra.gmra.mrb[12].mxu1 %vm1193_vm2, %v11048_v33  ;;  %v1421_v36 = vpop.permute.xlu0 %1420  ;;  %v1354_v40 = vsel %vm1197_vm1, %v1348_v37, 0  ;;  %v935_v33 = vand.u32 127, %v934_v35 }
 0x2a4   : > { %1391 = vmatprep.mubr.bf16.mxu1 %v12062_v0 }
 0x2a5   : > { %v1346_v38 = vpop.permute.xlu1 %1345 }
 0x2a6   : > { %v1349_v39 = vsel %vm1347_vm4, %v1344_v31, %v1346_v38 }
 0x2a7   : > { %11051 = vmatprep.subr.msk.bf16.mxu1 %vm1197_vm1, %v1349_v39  ;;  %v1425_v42 = vpop.permute.xlu0 %1424  ;;  %v936_v39 = vadd.s32 128, %v935_v33 }
 0x2a8   : > { %1360 = vmatpush1.bf16.msra.mxu1 %v1354_v40  ;;  %v12474_v40 = vand.u32 15, %v935_v33 }
 0x2a9   : > { %v1423_v43 = vpop.permute.xlu1 %1422 }
 0x2aa   : > { %v1428_v44 = vsel %vm1426_vm5, %v1423_v43, %v1425_v42  ;;  %v1427_v47 = vsel %vm1426_vm5, %v1421_v36, %v1423_v43  ;;  %v12476_v42 = vand.u32 15, %v936_v39 }
 0x2ab   : > { %11054 = vmatprep.subr.msk.bf16.mxu1 %vm1197_vm1, %v1428_v44  ;;  %v1745_v45 = vpop.permute.xlu0 %1744  ;;  %v1433_v53 = vsel %vm1197_vm1, %v1427_v47, 0 }
 0x2ac   : > { %v12482_v35 = vadd.s32 4294967295, %v12476_v42 }
 0x2ad   : > { %v1743_v50 = vpop.permute.xlu1 %1742 }
 0x2ae   : > { %v1749_v60 = vsel %vm14182_vm6, %v1743_v50, %v1745_v45  ;;  %v12479_v50 = vadd.s32 4294967295, %v12474_v40  ;;  %vm14177_vm11 = vcmp.ge.s32.totalorder %v12482_v35, 0 }
 0x2af   : > { %11052 = vmatmul.mubr.msk.bf16.vlgmr.msra.gmra.mrb[12].mxu1 %vm1193_vm2, %v1262_v48  ;;  %v1819_v54 = vpop.permute.xlu0 %1818  ;;  %v1755_v1 = vsel %vm1197_vm1, %v1749_v60, 0 }
 0x2b0   : > { %1439 = vmatpush1.bf16.msra.mxu1 %v1433_v53  ;;  %1470 = vmatprep.mubr.bf16.mxu1 %v12062_v0  ;;  %vm14178_vm10 = vcmp.ge.s32.totalorder %v12479_v50, 0 }
 0x2b1   : > { %v1747_v55 = vpop.permute.xlu1 %1746 }
 0x2b2   : > { %v1750_v56 = vsel %vm14182_vm6, %v1745_v45, %v1747_v55 }
 0x2b3   : > { %11068 = vmatprep.subr.msk.bf16.mxu1 %vm1197_vm1, %v1750_v56  ;;  %v1823_v57 = vpop.permute.xlu0 %1822 }
 0x2b5   : > { %v1578_v58 = vpop.permute.xlu1 %1577 }
 0x2b7   : > { %v1580_v59 = vpop.permute.xlu0 %1579 }
 0x2b8   : > { %v1584_v2 = vsel %vm14211_vm0, %v1578_v58, %v1580_v59 }
 0x2b9   : > { %v1821_v62 = vpop.permute.xlu1 %1820  ;;  %v1590_v6 = vsel %vm1197_vm1, %v1584_v2, 0 }
 0x2ba   : > { %v1826_v63 = vsel %vm14184_vm7, %v1821_v62, %v1823_v57  ;;  %v1825_v7 = vsel %vm14184_vm7, %v1819_v54, %v1821_v62  ;;  %v12491_v62 = vadd.s32 1, %v12474_v40 }
 0x2bb   : > { %11055 = vmatmul.mubr.msk.bf16.vlgmr.msra.gmra.mrb[12].mxu1 %vm1193_vm2, %v11053_v61  ;;  %v1657_v3 = vpop.permute.xlu0 %1656  ;;  %v1831_v12 = vsel %vm1197_vm1, %v1825_v7, 0 }
 0x2bc   : > { %1761 = vmatpush1.bf16.msra.mxu1 %v1755_v1  ;;  %1792 = vmatprep.mubr.bf16.mxu1 %v12062_v0  ;;  %vm14176_vm12 = vcmp.lt.s32.totalorder %v12491_v62, 16 }
 0x2bd   : > { %11070 = vmatprep.subr.msk.bf16.mxu1 %vm1197_vm1, %v1826_v63  ;;  %v1582_v4 = vpop.permute.xlu1 %1581  ;;  %v12494_v63 = vadd.s32 1, %v12476_v42 }
 0x2be   : > { %v1585_v5 = vsel %vm14211_vm0, %v1580_v59, %v1582_v4 }
 0x2bf   : > { %11061 = vmatprep.subr.msk.bf16.mxu0 %vm1197_vm1, %v1585_v5  ;;  %v1661_v11 = vpop.permute.xlu0 %1660  ;;  %vm14175_vm13 = vcmp.lt.s32.totalorder %v12494_v63, 16 }
 0x2c0   : > { %1596 = vmatpush1.bf16.msra.mxu0 %v1590_v6 }
 0x2c1   : > { %v1898_v10 = vpop.permute.xlu1 %1897 }
 0x2c3   : > { %11062 = vmatmul.mubr.msk.bf16.vlgmr.msra.gmra.mrb[12].mxu0 %vm1193_vm2, %v11056_v8  ;;  %11069 = vmatmul.mubr.msk.bf16.vlgmr.msra.gmra.mrb[16].mxu1 %vm1193_vm2, %v11067_v9  ;;  %v1900_v20 = vpop.permute.xlu0 %1899 }
 0x2c4   : > { %1837 = vmatpush1.bf16.msra.mxu1 %v1831_v12  ;;  %1706 = vmatprep.mubr.bf16.mxu0 %v12062_v0  ;;  %v1904_v25 = vsel %vm14179_vm9, %v1898_v10, %v1900_v20 }
 0x2c5   : > { %v1659_v13 = vpop.permute.xlu1 %1658  ;;  %1868 = vmatprep.mubr.bf16.mxu1 %v12062_v0  ;;  %v1910_v27 = vsel %vm1197_vm1, %v1904_v25, 0 }
 0x2c6   : > { %v1663_v14 = vsel %vm14212_vm8, %v1657_v3, %v1659_v13  ;;  %v1664_v16 = vsel %vm14212_vm8, %v1659_v13, %v1661_v11 }
 0x2c7   : > { %11064 = vmatprep.subr.msk.bf16.mxu0 %vm1197_vm1, %v1664_v16  ;;  %v1669_v17 = vsel %vm1197_vm1, %v1663_v14, 0 }
 0x2c8   : > { %1675 = vmatpush1.bf16.msra.mxu0 %v1669_v17 }
 0x2c9   : > { %v1902_v23 = vpop.permute.xlu1 %1901 }
 0x2ca   : > { %v1905_v24 = vsel %vm14179_vm9, %v1900_v20, %v1902_v23 }
 0x2cb   : > { %11065 = vmatmul.mubr.msk.bf16.vlgmr.msra.gmra.mrb[16].mxu0 %vm1193_vm2, %v11063_v19  ;;  %11073 = vmatprep.subr.msk.bf16.mxu1 %vm1197_vm1, %v1905_v24 }
 0x2cc   : > { %2070 = vmatprep.mubr.bf16.mxu0 %v12062_v0 }
 0x2cf   : > { %11071 = vmatmul.mubr.msk.bf16.vlgmr.msra.gmra.mrb[16].mxu1 %vm1193_vm2, %v11066_v26 }
 0x2d0   : > { %1916 = vmatpush1.bf16.msra.mxu1 %v1910_v27  ;;  %1947 = vmatprep.mubr.bf16.mxu1 %v12062_v0 }
 0x2d4   : > { %v1030_v1 = vpop.permute.xlu0 %1029 }
 0x2d5   : > { %v1070_v6 = vadd.f32 %v12403_v15, %v1030_v1  ;;  %v1072_v10 = vadd.f32 %v12406_v18, %v1030_v1 }
 0x2d7   : > { %v1076_v16 = vmax.f32 %v1070_v6, 0.0  ;;  %v1077_v19 = vmax.f32 %v1072_v10, 0.0 }
 0x2da   : > { %v1978_v5 = vpop.permute.xlu1 %1977 }
 0x2db   : > { %11074 = vmatmul.mubr.msk.bf16.vlgmr.msra.gmra.mrb[16].mxu1 %vm1193_vm2, %v11072_v28 }
 0x2dc   : > { %2275 = vmatprep.mubr.bf16.mxu1 %v12062_v0 }
 0x2fd   : > { %v1553_v29 = vpop.f32.mrb[8].mxu0 }
 0x2fe   : > { %v1555_v30 = vpop.f32.mrb[9].mxu0 }
 0x2ff   : > { %v1557_v31 = vpop.f32.mrb[10].mxu0 }
 0x300   : > { %v1558_v32 = vpop.f32.mrb[11].mxu0 }
 0x38e   : > { %v1472_v34 = vpop.f32.mrb[12].mxu1 }
 0x38f   : > { %v1474_v36 = vpop.f32.mrb[13].mxu1  ;;  %v1493_v55 = vsel %vm14178_vm10, %v1472_v34, 0.0 }
 0x390   : > { %v1476_v37 = vpop.f32.mrb[14].mxu1  ;;  %v1494_v58 = vsel %vm14177_vm11, %v1474_v36, 0.0 }
 0x391   : > { %v1477_v38 = vpop.f32.mrb[15].mxu1 }
 0x396   : > { %v1629_v43 = vpop.f32.mrb[12].mxu0 }
 0x397   : > { %v1630_v44 = vadd.f32 %v1629_v43, %v1553_v29  ;;  %v1631_v45 = vpop.f32.mrb[13].mxu0 }
 0x398   : > { %v1632_v47 = vadd.f32 %v1631_v45, %v1555_v30  ;;  %v1633_v48 = vpop.f32.mrb[14].mxu0 }
 0x399   : > { %v1634_v51 = vpop.f32.mrb[15].mxu0 }
 0x39e   : > { %v1708_v52 = vpop.f32.mrb[16].mxu0 }
 0x39f   : > { %v1715_v53 = vadd.f32 %v1708_v52, %v1630_v44  ;;  %v1710_v54 = vpop.f32.mrb[17].mxu0 }
 0x3a0   : > { %v1716_v56 = vadd.f32 %v1710_v54, %v1632_v47  ;;  %v1712_v57 = vpop.f32.mrb[18].mxu0  ;;  %v11086_v54 = vld [vmem:[%s14255_s6 + $0x8] sm:$0x3] }
 0x3a1   : > { %v1717_v59 = vadd.f32 %v1715_v53, %v1493_v55  ;;  %v1713_v60 = vpop.f32.mrb[19].mxu0 }
 0x3a2   : > { %v1718_v61 = vadd.f32 %v1716_v56, %v1494_v58 }
 0x3ae   : > { %v1949_v2 = vpop.f32.mrb[16].mxu1 }
 0x3af   : > { %v1970_v3 = vsel %vm14176_vm12, %v1949_v2, 0.0  ;;  %v1951_v4 = vpop.f32.mrb[17].mxu1 }
 0x3b0   : > { %v1972_v7 = vadd.f32 %v1970_v3, %v1717_v59  ;;  %v1971_v8 = vsel %vm14175_vm13, %v1951_v4, 0.0  ;;  %v1953_v9 = vpop.f32.mrb[18].mxu1 }
 0x3b1   : > { %v1973_v11 = vadd.f32 %v1971_v8, %v1718_v61  ;;  %v1954_v12 = vpop.f32.mrb[19].mxu1  ;;  %v2681_v9 = vld [vmem:[%s14276_s12] sm:$0xf]  ;;  %s14171_s12 = smov 98  }
 0x3b2   : > { %v1980_v13 = vadd.f32 %v1978_v5, %v1972_v7 }
 0x3b3   : > { %v1981_v14 = vadd.f32 %v1978_v5, %v1973_v11 }
 0x3b4   : > { %v12504_v17 = vmax.f32 %v1980_v13, 0.0 }
 0x3b5   : > { %v12506_v20 = vmax.f32 %v1981_v14, 0.0 }
 0x3b6   : > { %v1984_v23 = vadd.f32 %v12504_v17, %v1076_v16 }
 0x3b7   : > { %v1985_v15 = vadd.f32 %v12506_v20, %v1077_v19 }
 0x3b9   : > { %v11075_v24 = vpack.c.bf16 %v1985_v15, %v1984_v23  ;;  %v11077_v23 = vld [vmem:[%s14255_s6 + $0x6] sm:$0x3] }
 0x3bb   : > { %11076 = vst.sshfl [vmem:[#allocation2 + $0x4] sm:$0x33 pattern:$0x76325410] %v11075_v24 }
 0x3c2   : > { %v11087_v25 = vld.sshfl [vmem:[#allocation2 + $0x4] sm:$0x33 pattern:$0x76325410] }
 0x3c3   : > { %v2000_v26 = vld [vmem:[#allocation2 + $0x2] sm:$0x3f]  ;;  %v2233_v27 = vcombine.high %v11087_v25, %v11087_v25  ;;  %v2238_v29 = vsel %vm1197_vm1, %v11087_v25, 0 }
 0x3c4   : > { %v2012_v18 = vrot.slane %v2000_v26, %v12362_v41  ;;  %v2005_v28 = vcombine.high %v2000_v26, %v2000_v26  ;;  %v2137_v32 = vld [vmem:[#allocation2 + $0x4] sm:$0x3f] }
 0x3c5   : > { %11088 = vmatprep.subr.msk.bf16.mxu1 %vm1197_vm1, %v2233_v27  ;;  %v2148_v33 = vrot.slane %v2137_v32, %v12362_v41  ;;  %v2141_v34 = vcombine.high %v2137_v32, %v2137_v32  ;;  %v2219_v36 = vld [vmem:[#allocation2 + $0x2] sm:$0x3f] }
 0x3c6   : > { %2021 = vrot.lane.b32.xlu0 %v2012_v18, %s14160_s1  ;;  %v2020_v30 = vcombine.high %v2012_v18, %v2012_v18  ;;  %2244 = vmatpush1.bf16.msra.mxu1 %v2238_v29  ;;  %v2019_v31 = vrot.slane %v2005_v28, %v12362_v41  ;;  %v2292_v39 = vrot.slane %v2219_v36, %v12362_v41  ;;  %v2444_v44 = vld [vmem:[#allocation2 + $0x4] sm:$0x3f] }
 0x3c7   : > { %v2156_v37 = vcombine.high %v2148_v33, %v2148_v33  ;;  %v2155_v38 = vrot.slane %v2141_v34, %v12362_v41  ;;  %v2285_v43 = vcombine.high %v2219_v36, %v2219_v36  ;;  %v2455_v48 = vrot.slane %v2444_v44, %v12362_v41  ;;  %v2441_v52 = vld [vmem:[#allocation2 + $0x2] sm:$0x3f] }
 0x3c8   : > { %2023 = vrot.lane.b32.xlu1 %v2020_v30, %s14160_s1  ;;  %v2300_v45 = vcombine.high %v2292_v39, %v2292_v39  ;;  %v2448_v51 = vcombine.high %v2444_v44, %v2444_v44  ;;  %v2530_v56 = vrot.slane %v2441_v52, %v12362_v41  ;;  %v2523_v57 = vcombine.high %v2441_v52, %v2441_v52  ;;  %v2359_v59 = vld [vmem:[#allocation2 + $0x4] sm:$0x3f] }
 0x3c9   : > { %v2299_v47 = vrot.slane %v2285_v43, %v12362_v41  ;;  %v2463_v53 = vcombine.high %v2455_v48, %v2455_v48  ;;  %11089 = vmatmul.mubr.msk.bf16.vlgmr.msra.gmra.mrb[20].mxu1 %vm1193_vm2, %v11086_v54  ;;  %v2597_v61 = vld [vmem:[#allocation2 + $0x4] sm:$0x3f]  ;;  %v2370_v1 = vrot.slane %v2359_v59, %v12362_v41  ;;  %v2363_v2 = vcombine.high %v2359_v59, %v2359_v59 }
 0x3ca   : > { %2025 = vrot.lane.b32.xlu0 %v2019_v31, %s14160_s1  ;;  %s14274_s1 = smov 127   ;;  %v2462_v55 = vrot.slane %v2448_v51, %v12362_v41  ;;  %2428 = vmatprep.mubr.bf16.mxu1 %v12062_v0  ;;  %v2538_v58 = vcombine.high %v2530_v56, %v2530_v56  ;;  %v2537_v60 = vrot.slane %v2523_v57, %v12362_v41 }
 0x3cb   : > { %v2608_v3 = vrot.slane %v2597_v61, %v12362_v41  ;;  %v2377_v4 = vrot.slane %v2363_v2, %v12362_v41  ;;  %v2378_v5 = vcombine.high %v2370_v1, %v2370_v1  ;;  %v2601_v6 = vcombine.high %v2597_v61, %v2597_v61 }
 0x3cc   : > { %2079 = vrot.lane.b32.xlu1 %v2012_v18, %s14272_s11 }
 0x3cd   : > { %v2616_v7 = vcombine.high %v2608_v3, %v2608_v3  ;;  %v2615_v8 = vrot.slane %v2601_v6, %v12362_v41 }
 0x3ce   : > { %2081 = vrot.lane.b32.xlu0 %v2020_v30, %s14272_s11 }
 0x3d0   : > { %2083 = vrot.lane.b32.xlu1 %v2019_v31, %s14272_s11 }
 0x3d2   : > { %2157 = vrot.lane.b32.xlu0 %v2148_v33, %s14273_s28  ;;  %v2001_v33 = vld [vmem:[%s14255_s6] sm:$0x3] }
 0x3d4   : > { %2159 = vrot.lane.b32.xlu1 %v2156_v37, %s14273_s28 }
 0x3d6   : > { %2161 = vrot.lane.b32.xlu0 %v2155_v38, %s14273_s28 }
 0x3d8   : > { %2301 = vrot.lane.b32.xlu1 %v2292_v39, %s14162_s23 }
 0x3da   : > { %2303 = vrot.lane.b32.xlu0 %v2300_v45, %s14162_s23 }
 0x3dc   : > { %2305 = vrot.lane.b32.xlu1 %v2299_v47, %s14162_s23  ;;  %s14275_s23 = smov 15  }
 0x3de   : > { %2464 = vrot.lane.b32.xlu0 %v2455_v48, %s14274_s1  ;;  %v11082_v48 = vld [vmem:[%s14255_s6 + $0xc] sm:$0x3] }
 0x3e0   : > { %2466 = vrot.lane.b32.xlu1 %v2463_v53, %s14274_s1 }
 0x3e2   : > { %2468 = vrot.lane.b32.xlu0 %v2462_v55, %s14274_s1 }
 0x3e4   : > { %2539 = vrot.lane.b32.xlu1 %v2530_v56, %s14275_s23 }
 0x3e6   : > { %2541 = vrot.lane.b32.xlu0 %v2538_v58, %s14275_s23  ;;  %v11085_v58 = vld [vmem:[%s14255_s6 + $0x2] sm:$0x3] }
 0x3e8   : > { %2543 = vrot.lane.b32.xlu1 %v2537_v60, %s14275_s23 }
 0x3ea   : > { %2379 = vrot.lane.b32.xlu0 %v2370_v1, %s14277_s3 }
 0x3ec   : > { %2617 = vrot.lane.b32.xlu1 %v2608_v3, %s14278_s5 }
 0x3ee   : > { %2383 = vrot.lane.b32.xlu0 %v2377_v4, %s14277_s3 }
 0x3f0   : > { %2381 = vrot.lane.b32.xlu1 %v2378_v5, %s14277_s3  ;;  %v11092_v5 = vld [vmem:[%s14255_s6 + $0xe] sm:$0x3] }
 0x3f2   : > { %2619 = vrot.lane.b32.xlu0 %v2616_v7, %s14278_s5  ;;  %v11096_v7 = vld [vmem:[%s14255_s6 + $0xa] sm:$0x3] }
 0x3f4   : > { %2621 = vrot.lane.b32.xlu1 %v2615_v8, %s14278_s5 }
 0x3f6   : > { %2684 = vperm.xlu0 %11865, %v2681_v9  }
 0x438   : > { %v2022_v10 = vpop.permute.xlu0 %2021 }
 0x43a   : > { %v2024_v11 = vpop.permute.xlu1 %2023 }
 0x43b   : > { %v2027_v12 = vsel %vm1288_vm3, %v2022_v10, %v2024_v11 }
 0x43c   : > { %v2026_v13 = vpop.permute.xlu0 %2025  ;;  %v2033_v19 = vsel %vm1197_vm1, %v2027_v12, 0 }
 0x43d   : > { %v2028_v14 = vsel %vm1288_vm3, %v2024_v11, %v2026_v13  ;;  %v11095_v13 = vld [vmem:[%s14255_s6 + $0x4] sm:$0x3] }
 0x43e   : > { %v2080_v16 = vpop.permute.xlu1 %2079  ;;  %11078 = vmatprep.subr.msk.bf16.mxu0 %vm1197_vm1, %v2028_v14 }
 0x43f   : > { %2039 = vmatpush1.bf16.msra.mxu0 %v2033_v19 }
 0x440   : > { %v2082_v15 = vpop.permute.xlu0 %2081 }
 0x441   : > { %v2085_v24 = vsel %vm1347_vm4, %v2080_v16, %v2082_v15  ;;  %v11101_v16 = vld [vmem:[%s14255_s6 + $0x10] sm:$0x3]  ;;  %s14165_s6 = smov 2  }
 0x442   : > { %v2084_v25 = vpop.permute.xlu1 %2083  ;;  %11079 = vmatmul.mubr.msk.bf16.vlgmr.msra.gmra.mrb[20].mxu0 %vm1193_vm2, %v11077_v23  ;;  %v2091_v18 = vsel %vm1197_vm1, %v2085_v24, 0 }
 0x443   : > { %v2086_v26 = vsel %vm1347_vm4, %v2082_v15, %v2084_v25  ;;  %2128 = vmatprep.mubr.bf16.mxu0 %v12062_v0 }
 0x444   : > { %11080 = vmatprep.subr.msk.bf16.mxu0 %vm1197_vm1, %v2086_v26  ;;  %v2158_v27 = vpop.permute.xlu0 %2157 }
 0x445   : > { %2097 = vmatpush1.bf16.msra.mxu0 %v2091_v18 }
 0x446   : > { %v2160_v28 = vpop.permute.xlu1 %2159 }
 0x447   : > { %v2163_v32 = vsel %vm1426_vm5, %v2158_v27, %v2160_v28 }
 0x448   : > { %v2162_v29 = vpop.permute.xlu0 %2161  ;;  %v2169_v37 = vsel %vm1197_vm1, %v2163_v32, 0 }
 0x449   : > { %v2164_v30 = vsel %vm1426_vm5, %v2160_v28, %v2162_v29 }
 0x44a   : > { %v2302_v31 = vpop.permute.xlu1 %2301  ;;  %11083 = vmatprep.subr.msk.bf16.mxu0 %vm1197_vm1, %v2164_v30 }
 0x44c   : > { %v2304_v34 = vpop.permute.xlu0 %2303 }
 0x44d   : > { %v2307_v47 = vsel %vm14211_vm0, %v2302_v31, %v2304_v34 }
 0x44e   : > { %v2306_v36 = vpop.permute.xlu1 %2305  ;;  %11081 = vmatmul.mubr.msk.bf16.vlgmr.msra.gmra.mrb[20].mxu0 %vm1193_vm2, %v2001_v33  ;;  %v2313_v53 = vsel %vm1197_vm1, %v2307_v47, 0 }
 0x44f   : > { %v2308_v38 = vsel %vm14211_vm0, %v2304_v34, %v2306_v36  ;;  %2175 = vmatpush1.bf16.msra.mxu0 %v2169_v37  ;;  %2206 = vmatprep.mubr.bf16.mxu0 %v12062_v0 }
 0x450   : > { %11090 = vmatprep.subr.msk.bf16.mxu0 %vm1197_vm1, %v2308_v38  ;;  %v2465_v39 = vpop.permute.xlu0 %2464 }
 0x452   : > { %v2467_v43 = vpop.permute.xlu1 %2466 }
 0x453   : > { %v2470_v57 = vsel %vm14182_vm6, %v2465_v39, %v2467_v43 }
 0x454   : > { %v2469_v44 = vpop.permute.xlu0 %2468  ;;  %v2476_v61 = vsel %vm1197_vm1, %v2470_v57, 0 }
 0x455   : > { %v2471_v54 = vsel %vm14182_vm6, %v2467_v43, %v2469_v44 }
 0x456   : > { %v2540_v45 = vpop.permute.xlu1 %2539 }
 0x458   : > { %v2542_v51 = vpop.permute.xlu0 %2541 }
 0x459   : > { %v2545_v6 = vsel %vm14184_vm7, %v2540_v45, %v2542_v51 }
 0x45a   : > { %v2544_v52 = vpop.permute.xlu1 %2543  ;;  %11084 = vmatmul.mubr.msk.bf16.vlgmr.msra.gmra.mrb[20].mxu0 %vm1193_vm2, %v11082_v48  ;;  %v2551_v10 = vsel %vm1197_vm1, %v2545_v6, 0 }
 0x45b   : > { %2319 = vmatpush1.bf16.msra.mxu0 %v2313_v53  ;;  %2350 = vmatprep.mubr.bf16.mxu0 %v12062_v0  ;;  %v2546_v1 = vsel %vm14184_vm7, %v2542_v51, %v2544_v52 }
 0x45c   : > { %11097 = vmatprep.subr.msk.bf16.mxu0 %vm1197_vm1, %v2471_v54  ;;  %v2380_v55 = vpop.permute.xlu0 %2379 }
 0x45e   : > { %v2618_v56 = vpop.permute.xlu1 %2617 }
 0x460   : > { %v2384_v59 = vpop.permute.xlu0 %2383 }
 0x462   : > { %v2382_v60 = vpop.permute.xlu1 %2381  ;;  %11091 = vmatmul.mubr.msk.bf16.vlgmr.msra.gmra.mrb[24].mxu0 %vm1193_vm2, %v11085_v58 }
 0x463   : > { %v2385_v2 = vsel %vm14212_vm8, %v2380_v55, %v2382_v60  ;;  %2482 = vmatpush1.bf16.msra.mxu0 %v2476_v61  ;;  %v2386_v3 = vsel %vm14212_vm8, %v2382_v60, %v2384_v59  ;;  %2513 = vmatprep.mubr.bf16.mxu0 %v12062_v0 }
 0x464   : > { %11099 = vmatprep.subr.msk.bf16.mxu0 %vm1197_vm1, %v2546_v1  ;;  %11093 = vmatprep.subr.msk.bf16.mxu1 %vm1197_vm1, %v2386_v3  ;;  %v2391_v4 = vsel %vm1197_vm1, %v2385_v2, 0  ;;  %v2620_v9 = vpop.permute.xlu0 %2619 }
 0x465   : > { %2397 = vmatpush1.bf16.msra.mxu1 %v2391_v4  ;;  %v2623_v12 = vsel %vm14179_vm9, %v2618_v56, %v2620_v9 }
 0x466   : > { %v2622_v8 = vpop.permute.xlu1 %2621  ;;  %v2629_v14 = vsel %vm1197_vm1, %v2623_v12, 0 }
 0x467   : > { %v2624_v11 = vsel %vm14179_vm9, %v2620_v9, %v2622_v8  ;;  %vm14183_vm9 = vcmask 244736  }
 0x468   : > { %11094 = vmatmul.mubr.msk.bf16.vlgmr.msra.gmra.mrb[24].mxu1 %vm1193_vm2, %v11092_v5 }
 0x469   : > { %2776 = vmatprep.mubr.bf16.mxu1 %v12062_v0 }
 0x46a   : > { %11098 = vmatmul.mubr.msk.bf16.vlgmr.msra.gmra.mrb[28].mxu0 %vm1193_vm2, %v11096_v7 }
 0x46b   : > { %2557 = vmatpush1.bf16.msra.mxu0 %v2551_v10  ;;  %2588 = vmatprep.mubr.bf16.mxu0 %v12062_v0 }
 0x46c   : > { %11102 = vmatprep.subr.msk.bf16.mxu0 %vm1197_vm1, %v2624_v11 }
 0x475   : > { %v2685_v57 = vpop.permute.xlu0 %2684 }
 0x476   : > { %11100 = vmatmul.mubr.msk.bf16.vlgmr.msra.gmra.mrb[28].mxu0 %vm1193_vm2, %v11095_v13 }
 0x477   : > { %2635 = vmatpush1.bf16.msra.mxu0 %v2629_v14  ;;  %2666 = vmatprep.mubr.bf16.mxu0 %v12062_v0 }
 0x482   : > { %11103 = vmatmul.mubr.msk.bf16.vlgmr.msra.gmra.mrb[28].mxu0 %vm1193_vm2, %v11101_v16 }
 0x483   : > { %2995 = vmatprep.mubr.bf16.mxu0 %v12062_v0 }
 0x49c   : > { %v2277_v19 = vpop.f32.mrb[20].mxu1 }
 0x49d   : > { %v2279_v23 = vpop.f32.mrb[21].mxu1 }
 0x49e   : > { %v2281_v15 = vpop.f32.mrb[22].mxu1 }
 0x49f   : > { %v2282_v24 = vpop.f32.mrb[23].mxu1 }
 0x52d   : > { %v2208_v25 = vpop.f32.mrb[20].mxu0 }
 0x52e   : > { %v2210_v26 = vpop.f32.mrb[21].mxu0  ;;  %v2217_v38 = vsel %vm14178_vm10, %v2208_v25, 0.0  ;;  %vm14214_vm10 = vcmask 785408  }
 0x52f   : > { %v2212_v27 = vpop.f32.mrb[22].mxu0  ;;  %v2218_v44 = vsel %vm14177_vm11, %v2210_v26, 0.0  ;;  %vm14180_vm11 = vcmask 1031168  }
 0x530   : > { %v2213_v18 = vpop.f32.mrb[23].mxu0 }
 0x535   : > { %v2352_v28 = vpop.f32.mrb[24].mxu0 }
 0x536   : > { %v2353_v29 = vadd.f32 %v2352_v28, %v2277_v19  ;;  %v2354_v30 = vpop.f32.mrb[25].mxu0 }
 0x537   : > { %v2355_v31 = vadd.f32 %v2354_v30, %v2279_v23  ;;  %v2356_v32 = vpop.f32.mrb[26].mxu0 }
 0x538   : > { %v2357_v33 = vpop.f32.mrb[27].mxu0 }
 0x53b   : > { %v2430_v34 = vpop.f32.mrb[24].mxu1 }
 0x53c   : > { %v2437_v36 = vadd.f32 %v2430_v34, %v2353_v29  ;;  %v2432_v37 = vpop.f32.mrb[25].mxu1 }
 0x53d   : > { %v2438_v39 = vadd.f32 %v2432_v37, %v2355_v31  ;;  %v2434_v43 = vpop.f32.mrb[26].mxu1  ;;  %v11115_v31 = vld [vmem:[%s14254_s20 + $0x8] sm:$0x3] }
 0x53e   : > { %v2439_v45 = vadd.f32 %v2437_v36, %v2217_v38  ;;  %v2435_v47 = vpop.f32.mrb[27].mxu1 }
 0x53f   : > { %v2440_v48 = vadd.f32 %v2438_v39, %v2218_v44 }
 0x555   : > { %v2668_v51 = vpop.f32.mrb[28].mxu0 }
 0x556   : > { %v2677_v52 = vsel %vm14176_vm12, %v2668_v51, 0.0  ;;  %v2670_v53 = vpop.f32.mrb[29].mxu0  ;;  %vm14213_vm12 = vcmask 261120  }
 0x557   : > { %v2679_v54 = vadd.f32 %v2677_v52, %v2439_v45  ;;  %v2678_v55 = vsel %vm14175_vm13, %v2670_v53, 0.0  ;;  %v2672_v56 = vpop.f32.mrb[30].mxu0  ;;  %vm14217_vm13 = vcmask 801792  }
 0x558   : > { %v2680_v58 = vadd.f32 %v2678_v55, %v2440_v48  ;;  %v2673_v59 = vpop.f32.mrb[31].mxu0  ;;  %v3418_v55 = vld [vmem:[%s14280_s13] sm:$0xf]  ;;  %s14281_s13 = smov 34  }
 0x559   : > { %v2687_v60 = vadd.f32 %v2685_v57, %v2679_v54 }
 0x55a   : > { %v2688_v61 = vadd.f32 %v2685_v57, %v2680_v58 }
 0x55b   : > { %v2689_v1 = vmax.f32 %v2687_v60, 0.0 }
 0x55c   : > { %v2690_v2 = vmax.f32 %v2688_v61, 0.0 }
 0x55e   : > { %v11104_v3 = vpack.c.bf16 %v2690_v2, %v2689_v1  ;;  %v11106_v2 = vld [vmem:[%s14254_s20 + $0x6] sm:$0x3] }
 0x560   : > { %11105 = vst.sshfl [vmem:[#allocation2 + $0x4] sm:$0x33 pattern:$0x76325410] %v11104_v3 }
 0x567   : > { %v11116_v4 = vld.sshfl [vmem:[#allocation2 + $0x4] sm:$0x33 pattern:$0x76325410] }
 0x568   : > { %v2705_v5 = vld [vmem:[#allocation2 + $0x2] sm:$0x3f]  ;;  %v2953_v6 = vcombine.high %v11116_v4, %v11116_v4  ;;  %v2958_v9 = vsel %vm1197_vm1, %v11116_v4, 0 }
 0x569   : > { %v2717_v7 = vrot.slane %v2705_v5, %v12362_v41  ;;  %v2710_v8 = vcombine.high %v2705_v5, %v2705_v5  ;;  %v2844_v12 = vld [vmem:[#allocation2 + $0x4] sm:$0x3f] }
 0x56a   : > { %11117 = vmatprep.subr.msk.bf16.mxu0 %vm1197_vm1, %v2953_v6  ;;  %v2855_v13 = vrot.slane %v2844_v12, %v12362_v41  ;;  %v2848_v14 = vcombine.high %v2844_v12, %v2844_v12  ;;  %v2939_v16 = vld [vmem:[#allocation2 + $0x2] sm:$0x3f] }
 0x56b   : > { %2726 = vrot.lane.b32.xlu1 %v2717_v7, %s14165_s6  ;;  %v2725_v10 = vcombine.high %v2717_v7, %v2717_v7  ;;  %2964 = vmatpush1.bf16.msra.mxu0 %v2958_v9  ;;  %v2724_v11 = vrot.slane %v2710_v8, %v12362_v41  ;;  %v3012_v15 = vrot.slane %v2939_v16, %v12362_v41  ;;  %v3166_v25 = vld [vmem:[#allocation2 + $0x4] sm:$0x3f] }
 0x56c   : > { %v2863_v19 = vcombine.high %v2855_v13, %v2855_v13  ;;  %v2862_v23 = vrot.slane %v2848_v14, %v12362_v41  ;;  %v3005_v24 = vcombine.high %v2939_v16, %v2939_v16  ;;  %v3177_v18 = vrot.slane %v3166_v25, %v12362_v41  ;;  %v3163_v29 = vld [vmem:[#allocation2 + $0x2] sm:$0x3f]  ;;  %v2706_v14 = vld [vmem:[%s14254_s20] sm:$0x3] }
 0x56d   : > { %2728 = vrot.lane.b32.xlu0 %v2725_v10, %s14165_s6  ;;  %v3020_v26 = vcombine.high %v3012_v15, %v3012_v15  ;;  %v3170_v28 = vcombine.high %v3166_v25, %v3166_v25  ;;  %v3253_v33 = vrot.slane %v3163_v29, %v12362_v41  ;;  %v3246_v34 = vcombine.high %v3163_v29, %v3163_v29  ;;  %v3080_v37 = vld [vmem:[#allocation2 + $0x4] sm:$0x3f] }
 0x56e   : > { %v3019_v27 = vrot.slane %v3005_v24, %v12362_v41  ;;  %v3185_v30 = vcombine.high %v3177_v18, %v3177_v18  ;;  %11118 = vmatmul.mubr.msk.bf16.vlgmr.msra.gmra.mrb[32].mxu0 %vm1193_vm2, %v11115_v31  ;;  %v3321_v39 = vld [vmem:[#allocation2 + $0x4] sm:$0x3f]  ;;  %v3091_v43 = vrot.slane %v3080_v37, %v12362_v41  ;;  %v3084_v44 = vcombine.high %v3080_v37, %v3080_v37  ;;  %v11114_v37 = vld [vmem:[%s14254_s20 + $0x2] sm:$0x3] }
 0x56f   : > { %2730 = vrot.lane.b32.xlu1 %v2724_v11, %s14165_s6  ;;  %s14169_s6 = smov 32   ;;  %v3184_v32 = vrot.slane %v3170_v28, %v12362_v41  ;;  %3150 = vmatprep.mubr.bf16.mxu0 %v12062_v0  ;;  %v3261_v36 = vcombine.high %v3253_v33, %v3253_v33  ;;  %v3260_v38 = vrot.slane %v3246_v34, %v12362_v41  ;;  %v11111_v28 = vld [vmem:[%s14254_s20 + $0xc] sm:$0x3] }
 0x570   : > { %v3332_v45 = vrot.slane %v3321_v39, %v12362_v41  ;;  %v3098_v47 = vrot.slane %v3084_v44, %v12362_v41  ;;  %v3099_v48 = vcombine.high %v3091_v43, %v3091_v43  ;;  %v3325_v51 = vcombine.high %v3321_v39, %v3321_v39 }
 0x571   : > { %2785 = vrot.lane.b32.xlu0 %v2717_v7, %s14167_s9 }
 0x572   : > { %v3340_v52 = vcombine.high %v3332_v45, %v3332_v45  ;;  %v3339_v53 = vrot.slane %v3325_v51, %v12362_v41  ;;  %v11121_v51 = vld [vmem:[%s14254_s20 + $0xe] sm:$0x3] }
 0x573   : > { %2787 = vrot.lane.b32.xlu1 %v2725_v10, %s14167_s9 }
 0x575   : > { %2789 = vrot.lane.b32.xlu0 %v2724_v11, %s14167_s9  ;;  %s14173_s9 = smov 126  }
 0x577   : > { %2864 = vrot.lane.b32.xlu1 %v2855_v13, %s14171_s12 }
 0x579   : > { %2866 = vrot.lane.b32.xlu0 %v2863_v19, %s14171_s12 }
 0x57b   : > { %2868 = vrot.lane.b32.xlu1 %v2862_v23, %s14171_s12  ;;  %s14279_s12 = sld [smem:[#allocation12_spill]] }
 0x57d   : > { %3021 = vrot.lane.b32.xlu0 %v3012_v15, %s14169_s6 }
 0x57f   : > { %3023 = vrot.lane.b32.xlu1 %v3020_v26, %s14169_s6 }
 0x581   : > { %3025 = vrot.lane.b32.xlu0 %v3019_v27, %s14169_s6  ;;  %s14187_s6 = smov 30   ;;  %v1079_v54 = vld [vmem:[%s14279_s12] sm:$0xf]  ;;  %s14191_s12 = smov 18  }
 0x583   : > { %3186 = vrot.lane.b32.xlu1 %v3177_v18, %s14173_s9 }
 0x585   : > { %3188 = vrot.lane.b32.xlu0 %v3185_v30, %s14173_s9 }
 0x587   : > { %3190 = vrot.lane.b32.xlu1 %v3184_v32, %s14173_s9  ;;  %s14185_s9 = smov 94  }
 0x589   : > { %3262 = vrot.lane.b32.xlu0 %v3253_v33, %s14187_s6 }
 0x58b   : > { %3264 = vrot.lane.b32.xlu1 %v3261_v36, %s14187_s6 }
 0x58d   : > { %3266 = vrot.lane.b32.xlu0 %v3260_v38, %s14187_s6  ;;  %s14193_s6 = smov 114  }
 0x58f   : > { %3100 = vrot.lane.b32.xlu1 %v3091_v43, %s14189_s14 }
 0x591   : > { %3341 = vrot.lane.b32.xlu0 %v3332_v45, %s14185_s9 }
 0x593   : > { %3104 = vrot.lane.b32.xlu1 %v3098_v47, %s14189_s14 }
 0x595   : > { %3102 = vrot.lane.b32.xlu0 %v3099_v48, %s14189_s14  ;;  %s14196_s14 = smov 33  }
 0x597   : > { %3343 = vrot.lane.b32.xlu1 %v3340_v52, %s14185_s9 }
 0x599   : > { %3345 = vrot.lane.b32.xlu0 %v3339_v53, %s14185_s9  ;;  %v11125_v53 = vld [vmem:[%s14254_s20 + $0xa] sm:$0x3]  ;;  %s14282_s9 = smov 2  }
 0x59b   : > { %1082 = vperm.xlu1 %11866, %v1079_v54  }
 0x59d   : > { %3421 = vperm.xlu0 %11865, %v3418_v55  }
 0x5dd   : > { %v2727_v56 = vpop.permute.xlu1 %2726 }
 0x5df   : > { %v2729_v57 = vpop.permute.xlu0 %2728 }
 0x5e0   : > { %v2733_v58 = vsel %vm14210_vm14, %v2727_v56, %v2729_v57 }
 0x5e1   : > { %v2731_v59 = vpop.permute.xlu1 %2730  ;;  %v2739_v1 = vsel %vm1197_vm1, %v2733_v58, 0 }
 0x5e2   : > { %v2734_v60 = vsel %vm14210_vm14, %v2729_v57, %v2731_v59  ;;  %v11124_v59 = vld [vmem:[%s14254_s20 + $0x4] sm:$0x3] }
 0x5e3   : > { %v2786_v61 = vpop.permute.xlu0 %2785  ;;  %11107 = vmatprep.subr.msk.bf16.mxu1 %vm1197_vm1, %v2734_v60 }
 0x5e4   : > { %2745 = vmatpush1.bf16.msra.mxu1 %v2739_v1 }
 0x5e5   : > { %v2788_v3 = vpop.permute.xlu1 %2787 }
 0x5e6   : > { %v2792_v4 = vsel %vm2791_vm15, %v2786_v61, %v2788_v3  ;;  %v11130_v61 = vld [vmem:[%s14254_s20 + $0x10] sm:$0x3]  ;;  %s14199_s20 = smov 97  }
 0x5e7   : > { %v2790_v5 = vpop.permute.xlu0 %2789  ;;  %11108 = vmatmul.mubr.msk.bf16.vlgmr.msra.gmra.mrb[28].mxu1 %vm1193_vm2, %v11106_v2  ;;  %v2798_v8 = vsel %vm1197_vm1, %v2792_v4, 0 }
 0x5e8   : > { %v2793_v6 = vsel %vm2791_vm15, %v2788_v3, %v2790_v5  ;;  %2835 = vmatprep.mubr.bf16.mxu1 %v12062_v0 }
 0x5e9   : > { %11109 = vmatprep.subr.msk.bf16.mxu1 %vm1197_vm1, %v2793_v6  ;;  %v2865_v7 = vpop.permute.xlu1 %2864 }
 0x5ea   : > { %2804 = vmatpush1.bf16.msra.mxu1 %v2798_v8 }
 0x5eb   : > { %v2867_v9 = vpop.permute.xlu0 %2866 }
 0x5ec   : > { %v2871_v13 = vsel %vm14217_vm13, %v2865_v7, %v2867_v9 }
 0x5ed   : > { %v2869_v10 = vpop.permute.xlu1 %2868  ;;  %v2877_v23 = vsel %vm1197_vm1, %v2871_v13, 0  ;;  %v12723_v13 = vadd.s32 4294967294, %v12476_v42 }
 0x5ee   : > { %v2872_v11 = vsel %vm14217_vm13, %v2867_v9, %v2869_v10  ;;  %v12720_v10 = vadd.s32 4294967294, %v12474_v40 }
 0x5ef   : > { %v3022_v12 = vpop.permute.xlu0 %3021  ;;  %11112 = vmatprep.subr.msk.bf16.mxu1 %vm1197_vm1, %v2872_v11  ;;  %vm14218_vm6 = vcmp.ge.s32.totalorder %v12723_v13, 0 }
 0x5f1   : > { %v3024_v16 = vpop.permute.xlu1 %3023 }
 0x5f2   : > { %v3028_v18 = vsel %vm14213_vm12, %v3022_v12, %v3024_v16 }
 0x5f3   : > { %v3026_v19 = vpop.permute.xlu0 %3025  ;;  %11110 = vmatmul.mubr.msk.bf16.vlgmr.msra.gmra.mrb[28].mxu1 %vm1193_vm2, %v2706_v14  ;;  %v3034_v31 = vsel %vm1197_vm1, %v3028_v18, 0 }
 0x5f4   : > { %v3029_v15 = vsel %vm14213_vm12, %v3024_v16, %v3026_v19  ;;  %2883 = vmatpush1.bf16.msra.mxu1 %v2877_v23  ;;  %2914 = vmatprep.mubr.bf16.mxu1 %v12062_v0 }
 0x5f5   : > { %11119 = vmatprep.subr.msk.bf16.mxu1 %vm1197_vm1, %v3029_v15  ;;  %v3187_v24 = vpop.permute.xlu1 %3186 }
 0x5f7   : > { %v3189_v25 = vpop.permute.xlu0 %3188 }
 0x5f8   : > { %v3193_v36 = vsel %vm14180_vm11, %v3187_v24, %v3189_v25 }
 0x5f9   : > { %v3191_v26 = vpop.permute.xlu1 %3190  ;;  %v3199_v43 = vsel %vm1197_vm1, %v3193_v36, 0 }
 0x5fa   : > { %v3194_v32 = vsel %vm14180_vm11, %v3189_v25, %v3191_v26  ;;  %vm14181_vm11 = vcmask 769024  }
 0x5fb   : > { %v3263_v27 = vpop.permute.xlu0 %3262 }
 0x5fd   : > { %v3265_v29 = vpop.permute.xlu1 %3264 }
 0x5fe   : > { %v3269_v52 = vsel %vm14183_vm9, %v3263_v27, %v3265_v29 }
 0x5ff   : > { %v3267_v30 = vpop.permute.xlu0 %3266  ;;  %11113 = vmatmul.mubr.msk.bf16.vlgmr.msra.gmra.mrb[28].mxu1 %vm1193_vm2, %v11111_v28  ;;  %v3275_v56 = vsel %vm1197_vm1, %v3269_v52, 0 }
 0x600   : > { %3040 = vmatpush1.bf16.msra.mxu1 %v3034_v31  ;;  %3071 = vmatprep.mubr.bf16.mxu1 %v12062_v0  ;;  %v3270_v44 = vsel %vm14183_vm9, %v3265_v29, %v3267_v30  ;;  %v12732_v31 = vadd.s32 2, %v12474_v40 }
 0x601   : > { %11126 = vmatprep.subr.msk.bf16.mxu1 %vm1197_vm1, %v3194_v32  ;;  %v3101_v33 = vpop.permute.xlu1 %3100  ;;  %v12735_v32 = vadd.s32 2, %v12476_v42 }
 0x602   : > { %vm14225_vm9 = vcmp.lt.s32.totalorder %v12732_v31, 16 }
 0x603   : > { %v3342_v34 = vpop.permute.xlu0 %3341  ;;  %vm14203_vm7 = vcmp.lt.s32.totalorder %v12735_v32, 16 }
 0x605   : > { %v3105_v38 = vpop.permute.xlu1 %3104 }
 0x607   : > { %v3103_v39 = vpop.permute.xlu0 %3102  ;;  %11120 = vmatmul.mubr.msk.bf16.vlgmr.msra.gmra.mrb[32].mxu1 %vm1193_vm2, %v11114_v37 }
 0x608   : > { %v3107_v45 = vsel %vm14214_vm10, %v3101_v33, %v3103_v39  ;;  %3205 = vmatpush1.bf16.msra.mxu1 %v3199_v43  ;;  %v3108_v47 = vsel %vm14214_vm10, %v3103_v39, %v3105_v38  ;;  %3236 = vmatprep.mubr.bf16.mxu1 %v12062_v0 }
 0x609   : > { %11128 = vmatprep.subr.msk.bf16.mxu1 %vm1197_vm1, %v3270_v44  ;;  %11122 = vmatprep.subr.msk.bf16.mxu0 %vm1197_vm1, %v3108_v47  ;;  %v3113_v48 = vsel %vm1197_vm1, %v3107_v45, 0  ;;  %v3344_v55 = vpop.permute.xlu1 %3343 }
 0x60a   : > { %3119 = vmatpush1.bf16.msra.mxu0 %v3113_v48  ;;  %v3348_v58 = vsel %vm14181_vm11, %v3342_v34, %v3344_v55 }
 0x60b   : > { %v3346_v54 = vpop.permute.xlu0 %3345  ;;  %v3354_v60 = vsel %vm1197_vm1, %v3348_v58, 0 }
 0x60c   : > { %v3349_v57 = vsel %vm14181_vm11, %v3344_v55, %v3346_v54  ;;  %vm2927_vm11 = vcmp.ge.s32.totalorder %v12720_v10, 0 }
 0x60d   : > { %11123 = vmatmul.mubr.msk.bf16.vlgmr.msra.gmra.mrb[36].mxu0 %vm1193_vm2, %v11121_v51 }
 0x60e   : > { %3515 = vmatprep.mubr.bf16.mxu0 %v12062_v0 }
 0x60f   : > { %11127 = vmatmul.mubr.msk.bf16.vlgmr.msra.gmra.mrb[36].mxu1 %vm1193_vm2, %v11125_v53 }
 0x610   : > { %3281 = vmatpush1.bf16.msra.mxu1 %v3275_v56  ;;  %3312 = vmatprep.mubr.bf16.mxu1 %v12062_v0 }
 0x611   : > { %11131 = vmatprep.subr.msk.bf16.mxu1 %vm1197_vm1, %v3349_v57 }
 0x61a   : > { %v1083_v33 = vpop.permute.xlu1 %1082 }
 0x61b   : > { %11129 = vmatmul.mubr.msk.bf16.vlgmr.msra.gmra.mrb[36].mxu1 %vm1193_vm2, %v11124_v59  ;;  %v1123_v38 = vadd.f32 %v12354_v21, %v1083_v33  ;;  %v1125_v45 = vadd.f32 %v12356_v22, %v1083_v33 }
 0x61c   : > { %3360 = vmatpush1.bf16.msra.mxu1 %v3354_v60  ;;  %3391 = vmatprep.mubr.bf16.mxu1 %v12062_v0  ;;  %v3422_v47 = vpop.permute.xlu0 %3421 }
 0x61d   : > { %v1129_v54 = vmax.f32 %v1123_v38, 0.0  ;;  %v1130_v56 = vmax.f32 %v1125_v45, 0.0 }
 0x627   : > { %11132 = vmatmul.mubr.msk.bf16.vlgmr.msra.gmra.mrb[36].mxu1 %vm1193_vm2, %v11130_v61 }
 0x628   : > { %3896 = vmatprep.mubr.bf16.mxu1 %v12062_v0 }
 0x641   : > { %v2997_v1 = vpop.f32.mrb[32].mxu0 }
 0x642   : > { %v2999_v2 = vpop.f32.mrb[33].mxu0 }
 0x643   : > { %v3001_v3 = vpop.f32.mrb[34].mxu0 }
 0x644   : > { %v3002_v4 = vpop.f32.mrb[35].mxu0 }
 0x6d2   : > { %v2916_v5 = vpop.f32.mrb[28].mxu1 }
 0x6d3   : > { %v2918_v6 = vpop.f32.mrb[29].mxu1  ;;  %v2937_v25 = vsel %vm2927_vm11, %v2916_v5, 0.0 }
 0x6d4   : > { %v2920_v7 = vpop.f32.mrb[30].mxu1  ;;  %v2938_v18 = vsel %vm14218_vm6, %v2918_v6, 0.0 }
 0x6d5   : > { %v2921_v8 = vpop.f32.mrb[31].mxu1 }
 0x6da   : > { %v3073_v9 = vpop.f32.mrb[32].mxu1 }
 0x6db   : > { %v3074_v11 = vadd.f32 %v3073_v9, %v2997_v1  ;;  %v3075_v12 = vpop.f32.mrb[33].mxu1 }
 0x6dc   : > { %v3076_v14 = vadd.f32 %v3075_v12, %v2999_v2  ;;  %v3077_v16 = vpop.f32.mrb[34].mxu1 }
 0x6dd   : > { %v3078_v19 = vpop.f32.mrb[35].mxu1 }
 0x6e0   : > { %v3152_v23 = vpop.f32.mrb[36].mxu0 }
 0x6e1   : > { %v3159_v15 = vadd.f32 %v3152_v23, %v3074_v11  ;;  %v3154_v24 = vpop.f32.mrb[37].mxu0 }
 0x6e2   : > { %v3160_v26 = vadd.f32 %v3154_v24, %v3076_v14  ;;  %v3156_v27 = vpop.f32.mrb[38].mxu0 }
 0x6e3   : > { %v3161_v28 = vadd.f32 %v3159_v15, %v2937_v25  ;;  %v3157_v29 = vpop.f32.mrb[39].mxu0 }
 0x6e4   : > { %v3162_v30 = vadd.f32 %v3160_v26, %v2938_v18 }
 0x6fa   : > { %v3393_v34 = vpop.f32.mrb[36].mxu1 }
 0x6fb   : > { %v3414_v36 = vsel %vm14225_vm9, %v3393_v34, 0.0  ;;  %v3395_v37 = vpop.f32.mrb[37].mxu1 }
 0x6fc   : > { %v3416_v39 = vadd.f32 %v3414_v36, %v3161_v28  ;;  %v3415_v43 = vsel %vm14203_vm7, %v3395_v37, 0.0  ;;  %v3397_v44 = vpop.f32.mrb[38].mxu1  ;;  %vm14209_vm7 = vcmask 146432  }
 0x6fd   : > { %v3417_v48 = vadd.f32 %v3415_v43, %v3162_v30  ;;  %v3398_v51 = vpop.f32.mrb[39].mxu1 }
 0x6fe   : > { %v3424_v52 = vadd.f32 %v3422_v47, %v3416_v39 }
 0x6ff   : > { %v3425_v53 = vadd.f32 %v3422_v47, %v3417_v48 }
 0x700   : > { %v12745_v55 = vmax.f32 %v3424_v52, 0.0 }
 0x701   : > { %v12747_v57 = vmax.f32 %v3425_v53, 0.0 }
 0x702   : > { %v3428_v21 = vadd.f32 %v12745_v55, %v1129_v54 }
 0x703   : > { %v3429_v58 = vadd.f32 %v12747_v57, %v1130_v56 }
 0x705   : > { %v11133_v59 = vpack.c.bf16 %v3429_v58, %v3428_v21 }
 0x707   : > { %11134 = vst.sshfl [vmem:[#allocation2 + $0x4] sm:$0x33 pattern:$0x76325410] %v11133_v59 }
 0x70e   : > { %v3444_v60 = vld [vmem:[#allocation2 + $0x2] sm:$0x3f] }
 0x70f   : > { %v3456_v22 = vrot.slane %v3444_v60, %v12362_v41  ;;  %v3449_v61 = vcombine.high %v3444_v60, %v3444_v60  ;;  %v3582_v3 = vld [vmem:[#allocation2 + $0x2] sm:$0x3f] }
 0x710   : > { %v3825_v4 = vld [vmem:[#allocation2 + $0x2] sm:$0x3f]  ;;  %v3593_v5 = vrot.slane %v3582_v3, %v12362_v41  ;;  %v3586_v15 = vcombine.high %v3582_v3, %v3582_v3 }
 0x711   : > { %3524 = vrot.lane.b32.xlu0 %v3456_v22, %s14281_s13  ;;  %3465 = vrot.lane.b32.xlu1 %v3456_v22, %s14191_s12  ;;  %v3464_v1 = vcombine.high %v3456_v22, %v3456_v22  ;;  %v3463_v2 = vrot.slane %v3449_v61, %v12362_v41  ;;  %v3838_v6 = vrot.slane %v3825_v4, %v12362_v41  ;;  %v3662_v7 = vld [vmem:[#allocation2 + $0x4] sm:$0x3f] }
 0x712   : > { %v3673_v8 = vrot.slane %v3662_v7, %v12362_v41  ;;  %v3743_v9 = vld [vmem:[#allocation2 + $0x4] sm:$0x3f]  ;;  %v3831_v16 = vcombine.high %v3825_v4, %v3825_v4  ;;  %v3600_v24 = vrot.slane %v3586_v15, %v12362_v41  ;;  %v3601_v25 = vcombine.high %v3593_v5, %v3593_v5 }
 0x713   : > { %v3964_v11 = vld [vmem:[#allocation2 + $0x2] sm:$0x3f]  ;;  %v3754_v12 = vrot.slane %v3743_v9, %v12362_v41  ;;  %v3846_v19 = vcombine.high %v3838_v6, %v3838_v6  ;;  %v3666_v29 = vcombine.high %v3662_v7, %v3662_v7  ;;  %v3747_v43 = vcombine.high %v3743_v9, %v3743_v9 }
 0x714   : > { %v3975_v14 = vrot.slane %v3964_v11, %v12362_v41  ;;  %v3845_v23 = vrot.slane %v3831_v16, %v12362_v41  ;;  %v4044_v26 = vld [vmem:[#allocation2 + $0x4] sm:$0x3f]  ;;  %v3681_v30 = vcombine.high %v3673_v8, %v3673_v8  ;;  %v3968_v37 = vcombine.high %v3964_v11, %v3964_v11 }
 0x715   : > { %3467 = vrot.lane.b32.xlu0 %v3464_v1, %s14191_s12  ;;  %3469 = vrot.lane.b32.xlu1 %v3463_v2, %s14191_s12  ;;  %s14283_s12 = smov 98   ;;  %v4209_v27 = vld [vmem:[#allocation2 + $0x2] sm:$0x3f]  ;;  %v4055_v18 = vrot.slane %v4044_v26, %v12362_v41  ;;  %v3680_v33 = vrot.slane %v3666_v29, %v12362_v41  ;;  %v3762_v44 = vcombine.high %v3754_v12, %v3754_v12 }
 0x716   : > { %v4222_v28 = vrot.slane %v4209_v27, %v12362_v41  ;;  %v4124_v34 = vld [vmem:[#allocation2 + $0x4] sm:$0x3f]  ;;  %v3983_v38 = vcombine.high %v3975_v14, %v3975_v14  ;;  %v3982_v39 = vrot.slane %v3968_v37, %v12362_v41  ;;  %v3761_v45 = vrot.slane %v3747_v43, %v12362_v41 }
 0x717   : > { %v4135_v36 = vrot.slane %v4124_v34, %v12362_v41  ;;  %v4215_v47 = vcombine.high %v4209_v27, %v4209_v27  ;;  %v4048_v52 = vcombine.high %v4044_v26, %v4044_v26  ;;  %v4063_v53 = vcombine.high %v4055_v18, %v4055_v18  ;;  %v4491_v56 = vld [vmem:[#allocation2 + $0x4] sm:$0x3f] }
 0x718   : > { %v4230_v48 = vcombine.high %v4222_v28, %v4222_v28  ;;  %v4411_v21 = vld [vmem:[#allocation2 + $0x4] sm:$0x3f]  ;;  %v4502_v58 = vrot.slane %v4491_v56, %v12362_v41  ;;  %v4128_v60 = vcombine.high %v4124_v34, %v4124_v34 }
 0x719   : > { %3602 = vrot.lane.b32.xlu0 %v3593_v5, %s14282_s9  ;;  %3847 = vrot.lane.b32.xlu1 %v3838_v6, %s14272_s11  ;;  %v4229_v51 = vrot.slane %v4215_v47, %v12362_v41  ;;  %v4062_v54 = vrot.slane %v4048_v52, %v12362_v41  ;;  %v4422_v59 = vrot.slane %v4411_v21, %v12362_v41 }
 0x71a   : > { %v4142_v22 = vrot.slane %v4128_v60, %v12362_v41  ;;  %v4143_v61 = vcombine.high %v4135_v36, %v4135_v36  ;;  %v4415_v5 = vcombine.high %v4411_v21, %v4411_v21  ;;  %v4510_v11 = vcombine.high %v4502_v58, %v4502_v58 }
 0x71c   : > { %v4429_v7 = vrot.slane %v4415_v5, %v12362_v41 }
 0x71d   : > { %3682 = vrot.lane.b32.xlu0 %v3673_v8, %s14193_s6  ;;  %3905 = vrot.lane.b32.xlu1 %v3838_v6, %s14196_s14  ;;  %s14285_s6 = smov 16   ;;  %v4430_v6 = vcombine.high %v4422_v59, %v4422_v59  ;;  %v4495_v8 = vcombine.high %v4491_v56, %v4491_v56 }
 0x71f   : > { %v4509_v9 = vrot.slane %v4495_v8, %v12362_v41 }
 0x721   : > { %3528 = vrot.lane.b32.xlu0 %v3463_v2, %s14281_s13  ;;  %3526 = vrot.lane.b32.xlu1 %v3464_v1, %s14281_s13  ;;  %v4957_v1 = vld [vmem:[#allocation2 + $0x2] sm:$0x3f] }
 0x722   : > { %v4573_v2 = vld [vmem:[#allocation2 + $0x2] sm:$0x3f]  ;;  %v4970_v3 = vrot.slane %v4957_v1, %v12362_v41 }
 0x723   : > { %v4586_v4 = vrot.slane %v4573_v2, %v12362_v41 }
 0x724   : > { %v4978_v15 = vcombine.high %v4970_v3, %v4970_v3 }
 0x725   : > { %3763 = vrot.lane.b32.xlu0 %v3754_v12, %s14283_s12  ;;  %3984 = vrot.lane.b32.xlu1 %v3975_v14, %s14284_s17  ;;  %v4579_v12 = vcombine.high %v4573_v2, %v4573_v2  ;;  %v4594_v14 = vcombine.high %v4586_v4, %v4586_v4 }
 0x727   : > { %v4593_v16 = vrot.slane %v4579_v12, %v12362_v41 }
 0x729   : > { %3849 = vrot.lane.b32.xlu0 %v3846_v19, %s14272_s11  ;;  %3851 = vrot.lane.b32.xlu1 %v3845_v23, %s14272_s11 }
 0x72d   : > { %3606 = vrot.lane.b32.xlu0 %v3600_v24, %s14282_s9  ;;  %3604 = vrot.lane.b32.xlu1 %v3601_v25, %s14282_s9  ;;  %v5096_v24 = vld [vmem:[#allocation2 + $0x4] sm:$0x3f] }
 0x72e   : > { %v4712_v25 = vld [vmem:[#allocation2 + $0x4] sm:$0x3f]  ;;  %v5107_v26 = vrot.slane %v5096_v24, %v12362_v41 }
 0x72f   : > { %v4723_v27 = vrot.slane %v4712_v25, %v12362_v41 }
 0x730   : > { %v5115_v37 = vcombine.high %v5107_v26, %v5107_v26 }
 0x731   : > { %4064 = vrot.lane.b32.xlu0 %v4055_v18, %s14273_s28  ;;  %4231 = vrot.lane.b32.xlu1 %v4222_v28, %s14285_s6  ;;  %v4716_v18 = vcombine.high %v4712_v25, %v4712_v25 }
 0x733   : > { %v4730_v29 = vrot.slane %v4716_v18, %v12362_v41 }
 0x735   : > { %3907 = vrot.lane.b32.xlu0 %v3846_v19, %s14196_s14  ;;  %3909 = vrot.lane.b32.xlu1 %v3845_v23, %s14196_s14  ;;  %s14288_s14 = smov 96   ;;  %v4963_v19 = vcombine.high %v4957_v1, %v4957_v1 }
 0x737   : > { %v4977_v23 = vrot.slane %v4963_v19, %v12362_v41 }
 0x739   : > { %3686 = vrot.lane.b32.xlu0 %v3680_v33, %s14286_s19  ;;  %3684 = vrot.lane.b32.xlu1 %v3681_v30, %s14286_s19  ;;  %v5100_v30 = vcombine.high %v5096_v24, %v5096_v24 }
 0x73d   : > { %4144 = vrot.lane.b32.xlu0 %v4135_v36, %s14199_s20  ;;  %4289 = vrot.lane.b32.xlu1 %v4222_v28, %s14287_s21  ;;  %v4731_v28 = vcombine.high %v4723_v27, %v4723_v27  ;;  %v5114_v36 = vrot.slane %v5100_v30, %v12362_v41 }
 0x741   : > { %3986 = vrot.lane.b32.xlu0 %v3983_v38, %s14284_s17  ;;  %3988 = vrot.lane.b32.xlu1 %v3982_v39, %s14284_s17  ;;  %v5176_v38 = vld [vmem:[#allocation2 + $0x4] sm:$0x3f] }
 0x742   : > { %v4792_v39 = vld [vmem:[#allocation2 + $0x4] sm:$0x3f]  ;;  %v5180_v60 = vcombine.high %v5176_v38, %v5176_v38 }
 0x743   : > { %v4803_v47 = vrot.slane %v4792_v39, %v12362_v41 }
 0x744   : > { %v5194_v1 = vrot.slane %v5180_v60, %v12362_v41 }
 0x745   : > { %3767 = vrot.lane.b32.xlu0 %v3761_v45, %s14283_s12  ;;  %3765 = vrot.lane.b32.xlu1 %v3762_v44, %s14283_s12  ;;  %v5187_v45 = vrot.slane %v5176_v38, %v12362_v41  ;;  %v4811_v21 = vcombine.high %v4803_v47, %v4803_v47 }
 0x747   : > { %v5195_v2 = vcombine.high %v5187_v45, %v5187_v45 }
 0x749   : > { %4233 = vrot.lane.b32.xlu0 %v4230_v48, %s14285_s6  ;;  %4235 = vrot.lane.b32.xlu1 %v4229_v51, %s14285_s6 }
 0x74d   : > { %4068 = vrot.lane.b32.xlu0 %v4062_v54, %s14273_s28  ;;  %4066 = vrot.lane.b32.xlu1 %v4063_v53, %s14273_s28 }
 0x751   : > { %4511 = vrot.lane.b32.xlu0 %v4502_v58, %s14288_s14  ;;  %4431 = vrot.lane.b32.xlu1 %v4422_v59, %s14277_s3 }
 0x755   : > { %4291 = vrot.lane.b32.xlu0 %v4230_v48, %s14287_s21  ;;  %4293 = vrot.lane.b32.xlu1 %v4229_v51, %s14287_s21  ;;  %v4796_v48 = vcombine.high %v4792_v39, %v4792_v39 }
 0x757   : > { %v4810_v58 = vrot.slane %v4796_v48, %v12362_v41 }
 0x759   : > { %4148 = vrot.lane.b32.xlu0 %v4142_v22, %s14199_s20  ;;  %4146 = vrot.lane.b32.xlu1 %v4143_v61, %s14199_s20  ;;  %s14289_s20 = smov 30  }
 0x75d   : > { %4979 = vrot.lane.b32.xlu0 %v4970_v3, %s14201_s24  ;;  %4595 = vrot.lane.b32.xlu1 %v4586_v4, %s14275_s23 }
 0x761   : > { %4433 = vrot.lane.b32.xlu0 %v4430_v6, %s14277_s3  ;;  %4435 = vrot.lane.b32.xlu1 %v4429_v7, %s14277_s3 }
 0x765   : > { %4515 = vrot.lane.b32.xlu0 %v4509_v9, %s14288_s14  ;;  %4513 = vrot.lane.b32.xlu1 %v4510_v11, %s14288_s14 }
 0x769   : > { %4597 = vrot.lane.b32.xlu0 %v4594_v14, %s14275_s23  ;;  %4599 = vrot.lane.b32.xlu1 %v4593_v16, %s14275_s23 }
 0x76d   : > { %4983 = vrot.lane.b32.xlu0 %v4977_v23, %s14201_s24  ;;  %4981 = vrot.lane.b32.xlu1 %v4978_v15, %s14201_s24  ;;  %s14290_s24 = smov 126  }
 0x771   : > { %5038 = vrot.lane.b32.xlu0 %v4970_v3, %s14289_s20  ;;  %4653 = vrot.lane.b32.xlu1 %v4586_v4, %s14204_s25  ;;  %v5257_v3 = vld [vmem:[#allocation2 + $0x4] sm:$0x3f] }
 0x772   : > { %v4872_v4 = vld [vmem:[#allocation2 + $0x4] sm:$0x3f]  ;;  %v5268_v7 = vrot.slane %v5257_v3, %v12362_v41  ;;  %v5261_v25 = vcombine.high %v5257_v3, %v5257_v3 }
 0x773   : > { %v4883_v8 = vrot.slane %v4872_v4, %v12362_v41  ;;  %v4876_v9 = vcombine.high %v4872_v4, %v4872_v4 }
 0x774   : > { %v5275_v18 = vrot.slane %v5261_v25, %v12362_v41 }
 0x775   : > { %4655 = vrot.lane.b32.xlu0 %v4594_v14, %s14204_s25  ;;  %4657 = vrot.lane.b32.xlu1 %v4593_v16, %s14204_s25  ;;  %s14291_s25 = sld [smem:[#allocation23_spill]] }
 0x779   : > { %5042 = vrot.lane.b32.xlu0 %v4977_v23, %s14289_s20  ;;  %5040 = vrot.lane.b32.xlu1 %v4978_v15, %s14289_s20  ;;  %v4891_v23 = vcombine.high %v4883_v8, %v4883_v8  ;;  %v4890_v15 = vrot.slane %v4876_v9, %v12362_v41 }
 0x77b   : > { %v11135_v59 = vld [vmem:[%s14291_s25 + $0xa] sm:$0x3]  ;;  %v3445_v24 = vld [vmem:[%s14291_s25] sm:$0x3]  ;;  %v11150_v38 = vld [vmem:[%s14291_s25 + $0xc] sm:$0x3] }
 0x77c   : > { %v11140_v48 = vld [vmem:[%s14291_s25 + $0x14] sm:$0x3]  ;;  %v11143_v4 = vld [vmem:[%s14291_s25 + $0x1e] sm:$0x3]  ;;  %v11146_v25 = vld [vmem:[%s14291_s25 + $0x28] sm:$0x3] }
 0x77d   : > { %5116 = vrot.lane.b32.xlu0 %v5107_v26, %s14290_s24  ;;  %4732 = vrot.lane.b32.xlu1 %v4723_v27, %s14274_s1 }
 0x781   : > { %4734 = vrot.lane.b32.xlu0 %v4731_v28, %s14274_s1  ;;  %4736 = vrot.lane.b32.xlu1 %v4730_v29, %s14274_s1  ;;  %v5276_v28 = vcombine.high %v5268_v7, %v5268_v7 }
 0x783   : > { %v3525_v33 = vpop.permute.xlu0 %3524  ;;  %v3466_v34 = vpop.permute.xlu1 %3465 }
 0x785   : > { %5120 = vrot.lane.b32.xlu0 %v5114_v36, %s14290_s24  ;;  %5118 = vrot.lane.b32.xlu1 %v5115_v37, %s14290_s24 }
 0x787   : > { %v3468_v43 = vpop.permute.xlu0 %3467  ;;  %v3470_v44 = vpop.permute.xlu1 %3469 }
 0x788   : > { %v3472_v51 = vsel %vm14209_vm7, %v3466_v34, %v3468_v43  ;;  %v3473_v52 = vsel %vm14209_vm7, %v3468_v43, %v3470_v44  ;;  %vm3911_vm7 = vcmask 269312  }
 0x789   : > { %5196 = vrot.lane.b32.xlu0 %v5187_v45, %s14207_s30  ;;  %4812 = vrot.lane.b32.xlu1 %v4803_v47, %s14278_s5  ;;  %v3478_v53 = vsel %vm1197_vm1, %v3472_v51, 0 }
 0x78a   : > { %11136 = vmatprep.subr.msk.bf16.mxu0 %vm1197_vm1, %v3473_v52 }
 0x78b   : > { %3484 = vmatpush1.bf16.msra.mxu0 %v3478_v53  ;;  %v3603_v54 = vpop.permute.xlu0 %3602  ;;  %v3848_v56 = vpop.permute.xlu1 %3847 }
 0x78d   : > { %4814 = vrot.lane.b32.xlu0 %v4811_v21, %s14278_s5  ;;  %4816 = vrot.lane.b32.xlu1 %v4810_v58, %s14278_s5 }
 0x78e   : > { %11137 = vmatmul.mubr.msk.bf16.vlgmr.msra.gmra.mrb[40].mxu0 %vm1193_vm2, %v11135_v59  ;;  %v11149_v59 = vld [vmem:[%s14291_s25 + $0x2] sm:$0x3] }
 0x78f   : > { %v12854_v22 = vpop.permute.xlu0 %3682  ;;  %v12856_v61 = vpop.permute.xlu1 %3905  ;;  %3573 = vmatprep.mubr.bf16.mxu0 %v12062_v0 }
 0x791   : > { %5200 = vrot.lane.b32.xlu0 %v5194_v1, %s14207_s30  ;;  %5198 = vrot.lane.b32.xlu1 %v5195_v2, %s14207_s30  ;;  %s14293_s30 = sld [smem:[#allocation24_spill]] }
 0x793   : > { %v3529_v5 = vpop.permute.xlu0 %3528  ;;  %v3527_v6 = vpop.permute.xlu1 %3526 }
 0x794   : > { %v3530_v11 = vsel %vm2791_vm15, %v3525_v33, %v3527_v6  ;;  %v3531_v12 = vsel %vm2791_vm15, %v3527_v6, %v3529_v5 }
 0x795   : > { %5277 = vrot.lane.b32.xlu0 %v5268_v7, %s14292_s2  ;;  %4892 = vrot.lane.b32.xlu1 %v4883_v8, %s14219_s18  ;;  %v3536_v14 = vsel %vm1197_vm1, %v3530_v11, 0 }
 0x796   : > { %11138 = vmatprep.subr.msk.bf16.mxu0 %vm1197_vm1, %v3531_v12  ;;  %v11155_v12 = vld [vmem:[%s14291_s25 + $0x16] sm:$0x3] }
 0x797   : > { %3542 = vmatpush1.bf16.msra.mxu0 %v3536_v14  ;;  %v12870_v16 = vpop.permute.xlu0 %3763  ;;  %v12872_v19 = vpop.permute.xlu1 %3984  ;;  %v5341_v34 = vld [vmem:[%s14293_s30] sm:$0xf]  ;;  %s12088_s30 = smov 4  }
 0x799   : > { %4894 = vrot.lane.b32.xlu0 %v4891_v23, %s14219_s18  ;;  %4896 = vrot.lane.b32.xlu1 %v4890_v15, %s14219_s18  ;;  %s14311_s18 = sld [smem:[#allocation25_spill]] }
 0x79a   : > { %11139 = vmatmul.mubr.msk.bf16.vlgmr.msra.gmra.mrb[40].mxu0 %vm1193_vm2, %v3445_v24 }
 0x79b   : > { %v3850_v26 = vpop.permute.xlu0 %3849  ;;  %v3852_v27 = vpop.permute.xlu1 %3851  ;;  %3651 = vmatprep.mubr.bf16.mxu0 %v12062_v0 }
 0x79c   : > { %v3853_v29 = vsel %vm1347_vm4, %v3848_v56, %v3850_v26  ;;  %v3854_v30 = vsel %vm1347_vm4, %v3850_v26, %v3852_v27 }
 0x79d   : > { %5281 = vrot.lane.b32.xlu0 %v5275_v18, %s14292_s2  ;;  %5279 = vrot.lane.b32.xlu1 %v5276_v28, %s14292_s2  ;;  %v3859_v33 = vsel %vm1197_vm1, %v3853_v29, 0 }
 0x79e   : > { %11151 = vmatprep.subr.msk.bf16.mxu1 %vm1197_vm1, %v3854_v30 }
 0x79f   : > { %3865 = vmatpush1.bf16.msra.mxu1 %v3859_v33  ;;  %v3607_v36 = vpop.permute.xlu0 %3606  ;;  %v3605_v37 = vpop.permute.xlu1 %3604 }
 0x7a0   : > { %v3608_v39 = vsel %vm14210_vm14, %v3603_v54, %v3605_v37  ;;  %v3609_v43 = vsel %vm14210_vm14, %v3605_v37, %v3607_v36  ;;  %vm3688_vm14 = vcmask 932864   ;;  %v11158_v37 = vld [vmem:[%s14291_s25 + $0x20] sm:$0x3] }
 0x7a1   : > { %5344 = vperm.xlu1 %11866, %v5341_v34   ;;  %11141 = vmatprep.subr.msk.bf16.mxu0 %vm1197_vm1, %v3609_v43  ;;  %v3614_v44 = vsel %vm1197_vm1, %v3608_v39, 0  ;;  %v11171_v39 = vld.sshfl [vmem:[#allocation2 + $0x4] sm:$0x33 pattern:$0x76325410] }
 0x7a2   : > { %11152 = vmatmul.mubr.msk.bf16.vlgmr.msra.gmra.mrb[40].mxu1 %vm1193_vm2, %v11150_v38  ;;  %3620 = vmatpush1.bf16.msra.mxu0 %v3614_v44  ;;  %v11165_v38 = vld [vmem:[%s14291_s25 + $0xe] sm:$0x3] }
 0x7a3   : > { %v4065_v45 = vpop.permute.xlu0 %4064  ;;  %v4232_v47 = vpop.permute.xlu1 %4231  ;;  %3955 = vmatprep.mubr.bf16.mxu1 %v12062_v0 }
 0x7a6   : > { %11142 = vmatmul.mubr.msk.bf16.vlgmr.msra.gmra.mrb[40].mxu0 %vm1193_vm2, %v11140_v48 }
 0x7a7   : > { %v3908_v51 = vpop.permute.xlu0 %3907  ;;  %v3910_v52 = vpop.permute.xlu1 %3909  ;;  %3732 = vmatprep.mubr.bf16.mxu0 %v12062_v0 }
 0x7a8   : > { %v3912_v53 = vsel %vm3911_vm7, %v12856_v61, %v3908_v51  ;;  %v3913_v54 = vsel %vm3911_vm7, %v3908_v51, %v3910_v52  ;;  %v4358_v51 = vcombine.high %v11171_v39, %v11171_v39 }
 0x7a9   : > { %11153 = vmatprep.subr.msk.bf16.mxu1 %vm1197_vm1, %v3913_v54  ;;  %v3918_v56 = vsel %vm1197_vm1, %v3912_v53, 0  ;;  %v11164_v54 = vld [vmem:[%s14291_s25 + $0x4] sm:$0x3] }
 0x7aa   : > { %3924 = vmatpush1.bf16.msra.mxu1 %v3918_v56 }
 0x7ab   : > { %v3687_v21 = vpop.permute.xlu0 %3686  ;;  %v3685_v58 = vpop.permute.xlu1 %3684 }
 0x7ac   : > { %v3689_v60 = vsel %vm3688_vm14, %v12854_v22, %v3685_v58  ;;  %v3690_v1 = vsel %vm3688_vm14, %v3685_v58, %v3687_v21 }
 0x7ad   : > { %11144 = vmatprep.subr.msk.bf16.mxu0 %vm1197_vm1, %v3690_v1  ;;  %v3695_v61 = vsel %vm1197_vm1, %v3689_v60, 0 }
 0x7ae   : > { %11154 = vmatmul.mubr.msk.bf16.vlgmr.msra.gmra.mrb[40].mxu1 %vm1193_vm2, %v11149_v59  ;;  %3701 = vmatpush1.bf16.msra.mxu0 %v3695_v61  ;;  %v4363_v59 = vsel %vm1197_vm1, %v11171_v39, 0  ;;  %v11161_v61 = vld [vmem:[%s14291_s25 + $0x2a] sm:$0x3] }
 0x7af   : > { %v12910_v2 = vpop.permute.xlu0 %4144  ;;  %v4290_v3 = vpop.permute.xlu1 %4289  ;;  %4033 = vmatprep.mubr.bf16.mxu1 %v12062_v0 }
 0x7b2   : > { %11145 = vmatmul.mubr.msk.bf16.vlgmr.msra.gmra.mrb[40].mxu0 %vm1193_vm2, %v11143_v4  ;;  %v11170_v4 = vld [vmem:[%s14291_s25 + $0x18] sm:$0x3] }
 0x7b3   : > { %v3987_v5 = vpop.permute.xlu0 %3986  ;;  %v3989_v22 = vpop.permute.xlu1 %3988  ;;  %3812 = vmatprep.mubr.bf16.mxu0 %v12062_v0 }
 0x7b4   : > { %v3990_v6 = vsel %vm1288_vm3, %v12872_v19, %v3987_v5  ;;  %v3991_v7 = vsel %vm1288_vm3, %v3987_v5, %v3989_v22 }
 0x7b5   : > { %11156 = vmatprep.subr.msk.bf16.mxu1 %vm1197_vm1, %v3991_v7  ;;  %v3996_v8 = vsel %vm1197_vm1, %v3990_v6, 0 }
 0x7b6   : > { %4002 = vmatpush1.bf16.msra.mxu1 %v3996_v8 }
 0x7b7   : > { %v3768_v9 = vpop.permute.xlu0 %3767  ;;  %v3766_v11 = vpop.permute.xlu1 %3765 }
 0x7b8   : > { %v3769_v14 = vsel %vm14217_vm13, %v12870_v16, %v3766_v11  ;;  %v3770_v23 = vsel %vm14217_vm13, %v3766_v11, %v3768_v9  ;;  %v11174_v9 = vld [vmem:[%s14291_s25 + $0x22] sm:$0x3] }
 0x7b9   : > { %11147 = vmatprep.subr.msk.bf16.mxu0 %vm1197_vm1, %v3770_v23  ;;  %v3775_v19 = vsel %vm1197_vm1, %v3769_v14, 0 }
 0x7ba   : > { %11157 = vmatmul.mubr.msk.bf16.vlgmr.msra.gmra.mrb[40].mxu1 %vm1193_vm2, %v11155_v12  ;;  %3781 = vmatpush1.bf16.msra.mxu0 %v3775_v19 }
 0x7bb   : > { %v4234_v15 = vpop.permute.xlu0 %4233  ;;  %v4236_v24 = vpop.permute.xlu1 %4235  ;;  %4113 = vmatprep.mubr.bf16.mxu1 %v12062_v0 }
 0x7bc   : > { %v4237_v26 = vsel %vm14211_vm0, %v4232_v47, %v4234_v15  ;;  %v4238_v27 = vsel %vm14211_vm0, %v4234_v15, %v4236_v24  ;;  %vm4150_vm0 = vcmask 793600   ;;  %v11177_v15 = vld [vmem:[%s14291_s25 + $0x2c] sm:$0x3] }
 0x7bd   : > { %11166 = vmatprep.subr.msk.bf16.mxu0 %vm1197_vm1, %v4238_v27  ;;  %v4243_v16 = vsel %vm1197_vm1, %v4237_v26, 0 }
 0x7be   : > { %11148 = vmatmul.mubr.msk.bf16.vlgmr.msra.gmra.mrb[40].mxu0 %vm1193_vm2, %v11146_v25 }
 0x7bf   : > { %4249 = vmatpush1.bf16.msra.mxu0 %v4243_v16  ;;  %v4069_v18 = vpop.permute.xlu0 %4068  ;;  %v4067_v28 = vpop.permute.xlu1 %4066  ;;  %4280 = vmatprep.mubr.bf16.mxu0 %v12062_v0 }
 0x7c0   : > { %v4070_v29 = vsel %vm1426_vm5, %v4065_v45, %v4067_v28  ;;  %v4071_v30 = vsel %vm1426_vm5, %v4067_v28, %v4069_v18  ;;  %v11181_v18 = vld [vmem:[%s14291_s25 + $0x10] sm:$0x3] }
 0x7c1   : > { %11159 = vmatprep.subr.msk.bf16.mxu1 %vm1197_vm1, %v4071_v30  ;;  %v4076_v33 = vsel %vm1197_vm1, %v4070_v29, 0 }
 0x7c2   : > { %4082 = vmatpush1.bf16.msra.mxu1 %v4076_v33 }
 0x7c3   : > { %v4512_v34 = vpop.permute.xlu0 %4511  ;;  %v4432_v36 = vpop.permute.xlu1 %4431 }
 0x7c6   : > { %11160 = vmatmul.mubr.msk.bf16.vlgmr.msra.gmra.mrb[40].mxu1 %vm1193_vm2, %v11158_v37  ;;  %11167 = vmatmul.mubr.msk.bf16.vlgmr.msra.gmra.mrb[44].mxu0 %vm1193_vm2, %v11165_v38 }
 0x7c7   : > { %v4292_v43 = vpop.permute.xlu0 %4291  ;;  %v4294_v44 = vpop.permute.xlu1 %4293  ;;  %4338 = vmatprep.mubr.bf16.mxu0 %v12062_v0  ;;  %4194 = vmatprep.mubr.bf16.mxu1 %v12062_v0 }
 0x7c8   : > { %v4295_v45 = vsel %vm14213_vm12, %v4290_v3, %v4292_v43  ;;  %v4296_v47 = vsel %vm14213_vm12, %v4292_v43, %v4294_v44 }
 0x7c9   : > { %11168 = vmatprep.subr.msk.bf16.mxu0 %vm1197_vm1, %v4296_v47  ;;  %v4301_v48 = vsel %vm1197_vm1, %v4295_v45, 0 }
 0x7ca   : > { %4307 = vmatpush1.bf16.msra.mxu0 %v4301_v48  ;;  %v11180_v48 = vld [vmem:[%s14291_s25 + $0x6] sm:$0x3] }
 0x7cb   : > { %v4149_v52 = vpop.permute.xlu0 %4148  ;;  %11172 = vmatprep.subr.msk.bf16.mxu0 %vm1197_vm1, %v4358_v51  ;;  %v4147_v53 = vpop.permute.xlu1 %4146 }
 0x7cc   : > { %v4151_v56 = vsel %vm4150_vm0, %v12910_v2, %v4147_v53  ;;  %v4152_v21 = vsel %vm4150_vm0, %v4147_v53, %v4149_v52 }
 0x7cd   : > { %11162 = vmatprep.subr.msk.bf16.mxu1 %vm1197_vm1, %v4152_v21  ;;  %v4157_v58 = vsel %vm1197_vm1, %v4151_v56, 0  ;;  %v11195_v21 = vld [vmem:[%s14291_s25 + $0x8] sm:$0x3] }
 0x7ce   : > { %11169 = vmatmul.mubr.msk.bf16.vlgmr.msra.gmra.mrb[48].mxu0 %vm1193_vm2, %v11164_v54  ;;  %4163 = vmatpush1.bf16.msra.mxu1 %v4157_v58 }
 0x7cf   : > { %4369 = vmatpush1.bf16.msra.mxu0 %v4363_v59  ;;  %v4980_v60 = vpop.permute.xlu0 %4979  ;;  %v4596_v1 = vpop.permute.xlu1 %4595  ;;  %4400 = vmatprep.mubr.bf16.mxu0 %v12062_v0 }
 0x7d2   : > { %11163 = vmatmul.mubr.msk.bf16.vlgmr.msra.gmra.mrb[40].mxu1 %vm1193_vm2, %v11161_v61 }
 0x7d3   : > { %v4434_v2 = vpop.permute.xlu0 %4433  ;;  %v4436_v3 = vpop.permute.xlu1 %4435  ;;  %4480 = vmatprep.mubr.bf16.mxu1 %v12062_v0 }
 0x7d4   : > { %v4437_v5 = vsel %vm14212_vm8, %v4432_v36, %v4434_v2  ;;  %v4438_v22 = vsel %vm14212_vm8, %v4434_v2, %v4436_v3  ;;  %vm14294_vm8 = vcmask 121856   ;;  %v11196_v36 = vld [vmem:[%s14291_s25 + $0x12] sm:$0x3] }
 0x7d5   : > { %11175 = vmatprep.subr.msk.bf16.mxu1 %vm1197_vm1, %v4438_v22  ;;  %v4443_v6 = vsel %vm1197_vm1, %v4437_v5, 0  ;;  %vm14295_vm12 = vmmov %vm14294_vm8 }
 0x7d6   : > { %11173 = vmatmul.mubr.msk.bf16.vlgmr.msra.gmra.mrb[52].mxu0 %vm1193_vm2, %v11170_v4  ;;  %4449 = vmatpush1.bf16.msra.mxu1 %v4443_v6  ;;  %v11186_v4 = vld [vmem:[%s14291_s25 + $0x1a] sm:$0x3] }
 0x7d7   : > { %v4516_v7 = vpop.permute.xlu0 %4515  ;;  %v4514_v8 = vpop.permute.xlu1 %4513  ;;  %4560 = vmatprep.mubr.bf16.mxu0 %v12062_v0 }
 0x7d8   : > { %v4517_v11 = vsel %vm14214_vm10, %v4512_v34, %v4514_v8  ;;  %v4518_v12 = vsel %vm14214_vm10, %v4514_v8, %v4516_v7  ;;  %vm14215_vm10 = vcmask 113664  }
 0x7d9   : > { %11178 = vmatprep.subr.msk.bf16.mxu0 %vm1197_vm1, %v4518_v12  ;;  %v4523_v14 = vsel %vm1197_vm1, %v4517_v11, 0 }
 0x7da   : > { %11176 = vmatmul.mubr.msk.bf16.vlgmr.msra.gmra.mrb[44].mxu1 %vm1193_vm2, %v11174_v9  ;;  %4529 = vmatpush1.bf16.msra.mxu0 %v4523_v14  ;;  %v11201_v9 = vld [vmem:[%s14291_s25 + $0x1c] sm:$0x3] }
 0x7db   : > { %v4598_v23 = vpop.permute.xlu0 %4597  ;;  %v4600_v19 = vpop.permute.xlu1 %4599  ;;  %4644 = vmatprep.mubr.bf16.mxu1 %v12062_v0 }
 0x7dc   : > { %v4601_v24 = vsel %vm14294_vm8, %v4596_v1, %v4598_v23  ;;  %v4602_v25 = vsel %vm14295_vm12, %v4598_v23, %v4600_v19  ;;  %vm14216_vm8 = vcmask 252928   ;;  %vm14296_vm12 = vcmask 244736  }
 0x7dd   : > { %11182 = vmatprep.subr.msk.bf16.mxu1 %vm1197_vm1, %v4602_v25  ;;  %v4607_v26 = vsel %vm1197_vm1, %v4601_v24, 0  ;;  %v11189_v25 = vld [vmem:[%s14291_s25 + $0x24] sm:$0x3] }
 0x7de   : > { %11179 = vmatmul.mubr.msk.bf16.vlgmr.msra.gmra.mrb[56].mxu0 %vm1193_vm2, %v11177_v15  ;;  %4613 = vmatpush1.bf16.msra.mxu1 %v4607_v26 }
 0x7df   : > { %v4984_v27 = vpop.permute.xlu0 %4983  ;;  %v4982_v16 = vpop.permute.xlu1 %4981  ;;  %5029 = vmatprep.mubr.bf16.mxu0 %v12062_v0 }
 0x7e0   : > { %v4986_v28 = vsel %vm14215_vm10, %v4980_v60, %v4982_v16  ;;  %v4987_v29 = vsel %vm14215_vm10, %v4982_v16, %v4984_v27  ;;  %vm14297_vm10 = vmmov %vm14296_vm12 }
 0x7e1   : > { %11197 = vmatprep.subr.msk.bf16.mxu0 %vm1197_vm1, %v4987_v29  ;;  %v4992_v30 = vsel %vm1197_vm1, %v4986_v28, 0  ;;  %v11204_v29 = vld [vmem:[%s14291_s25 + $0x26] sm:$0x3] }
 0x7e2   : > { %11183 = vmatmul.mubr.msk.bf16.vlgmr.msra.gmra.mrb[48].mxu1 %vm1193_vm2, %v11181_v18  ;;  %4998 = vmatpush1.bf16.msra.mxu0 %v4992_v30 }
 0x7e3   : > { %v5039_v33 = vpop.permute.xlu0 %5038  ;;  %v4654_v34 = vpop.permute.xlu1 %4653  ;;  %4703 = vmatprep.mubr.bf16.mxu1 %v12062_v0 }
 0x7e6   : > { %11198 = vmatmul.mubr.msk.bf16.vlgmr.msra.gmra.mrb[60].mxu0 %vm1193_vm2, %v11196_v36 }
 0x7e7   : > { %v4656_v37 = vpop.permute.xlu0 %4655  ;;  %v4658_v38 = vpop.permute.xlu1 %4657  ;;  %5087 = vmatprep.mubr.bf16.mxu0 %v12062_v0 }
 0x7e8   : > { %v4660_v39 = vsel %vm14216_vm8, %v4654_v34, %v4656_v37  ;;  %v4661_v43 = vsel %vm14216_vm8, %v4656_v37, %v4658_v38  ;;  %vm14300_vm8 = vcmask 1031168  }
 0x7e9   : > { %11184 = vmatprep.subr.msk.bf16.mxu1 %vm1197_vm1, %v4661_v43  ;;  %v4666_v44 = vsel %vm1197_vm1, %v4660_v39, 0  ;;  %vm14301_vm13 = vmmov %vm14300_vm8  ;;  %v11192_v43 = vld [vmem:[%s14291_s25 + $0x2e] sm:$0x3] }
 0x7ea   : > { %4672 = vmatpush1.bf16.msra.mxu1 %v4666_v44 }
 0x7eb   : > { %v5043_v45 = vpop.permute.xlu0 %5042  ;;  %v5041_v47 = vpop.permute.xlu1 %5040 }
 0x7ec   : > { %v5044_v51 = vsel %vm14296_vm12, %v5039_v33, %v5041_v47  ;;  %v5045_v52 = vsel %vm14297_vm10, %v5041_v47, %v5043_v45  ;;  %vm14298_vm10 = vcmask 1039360  }
 0x7ed   : > { %11199 = vmatprep.subr.msk.bf16.mxu0 %vm1197_vm1, %v5045_v52  ;;  %v5050_v53 = vsel %vm1197_vm1, %v5044_v51, 0  ;;  %vm14299_vm12 = vmmov %vm14298_vm10 }
 0x7ee   : > { %11185 = vmatmul.mubr.msk.bf16.vlgmr.msra.gmra.mrb[48].mxu1 %vm1193_vm2, %v11180_v48  ;;  %5056 = vmatpush1.bf16.msra.mxu0 %v5050_v53  ;;  %v11207_v48 = vld [vmem:[%s14291_s25 + $0x30] sm:$0x3]  ;;  %s14312_s25 = smov %s14311_s18 }
 0x7ef   : > { %v5117_v54 = vpop.permute.xlu0 %5116  ;;  %v4733_v56 = vpop.permute.xlu1 %4732  ;;  %4781 = vmatprep.mubr.bf16.mxu1 %v12062_v0 }
 0x7f2   : > { %11200 = vmatmul.mubr.msk.bf16.vlgmr.msra.gmra.mrb[60].mxu0 %vm1193_vm2, %v11195_v21 }
 0x7f3   : > { %v4735_v58 = vpop.permute.xlu0 %4734  ;;  %v4737_v59 = vpop.permute.xlu1 %4736  ;;  %5165 = vmatprep.mubr.bf16.mxu0 %v12062_v0 }
 0x7f4   : > { %v4738_v60 = vsel %vm14298_vm10, %v4733_v56, %v4735_v58  ;;  %v4739_v1 = vsel %vm14299_vm12, %v4735_v58, %v4737_v59  ;;  %vm5202_vm10 = vcmask 900096   ;;  %vm4898_vm12 = vcmask 777216  }
 0x7f5   : > { %11187 = vmatprep.subr.msk.bf16.mxu1 %vm1197_vm1, %v4739_v1  ;;  %v4744_v61 = vsel %vm1197_vm1, %v4738_v60, 0 }
 0x7f6   : > { %4750 = vmatpush1.bf16.msra.mxu1 %v4744_v61 }
 0x7f7   : > { %v5121_v2 = vpop.permute.xlu0 %5120  ;;  %v5119_v3 = vpop.permute.xlu1 %5118 }
 0x7f8   : > { %v5122_v5 = vsel %vm14300_vm8, %v5117_v54, %v5119_v3  ;;  %v5123_v22 = vsel %vm14301_vm13, %v5119_v3, %v5121_v2  ;;  %vm14302_vm13 = vcmask 908288  }
 0x7f9   : > { %11202 = vmatprep.subr.msk.bf16.mxu0 %vm1197_vm1, %v5123_v22  ;;  %v5128_v6 = vsel %vm1197_vm1, %v5122_v5, 0  ;;  %vm14303_vm8 = vmmov %vm14302_vm13 }
 0x7fa   : > { %11188 = vmatmul.mubr.msk.bf16.vlgmr.msra.gmra.mrb[48].mxu1 %vm1193_vm2, %v11186_v4  ;;  %5134 = vmatpush1.bf16.msra.mxu0 %v5128_v6 }
 0x7fb   : > { %v5197_v7 = vpop.permute.xlu0 %5196  ;;  %v4813_v8 = vpop.permute.xlu1 %4812  ;;  %4861 = vmatprep.mubr.bf16.mxu1 %v12062_v0 }
 0x7fe   : > { %11203 = vmatmul.mubr.msk.bf16.vlgmr.msra.gmra.mrb[60].mxu0 %vm1193_vm2, %v11201_v9 }
 0x7ff   : > { %v4815_v11 = vpop.permute.xlu0 %4814  ;;  %v4817_v12 = vpop.permute.xlu1 %4816  ;;  %5246 = vmatprep.mubr.bf16.mxu0 %v12062_v0 }
 0x800   : > { %v4818_v14 = vsel %vm14302_vm13, %v4813_v8, %v4815_v11  ;;  %v4819_v23 = vsel %vm14303_vm8, %v4815_v11, %v4817_v12  ;;  %vm14304_vm13 = vcmask 769024  }
 0x801   : > { %11190 = vmatprep.subr.msk.bf16.mxu1 %vm1197_vm1, %v4819_v23  ;;  %v4824_v19 = vsel %vm1197_vm1, %v4818_v14, 0  ;;  %vm14305_vm8 = vmmov %vm14304_vm13 }
 0x802   : > { %4830 = vmatpush1.bf16.msra.mxu1 %v4824_v19 }
 0x803   : > { %v5201_v15 = vpop.permute.xlu0 %5200  ;;  %v5199_v24 = vpop.permute.xlu1 %5198 }
 0x804   : > { %v5203_v26 = vsel %vm5202_vm10, %v5197_v7, %v5199_v24  ;;  %v5204_v27 = vsel %vm5202_vm10, %v5199_v24, %v5201_v15 }
 0x805   : > { %11205 = vmatprep.subr.msk.bf16.mxu0 %vm1197_vm1, %v5204_v27  ;;  %v5209_v16 = vsel %vm1197_vm1, %v5203_v26, 0 }
 0x806   : > { %11191 = vmatmul.mubr.msk.bf16.vlgmr.msra.gmra.mrb[48].mxu1 %vm1193_vm2, %v11189_v25  ;;  %5215 = vmatpush1.bf16.msra.mxu0 %v5209_v16 }
 0x807   : > { %v5278_v18 = vpop.permute.xlu0 %5277  ;;  %v4893_v28 = vpop.permute.xlu1 %4892  ;;  %4942 = vmatprep.mubr.bf16.mxu1 %v12062_v0 }
 0x80a   : > { %11206 = vmatmul.mubr.msk.bf16.vlgmr.msra.gmra.mrb[60].mxu0 %vm1193_vm2, %v11204_v29 }
 0x80b   : > { %v4895_v30 = vpop.permute.xlu0 %4894  ;;  %v4897_v33 = vpop.permute.xlu1 %4896  ;;  %5326 = vmatprep.mubr.bf16.mxu0 %v12062_v0 }
 0x80c   : > { %v4899_v34 = vsel %vm4898_vm12, %v4893_v28, %v4895_v30  ;;  %v4900_v36 = vsel %vm4898_vm12, %v4895_v30, %v4897_v33 }
 0x80d   : > { %11193 = vmatprep.subr.msk.bf16.mxu1 %vm1197_vm1, %v4900_v36  ;;  %v4905_v37 = vsel %vm1197_vm1, %v4899_v34, 0 }
 0x80e   : > { %4911 = vmatpush1.bf16.msra.mxu1 %v4905_v37 }
 0x80f   : > { %v5282_v38 = vpop.permute.xlu0 %5281  ;;  %v5280_v39 = vpop.permute.xlu1 %5279 }
 0x810   : > { %v5283_v44 = vsel %vm14304_vm13, %v5278_v18, %v5280_v39  ;;  %v5284_v45 = vsel %vm14305_vm8, %v5280_v39, %v5282_v38  ;;  %vm14306_vm13 = vcmp.ge.s32.totalorder %v12479_v50, 0  ;;  %vm14307_vm8 = vcmp.ge.s32.totalorder %v12482_v35, 0 }
 0x811   : > { %11208 = vmatprep.subr.msk.bf16.mxu0 %vm1197_vm1, %v5284_v45  ;;  %v5289_v47 = vsel %vm1197_vm1, %v5283_v44, 0 }
 0x812   : > { %11194 = vmatmul.mubr.msk.bf16.vlgmr.msra.gmra.mrb[48].mxu1 %vm1193_vm2, %v11192_v43  ;;  %5295 = vmatpush1.bf16.msra.mxu0 %v5289_v47 }
 0x813   : > { %5436 = vmatprep.mubr.bf16.mxu1 %v12062_v0 }
 0x816   : > { %11209 = vmatmul.mubr.msk.bf16.vlgmr.msra.gmra.mrb[60].mxu0 %vm1193_vm2, %v11207_v48 }
 0x817   : > { %5654 = vmatprep.mubr.bf16.mxu0 %v12062_v0 }
 0x891   : > { %v3814_v51 = vpop.f32.mrb[40].mxu0 }
 0x892   : > { %v3816_v52 = vpop.f32.mrb[41].mxu0  ;;  %v3823_v22 = vsel %vm2927_vm11, %v3814_v51, 0.0 }
 0x893   : > { %v3818_v53 = vpop.f32.mrb[42].mxu0  ;;  %v3824_v8 = vsel %vm14218_vm6, %v3816_v52, 0.0  ;;  %vm14310_vm6 = vcmp.lt.s32.totalorder %v12735_v32, 16 }
 0x894   : > { %v3819_v54 = vpop.f32.mrb[43].mxu0 }
 0x899   : > { %v4282_v56 = vpop.f32.mrb[44].mxu0 }
 0x89a   : > { %v4284_v21 = vpop.f32.mrb[45].mxu0 }
 0x89b   : > { %v4286_v58 = vpop.f32.mrb[46].mxu0 }
 0x89c   : > { %v4287_v59 = vpop.f32.mrb[47].mxu0 }
 0x8a1   : > { %v4340_v60 = vpop.f32.mrb[48].mxu0 }
 0x8a2   : > { %v4341_v1 = vadd.f32 %v4340_v60, %v4282_v56  ;;  %v4342_v61 = vpop.f32.mrb[49].mxu0 }
 0x8a3   : > { %v4343_v2 = vadd.f32 %v4342_v61, %v4284_v21  ;;  %v4344_v3 = vpop.f32.mrb[50].mxu0 }
 0x8a4   : > { %v4345_v4 = vpop.f32.mrb[51].mxu0  ;;  %v5345_v3 = vpop.permute.xlu1 %5344 }
 0x8a5   : > { %v4196_v5 = vpop.f32.mrb[40].mxu1 }
 0x8a6   : > { %v4205_v6 = vsel %vm14306_vm13, %v4196_v5, 0.0  ;;  %v4198_v7 = vpop.f32.mrb[41].mxu1  ;;  %vm14308_vm13 = vcmp.lt.s32.totalorder %v12491_v62, 16 }
 0x8a7   : > { %v4207_v9 = vadd.f32 %v4205_v6, %v3823_v22  ;;  %v4206_v11 = vsel %vm14307_vm8, %v4198_v7, 0.0  ;;  %v4200_v12 = vpop.f32.mrb[42].mxu1  ;;  %vm14309_vm8 = vcmp.lt.s32.totalorder %v12494_v63, 16 }
 0x8a8   : > { %v4208_v14 = vadd.f32 %v4206_v11, %v3824_v8  ;;  %v4201_v23 = vpop.f32.mrb[43].mxu1 }
 0x8a9   : > { %v4402_v19 = vpop.f32.mrb[52].mxu0 }
 0x8aa   : > { %v4409_v15 = vadd.f32 %v4402_v19, %v4341_v1  ;;  %v4404_v24 = vpop.f32.mrb[53].mxu0 }
 0x8ab   : > { %v4410_v25 = vadd.f32 %v4404_v24, %v4343_v2  ;;  %v4406_v26 = vpop.f32.mrb[54].mxu0 }
 0x8ac   : > { %v4407_v27 = vpop.f32.mrb[55].mxu0 }
 0x8ad   : > { %v4482_v16 = vpop.f32.mrb[44].mxu1 }
 0x8ae   : > { %v4489_v18 = vadd.f32 %v4482_v16, %v4409_v15  ;;  %v4484_v28 = vpop.f32.mrb[45].mxu1 }
 0x8af   : > { %v4490_v29 = vadd.f32 %v4484_v28, %v4410_v25  ;;  %v4486_v30 = vpop.f32.mrb[46].mxu1 }
 0x8b0   : > { %v4487_v33 = vpop.f32.mrb[47].mxu1 }
 0x8b1   : > { %v4562_v34 = vpop.f32.mrb[56].mxu0 }
 0x8b2   : > { %v4569_v36 = vadd.f32 %v4562_v34, %v4489_v18  ;;  %v4564_v37 = vpop.f32.mrb[57].mxu0  ;;  %v11221_v34 = vld [vmem:[%s14311_s18 + $0x8] sm:$0x3]  ;;  %s12092_s18 = smov 64  }
 0x8b3   : > { %v4570_v38 = vadd.f32 %v4564_v37, %v4490_v29  ;;  %v4566_v39 = vpop.f32.mrb[58].mxu0 }
 0x8b4   : > { %v4571_v43 = vadd.f32 %v4569_v36, %v4207_v9  ;;  %v4567_v44 = vpop.f32.mrb[59].mxu0 }
 0x8b5   : > { %v4572_v45 = vadd.f32 %v4570_v38, %v4208_v14 }
 0x8e5   : > { %v4944_v47 = vpop.f32.mrb[48].mxu1 }
 0x8e6   : > { %v4953_v48 = vsel %vm14308_vm13, %v4944_v47, 0.0  ;;  %v4946_v51 = vpop.f32.mrb[49].mxu1  ;;  %vm5850_vm13 = vcmask 1014784  }
 0x8e7   : > { %v4955_v52 = vadd.f32 %v4953_v48, %v4571_v43  ;;  %v4954_v53 = vsel %vm14309_vm8, %v4946_v51, 0.0  ;;  %v4948_v54 = vpop.f32.mrb[50].mxu1  ;;  %vm5686_vm8 = vcmask 523264  }
 0x8e8   : > { %v4956_v56 = vadd.f32 %v4954_v53, %v4572_v45  ;;  %v4949_v21 = vpop.f32.mrb[51].mxu1 }
 0x8e9   : > { %v5328_v58 = vpop.f32.mrb[60].mxu0 }
 0x8ea   : > { %v5337_v59 = vsel %vm14225_vm9, %v5328_v58, 0.0  ;;  %v5330_v60 = vpop.f32.mrb[61].mxu0 }
 0x8eb   : > { %v5339_v1 = vadd.f32 %v5337_v59, %v4955_v52  ;;  %v5338_v61 = vsel %vm14310_vm6, %v5330_v60, 0.0  ;;  %v5332_v2 = vpop.f32.mrb[62].mxu0  ;;  %vm5451_vm6 = vcmask 556032  }
 0x8ec   : > { %v5340_v4 = vadd.f32 %v5338_v61, %v4956_v56  ;;  %v5333_v5 = vpop.f32.mrb[63].mxu0 }
 0x8ed   : > { %v5347_v22 = vadd.f32 %v5345_v3, %v5339_v1 }
 0x8ee   : > { %v5348_v6 = vadd.f32 %v5345_v3, %v5340_v4 }
 0x8ef   : > { %v5349_v7 = vmax.f32 %v5347_v22, 0.0 }
 0x8f0   : > { %v5350_v8 = vmax.f32 %v5348_v6, 0.0 }
 0x8f2   : > { %v11210_v9 = vpack.c.bf16 %v5350_v8, %v5349_v7 }
 0x8f4   : > { %11211 = vst.sshfl [vmem:[#allocation2 + $0x4] sm:$0x33 pattern:$0x76325410] %v11210_v9 }
 0x8fb   : > { %v11222_v11 = vld.sshfl [vmem:[#allocation2 + $0x4] sm:$0x33 pattern:$0x76325410] }
 0x8fc   : > { %v5365_v12 = vld [vmem:[#allocation2 + $0x2] sm:$0x3f]  ;;  %v5612_v14 = vcombine.high %v11222_v11, %v11222_v11  ;;  %v5617_v15 = vsel %vm1197_vm1, %v11222_v11, 0 }
 0x8fd   : > { %v5377_v23 = vrot.slane %v5365_v12, %v12362_v41  ;;  %v5370_v19 = vcombine.high %v5365_v12, %v5365_v12  ;;  %v5504_v26 = vld [vmem:[#allocation2 + $0x4] sm:$0x3f] }
 0x8fe   : > { %11223 = vmatprep.subr.msk.bf16.mxu0 %vm1197_vm1, %v5612_v14  ;;  %v5515_v27 = vrot.slane %v5504_v26, %v12362_v41  ;;  %v5508_v16 = vcombine.high %v5504_v26, %v5504_v26  ;;  %v5824_v18 = vld [vmem:[#allocation2 + $0x4] sm:$0x3f] }
 0x8ff   : > { %5386 = vrot.lane.b32.xlu0 %v5377_v23, %s12088_s30  ;;  %v5385_v24 = vcombine.high %v5377_v23, %v5377_v23  ;;  %5623 = vmatpush1.bf16.msra.mxu0 %v5617_v15  ;;  %v5384_v25 = vrot.slane %v5370_v19, %v12362_v41  ;;  %v5835_v30 = vrot.slane %v5824_v18, %v12362_v41  ;;  %v5821_v37 = vld [vmem:[#allocation2 + $0x2] sm:$0x3f] }
 0x900   : > { %v5523_v28 = vcombine.high %v5515_v27, %v5515_v27  ;;  %v5522_v29 = vrot.slane %v5508_v16, %v12362_v41  ;;  %v5828_v33 = vcombine.high %v5824_v18, %v5824_v18  ;;  %v5598_v39 = vld [vmem:[#allocation2 + $0x2] sm:$0x3f]  ;;  %v5911_v43 = vrot.slane %v5821_v37, %v12362_v41 }
 0x901   : > { %5388 = vrot.lane.b32.xlu1 %v5385_v24, %s12088_s30  ;;  %v5843_v36 = vcombine.high %v5835_v30, %v5835_v30  ;;  %v5904_v44 = vcombine.high %v5821_v37, %v5821_v37  ;;  %v5671_v45 = vrot.slane %v5598_v39, %v12362_v41  ;;  %v5664_v51 = vcombine.high %v5598_v39, %v5598_v39  ;;  %v5739_v53 = vld [vmem:[#allocation2 + $0x4] sm:$0x3f] }
 0x902   : > { %11224 = vmatmul.mubr.msk.bf16.vlgmr.msra.gmra.mrb[64].mxu0 %vm1193_vm2, %v11221_v34  ;;  %v5842_v38 = vrot.slane %v5828_v33, %v12362_v41  ;;  %v5919_v48 = vcombine.high %v5911_v43, %v5911_v43  ;;  %v5979_v56 = vld [vmem:[#allocation2 + $0x4] sm:$0x3f]  ;;  %v5750_v21 = vrot.slane %v5739_v53, %v12362_v41  ;;  %v5743_v58 = vcombine.high %v5739_v53, %v5739_v53 }
 0x903   : > { %5390 = vrot.lane.b32.xlu0 %v5384_v25, %s12088_s30  ;;  %s12090_s30 = smov 124   ;;  %5730 = vmatprep.mubr.bf16.mxu0 %v12062_v0  ;;  %v5918_v47 = vrot.slane %v5904_v44, %v12362_v41  ;;  %v5679_v52 = vcombine.high %v5671_v45, %v5671_v45  ;;  %v5678_v54 = vrot.slane %v5664_v51, %v12362_v41  ;;  %v11212_v14 = vld [vmem:[%s14312_s25 + $0x6] sm:$0x3] }
 0x904   : > { %v5990_v59 = vrot.slane %v5979_v56, %v12362_v41  ;;  %v5757_v60 = vrot.slane %v5743_v58, %v12362_v41  ;;  %v5758_v1 = vcombine.high %v5750_v21, %v5750_v21  ;;  %v5983_v61 = vcombine.high %v5979_v56, %v5979_v56 }
 0x905   : > { %5445 = vrot.lane.b32.xlu1 %v5377_v23, %s12089_s26 }
 0x906   : > { %v5998_v2 = vcombine.high %v5990_v59, %v5990_v59  ;;  %v5997_v3 = vrot.slane %v5983_v61, %v12362_v41  ;;  %v11231_v61 = vld [vmem:[%s14312_s25 + $0xa] sm:$0x3] }
 0x907   : > { %5447 = vrot.lane.b32.xlu0 %v5385_v24, %s12089_s26 }
 0x909   : > { %5449 = vrot.lane.b32.xlu1 %v5384_v25, %s12089_s26 }
 0x90b   : > { %5524 = vrot.lane.b32.xlu0 %v5515_v27, %s12089_s26 }
 0x90d   : > { %5526 = vrot.lane.b32.xlu1 %v5523_v28, %s12089_s26 }
 0x90f   : > { %5528 = vrot.lane.b32.xlu0 %v5522_v29, %s12089_s26  ;;  %s14313_s26 = sld [smem:[#allocation14_spill]] }
 0x911   : > { %5844 = vrot.lane.b32.xlu1 %v5835_v30, %s12090_s30  ;;  %v5366_v30 = vld [vmem:[%s14312_s25] sm:$0x3] }
 0x913   : > { %5846 = vrot.lane.b32.xlu0 %v5843_v36, %s12090_s30 }
 0x915   : > { %5848 = vrot.lane.b32.xlu1 %v5842_v38, %s12090_s30  ;;  %s14314_s30 = sld [smem:[#allocation26_spill]]  ;;  %v1132_v4 = vld [vmem:[%s14313_s26] sm:$0xf]  ;;  %s12095_s26 = smov 19  }
 0x917   : > { %5920 = vrot.lane.b32.xlu0 %v5911_v43, %s12091_s10 }
 0x919   : > { %5680 = vrot.lane.b32.xlu1 %v5671_v45, %s12092_s18 }
 0x91b   : > { %5924 = vrot.lane.b32.xlu0 %v5918_v47, %s12091_s10  ;;  %v6075_v5 = vld [vmem:[%s14314_s30] sm:$0xf]  ;;  %v11217_v47 = vld [vmem:[%s14312_s25 + $0xc] sm:$0x3]  ;;  %s12096_s30 = smov 3  }
 0x91d   : > { %5922 = vrot.lane.b32.xlu1 %v5919_v48, %s12091_s10 }
 0x91f   : > { %5682 = vrot.lane.b32.xlu0 %v5679_v52, %s12092_s18 }
 0x921   : > { %5684 = vrot.lane.b32.xlu1 %v5678_v54, %s12092_s18 }
 0x923   : > { %5759 = vrot.lane.b32.xlu0 %v5750_v21, %s12092_s18 }
 0x925   : > { %5999 = vrot.lane.b32.xlu1 %v5990_v59, %s12091_s10  ;;  %v11220_v59 = vld [vmem:[%s14312_s25 + $0x2] sm:$0x3] }
 0x927   : > { %5763 = vrot.lane.b32.xlu0 %v5757_v60, %s12092_s18 }
 0x929   : > { %5761 = vrot.lane.b32.xlu1 %v5758_v1, %s12092_s18  ;;  %s12094_s18 = smov 51  }
 0x92b   : > { %6001 = vrot.lane.b32.xlu0 %v5998_v2, %s12091_s10 }
 0x92d   : > { %6003 = vrot.lane.b32.xlu1 %v5997_v3, %s12091_s10  ;;  %s12093_s10 = smov 35  }
 0x92f   : > { %1135 = vperm.xlu0 %11865, %v1132_v4  }
 0x931   : > { %6078 = vperm.xlu1 %11866, %v6075_v5  }
 0x971   : > { %v5387_v22 = vpop.permute.xlu0 %5386 }
 0x973   : > { %v5389_v6 = vpop.permute.xlu1 %5388 }
 0x974   : > { %v5393_v7 = vsel %vm1193_vm2, %v5387_v22, %v5389_v6 }
 0x975   : > { %v5391_v8 = vpop.permute.xlu0 %5390  ;;  %v5399_v12 = vsel %vm1197_vm1, %v5393_v7, 0  ;;  %v11227_v7 = vld [vmem:[%s14312_s25 + $0xe] sm:$0x3] }
 0x976   : > { %v5394_v9 = vsel %vm1193_vm2, %v5389_v6, %v5391_v8 }
 0x977   : > { %v5446_v11 = vpop.permute.xlu1 %5445  ;;  %11213 = vmatprep.subr.msk.bf16.mxu1 %vm1197_vm1, %v5394_v9 }
 0x978   : > { %5405 = vmatpush1.bf16.msra.mxu1 %v5399_v12 }
 0x979   : > { %v5448_v23 = vpop.permute.xlu0 %5447 }
 0x97a   : > { %v5452_v19 = vsel %vm5451_vm6, %v5446_v11, %v5448_v23 }
 0x97b   : > { %v5450_v15 = vpop.permute.xlu1 %5449  ;;  %11214 = vmatmul.mubr.msk.bf16.vlgmr.msra.gmra.mrb[52].mxu1 %vm1193_vm2, %v11212_v14  ;;  %v5458_v26 = vsel %vm1197_vm1, %v5452_v19, 0  ;;  %v11230_v14 = vld [vmem:[%s14312_s25 + $0x4] sm:$0x3]  ;;  %v11236_v19 = vld [vmem:[%s14312_s25 + $0x10] sm:$0x3] }
 0x97c   : > { %v5453_v24 = vsel %vm5451_vm6, %v5448_v23, %v5450_v15  ;;  %5495 = vmatprep.mubr.bf16.mxu1 %v12062_v0 }
 0x97d   : > { %11215 = vmatprep.subr.msk.bf16.mxu1 %vm1197_vm1, %v5453_v24  ;;  %v5525_v25 = vpop.permute.xlu0 %5524 }
 0x97e   : > { %5464 = vmatpush1.bf16.msra.mxu1 %v5458_v26 }
 0x97f   : > { %v5527_v27 = vpop.permute.xlu1 %5526 }
 0x980   : > { %v5530_v29 = vsel %vm5451_vm6, %v5525_v25, %v5527_v27 }
 0x981   : > { %v5529_v16 = vpop.permute.xlu0 %5528  ;;  %v5536_v36 = vsel %vm1197_vm1, %v5530_v29, 0 }
 0x982   : > { %v5531_v18 = vsel %vm5451_vm6, %v5527_v27, %v5529_v16  ;;  %vm5926_vm6 = vcmask 490496  }
 0x983   : > { %v5845_v28 = vpop.permute.xlu1 %5844  ;;  %11218 = vmatprep.subr.msk.bf16.mxu1 %vm1197_vm1, %v5531_v18 }
 0x985   : > { %v5847_v33 = vpop.permute.xlu0 %5846 }
 0x986   : > { %v5851_v45 = vsel %vm5850_vm13, %v5845_v28, %v5847_v33 }
 0x987   : > { %v5849_v34 = vpop.permute.xlu1 %5848  ;;  %11216 = vmatmul.mubr.msk.bf16.vlgmr.msra.gmra.mrb[52].mxu1 %vm1193_vm2, %v5366_v30  ;;  %v5857_v53 = vsel %vm1197_vm1, %v5851_v45, 0 }
 0x988   : > { %v5852_v37 = vsel %vm5850_vm13, %v5847_v33, %v5849_v34  ;;  %5542 = vmatpush1.bf16.msra.mxu1 %v5536_v36  ;;  %5573 = vmatprep.mubr.bf16.mxu1 %v12062_v0 }
 0x989   : > { %11232 = vmatprep.subr.msk.bf16.mxu1 %vm1197_vm1, %v5852_v37  ;;  %v5921_v38 = vpop.permute.xlu0 %5920  ;;  %v5584_v37 = vadd.s32 4294967292, %v12474_v40 }
 0x98b   : > { %v5681_v39 = vpop.permute.xlu1 %5680  ;;  %vm5586_vm13 = vcmp.ge.s32.totalorder %v5584_v37, 0 }
 0x98d   : > { %v5925_v43 = vpop.permute.xlu0 %5924 }
 0x98f   : > { %v5923_v44 = vpop.permute.xlu1 %5922 }
 0x990   : > { %v5928_v56 = vsel %vm5926_vm6, %v5923_v44, %v5925_v43  ;;  %v5927_v1 = vsel %vm5926_vm6, %v5921_v38, %v5923_v44 }
 0x991   : > { %v5683_v48 = vpop.permute.xlu0 %5682  ;;  %v5933_v4 = vsel %vm1197_vm1, %v5927_v1, 0 }
 0x992   : > { %v5687_v51 = vsel %vm5686_vm8, %v5681_v39, %v5683_v48  ;;  %v5585_v39 = vadd.s32 4294967292, %v12476_v42 }
 0x993   : > { %v5685_v52 = vpop.permute.xlu1 %5684  ;;  %11219 = vmatmul.mubr.msk.bf16.vlgmr.msra.gmra.mrb[52].mxu1 %vm1193_vm2, %v11217_v47  ;;  %v5693_v58 = vsel %vm1197_vm1, %v5687_v51, 0 }
 0x994   : > { %v5688_v54 = vsel %vm5686_vm8, %v5683_v48, %v5685_v52  ;;  %5863 = vmatpush1.bf16.msra.mxu1 %v5857_v53  ;;  %5894 = vmatprep.mubr.bf16.mxu1 %v12062_v0 }
 0x995   : > { %11234 = vmatprep.subr.msk.bf16.mxu1 %vm1197_vm1, %v5928_v56  ;;  %11225 = vmatprep.subr.msk.bf16.mxu0 %vm1197_vm1, %v5688_v54  ;;  %v5760_v21 = vpop.permute.xlu0 %5759 }
 0x996   : > { %5699 = vmatpush1.bf16.msra.mxu0 %v5693_v58  ;;  %v6060_v58 = vadd.s32 4, %v12476_v42 }
 0x997   : > { %v6000_v60 = vpop.permute.xlu1 %5999 }
 0x998   : > { %vm6064_vm9 = vcmp.lt.s32.totalorder %v6060_v58, 16 }
 0x999   : > { %11226 = vmatmul.mubr.msk.bf16.vlgmr.msra.gmra.mrb[68].mxu0 %vm1193_vm2, %v11220_v59  ;;  %v5764_v2 = vpop.permute.xlu0 %5763 }
 0x99a   : > { %5808 = vmatprep.mubr.bf16.mxu0 %v12062_v0 }
 0x99b   : > { %v5762_v3 = vpop.permute.xlu1 %5761  ;;  %11233 = vmatmul.mubr.msk.bf16.vlgmr.msra.gmra.mrb[56].mxu1 %vm1193_vm2, %v11231_v61 }
 0x99c   : > { %v5765_v5 = vsel %vm5686_vm8, %v5760_v21, %v5762_v3  ;;  %5939 = vmatpush1.bf16.msra.mxu1 %v5933_v4  ;;  %v5766_v22 = vsel %vm5686_vm8, %v5762_v3, %v5764_v2  ;;  %5970 = vmatprep.mubr.bf16.mxu1 %v12062_v0  ;;  %vm5587_vm8 = vcmp.ge.s32.totalorder %v5585_v39, 0  ;;  %v6059_v21 = vadd.s32 4, %v12474_v40 }
 0x99d   : > { %11228 = vmatprep.subr.msk.bf16.mxu0 %vm1197_vm1, %v5766_v22  ;;  %v5771_v6 = vsel %vm1197_vm1, %v5765_v5, 0  ;;  %v6002_v8 = vpop.permute.xlu0 %6001 }
 0x99e   : > { %5777 = vmatpush1.bf16.msra.mxu0 %v5771_v6  ;;  %v6005_v12 = vsel %vm5926_vm6, %v6000_v60, %v6002_v8 }
 0x99f   : > { %v6004_v9 = vpop.permute.xlu1 %6003  ;;  %v6011_v23 = vsel %vm1197_vm1, %v6005_v12, 0 }
 0x9a0   : > { %v6006_v11 = vsel %vm5926_vm6, %v6002_v8, %v6004_v9  ;;  %vm6063_vm6 = vcmp.lt.s32.totalorder %v6059_v21, 16 }
 0x9a1   : > { %11229 = vmatmul.mubr.msk.bf16.vlgmr.msra.gmra.mrb[72].mxu0 %vm1193_vm2, %v11227_v7  ;;  %11237 = vmatprep.subr.msk.bf16.mxu1 %vm1197_vm1, %v6006_v11 }
 0x9a2   : > { %6172 = vmatprep.mubr.bf16.mxu0 %v12062_v0 }
 0x9a7   : > { %11235 = vmatmul.mubr.msk.bf16.vlgmr.msra.gmra.mrb[56].mxu1 %vm1193_vm2, %v11230_v14 }
 0x9a8   : > { %6017 = vmatpush1.bf16.msra.mxu1 %v6011_v23  ;;  %6048 = vmatprep.mubr.bf16.mxu1 %v12062_v0 }
 0x9ae   : > { %v1136_v59 = vpop.permute.xlu0 %1135 }
 0x9af   : > { %v1176_v2 = vadd.f32 %v12426_v46, %v1136_v59  ;;  %v1178_v22 = vadd.f32 %v12430_v49, %v1136_v59 }
 0x9b0   : > { %v6079_v6 = vpop.permute.xlu1 %6078 }
 0x9b1   : > { %v1182_v12 = vmax.f32 %v1176_v2, 0.0  ;;  %v1183_v23 = vmax.f32 %v1178_v22, 0.0 }
 0x9b3   : > { %11238 = vmatmul.mubr.msk.bf16.vlgmr.msra.gmra.mrb[56].mxu1 %vm1193_vm2, %v11236_v19 }
 0x9b4   : > { %6730 = vmatprep.mubr.bf16.mxu1 %v12062_v0 }
 0x9d5   : > { %v5656_v15 = vpop.f32.mrb[64].mxu0 }
 0x9d6   : > { %v5658_v24 = vpop.f32.mrb[65].mxu0 }
 0x9d7   : > { %v5660_v25 = vpop.f32.mrb[66].mxu0 }
 0x9d8   : > { %v5661_v26 = vpop.f32.mrb[67].mxu0 }
 0xa66   : > { %v5575_v27 = vpop.f32.mrb[52].mxu1 }
 0xa67   : > { %v5577_v16 = vpop.f32.mrb[53].mxu1  ;;  %v5596_v47 = vsel %vm5586_vm13, %v5575_v27, 0.0  ;;  %vm6187_vm13 = vcmask 416768  }
 0xa68   : > { %v5579_v18 = vpop.f32.mrb[54].mxu1  ;;  %v5597_v52 = vsel %vm5587_vm8, %v5577_v16, 0.0  ;;  %vm6266_vm8 = vcmask 154624  }
 0xa69   : > { %v5580_v28 = vpop.f32.mrb[55].mxu1 }
 0xa6c   : > { %v5732_v29 = vpop.f32.mrb[68].mxu0 }
 0xa6d   : > { %v5733_v30 = vadd.f32 %v5732_v29, %v5656_v15  ;;  %v5734_v33 = vpop.f32.mrb[69].mxu0 }
 0xa6e   : > { %v5735_v34 = vadd.f32 %v5734_v33, %v5658_v24  ;;  %v5736_v36 = vpop.f32.mrb[70].mxu0 }
 0xa6f   : > { %v5737_v38 = vpop.f32.mrb[71].mxu0 }
 0xa74   : > { %v5810_v43 = vpop.f32.mrb[72].mxu0 }
 0xa75   : > { %v5817_v44 = vadd.f32 %v5810_v43, %v5733_v30  ;;  %v5812_v45 = vpop.f32.mrb[73].mxu0 }
 0xa76   : > { %v5818_v48 = vadd.f32 %v5812_v45, %v5735_v34  ;;  %v5814_v51 = vpop.f32.mrb[74].mxu0 }
 0xa77   : > { %v5819_v53 = vadd.f32 %v5817_v44, %v5596_v47  ;;  %v5815_v54 = vpop.f32.mrb[75].mxu0 }
 0xa78   : > { %v5820_v56 = vadd.f32 %v5818_v48, %v5597_v52 }
 0xa86   : > { %v6050_v60 = vpop.f32.mrb[56].mxu1 }
 0xa87   : > { %v6071_v1 = vsel %vm6063_vm6, %v6050_v60, 0.0  ;;  %v6052_v61 = vpop.f32.mrb[57].mxu1  ;;  %vm6347_vm6 = vcmask 23552  }
 0xa88   : > { %v6073_v3 = vadd.f32 %v6071_v1, %v5819_v53  ;;  %v6072_v4 = vsel %vm6064_vm9, %v6052_v61, 0.0  ;;  %v6054_v5 = vpop.f32.mrb[58].mxu1  ;;  %vm6128_vm9 = vcmask 285696  }
 0xa89   : > { %v6074_v7 = vadd.f32 %v6072_v4, %v5820_v56  ;;  %v6055_v8 = vpop.f32.mrb[59].mxu1 }
 0xa8a   : > { %v6081_v9 = vadd.f32 %v6079_v6, %v6073_v3 }
 0xa8b   : > { %v6082_v11 = vadd.f32 %v6079_v6, %v6074_v7 }
 0xa8c   : > { %v13153_v14 = vmax.f32 %v6081_v9, 0.0 }
 0xa8d   : > { %v13155_v19 = vmax.f32 %v6082_v11, 0.0 }
 0xa8e   : > { %v6085_v15 = vadd.f32 %v13153_v14, %v1182_v12 }
 0xa8f   : > { %v6086_v46 = vadd.f32 %v13155_v19, %v1183_v23 }
 0xa91   : > { %v11239_v24 = vpack.c.bf16 %v6086_v46, %v6085_v15 }
 0xa93   : > { %11240 = vst.sshfl [vmem:[#allocation2 + $0x4] sm:$0x33 pattern:$0x76325410] %v11239_v24 }
 0xa9a   : > { %v6101_v25 = vld [vmem:[#allocation2 + $0x2] sm:$0x3f] }
 0xa9b   : > { %v6113_v49 = vrot.slane %v6101_v25, %v12362_v41  ;;  %v6106_v26 = vcombine.high %v6101_v25, %v6101_v25  ;;  %v6240_v18 = vld [vmem:[#allocation2 + $0x2] sm:$0x3f] }
 0xa9c   : > { %v6251_v28 = vrot.slane %v6240_v18, %v12362_v41  ;;  %v6244_v29 = vcombine.high %v6240_v18, %v6240_v18  ;;  %v6321_v30 = vld [vmem:[#allocation2 + $0x2] sm:$0x3f] }
 0xa9d   : > { %6122 = vrot.lane.b32.xlu0 %v6113_v49, %s12093_s10  ;;  %v6121_v27 = vcombine.high %v6113_v49, %v6113_v49  ;;  %v6120_v16 = vrot.slane %v6106_v26, %v12362_v41  ;;  %v6332_v36 = vrot.slane %v6321_v30, %v12362_v41  ;;  %v6325_v37 = vcombine.high %v6321_v30, %v6321_v30  ;;  %v6402_v38 = vld [vmem:[#allocation2 + $0x4] sm:$0x3f] }
 0xa9e   : > { %v6259_v33 = vcombine.high %v6251_v28, %v6251_v28  ;;  %v6258_v34 = vrot.slane %v6244_v29, %v12362_v41  ;;  %v6413_v44 = vrot.slane %v6402_v38, %v12362_v41  ;;  %v6406_v45 = vcombine.high %v6402_v38, %v6402_v38  ;;  %v6483_v47 = vld [vmem:[#allocation2 + $0x4] sm:$0x3f] }
 0xa9f   : > { %6124 = vrot.lane.b32.xlu1 %v6121_v27, %s12093_s10  ;;  %v6340_v39 = vcombine.high %v6332_v36, %v6332_v36  ;;  %v6339_v43 = vrot.slane %v6325_v37, %v12362_v41  ;;  %v6494_v52 = vrot.slane %v6483_v47, %v12362_v41  ;;  %v6487_v53 = vcombine.high %v6483_v47, %v6483_v47  ;;  %v6564_v54 = vld [vmem:[#allocation2 + $0x4] sm:$0x3f] }
 0xaa0   : > { %v6421_v48 = vcombine.high %v6413_v44, %v6413_v44  ;;  %v6420_v51 = vrot.slane %v6406_v45, %v12362_v41  ;;  %v6575_v58 = vrot.slane %v6564_v54, %v12362_v41  ;;  %v6568_v59 = vcombine.high %v6564_v54, %v6564_v54  ;;  %v7203_v60 = vld [vmem:[#allocation2 + $0x2] sm:$0x3f] }
 0xaa1   : > { %6126 = vrot.lane.b32.xlu0 %v6120_v16, %s12093_s10  ;;  %s12097_s10 = smov 115   ;;  %v6502_v56 = vcombine.high %v6494_v52, %v6494_v52  ;;  %v6501_v21 = vrot.slane %v6487_v53, %v12362_v41  ;;  %v7216_v2 = vrot.slane %v7203_v60, %v12362_v41  ;;  %v7209_v3 = vcombine.high %v7203_v60, %v7203_v60  ;;  %v7342_v22 = vld [vmem:[#allocation2 + $0x2] sm:$0x3f] }
 0xaa2   : > { %v6583_v1 = vcombine.high %v6575_v58, %v6575_v58  ;;  %v6582_v61 = vrot.slane %v6568_v59, %v12362_v41  ;;  %v7422_v6 = vld [vmem:[#allocation2 + $0x2] sm:$0x3f]  ;;  %v7353_v7 = vrot.slane %v7342_v22, %v12362_v41 }
 0xaa3   : > { %6181 = vrot.lane.b32.xlu1 %v6113_v49, %s12094_s18  ;;  %v7224_v4 = vcombine.high %v7216_v2, %v7216_v2  ;;  %v7223_v5 = vrot.slane %v7209_v3, %v12362_v41  ;;  %v6659_v8 = vld [vmem:[#allocation2 + $0x2] sm:$0x3f]  ;;  %v7433_v9 = vrot.slane %v7422_v6, %v12362_v41  ;;  %v7346_v49 = vcombine.high %v7342_v22, %v7342_v22 }
 0xaa4   : > { %v6672_v11 = vrot.slane %v6659_v8, %v12362_v41  ;;  %v7502_v12 = vld [vmem:[#allocation2 + $0x4] sm:$0x3f]  ;;  %v7361_v26 = vcombine.high %v7353_v7, %v7353_v7  ;;  %v7426_v29 = vcombine.high %v7422_v6, %v7422_v6 }
 0xaa5   : > { %6183 = vrot.lane.b32.xlu0 %v6121_v27, %s12094_s18  ;;  %v7513_v23 = vrot.slane %v7502_v12, %v12362_v41  ;;  %v7582_v15 = vld [vmem:[#allocation2 + $0x4] sm:$0x3f]  ;;  %v7506_v45 = vcombine.high %v7502_v12, %v7502_v12 }
 0xaa6   : > { %v6798_v46 = vld [vmem:[#allocation2 + $0x2] sm:$0x3f]  ;;  %v7593_v24 = vrot.slane %v7582_v15, %v12362_v41  ;;  %v6680_v37 = vcombine.high %v6672_v11, %v6672_v11 }
 0xaa7   : > { %6185 = vrot.lane.b32.xlu1 %v6120_v16, %s12094_s18  ;;  %s12098_s18 = smov 99   ;;  %v6809_v25 = vrot.slane %v6798_v46, %v12362_v41  ;;  %v7662_v27 = vld [vmem:[#allocation2 + $0x4] sm:$0x3f]  ;;  %v7360_v16 = vrot.slane %v7346_v49, %v12362_v41  ;;  %v6802_v60 = vcombine.high %v6798_v46, %v6798_v46 }
 0xaa8   : > { %v13191_v18 = vld [vmem:[#allocation2 + $0x2] sm:$0x3f]  ;;  %v7601_v59 = vcombine.high %v7593_v24, %v7593_v24  ;;  %v7666_v3 = vcombine.high %v7662_v27, %v7662_v27 }
 0xaa9   : > { %6260 = vrot.lane.b32.xlu0 %v6251_v28, %s12095_s26  ;;  %v7673_v28 = vrot.slane %v7662_v27, %v12362_v41  ;;  %v6889_v30 = vrot.slane %v13191_v18, %v12362_v41  ;;  %v13202_v38 = vld [vmem:[#allocation2 + $0x4] sm:$0x3f]  ;;  %v6882_v6 = vcombine.high %v13191_v18, %v13191_v18 }
 0xaaa   : > { %v13227_v53 = vld [vmem:[#allocation2 + $0x4] sm:$0x3f] }
 0xaab   : > { %6262 = vrot.lane.b32.xlu1 %v6259_v33, %s12095_s26  ;;  %v7440_v33 = vrot.slane %v7426_v29, %v12362_v41  ;;  %v7681_v22 = vcombine.high %v7673_v28, %v7673_v28  ;;  %v6896_v12 = vrot.slane %v6882_v6, %v12362_v41 }
 0xaad   : > { %6264 = vrot.lane.b32.xlu0 %v6258_v34, %s12095_s26  ;;  %s12099_s26 = smov 83   ;;  %v7441_v34 = vcombine.high %v7433_v9, %v7433_v9 }
 0xaaf   : > { %6341 = vrot.lane.b32.xlu1 %v6332_v36, %s12096_s30  ;;  %v6665_v36 = vcombine.high %v6659_v8, %v6659_v8  ;;  %v6897_v8 = vcombine.high %v6889_v30, %v6889_v30 }
 0xab1   : > { %6343 = vrot.lane.b32.xlu0 %v6340_v39, %s12096_s30  ;;  %v6679_v39 = vrot.slane %v6665_v36, %v12362_v41 }
 0xab3   : > { %6345 = vrot.lane.b32.xlu1 %v6339_v43, %s12096_s30  ;;  %s14315_s30 = smov 33   ;;  %v13206_v43 = vld [vmem:[#allocation2 + $0x4] sm:$0x3f] }
 0xab4   : > { %v13217_v47 = vrot.slane %v13206_v43, %v12362_v41  ;;  %v6962_v36 = vcombine.high %v13206_v43, %v13206_v43 }
 0xab5   : > { %6422 = vrot.lane.b32.xlu0 %v6413_v44, %s12097_s10  ;;  %v13211_v44 = vrot.slane %v13202_v38, %v12362_v41 }
 0xab6   : > { %v6976_v43 = vrot.slane %v6962_v36, %v12362_v41 }
 0xab7   : > { %6424 = vrot.lane.b32.xlu1 %v6421_v48, %s12097_s10  ;;  %v7520_v48 = vrot.slane %v7506_v45, %v12362_v41  ;;  %v6977_v45 = vcombine.high %v13217_v47, %v13217_v47 }
 0xab9   : > { %6426 = vrot.lane.b32.xlu0 %v6420_v51, %s12097_s10  ;;  %s12100_s10 = smov 49   ;;  %v7521_v51 = vcombine.high %v7513_v23, %v7513_v23 }
 0xabb   : > { %6503 = vrot.lane.b32.xlu1 %v6494_v52, %s12098_s18  ;;  %v13224_v52 = vld [vmem:[#allocation2 + $0x2] sm:$0x3f] }
 0xabc   : > { %v13232_v54 = vrot.slane %v13224_v52, %v12362_v41 }
 0xabd   : > { %6505 = vrot.lane.b32.xlu0 %v6502_v56, %s12098_s18  ;;  %v7586_v56 = vcombine.high %v7582_v15, %v7582_v15  ;;  %v13267_v15 = vld [vmem:[#allocation2 + $0x2] sm:$0x3f] }
 0xabf   : > { %6507 = vrot.lane.b32.xlu1 %v6501_v21, %s12098_s18  ;;  %s12101_s18 = smov 50   ;;  %v13238_v21 = vrot.slane %v13227_v53, %v12362_v41 }
 0xac1   : > { %6584 = vrot.lane.b32.xlu0 %v6575_v58, %s12099_s26  ;;  %v7600_v58 = vrot.slane %v7586_v56, %v12362_v41 }
 0xac3   : > { %6586 = vrot.lane.b32.xlu1 %v6583_v1, %s12099_s26  ;;  %v6817_v1 = vcombine.high %v6809_v25, %v6809_v25 }
 0xac5   : > { %6588 = vrot.lane.b32.xlu0 %v6582_v61, %s12099_s26  ;;  %s14316_s26 = smov 97   ;;  %v6816_v61 = vrot.slane %v6802_v60, %v12362_v41 }
 0xac7   : > { %7225 = vrot.lane.b32.xlu1 %v7216_v2, %s14315_s30 }
 0xac9   : > { %7227 = vrot.lane.b32.xlu0 %v7224_v4, %s14315_s30 }
 0xacb   : > { %7229 = vrot.lane.b32.xlu1 %v7223_v5, %s14315_s30  ;;  %s14317_s30 = smov 18  }
 0xacd   : > { %7283 = vrot.lane.b32.xlu0 %v7216_v2, %s12100_s10  ;;  %v13247_v2 = vld [vmem:[#allocation2 + $0x4] sm:$0x3f] }
 0xacf   : > { %7362 = vrot.lane.b32.xlu1 %v7353_v7, %s14272_s11 }
 0xad1   : > { %7442 = vrot.lane.b32.xlu0 %v7433_v9, %s14284_s17  ;;  %v13263_v9 = vld [vmem:[#allocation2 + $0x2] sm:$0x3f] }
 0xad3   : > { %6681 = vrot.lane.b32.xlu1 %v6672_v11, %s14281_s13 }
 0xad5   : > { %7287 = vrot.lane.b32.xlu0 %v7223_v5, %s12100_s10  ;;  %v7680_v5 = vrot.slane %v7666_v3, %v12362_v41 }
 0xad7   : > { %7285 = vrot.lane.b32.xlu1 %v7224_v4, %s12100_s10  ;;  %s12102_s10 = smov 81   ;;  %v13254_v4 = vrot.slane %v13247_v2, %v12362_v41 }
 0xad9   : > { %7522 = vrot.lane.b32.xlu0 %v7513_v23, %s14273_s28  ;;  %v7137_v36 = vcombine.high %v13254_v4, %v13254_v4 }
 0xadb   : > { %6739 = vrot.lane.b32.xlu1 %v6672_v11, %s12101_s18 }
 0xadd   : > { %7602 = vrot.lane.b32.xlu0 %v7593_v24, %s14316_s26  ;;  %v13272_v24 = vrot.slane %v13263_v9, %v12362_v41 }
 0xadf   : > { %6818 = vrot.lane.b32.xlu1 %v6809_v25, %s14317_s30  ;;  %v8114_v25 = vcombine.high %v13202_v38, %v13202_v38 }
 0xae1   : > { %7364 = vrot.lane.b32.xlu0 %v7361_v26, %s14272_s11  ;;  %v8128_v29 = vrot.slane %v8114_v25, %v12362_v41 }
 0xae3   : > { %7366 = vrot.lane.b32.xlu1 %v7360_v16, %s14272_s11  ;;  %s12103_s11 = smov 47   ;;  %v13282_v16 = vrot.slane %v13267_v15, %v12362_v41 }
 0xae5   : > { %7682 = vrot.lane.b32.xlu0 %v7673_v28, %s12102_s10 }
 0xae7   : > { %6898 = vrot.lane.b32.xlu1 %v6889_v30, %s14282_s9 }
 0xae9   : > { %7446 = vrot.lane.b32.xlu0 %v7440_v33, %s14284_s17 }
 0xaeb   : > { %7444 = vrot.lane.b32.xlu1 %v7441_v34, %s14284_s17  ;;  %s14318_s17 = smov 31   ;;  %v8129_v34 = vcombine.high %v13211_v44, %v13211_v44 }
 0xaed   : > { %6683 = vrot.lane.b32.xlu0 %v6680_v37, %s14281_s13 }
 0xaef   : > { %6685 = vrot.lane.b32.xlu1 %v6679_v39, %s14281_s13  ;;  %s14319_s13 = sld [smem:[#allocation27_spill]] }
 0xaf1   : > { %8130 = vrot.lane.b32.xlu0 %v13211_v44, %s14288_s14 }
 0xaf3   : > { %6978 = vrot.lane.b32.xlu1 %v13217_v47, %s14286_s19 }
 0xaf5   : > { %7526 = vrot.lane.b32.xlu0 %v7520_v48, %s14273_s28  ;;  %v11241_v18 = vld [vmem:[%s14319_s13 + $0xe] sm:$0x3]  ;;  %v8279_v48 = vcombine.high %v13224_v52, %v13224_v52  ;;  %v8294_v52 = vcombine.high %v13232_v54, %v13232_v54 }
 0xaf7   : > { %7524 = vrot.lane.b32.xlu1 %v7521_v51, %s14273_s28  ;;  %s12104_s28 = smov 82   ;;  %v8293_v56 = vrot.slane %v8279_v48, %v12362_v41 }
 0xaf9   : > { %6741 = vrot.lane.b32.xlu0 %v6680_v37, %s12101_s18 }
 0xafb   : > { %6743 = vrot.lane.b32.xlu1 %v6679_v39, %s12101_s18  ;;  %s12113_s18 = smov 109  }
 0xafd   : > { %8295 = vrot.lane.b32.xlu0 %v13232_v54, %s14318_s17 }
 0xaff   : > { %7058 = vrot.lane.b32.xlu1 %v13238_v21, %s14283_s12 }
 0xb01   : > { %7606 = vrot.lane.b32.xlu0 %v7600_v58, %s14316_s26 }
 0xb03   : > { %7604 = vrot.lane.b32.xlu1 %v7601_v59, %s14316_s26  ;;  %v13306_v59 = vld [vmem:[#allocation2 + $0x4] sm:$0x3f]  ;;  %s12114_s26 = smov 93  }
 0xb04   : > { %v13316_v3 = vrot.slane %v13306_v59, %v12362_v41 }
 0xb05   : > { %6820 = vrot.lane.b32.xlu0 %v6817_v1, %s14317_s30  ;;  %v6102_v1 = vld [vmem:[%s14319_s13] sm:$0x3] }
 0xb07   : > { %6822 = vrot.lane.b32.xlu1 %v6816_v61, %s14317_s30  ;;  %s12116_s30 = smov 77  }
 0xb09   : > { %8353 = vrot.lane.b32.xlu0 %v13232_v54, %s12103_s11  ;;  %v7042_v54 = vcombine.high %v13227_v53, %v13227_v53 }
 0xb0b   : > { %7138 = vrot.lane.b32.xlu1 %v13254_v4, %s12104_s28  ;;  %v7056_v53 = vrot.slane %v7042_v54, %v12362_v41  ;;  %v8431_v4 = vcombine.high %v13272_v24, %v13272_v24 }
 0xb0d   : > { %7686 = vrot.lane.b32.xlu0 %v7680_v5, %s12102_s10 }
 0xb0f   : > { %v6123_v7 = vpop.permute.xlu0 %6122  ;;  %7684 = vrot.lane.b32.xlu1 %v7681_v22, %s12102_s10  ;;  %s14335_s10 = sld [smem:[#allocation28_spill]] }
 0xb11   : > { %v6125_v11 = vpop.permute.xlu1 %6124  ;;  %6900 = vrot.lane.b32.xlu0 %v6897_v8, %s14282_s9  ;;  %v7057_v8 = vcombine.high %v13238_v21, %v13238_v21 }
 0xb12   : > { %v6129_v23 = vsel %vm6128_vm9, %v6123_v7, %v6125_v11 }
 0xb13   : > { %6902 = vrot.lane.b32.xlu1 %v6896_v12, %s14282_s9  ;;  %v6127_v46 = vpop.permute.xlu0 %6126  ;;  %v6135_v27 = vsel %vm1197_vm1, %v6129_v23, 0  ;;  %s12105_s9 = smov 48   ;;  %v13334_v23 = vld [vmem:[#allocation2 + $0x2] sm:$0x3f] }
 0xb14   : > { %v6130_v49 = vsel %vm6128_vm9, %v6125_v11, %v6127_v46  ;;  %vm6428_vm9 = vcmask 941056  }
 0xb15   : > { %v6182_v26 = vpop.permute.xlu1 %6181  ;;  %8432 = vrot.lane.b32.xlu0 %v13272_v24, %s14275_s23  ;;  %11242 = vmatprep.subr.msk.bf16.mxu0 %vm1197_vm1, %v6130_v49  ;;  %v11246_v49 = vld [vmem:[%s14319_s13 + $0x1c] sm:$0x3] }
 0xb16   : > { %6141 = vmatpush1.bf16.msra.mxu0 %v6135_v27  ;;  %v13344_v27 = vrot.slane %v13334_v23, %v12362_v41 }
 0xb17   : > { %7769 = vrot.lane.b32.xlu1 %v13282_v16, %s14287_s21  ;;  %v6184_v28 = vpop.permute.xlu0 %6183 }
 0xb18   : > { %v6188_v30 = vsel %vm6187_vm13, %v6182_v26, %v6184_v28  ;;  %v13339_v26 = vld [vmem:[#allocation2 + $0x4] sm:$0x3f] }
 0xb19   : > { %v6186_v33 = vpop.permute.xlu1 %6185  ;;  %8134 = vrot.lane.b32.xlu0 %v8128_v29, %s14288_s14  ;;  %11243 = vmatmul.mubr.msk.bf16.vlgmr.msra.gmra.mrb[76].mxu0 %vm1193_vm2, %v11241_v18  ;;  %v6194_v39 = vsel %vm1197_vm1, %v6188_v30, 0  ;;  %v13352_v29 = vrot.slane %v13339_v26, %v12362_v41  ;;  %v7122_v30 = vcombine.high %v13247_v2, %v13247_v2 }
 0xb1a   : > { %v6189_v37 = vsel %vm6187_vm13, %v6184_v28, %v6186_v33  ;;  %6231 = vmatprep.mubr.bf16.mxu0 %v12062_v0  ;;  %vm6509_vm13 = vcmask 809984  }
 0xb1b   : > { %8132 = vrot.lane.b32.xlu1 %v8129_v34, %s14288_s14  ;;  %11244 = vmatprep.subr.msk.bf16.mxu0 %vm1197_vm1, %v6189_v37  ;;  %v6261_v38 = vpop.permute.xlu0 %6260  ;;  %v8416_v37 = vcombine.high %v13263_v9, %v13263_v9  ;;  %v7753_v9 = vcombine.high %v13267_v15, %v13267_v15  ;;  %s12106_s14 = smov 80  }
 0xb1c   : > { %6200 = vmatpush1.bf16.msra.mxu0 %v6194_v39 }
 0xb1d   : > { %v6263_v44 = vpop.permute.xlu1 %6262  ;;  %6980 = vrot.lane.b32.xlu0 %v6977_v45, %s14286_s19  ;;  %v8430_v45 = vrot.slane %v8416_v37, %v12362_v41  ;;  %v7767_v24 = vrot.slane %v7753_v9, %v12362_v41 }
 0xb1e   : > { %v6267_v60 = vsel %vm6266_vm8, %v6261_v38, %v6263_v44  ;;  %v7136_v38 = vrot.slane %v7122_v30, %v12362_v41 }
 0xb1f   : > { %6982 = vrot.lane.b32.xlu1 %v6976_v43, %s14286_s19  ;;  %v6265_v51 = vpop.permute.xlu0 %6264  ;;  %v6273_v22 = vsel %vm1197_vm1, %v6267_v60, 0  ;;  %v11249_v43 = vld [vmem:[%s14319_s13 + $0x2a] sm:$0x3]  ;;  %s12109_s19 = smov 46  }
 0xb20   : > { %v6268_v58 = vsel %vm6266_vm8, %v6263_v44, %v6265_v51  ;;  %vm6590_vm8 = vcmask 678912  }
 0xb21   : > { %v6342_v47 = vpop.permute.xlu1 %6341  ;;  %8299 = vrot.lane.b32.xlu0 %v8293_v56, %s14318_s17  ;;  %11247 = vmatprep.subr.msk.bf16.mxu0 %vm1197_vm1, %v6268_v58  ;;  %v8496_v58 = vcombine.high %v13306_v59, %v13306_v59 }
 0xb23   : > { %8297 = vrot.lane.b32.xlu1 %v8294_v52, %s14318_s17  ;;  %v6344_v61 = vpop.permute.xlu0 %6343  ;;  %v8510_v59 = vrot.slane %v8496_v58, %v12362_v41  ;;  %s14354_s17 = sld [smem:[#allocation32_spill]] }
 0xb24   : > { %v6348_v25 = vsel %vm6347_vm6, %v6342_v47, %v6344_v61 }
 0xb25   : > { %v6346_v5 = vpop.permute.xlu1 %6345  ;;  %8512 = vrot.lane.b32.xlu0 %v13316_v3, %s14274_s1  ;;  %11245 = vmatmul.mubr.msk.bf16.vlgmr.msra.gmra.mrb[76].mxu0 %vm1193_vm2, %v6102_v1  ;;  %v6354_v28 = vsel %vm1197_vm1, %v6348_v25, 0  ;;  %v8511_v1 = vcombine.high %v13316_v3, %v13316_v3  ;;  %v7890_v3 = vcombine.high %v13334_v23, %v13334_v23 }
 0xb26   : > { %v6349_v6 = vsel %vm6347_vm6, %v6344_v61, %v6346_v5  ;;  %6279 = vmatpush1.bf16.msra.mxu0 %v6273_v22  ;;  %6310 = vmatprep.mubr.bf16.mxu0 %v12062_v0  ;;  %v8652_v5 = vld [vmem:[#allocation2 + $0x4] sm:$0x3f]  ;;  %vm7289_vm6 = vcmask 400384  }
 0xb27   : > { %7827 = vrot.lane.b32.xlu1 %v13282_v16, %s12105_s9  ;;  %11250 = vmatprep.subr.msk.bf16.mxu0 %vm1197_vm1, %v6349_v6  ;;  %v6423_v7 = vpop.permute.xlu0 %6422  ;;  %v11252_v6 = vld [vmem:[%s14319_s13 + $0x38] sm:$0x3] }
 0xb29   : > { %v6425_v11 = vpop.permute.xlu1 %6424  ;;  %7060 = vrot.lane.b32.xlu0 %v7057_v8, %s14283_s12 }
 0xb2a   : > { %v6429_v44 = vsel %vm6428_vm9, %v6423_v7, %v6425_v11  ;;  %v8030_v7 = vld [vmem:[#allocation2 + $0x4] sm:$0x3f] }
 0xb2b   : > { %7062 = vrot.lane.b32.xlu1 %v7056_v53, %s14283_s12  ;;  %v6427_v12 = vpop.permute.xlu0 %6426  ;;  %v6435_v15 = vsel %vm1197_vm1, %v6429_v44, 0  ;;  %s12112_s12 = smov 125  }
 0xb2c   : > { %v6430_v33 = vsel %vm6428_vm9, %v6425_v11, %v6427_v12  ;;  %v8663_v11 = vrot.slane %v8652_v5, %v12362_v41 }
 0xb2d   : > { %v6504_v46 = vpop.permute.xlu1 %6503  ;;  %8357 = vrot.lane.b32.xlu0 %v8293_v56, %s12103_s11  ;;  %v7768_v56 = vcombine.high %v13282_v16, %v13282_v16 }
 0xb2f   : > { %8355 = vrot.lane.b32.xlu1 %v8294_v52, %s12103_s11  ;;  %v6506_v21 = vpop.permute.xlu0 %6505  ;;  %s14355_s11 = sld [smem:[#allocation31_spill]] }
 0xb30   : > { %v6510_v54 = vsel %vm6509_vm13, %v6504_v46, %v6506_v21  ;;  %v8041_v46 = vrot.slane %v8030_v7, %v12362_v41 }
 0xb31   : > { %v6508_v18 = vpop.permute.xlu1 %6507  ;;  %7906 = vrot.lane.b32.xlu0 %v13344_v27, %s14285_s6  ;;  %11248 = vmatmul.mubr.msk.bf16.vlgmr.msra.gmra.mrb[76].mxu0 %vm1193_vm2, %v11246_v49  ;;  %v6516_v12 = vsel %vm1197_vm1, %v6510_v54, 0  ;;  %v7904_v49 = vrot.slane %v7890_v3, %v12362_v41  ;;  %v13491_v3 = vld [vmem:[#allocation2 + $0x2] sm:$0x3f] }
 0xb32   : > { %6360 = vmatpush1.bf16.msra.mxu0 %v6354_v28  ;;  %6391 = vmatprep.mubr.bf16.mxu0 %v12062_v0  ;;  %v6511_v52 = vsel %vm6509_vm13, %v6506_v21, %v6508_v18  ;;  %v7905_v18 = vcombine.high %v13344_v27, %v13344_v27  ;;  %v8576_v28 = vcombine.high %v13339_v26, %v13339_v26  ;;  %v13455_v26 = vld [vmem:[#allocation2 + $0x4] sm:$0x3f]  ;;  %vm7144_vm13 = vcmask 670720  }
 0xb33   : > { %11253 = vmatprep.subr.msk.bf16.mxu0 %vm1197_vm1, %v6430_v33  ;;  %8592 = vrot.lane.b32.xlu1 %v13352_v29, %s14278_s5  ;;  %v13361_v34 = vpop.permute.xlu0 %6584  ;;  %v8591_v33 = vcombine.high %v13352_v29, %v13352_v29 }
 0xb35   : > { %v13367_v2 = vpop.permute.xlu1 %6586  ;;  %7140 = vrot.lane.b32.xlu0 %v7137_v36, %s12104_s28  ;;  %v8190_v36 = vld [vmem:[#allocation2 + $0x4] sm:$0x3f] }
 0xb36   : > { %v6591_v27 = vsel %vm6590_vm8, %v13361_v34, %v13367_v2  ;;  %v8201_v29 = vrot.slane %v8190_v36, %v12362_v41  ;;  %v8743_v34 = vrot.slane %v13455_v26, %v12362_v41 }
 0xb37   : > { %7142 = vrot.lane.b32.xlu1 %v7136_v38, %s12104_s28  ;;  %v6589_v39 = vpop.permute.xlu0 %6588  ;;  %v8590_v38 = vrot.slane %v8576_v28, %v12362_v41  ;;  %v6597_v44 = vsel %vm1197_vm1, %v6591_v27, 0  ;;  %v8736_v27 = vcombine.high %v13455_v26, %v13455_v26  ;;  %s12117_s28 = smov 8  }
 0xb38   : > { %v6592_v25 = vsel %vm6590_vm8, %v13367_v2, %v6589_v39  ;;  %v11255_v39 = vld [vmem:[%s14319_s13 + $0x46] sm:$0x3]  ;;  %vm14329_vm8 = vcmask 785408  }
 0xb39   : > { %v13373_v48 = vpop.permute.xlu1 %7225  ;;  %8436 = vrot.lane.b32.xlu0 %v8430_v45, %s14275_s23 }
 0xb3b   : > { %8434 = vrot.lane.b32.xlu1 %v8431_v4, %s14275_s23  ;;  %v13383_v51 = vpop.permute.xlu0 %7227  ;;  %v8656_v4 = vcombine.high %v8652_v5, %v8652_v5  ;;  %s12111_s23 = smov 13  }
 0xb3c   : > { %v7231_v54 = vsel %vm3911_vm7, %v13373_v48, %v13383_v51 }
 0xb3d   : > { %v13389_v47 = vpop.permute.xlu1 %7229  ;;  %7771 = vrot.lane.b32.xlu0 %v7768_v56, %s14287_s21  ;;  %11251 = vmatmul.mubr.msk.bf16.vlgmr.msra.gmra.mrb[76].mxu0 %vm1193_vm2, %v11249_v43  ;;  %v7237_v48 = vsel %vm1197_vm1, %v7231_v54, 0 }
 0xb3e   : > { %6441 = vmatpush1.bf16.msra.mxu0 %v6435_v15  ;;  %6472 = vmatprep.mubr.bf16.mxu0 %v12062_v0  ;;  %v7232_v2 = vsel %vm3911_vm7, %v13383_v51, %v13389_v47  ;;  %v8671_v15 = vcombine.high %v8663_v11, %v8663_v11  ;;  %v13505_v51 = vrot.slane %v13491_v3, %v12362_v41  ;;  %vm6745_vm7 = vcmask 408576  }
 0xb3f   : > { %11256 = vmatprep.subr.msk.bf16.mxu0 %vm1197_vm1, %v6511_v52  ;;  %7773 = vrot.lane.b32.xlu1 %v7767_v24, %s14287_s21  ;;  %v13399_v16 = vpop.permute.xlu0 %7283  ;;  %s14320_s21 = smov 95   ;;  %v8049_v52 = vcombine.high %v8041_v46, %v8041_v46 }
 0xb41   : > { %v13402_v60 = vpop.permute.xlu1 %7362  ;;  %8516 = vrot.lane.b32.xlu0 %v8510_v59, %s14274_s1  ;;  %v8817_v59 = vld [vmem:[#allocation2 + $0x2] sm:$0x3f] }
 0xb43   : > { %8514 = vrot.lane.b32.xlu1 %v8511_v1, %s14274_s1  ;;  %v13408_v61 = vpop.permute.xlu0 %7442  ;;  %s14323_s1 = smov 14  }
 0xb45   : > { %v13410_v22 = vpop.permute.xlu1 %6681  ;;  %7829 = vrot.lane.b32.xlu0 %v7768_v56, %s12105_s9  ;;  %v8670_v56 = vrot.slane %v8656_v4, %v12362_v41  ;;  %v11283_v4 = vld [vmem:[%s14319_s13 + $0x12] sm:$0x3] }
 0xb47   : > { %7831 = vrot.lane.b32.xlu1 %v7767_v24, %s12105_s9  ;;  %v13416_v8 = vpop.permute.xlu0 %7287  ;;  %v8034_v24 = vcombine.high %v8030_v7, %v8030_v7  ;;  %s12118_s9 = smov 120  }
 0xb49   : > { %v13421_v53 = vpop.permute.xlu1 %7285  ;;  %8672 = vrot.lane.b32.xlu0 %v8663_v11, %s14320_s21  ;;  %11254 = vmatmul.mubr.msk.bf16.vlgmr.msra.gmra.mrb[76].mxu0 %vm1193_vm2, %v11252_v6  ;;  %v8048_v5 = vrot.slane %v8034_v24, %v12362_v41  ;;  %v11258_v6 = vld [vmem:[%s14319_s13 + $0x54] sm:$0x3]  ;;  %v13495_v11 = vrot.slane %v8817_v59, %v12362_v41 }
 0xb4a   : > { %6522 = vmatpush1.bf16.msra.mxu0 %v6516_v12  ;;  %6553 = vmatprep.mubr.bf16.mxu0 %v12062_v0  ;;  %v8194_v12 = vcombine.high %v8190_v36, %v8190_v36 }
 0xb4b   : > { %11259 = vmatprep.subr.msk.bf16.mxu0 %vm1197_vm1, %v6592_v25  ;;  %8050 = vrot.lane.b32.xlu1 %v8041_v46, %s14277_s3  ;;  %v13432_v23 = vpop.permute.xlu0 %7522 }
 0xb4c   : > { %v8208_v28 = vrot.slane %v8194_v12, %v12362_v41 }
 0xb4d   : > { %v13435_v21 = vpop.permute.xlu1 %6739  ;;  %7910 = vrot.lane.b32.xlu0 %v7904_v49, %s14285_s6 }
 0xb4f   : > { %7908 = vrot.lane.b32.xlu1 %v7905_v18, %s14285_s6  ;;  %v13443_v30 = vpop.permute.xlu0 %7602 }
 0xb51   : > { %v13447_v37 = vpop.permute.xlu1 %6818  ;;  %8594 = vrot.lane.b32.xlu0 %v8591_v33, %s14278_s5 }
 0xb53   : > { %8596 = vrot.lane.b32.xlu1 %v8590_v38, %s14278_s5  ;;  %v13458_v45 = vpop.permute.xlu0 %7364  ;;  %s12107_s5 = smov 79   ;;  %v11262_v38 = vld [vmem:[%s14319_s13 + $0x10] sm:$0x3] }
 0xb55   : > { %v13461_v9 = vpop.permute.xlu1 %7366  ;;  %8210 = vrot.lane.b32.xlu0 %v8201_v29, %s12106_s14  ;;  %11257 = vmatmul.mubr.msk.bf16.vlgmr.msra.gmra.mrb[76].mxu0 %vm1193_vm2, %v11255_v39  ;;  %v7290_v39 = vsel %vm7289_vm6, %v13399_v16, %v13421_v53 }
 0xb56   : > { %6603 = vmatpush1.bf16.msra.mxu0 %v6597_v44  ;;  %6634 = vmatprep.mubr.bf16.mxu0 %v12062_v0  ;;  %v7296_v26 = vsel %vm1197_vm1, %v7290_v39, 0  ;;  %v7369_v16 = vsel %vm1347_vm4, %v13458_v45, %v13461_v9  ;;  %v8838_v9 = vcombine.high %v13495_v11, %v13495_v11  ;;  %v11288_v39 = vld [vmem:[%s14319_s13 + $0x20] sm:$0x3] }
 0xb57   : > { %11284 = vmatprep.subr.msk.bf16.mxu0 %vm1197_vm1, %v7232_v2  ;;  %8752 = vrot.lane.b32.xlu1 %v8743_v34, %s12107_s5  ;;  %v13474_v43 = vpop.permute.xlu0 %7682  ;;  %v8751_v2 = vcombine.high %v8743_v34, %v8743_v34 }
 0xb59   : > { %v13477_v58 = vpop.permute.xlu1 %6898  ;;  %8676 = vrot.lane.b32.xlu0 %v8670_v56, %s14320_s21  ;;  %v8823_v56 = vcombine.high %v8817_v59, %v8817_v59  ;;  %v9367_v59 = vcombine.high %v13491_v3, %v13491_v3  ;;  %v11261_v3 = vld [vmem:[%s14319_s13 + $0x2] sm:$0x3] }
 0xb5b   : > { %8674 = vrot.lane.b32.xlu1 %v8671_v15, %s14320_s21  ;;  %v13481_v47 = vpop.permute.xlu0 %7446  ;;  %v8837_v34 = vrot.slane %v8823_v56, %v12362_v41  ;;  %v9381_v12 = vrot.slane %v9367_v59, %v12362_v41  ;;  %s14363_s21 = sld [smem:[#allocation30_spill]] }
 0xb5d   : > { %v13483_v1 = vpop.permute.xlu1 %7444  ;;  %8052 = vrot.lane.b32.xlu0 %v8049_v52, %s14277_s3 }
 0xb5f   : > { %8054 = vrot.lane.b32.xlu1 %v8048_v5, %s14277_s3  ;;  %v6684_v7 = vpop.permute.xlu0 %6683  ;;  %s12108_s3 = smov 29  }
 0xb60   : > { %v6687_v46 = vsel %vm2791_vm15, %v13410_v22, %v6684_v7  ;;  %v7291_v22 = vsel %vm7289_vm6, %v13421_v53, %v13416_v8  ;;  %v8209_v8 = vcombine.high %v8201_v29, %v8201_v29  ;;  %v8750_v29 = vrot.slane %v8736_v27, %v12362_v41  ;;  %v11267_v27 = vld [vmem:[%s14319_s13 + $0x1e] sm:$0x3]  ;;  %vm14330_vm6 = vmmov %vm14329_vm8 }
 0xb61   : > { %v6686_v25 = vpop.permute.xlu1 %6685  ;;  %8839 = vrot.lane.b32.xlu0 %v13495_v11, %s14289_s20  ;;  %11260 = vmatmul.mubr.msk.bf16.vlgmr.msra.gmra.mrb[76].mxu0 %vm1193_vm2, %v11258_v6  ;;  %v6693_v33 = vsel %vm1197_vm1, %v6687_v46, 0  ;;  %v9382_v6 = vcombine.high %v13505_v51, %v13505_v51  ;;  %v7368_v46 = vsel %vm1347_vm4, %v13402_v60, %v13458_v45  ;;  %v7449_v60 = vsel %vm1288_vm3, %v13483_v1, %v13481_v47 }
 0xb62   : > { %v6688_v49 = vsel %vm2791_vm15, %v6684_v7, %v6686_v25  ;;  %7243 = vmatpush1.bf16.msra.mxu0 %v7237_v48  ;;  %7274 = vmatprep.mubr.bf16.mxu0 %v12062_v0  ;;  %v11282_v25 = vld [vmem:[%s14319_s13 + $0x4] sm:$0x3]  ;;  %vm14321_vm4 = vcmask 146432  }
 0xb63   : > { %11286 = vmatprep.subr.msk.bf16.mxu0 %vm1197_vm1, %v7291_v22  ;;  %9383 = vrot.lane.b32.xlu1 %v13505_v51, %s12108_s3  ;;  %v13515_v18 = vpop.permute.xlu0 %8130  ;;  %v7374_v22 = vsel %vm1197_vm1, %v7368_v46, 0  ;;  %vm14322_vm15 = vmmov %vm14321_vm4  ;;  %v11270_v46 = vld [vmem:[%s14319_s13 + $0x2c] sm:$0x3] }
 0xb64   : > { %11263 = vmatprep.subr.msk.bf16.mxu1 %vm1197_vm1, %v6688_v49 }
 0xb65   : > { %6699 = vmatpush1.bf16.msra.mxu1 %v6693_v33  ;;  %v13520_v36 = vpop.permute.xlu1 %6978  ;;  %8214 = vrot.lane.b32.xlu0 %v8208_v28, %s12106_s14 }
 0xb67   : > { %8212 = vrot.lane.b32.xlu1 %v8209_v8, %s12106_s14  ;;  %v13531_v44 = vpop.permute.xlu0 %7526  ;;  %s14364_s14 = sld [smem:[#allocation29_spill]] }
 0xb68   : > { %11264 = vmatmul.mubr.msk.bf16.vlgmr.msra.gmra.mrb[60].mxu1 %vm1193_vm2, %v11262_v38 }
 0xb69   : > { %v13534_v15 = vpop.permute.xlu1 %7524  ;;  %8754 = vrot.lane.b32.xlu0 %v8751_v2, %s12107_s5  ;;  %11285 = vmatmul.mubr.msk.bf16.vlgmr.msra.gmra.mrb[80].mxu0 %vm1193_vm2, %v11283_v4  ;;  %v9501_v4 = vld [vmem:[#allocation2 + $0x2] sm:$0x3f] }
 0xb6a   : > { %7302 = vmatpush1.bf16.msra.mxu0 %v7296_v26  ;;  %6789 = vmatprep.mubr.bf16.mxu1 %v12062_v0 }
 0xb6b   : > { %11289 = vmatprep.subr.msk.bf16.mxu0 %vm1197_vm1, %v7369_v16  ;;  %8756 = vrot.lane.b32.xlu1 %v8750_v29, %s12107_s5  ;;  %v6742_v53 = vpop.permute.xlu0 %6741  ;;  %s921_s5 = sand.u32 1, %s12022_s16  }
 0xb6c   : > { %v6746_v24 = vsel %vm6745_vm7, %v13435_v21, %v6742_v53  ;;  %7333 = vmatprep.mubr.bf16.mxu0 %v12062_v0 }
 0xb6d   : > { %v6744_v52 = vpop.permute.xlu1 %6743  ;;  %8843 = vrot.lane.b32.xlu0 %v8837_v34, %s14289_s20  ;;  %v6752_v21 = vsel %vm1197_vm1, %v6746_v24, 0 }
 0xb6e   : > { %v6747_v5 = vsel %vm6745_vm7, %v6742_v53, %v6744_v52  ;;  %vm14331_vm7 = vcmask 261120  }
 0xb6f   : > { %8841 = vrot.lane.b32.xlu1 %v8838_v9, %s14289_s20  ;;  %11265 = vmatprep.subr.msk.bf16.mxu1 %vm1197_vm1, %v6747_v5  ;;  %v13556_v54 = vpop.permute.xlu0 %8295  ;;  %s12110_s20 = smov 45  }
 0xb70   : > { %6758 = vmatpush1.bf16.msra.mxu1 %v6752_v21 }
 0xb71   : > { %v13561_v7 = vpop.permute.xlu1 %7058  ;;  %9385 = vrot.lane.b32.xlu0 %v9382_v6, %s12108_s3 }
 0xb73   : > { %9387 = vrot.lane.b32.xlu1 %v9381_v12, %s12108_s3  ;;  %v13571_v48 = vpop.permute.xlu0 %7606  ;;  %s11035_s3 = sshll.u32 %s921_s5, 5 }
 0xb74   : > { %11266 = vmatmul.mubr.msk.bf16.vlgmr.msra.gmra.mrb[60].mxu1 %vm1193_vm2, %v11261_v3 }
 0xb75   : > { %v13574_v49 = vpop.permute.xlu1 %7604  ;;  %8897 = vrot.lane.b32.xlu0 %v13495_v11, %s12109_s19  ;;  %11287 = vmatmul.mubr.msk.bf16.vlgmr.msra.gmra.mrb[80].mxu0 %vm1193_vm2, %v11282_v25  ;;  %v7528_v25 = vsel %vm1426_vm5, %v13432_v23, %v13534_v15 }
 0xb76   : > { %7380 = vmatpush1.bf16.msra.mxu0 %v7374_v22  ;;  %6867 = vmatprep.mubr.bf16.mxu1 %v12062_v0  ;;  %v11291_v22 = vld [vmem:[%s14319_s13 + $0x2e] sm:$0x3] }
 0xb77   : > { %11292 = vmatprep.subr.msk.bf16.mxu0 %vm1197_vm1, %v7449_v60  ;;  %9442 = vrot.lane.b32.xlu1 %v13505_v51, %s12110_s20  ;;  %v6821_v45 = vpop.permute.xlu0 %6820  ;;  %v8956_v51 = vld [vmem:[#allocation2 + $0x2] sm:$0x3f] }
 0xb78   : > { %v6824_v11 = vsel %vm14321_vm4, %v13447_v37, %v6821_v45  ;;  %7411 = vmatprep.mubr.bf16.mxu0 %v12062_v0  ;;  %v7448_v37 = vsel %vm1288_vm3, %v13408_v61, %v13483_v1  ;;  %v8967_v56 = vrot.slane %v8956_v51, %v12362_v41  ;;  %v8960_v26 = vcombine.high %v8956_v51, %v8956_v51  ;;  %v9582_v60 = vld [vmem:[#allocation2 + $0x4] sm:$0x3f]  ;;  %vm14332_vm4 = vmmov %vm14331_vm7 }
 0xb79   : > { %v6823_v28 = vpop.permute.xlu1 %6822  ;;  %8901 = vrot.lane.b32.xlu0 %v8837_v34, %s12109_s19  ;;  %v6830_v8 = vsel %vm1197_vm1, %v6824_v11, 0  ;;  %v7454_v16 = vsel %vm1197_vm1, %v7448_v37, 0  ;;  %v9512_v61 = vrot.slane %v9501_v4, %v12362_v41  ;;  %v7529_v1 = vsel %vm1426_vm5, %v13534_v15, %v13531_v44 }
 0xb7a   : > { %v6825_v33 = vsel %vm14322_vm15, %v6821_v45, %v6823_v28  ;;  %v8974_v34 = vrot.slane %v8960_v26, %v12362_v41  ;;  %vm14324_vm3 = vcmask 15360   ;;  %v8975_v44 = vcombine.high %v8967_v56, %v8967_v56 }
 0xb7b   : > { %8899 = vrot.lane.b32.xlu1 %v8838_v9, %s12109_s19  ;;  %11268 = vmatprep.subr.msk.bf16.mxu1 %vm1197_vm1, %v6825_v33  ;;  %v13590_v47 = vpop.permute.xlu0 %8353  ;;  %v9505_v9 = vcombine.high %v9501_v4, %v9501_v4  ;;  %vm14325_vm9 = vmmov %vm14324_vm3  ;;  %v9593_v23 = vrot.slane %v9582_v60, %v12362_v41  ;;  %v7609_v15 = vsel %vm4150_vm0, %v13574_v49, %v13571_v48  ;;  %vm7688_vm5 = vcmask 662528   ;;  %s923_s19 = scalar_lea.vmem [#allocation3], %s11035_s3 }
 0xb7c   : > { %6836 = vmatpush1.bf16.msra.mxu1 %v6830_v8  ;;  %v7534_v8 = vsel %vm1197_vm1, %v7528_v25, 0  ;;  %v9586_v4 = vcombine.high %v9582_v60, %v9582_v60  ;;  %vm14333_vm15 = vcmask 252928  }
 0xb7d   : > { %v13593_v38 = vpop.permute.xlu1 %7138  ;;  %9444 = vrot.lane.b32.xlu0 %v9382_v6, %s12110_s20  ;;  %v9036_v6 = vld [vmem:[#allocation2 + $0x4] sm:$0x3f]  ;;  %v9519_v3 = vrot.slane %v9505_v9, %v12362_v41 }
 0xb7e   : > { %v9047_v11 = vrot.slane %v9036_v6, %v12362_v41  ;;  %v9040_v28 = vcombine.high %v9036_v6, %v9036_v6 }
 0xb7f   : > { %9446 = vrot.lane.b32.xlu1 %v9381_v12, %s12110_s20  ;;  %v13600_v2 = vpop.permute.xlu0 %7686  ;;  %s10939_s20 = sshll.u32 %s923_s19, 4  ;;  %s14100_s20 = int_to_ptr.vmem [resolvable:$true] %s10939_s20 }
 0xb80   : > { %11269 = vmatmul.mubr.msk.bf16.vlgmr.msra.gmra.mrb[60].mxu1 %vm1193_vm2, %v11267_v27  ;;  %v9054_v27 = vrot.slane %v9040_v28, %v12362_v41  ;;  %v9055_v48 = vcombine.high %v9047_v11, %v9047_v11 }
 0xb81   : > { %v13604_v29 = vpop.permute.xlu1 %7684  ;;  %8976 = vrot.lane.b32.xlu0 %v8967_v56, %s14323_s1  ;;  %11290 = vmatmul.mubr.msk.bf16.vlgmr.msra.gmra.mrb[80].mxu0 %vm1193_vm2, %v11288_v39 }
 0xb82   : > { %7460 = vmatpush1.bf16.msra.mxu0 %v7454_v16  ;;  %6947 = vmatprep.mubr.bf16.mxu1 %v12062_v0 }
 0xb83   : > { %11295 = vmatprep.subr.msk.bf16.mxu0 %vm1197_vm1, %v7529_v1  ;;  %9521 = vrot.lane.b32.xlu1 %v9512_v61, %s12111_s23  ;;  %v6901_v53 = vpop.permute.xlu0 %6900 }
 0xb84   : > { %v6904_v24 = vsel %vm14324_vm3, %v13477_v58, %v6901_v53  ;;  %7491 = vmatprep.mubr.bf16.mxu0 %v12062_v0  ;;  %v9520_v58 = vcombine.high %v9512_v61, %v9512_v61  ;;  %v9116_v61 = vld [vmem:[#allocation2 + $0x4] sm:$0x3f]  ;;  %vm14334_vm3 = vmmov %vm14333_vm15 }
 0xb85   : > { %v6903_v52 = vpop.permute.xlu1 %6902  ;;  %8980 = vrot.lane.b32.xlu0 %v8974_v34, %s14323_s1  ;;  %v6910_v21 = vsel %vm1197_vm1, %v6904_v24, 0  ;;  %v11273_v34 = vld [vmem:[%s14319_s13 + $0x3a] sm:$0x3]  ;;  %v7608_v24 = vsel %vm4150_vm0, %v13443_v30, %v13574_v49  ;;  %v7690_v49 = vsel %vm7688_vm5, %v13604_v29, %v13600_v2  ;;  %vm14327_vm0 = vcmask 801792  }
 0xb86   : > { %v6905_v59 = vsel %vm14325_vm9, %v6901_v53, %v6903_v52  ;;  %v9600_v53 = vrot.slane %v9586_v4, %v12362_v41  ;;  %v11294_v52 = vld [vmem:[%s14319_s13 + $0x3c] sm:$0x3]  ;;  %v7614_v6 = vsel %vm1197_vm1, %v7608_v24, 0  ;;  %vm7833_vm9 = vcmask 392192  }
 0xb87   : > { %8978 = vrot.lane.b32.xlu1 %v8975_v44, %s14323_s1  ;;  %11271 = vmatprep.subr.msk.bf16.mxu1 %vm1197_vm1, %v6905_v59  ;;  %v13623_v5 = vpop.permute.xlu0 %8432  ;;  %v9663_v44 = vld [vmem:[#allocation2 + $0x4] sm:$0x3f]  ;;  %v9127_v59 = vrot.slane %v9116_v61, %v12362_v41  ;;  %s11437_s1 = sshll.u32 %s12302_s0, 9  ;;  %s12119_s0 = smov [#allocation3]  }
 0xb88   : > { %6916 = vmatpush1.bf16.msra.mxu1 %v6910_v21  ;;  %v9120_v21 = vcombine.high %v9116_v61, %v9116_v61  ;;  %v9674_v30 = vrot.slane %v9663_v44, %v12362_v41  ;;  %v9667_v60 = vcombine.high %v9663_v44, %v9663_v44 }
 0xb89   : > { %v13626_v12 = vpop.permute.xlu1 %7769  ;;  %9523 = vrot.lane.b32.xlu0 %v9520_v58, %s12111_s23  ;;  %v9135_v2 = vcombine.high %v9127_v59, %v9127_v59 }
 0xb8b   : > { %9525 = vrot.lane.b32.xlu1 %v9519_v3, %s12111_s23  ;;  %v13634_v45 = vpop.permute.xlu0 %8134  ;;  %s14103_s23 = scalar_lea.hbm %s12279_s8, %s11437_s1 }
 0xb8c   : > { %11272 = vmatmul.mubr.msk.bf16.vlgmr.msra.gmra.mrb[60].mxu1 %vm1193_vm2, %v11270_v46  ;;  %v9134_v46 = vrot.slane %v9120_v21, %v12362_v41 }
 0xb8d   : > { %v13638_v33 = vpop.permute.xlu1 %8132  ;;  %9056 = vrot.lane.b32.xlu0 %v9047_v11, %s14290_s24  ;;  %11293 = vmatmul.mubr.msk.bf16.vlgmr.msra.gmra.mrb[80].mxu0 %vm1193_vm2, %v11291_v22 }
 0xb8e   : > { %7540 = vmatpush1.bf16.msra.mxu0 %v7534_v8  ;;  %7027 = vmatprep.mubr.bf16.mxu1 %v12062_v0 }
 0xb8f   : > { %11298 = vmatprep.subr.msk.bf16.mxu0 %vm1197_vm1, %v7609_v15  ;;  %9602 = vrot.lane.b32.xlu1 %v9593_v23, %s12112_s12  ;;  %v6981_v51 = vpop.permute.xlu0 %6980 }
 0xb90   : > { %v6984_v37 = vsel %vm3688_vm14, %v13520_v36, %v6981_v51  ;;  %7571 = vmatprep.mubr.bf16.mxu0 %v12062_v0  ;;  %v9601_v36 = vcombine.high %v9593_v23, %v9593_v23  ;;  %v9196_v23 = vld [vmem:[#allocation2 + $0x4] sm:$0x3f] }
 0xb91   : > { %v6983_v39 = vpop.permute.xlu1 %6982  ;;  %9060 = vrot.lane.b32.xlu0 %v9054_v27, %s14290_s24  ;;  %v6990_v16 = vsel %vm1197_vm1, %v6984_v37, 0  ;;  %v11276_v27 = vld [vmem:[%s14319_s13 + $0x48] sm:$0x3]  ;;  %v7689_v37 = vsel %vm7688_vm5, %v13474_v43, %v13604_v29  ;;  %v8137_v29 = vsel %vm14329_vm8, %v13638_v33, %v13634_v45  ;;  %vm8359_vm5 = vcmask 384000  }
 0xb92   : > { %v6985_v56 = vsel %vm3688_vm14, %v6981_v51, %v6983_v39  ;;  %vm14328_vm14 = vmmov %vm14327_vm0  ;;  %v9681_v51 = vrot.slane %v9667_v60, %v12362_v41  ;;  %v11297_v39 = vld [vmem:[%s14319_s13 + $0x4a] sm:$0x3]  ;;  %v7695_v61 = vsel %vm1197_vm1, %v7689_v37, 0 }
 0xb93   : > { %9058 = vrot.lane.b32.xlu1 %v9055_v48, %s14290_s24  ;;  %11274 = vmatprep.subr.msk.bf16.mxu1 %vm1197_vm1, %v6985_v56  ;;  %v13657_v26 = vpop.permute.xlu0 %8299  ;;  %s14326_s24 = smov 110   ;;  %v9744_v48 = vld [vmem:[#allocation2 + $0x4] sm:$0x3f]  ;;  %v9207_v56 = vrot.slane %v9196_v23, %v12362_v41 }
 0xb94   : > { %6996 = vmatpush1.bf16.msra.mxu1 %v6990_v16  ;;  %v9200_v16 = vcombine.high %v9196_v23, %v9196_v23  ;;  %v9755_v43 = vrot.slane %v9744_v48, %v12362_v41  ;;  %v9748_v45 = vcombine.high %v9744_v48, %v9744_v48 }
 0xb95   : > { %v13660_v1 = vpop.permute.xlu1 %8297  ;;  %9604 = vrot.lane.b32.xlu0 %v9601_v36, %s12112_s12  ;;  %v9215_v44 = vcombine.high %v9207_v56, %v9207_v56 }
 0xb97   : > { %9606 = vrot.lane.b32.xlu1 %v9600_v53, %s12112_s12  ;;  %v13668_v9 = vpop.permute.xlu0 %8512  ;;  %s14105_s12 = scalar_lea.sflag [#allocation4], %s921_s5 }
 0xb98   : > { %11275 = vmatmul.mubr.msk.bf16.vlgmr.msra.gmra.mrb[60].mxu1 %vm1193_vm2, %v11273_v34  ;;  %v9214_v34 = vrot.slane %v9200_v16, %v12362_v41 }
 0xb99   : > { %v13672_v58 = vpop.permute.xlu1 %7827  ;;  %9136 = vrot.lane.b32.xlu0 %v9127_v59, %s14326_s24  ;;  %11296 = vmatmul.mubr.msk.bf16.vlgmr.msra.gmra.mrb[80].mxu0 %vm1193_vm2, %v11294_v52 }
 0xb9a   : > { %7620 = vmatpush1.bf16.msra.mxu0 %v7614_v6  ;;  %7107 = vmatprep.mubr.bf16.mxu1 %v12062_v0 }
 0xb9b   : > { %11301 = vmatprep.subr.msk.bf16.mxu0 %vm1197_vm1, %v7690_v49  ;;  %9683 = vrot.lane.b32.xlu1 %v9674_v30, %s12113_s18  ;;  %v7061_v3 = vpop.permute.xlu0 %7060 }
 0xb9c   : > { %v7064_v25 = vsel %vm14327_vm0, %v13561_v7, %v7061_v3  ;;  %7651 = vmatprep.mubr.bf16.mxu0 %v12062_v0  ;;  %v9682_v7 = vcombine.high %v9674_v30, %v9674_v30  ;;  %v9763_v30 = vcombine.high %v9755_v43, %v9755_v43  ;;  %vm14336_vm0 = vcmask 121856  }
 0xb9d   : > { %v7063_v22 = vpop.permute.xlu1 %7062  ;;  %9140 = vrot.lane.b32.xlu0 %v9134_v46, %s14326_s24  ;;  %v7070_v28 = vsel %vm1197_vm1, %v7064_v25, 0  ;;  %v11279_v46 = vld [vmem:[%s14319_s13 + $0x56] sm:$0x3]  ;;  %v8136_v25 = vsel %vm14330_vm6, %v13515_v18, %v13638_v33  ;;  %vm14339_vm8 = vmmov %vm14336_vm0  ;;  %vm14340_vm6 = vcmask 1039360  }
 0xb9e   : > { %v7065_v11 = vsel %vm14328_vm14, %v7061_v3, %v7063_v22  ;;  %v9762_v3 = vrot.slane %v9748_v45, %v12362_v41  ;;  %v11300_v22 = vld [vmem:[%s14319_s13 + $0x58] sm:$0x3]  ;;  %v9922_v45 = vld [vmem:[%s14335_s10] sm:$0xf]  ;;  %vm14337_vm14 = vcmask 130048  }
 0xb9f   : > { %9138 = vrot.lane.b32.xlu1 %v9135_v2, %s14326_s24  ;;  %11277 = vmatprep.subr.msk.bf16.mxu1 %vm1197_vm1, %v7065_v11  ;;  %v13692_v8 = vpop.permute.xlu0 %8357  ;;  %v9825_v2 = vld [vmem:[#allocation2 + $0x4] sm:$0x3f]  ;;  %s11968_s24 = scalar_lea.vmem %s14100_s20, 512 }
 0xba0   : > { %7076 = vmatpush1.bf16.msra.mxu1 %v7070_v28  ;;  %v9836_v18 = vrot.slane %v9825_v2, %v12362_v41  ;;  %v9829_v16 = vcombine.high %v9825_v2, %v9825_v2  ;;  %p11969_p11 = scmp.ne.s32.totalorder %s14100_s20, %s11968_s24 }
 0xba1   : > { %v13694_v15 = vpop.permute.xlu1 %8355  ;;  %9685 = vrot.lane.b32.xlu0 %v9682_v7, %s12113_s18 }
 0xba2   : > { %p11970_p12 = pnand %p11969_p11, %p12319_p5 }
 0xba3   : > { %9687 = vrot.lane.b32.xlu1 %v9681_v51, %s12113_s18  ;;  %v13702_v4 = vpop.permute.xlu0 %7906  ;;  %v8142_v51 = vsel %vm1197_vm1, %v8136_v25, 0  ;;  %s11972_s18 = sshll.u32 %s12119_s0, 4  ;;  %s11973_s18 = int_to_ptr.vmem [resolvable:$false] %s11972_s18 }
 0xba4   : > { %11278 = vmatmul.mubr.msk.bf16.vlgmr.msra.gmra.mrb[60].mxu1 %vm1193_vm2, %v11276_v27  ;;  %v8302_v27 = vsel %vm14333_vm15, %v13660_v1, %v13657_v26  ;;  %vm14343_vm15 = vmmov %vm14340_vm6  ;;  %p11971_p13 = pneg %p11970_p12  ;;  %p11975_p0 = scmp.lt.s32.totalorder %s14100_s20, %s11973_s18 }
 0xba5   : > { %v13706_v36 = vpop.permute.xlu1 %8592  ;;  %9216 = vrot.lane.b32.xlu0 %v9207_v56, %s14292_s2  ;;  %11299 = vmatmul.mubr.msk.bf16.vlgmr.msra.gmra.mrb[80].mxu0 %vm1193_vm2, %v11297_v39  ;;  %v11304_v56 = vld [vmem:[%s14319_s13 + $0x14] sm:$0x3] }
 0xba6   : > { %7701 = vmatpush1.bf16.msra.mxu0 %v7695_v61  ;;  %7188 = vmatprep.mubr.bf16.mxu1 %v12062_v0  ;;  %v8301_v61 = vsel %vm14334_vm3, %v13556_v54, %v13660_v1  ;;  %v9843_v54 = vrot.slane %v9829_v16, %v12362_v41  ;;  %v8361_v1 = vsel %vm8359_vm5, %v13694_v15, %v13692_v8  ;;  %vm8216_vm3 = vcmask 654336  }
 0xba7   : > { %11320 = vmatprep.subr.msk.bf16.mxu0 %vm1197_vm1, %v8137_v29  ;;  %9764 = vrot.lane.b32.xlu1 %v9755_v43, %s12114_s26  ;;  %v7141_v53 = vpop.permute.xlu0 %7140  ;;  %v11319_v43 = vld [vmem:[%s14319_s13 + $0x4c] sm:$0x3] }
 0xba8   : > { %v7145_v24 = vsel %vm7144_vm13, %v13593_v38, %v7141_v53  ;;  %7732 = vmatprep.mubr.bf16.mxu0 %v12062_v0  ;;  %v9276_v38 = vld [vmem:[#allocation2 + $0x4] sm:$0x3f] }
 0xba9   : > { %v7143_v52 = vpop.permute.xlu1 %7142  ;;  %9220 = vrot.lane.b32.xlu0 %v9214_v34, %s14292_s2  ;;  %v7151_v21 = vsel %vm1197_vm1, %v7145_v24, 0  ;;  %v9287_v11 = vrot.slane %v9276_v38, %v12362_v41  ;;  %v9280_v28 = vcombine.high %v9276_v38, %v9276_v38  ;;  %v11326_v38 = vld [vmem:[%s14319_s13 + $0x16] sm:$0x3] }
 0xbaa   : > { %v7146_v59 = vsel %vm7144_vm13, %v7141_v53, %v7143_v52  ;;  %v9844_v53 = vcombine.high %v9836_v18, %v9836_v18  ;;  %v8307_v52 = vsel %vm1197_vm1, %v8301_v61, 0  ;;  %vm14338_vm13 = vmmov %vm14337_vm14 }
 0xbab   : > { %9218 = vrot.lane.b32.xlu1 %v9215_v44, %s14292_s2  ;;  %11280 = vmatprep.subr.msk.bf16.mxu1 %vm1197_vm1, %v7146_v59  ;;  %v13724_v6 = vpop.permute.xlu0 %8436  ;;  %s12115_s2 = smov 78   ;;  %v9294_v37 = vrot.slane %v9280_v28, %v12362_v41  ;;  %v9295_v48 = vcombine.high %v9287_v11, %v9287_v11 }
 0xbac   : > { %7157 = vmatpush1.bf16.msra.mxu1 %v7151_v21  ;;  %v11303_v21 = vld [vmem:[%s14319_s13 + $0x6] sm:$0x3] }
 0xbad   : > { %v13726_v49 = vpop.permute.xlu1 %8434  ;;  %9766 = vrot.lane.b32.xlu0 %v9763_v30, %s12114_s26  ;;  %v8360_v30 = vsel %vm8359_vm5, %v13590_v47, %v13694_v15 }
 0xbae   : > { %v8366_v25 = vsel %vm1197_vm1, %v8360_v30, 0  ;;  %v8439_v2 = vsel %vm14336_vm0, %v13726_v49, %v13724_v6  ;;  %vm14346_vm0 = vcmask 244736  }
 0xbaf   : > { %9768 = vrot.lane.b32.xlu1 %v9762_v3, %s12114_s26  ;;  %v7772_v60 = vpop.permute.xlu0 %7771  ;;  %s11974_s26 = scalar_lea.vmem %s11973_s18, 1024 }
 0xbb0   : > { %11281 = vmatmul.mubr.msk.bf16.vlgmr.msra.gmra.mrb[60].mxu1 %vm1193_vm2, %v11279_v46  ;;  %v7775_v7 = vsel %vm14331_vm7, %v13626_v12, %v7772_v60  ;;  %v11313_v46 = vld.sshfl [vmem:[#allocation2 + $0x4] sm:$0x33 pattern:$0x76325410]  ;;  %vm14341_vm7 = vcmask 916480   ;;  %p11976_p1 = scmp.lt.s32.totalorder %s11974_s26, %s11968_s24 }
 0xbb1   : > { %v7774_v23 = vpop.permute.xlu1 %7773  ;;  %9296 = vrot.lane.b32.xlu0 %v9287_v11, %s12115_s2  ;;  %11302 = vmatmul.mubr.msk.bf16.vlgmr.msra.gmra.mrb[80].mxu0 %vm1193_vm2, %v11300_v22  ;;  %v7781_v39 = vsel %vm1197_vm1, %v7775_v7, 0  ;;  %v7977_v28 = vcombine.high %v11313_v46, %v11313_v46 }
 0xbb2   : > { %v7776_v33 = vsel %vm14332_vm4, %v7772_v60, %v7774_v23  ;;  %8148 = vmatpush1.bf16.msra.mxu0 %v8142_v51  ;;  %7818 = vmatprep.mubr.bf16.mxu1 %v12062_v0  ;;  %v7982_v23 = vsel %vm1197_vm1, %v11313_v46, 0  ;;  %vm14342_vm4 = vmmov %vm14341_vm7  ;;  %p11977_p2 = por %p11976_p1, %p11975_p0 }
 0xbb3   : > { %11327 = vmatprep.subr.msk.bf16.mxu0 %vm1197_vm1, %v8302_v27  ;;  %9845 = vrot.lane.b32.xlu1 %v9836_v18, %s12116_s30  ;;  %v13748_v12 = vpop.permute.xlu0 %8516  ;;  %v8438_v18 = vsel %vm14339_vm8, %v13623_v5, %v13726_v49  ;;  %vm8758_vm8 = vcmask 646144  }
 0xbb4   : > { %11305 = vmatprep.subr.msk.bf16.mxu1 %vm1197_vm1, %v7776_v33  ;;  %8179 = vmatprep.mubr.bf16.mxu0 %v12062_v0  ;;  %v11325_v33 = vld [vmem:[%s14319_s13 + $0x8] sm:$0x3]  ;;  %p11978_p3 = pnand %p11977_p2, %p11971_p13 }
 0xbb5   : > { %7787 = vmatpush1.bf16.msra.mxu1 %v7781_v39  ;;  %v13754_v26 = vpop.permute.xlu1 %8514  ;;  %9300 = vrot.lane.b32.xlu0 %v9294_v37, %s12115_s2  ;;  %v8444_v37 = vsel %vm1197_vm1, %v8438_v18, 0 }
 0xbb7   : > { %9298 = vrot.lane.b32.xlu1 %v9295_v48, %s12115_s2  ;;  %v7830_v29 = vpop.permute.xlu0 %7829  ;;  %v11312_v48 = vld [vmem:[%s14319_s13 + $0x30] sm:$0x3] }
 0xbb8   : > { %11306 = vmatmul.mubr.msk.bf16.vlgmr.msra.gmra.mrb[64].mxu1 %vm1193_vm2, %v11304_v56  ;;  %v7834_v34 = vsel %vm7833_vm9, %v13672_v58, %v7830_v29  ;;  %v8519_v56 = vsel %vm14340_vm6, %v13754_v26, %v13748_v12 }
 0xbb9   : > { %v7832_v24 = vpop.permute.xlu1 %7831  ;;  %9847 = vrot.lane.b32.xlu0 %v9844_v53, %s12116_s30  ;;  %11321 = vmatmul.mubr.msk.bf16.vlgmr.msra.gmra.mrb[84].mxu0 %vm1193_vm2, %v11319_v43  ;;  %v7840_v59 = vsel %vm1197_vm1, %v7834_v34, 0  ;;  %v11316_v53 = vld [vmem:[%s14319_s13 + $0x3e] sm:$0x3]  ;;  %v8518_v34 = vsel %vm14343_vm15, %v13668_v9, %v13754_v26 }
 0xbba   : > { %v7835_v44 = vsel %vm7833_vm9, %v7830_v29, %v7832_v24  ;;  %8313 = vmatpush1.bf16.msra.mxu0 %v8307_v52  ;;  %7877 = vmatprep.mubr.bf16.mxu1 %v12062_v0  ;;  %v11331_v24 = vld [vmem:[%s14319_s13 + $0x24] sm:$0x3]  ;;  %vm14344_vm9 = vcmask 908288  }
 0xbbb   : > { %11329 = vmatprep.subr.msk.bf16.mxu0 %vm1197_vm1, %v8361_v1  ;;  %9849 = vrot.lane.b32.xlu1 %v9843_v54, %s12116_s30  ;;  %v13774_v58 = vpop.permute.xlu0 %8672  ;;  %v8524_v54 = vsel %vm1197_vm1, %v8518_v34, 0  ;;  %vm14345_vm5 = vmmov %vm14344_vm9 }
 0xbbc   : > { %11307 = vmatprep.subr.msk.bf16.mxu1 %vm1197_vm1, %v7835_v44  ;;  %8344 = vmatprep.mubr.bf16.mxu0 %v12062_v0 }
 0xbbd   : > { %7846 = vmatpush1.bf16.msra.mxu1 %v7840_v59  ;;  %v8051_v8 = vpop.permute.xlu1 %8050  ;;  %9925 = vperm.xlu0 %11865, %v9922_v45  }
 0xbbf   : > { %v7911_v3 = vpop.permute.xlu0 %7910 }
 0xbc0   : > { %11308 = vmatmul.mubr.msk.bf16.vlgmr.msra.gmra.mrb[68].mxu1 %vm1193_vm2, %v11303_v21  ;;  %v11322_v21 = vld [vmem:[%s14319_s13 + $0x5a] sm:$0x3] }
 0xbc1   : > { %v7909_v22 = vpop.permute.xlu1 %7908  ;;  %11328 = vmatmul.mubr.msk.bf16.vlgmr.msra.gmra.mrb[88].mxu0 %vm1193_vm2, %v11326_v38  ;;  %7955 = vmatprep.mubr.bf16.mxu1 %v12062_v0 }
 0xbc2   : > { %v7912_v47 = vsel %vm14337_vm14, %v13702_v4, %v7909_v22  ;;  %v7913_v15 = vsel %vm14338_vm13, %v7909_v22, %v7911_v3  ;;  %8372 = vmatpush1.bf16.msra.mxu0 %v8366_v25  ;;  %8403 = vmatprep.mubr.bf16.mxu0 %v12062_v0  ;;  %v11309_v4 = vld [vmem:[%s14319_s13 + $0x22] sm:$0x3]  ;;  %vm14347_vm14 = vmmov %vm14346_vm0  ;;  %v11334_v22 = vld [vmem:[%s14319_s13 + $0x32] sm:$0x3]  ;;  %vm8903_vm13 = vcmask 375808  }
 0xbc3   : > { %v7918_v60 = vsel %vm1197_vm1, %v7912_v47, 0  ;;  %11332 = vmatprep.subr.msk.bf16.mxu0 %vm1197_vm1, %v8439_v2  ;;  %11310 = vmatprep.subr.msk.bf16.mxu1 %vm1197_vm1, %v7913_v15  ;;  %v8595_v11 = vpop.permute.xlu0 %8594 }
 0xbc4   : > { %7924 = vmatpush1.bf16.msra.mxu1 %v7918_v60  ;;  %v8598_v3 = vsel %vm14345_vm5, %v13706_v36, %v8595_v11  ;;  %vm14352_vm5 = vcmask 769024  }
 0xbc5   : > { %v8597_v6 = vpop.permute.xlu1 %8596  ;;  %11314 = vmatprep.subr.msk.bf16.mxu1 %vm1197_vm1, %v7977_v28  ;;  %v8604_v15 = vsel %vm1197_vm1, %v8598_v3, 0  ;;  %v11347_v28 = vld [vmem:[%s14319_s13 + $0x18] sm:$0x3]  ;;  %v11343_v3 = vld [vmem:[%s14319_s13 + $0x5c] sm:$0x3] }
 0xbc6   : > { %v8599_v44 = vsel %vm14344_vm9, %v8595_v11, %v8597_v6  ;;  %vm9527_vm9 = vcmask 105472  }
 0xbc7   : > { %v8211_v7 = vpop.permute.xlu0 %8210 }
 0xbc8   : > { %11311 = vmatmul.mubr.msk.bf16.vlgmr.msra.gmra.mrb[72].mxu1 %vm1193_vm2, %v11309_v4 }
 0xbc9   : > { %7988 = vmatpush1.bf16.msra.mxu1 %v7982_v23  ;;  %v13802_v51 = vpop.permute.xlu1 %8752  ;;  %8019 = vmatprep.mubr.bf16.mxu1 %v12062_v0 }
 0xbcb   : > { %v8677_v27 = vpop.permute.xlu0 %8676 }
 0xbcd   : > { %v13810_v39 = vpop.permute.xlu1 %8674  ;;  %11330 = vmatmul.mubr.msk.bf16.vlgmr.msra.gmra.mrb[88].mxu0 %vm1193_vm2, %v11325_v33 }
 0xbce   : > { %8450 = vmatpush1.bf16.msra.mxu0 %v8444_v37  ;;  %8481 = vmatprep.mubr.bf16.mxu0 %v12062_v0  ;;  %v8679_v36 = vsel %vm4898_vm12, %v13810_v39, %v8677_v27  ;;  %v8678_v23 = vsel %vm4898_vm12, %v13774_v58, %v13810_v39  ;;  %v11337_v27 = vld [vmem:[%s14319_s13 + $0x40] sm:$0x3]  ;;  %vm14348_vm12 = vcmask 113664  }
 0xbcf   : > { %11335 = vmatprep.subr.msk.bf16.mxu0 %vm1197_vm1, %v8519_v56  ;;  %v8053_v5 = vpop.permute.xlu0 %8052  ;;  %v8684_v56 = vsel %vm1197_vm1, %v8678_v23, 0  ;;  %vm14349_vm6 = vmmov %vm14348_vm12 }
 0xbd0   : > { %11315 = vmatmul.mubr.msk.bf16.vlgmr.msra.gmra.mrb[76].mxu1 %vm1193_vm2, %v11312_v48  ;;  %v8056_v49 = vsel %vm14341_vm7, %v8051_v8, %v8053_v5  ;;  %vm9389_vm7 = vcmask 236544  }
 0xbd1   : > { %v8055_v16 = vpop.permute.xlu1 %8054  ;;  %8099 = vmatprep.mubr.bf16.mxu1 %v12062_v0  ;;  %v8062_v43 = vsel %vm1197_vm1, %v8056_v49, 0  ;;  %v11346_v49 = vld [vmem:[%s14319_s13 + $0xa] sm:$0x3] }
 0xbd2   : > { %v8057_v61 = vsel %vm14342_vm4, %v8053_v5, %v8055_v16  ;;  %vm14350_vm4 = vcmask 1031168  }
 0xbd3   : > { %11317 = vmatprep.subr.msk.bf16.mxu1 %vm1197_vm1, %v8057_v61  ;;  %v8840_v12 = vpop.permute.xlu0 %8839  ;;  %vm14351_vm15 = vmmov %vm14350_vm4 }
 0xbd4   : > { %8068 = vmatpush1.bf16.msra.mxu1 %v8062_v43 }
 0xbd5   : > { %v13825_v29 = vpop.permute.xlu1 %9383 }
 0xbd7   : > { %v8215_v52 = vpop.permute.xlu0 %8214 }
 0xbd8   : > { %11318 = vmatmul.mubr.msk.bf16.vlgmr.msra.gmra.mrb[80].mxu1 %vm1193_vm2, %v11316_v53 }
 0xbd9   : > { %v8213_v1 = vpop.permute.xlu1 %8212  ;;  %11333 = vmatmul.mubr.msk.bf16.vlgmr.msra.gmra.mrb[88].mxu0 %vm1193_vm2, %v11331_v24  ;;  %8260 = vmatprep.mubr.bf16.mxu1 %v12062_v0  ;;  %v11340_v24 = vld [vmem:[%s14319_s13 + $0x4e] sm:$0x3] }
 0xbda   : > { %v8217_v45 = vsel %vm8216_vm3, %v8211_v7, %v8213_v1  ;;  %v8218_v59 = vsel %vm8216_vm3, %v8213_v1, %v8215_v52  ;;  %8530 = vmatpush1.bf16.msra.mxu0 %v8524_v54  ;;  %8561 = vmatprep.mubr.bf16.mxu0 %v12062_v0  ;;  %vm9448_vm3 = vcmask 367616  }
 0xbdb   : > { %v8223_v9 = vsel %vm1197_vm1, %v8217_v45, 0  ;;  %11338 = vmatprep.subr.msk.bf16.mxu0 %vm1197_vm1, %v8599_v44  ;;  %11323 = vmatprep.subr.msk.bf16.mxu1 %vm1197_vm1, %v8218_v59  ;;  %v8755_v26 = vpop.permute.xlu0 %8754  ;;  %v11352_v45 = vld [vmem:[%s14319_s13 + $0x26] sm:$0x3] }
 0xbdc   : > { %8229 = vmatpush1.bf16.msra.mxu1 %v8223_v9 }
 0xbdd   : > { %v8757_v8 = vpop.permute.xlu1 %8756 }
 0xbde   : > { %v8760_v16 = vsel %vm8758_vm8, %v8755_v26, %v8757_v8 }
 0xbdf   : > { %v8844_v30 = vpop.permute.xlu0 %8843 }
 0xbe0   : > { %11324 = vmatmul.mubr.msk.bf16.vlgmr.msra.gmra.mrb[84].mxu1 %vm1193_vm2, %v11322_v21 }
 0xbe1   : > { %v8842_v38 = vpop.permute.xlu1 %8841  ;;  %8888 = vmatprep.mubr.bf16.mxu1 %v12062_v0 }
 0xbe2   : > { %v8845_v46 = vsel %vm14346_vm0, %v8840_v12, %v8842_v38  ;;  %v8846_v25 = vsel %vm14347_vm14, %v8842_v38, %v8844_v30  ;;  %v8759_v12 = vsel %vm8758_vm8, %v13802_v51, %v8755_v26  ;;  %vm14353_vm0 = vmmov %vm14352_vm5  ;;  %vm9302_vm14 = vcmask 637952  }
 0xbe3   : > { %v8851_v2 = vsel %vm1197_vm1, %v8845_v46, 0  ;;  %11348 = vmatprep.subr.msk.bf16.mxu1 %vm1197_vm1, %v8846_v25  ;;  %v13851_v47 = vpop.permute.xlu0 %9385  ;;  %v8765_v1 = vsel %vm1197_vm1, %v8759_v12, 0  ;;  %vm9770_vm8 = vcmask 760832  }
 0xbe4   : > { %8857 = vmatpush1.bf16.msra.mxu1 %v8851_v2  ;;  %v9390_v21 = vsel %vm9389_vm7, %v13825_v29, %v13851_v47 }
 0xbe5   : > { %v9388_v60 = vpop.permute.xlu1 %9387  ;;  %11336 = vmatmul.mubr.msk.bf16.vlgmr.msra.gmra.mrb[88].mxu0 %vm1193_vm2, %v11334_v22  ;;  %v9396_v22 = vsel %vm1197_vm1, %v9390_v21, 0 }
 0xbe6   : > { %8610 = vmatpush1.bf16.msra.mxu0 %v8604_v15  ;;  %8641 = vmatprep.mubr.bf16.mxu0 %v12062_v0  ;;  %v9391_v51 = vsel %vm9389_vm7, %v13851_v47, %v9388_v60  ;;  %v11355_v15 = vld [vmem:[%s14319_s13 + $0x34] sm:$0x3] }
 0xbe7   : > { %11341 = vmatprep.subr.msk.bf16.mxu0 %vm1197_vm1, %v8679_v36  ;;  %v8898_v11 = vpop.permute.xlu0 %8897  ;;  %v11368_v36 = vld [vmem:[%s14319_s13 + $0x1a] sm:$0x3] }
 0xbe8   : > { %11349 = vmatmul.mubr.msk.bf16.vlgmr.msra.gmra.mrb[88].mxu1 %vm1193_vm2, %v11347_v28 }
 0xbe9   : > { %v13861_v6 = vpop.permute.xlu1 %9442  ;;  %8947 = vmatprep.mubr.bf16.mxu1 %v12062_v0 }
 0xbeb   : > { %v8902_v4 = vpop.permute.xlu0 %8901 }
 0xbed   : > { %v8900_v7 = vpop.permute.xlu1 %8899 }
 0xbee   : > { %v8904_v18 = vsel %vm8903_vm13, %v8898_v11, %v8900_v7  ;;  %v8905_v33 = vsel %vm8903_vm13, %v8900_v7, %v8902_v4  ;;  %vm9689_vm13 = vcmask 891904  }
 0xbef   : > { %v8910_v37 = vsel %vm1197_vm1, %v8904_v18, 0  ;;  %11350 = vmatprep.subr.msk.bf16.mxu1 %vm1197_vm1, %v8905_v33  ;;  %v9445_v48 = vpop.permute.xlu0 %9444 }
 0xbf0   : > { %8916 = vmatpush1.bf16.msra.mxu1 %v8910_v37  ;;  %v9449_v28 = vsel %vm9448_vm3, %v13861_v6, %v9445_v48 }
 0xbf1   : > { %v9447_v5 = vpop.permute.xlu1 %9446  ;;  %11339 = vmatmul.mubr.msk.bf16.vlgmr.msra.gmra.mrb[88].mxu0 %vm1193_vm2, %v11337_v27  ;;  %v9455_v4 = vsel %vm1197_vm1, %v9449_v28, 0 }
 0xbf2   : > { %8690 = vmatpush1.bf16.msra.mxu0 %v8684_v56  ;;  %8721 = vmatprep.mubr.bf16.mxu0 %v12062_v0  ;;  %v9450_v29 = vsel %vm9448_vm3, %v9445_v48, %v9447_v5  ;;  %v11358_v48 = vld [vmem:[%s14319_s13 + $0x42] sm:$0x3]  ;;  %vm14358_vm3 = vcmp.ge.s32.totalorder %v12482_v35, 0 }
 0xbf3   : > { %11344 = vmatprep.subr.msk.bf16.mxu0 %vm1197_vm1, %v8760_v16  ;;  %v8977_v58 = vpop.permute.xlu0 %8976  ;;  %v11367_v16 = vld [vmem:[%s14319_s13 + $0xc] sm:$0x3] }
 0xbf4   : > { %11351 = vmatmul.mubr.msk.bf16.vlgmr.msra.gmra.mrb[88].mxu1 %vm1193_vm2, %v11346_v49 }
 0xbf5   : > { %v13876_v39 = vpop.permute.xlu1 %9521  ;;  %9025 = vmatprep.mubr.bf16.mxu1 %v12062_v0 }
 0xbf7   : > { %v8981_v61 = vpop.permute.xlu0 %8980 }
 0xbf9   : > { %v8979_v43 = vpop.permute.xlu1 %8978 }
 0xbfa   : > { %v8982_v53 = vsel %vm14348_vm12, %v8977_v58, %v8979_v43  ;;  %v8983_v34 = vsel %vm14349_vm6, %v8979_v43, %v8981_v61  ;;  %vm9851_vm12 = vcmask 629760  }
 0xbfb   : > { %v8988_v52 = vsel %vm1197_vm1, %v8982_v53, 0  ;;  %11353 = vmatprep.subr.msk.bf16.mxu1 %vm1197_vm1, %v8983_v34  ;;  %v9524_v54 = vpop.permute.xlu0 %9523 }
 0xbfc   : > { %8994 = vmatpush1.bf16.msra.mxu1 %v8988_v52  ;;  %v9528_v49 = vsel %vm9527_vm9, %v13876_v39, %v9524_v54 }
 0xbfd   : > { %v9526_v44 = vpop.permute.xlu1 %9525  ;;  %11342 = vmatmul.mubr.msk.bf16.vlgmr.msra.gmra.mrb[88].mxu0 %vm1193_vm2, %v11340_v24  ;;  %v9534_v61 = vsel %vm1197_vm1, %v9528_v49, 0  ;;  %v10651_v49 = vpack.c.bf16 %v12504_v17, %v12504_v17 }
 0xbfe   : > { %8771 = vmatpush1.bf16.msra.mxu0 %v8765_v1  ;;  %8802 = vmatprep.mubr.bf16.mxu0 %v12062_v0  ;;  %v9529_v23 = vsel %vm9527_vm9, %v9524_v54, %v9526_v44  ;;  %v11361_v54 = vld [vmem:[%s14319_s13 + $0x50] sm:$0x3]  ;;  %vm14360_vm9 = vcmp.lt.s32.totalorder %v12494_v63, 16  ;;  %v9907_v63 = vadd.s32 3, %v12476_v42 }
 0xbff   : > { %11369 = vmatprep.subr.msk.bf16.mxu0 %vm1197_vm1, %v9391_v51  ;;  %v9057_v59 = vpop.permute.xlu0 %9056  ;;  %v11373_v51 = vld [vmem:[%s14319_s13 + $0x28] sm:$0x3] }
 0xc00   : > { %11354 = vmatmul.mubr.msk.bf16.vlgmr.msra.gmra.mrb[88].mxu1 %vm1193_vm2, %v11352_v45 }
 0xc01   : > { %v13892_v9 = vpop.permute.xlu1 %9602  ;;  %9105 = vmatprep.mubr.bf16.mxu1 %v12062_v0 }
 0xc03   : > { %v9061_v26 = vpop.permute.xlu0 %9060 }
 0xc05   : > { %v9059_v8 = vpop.permute.xlu1 %9058 }
 0xc06   : > { %v9062_v30 = vsel %vm14350_vm4, %v9057_v59, %v9059_v8  ;;  %v9063_v38 = vsel %vm14351_vm15, %v9059_v8, %v9061_v26  ;;  %vm14356_vm4 = vcmp.ge.s32.totalorder %v12723_v13, 0  ;;  %vm14357_vm15 = vcmp.ge.s32.totalorder %v12479_v50, 0 }
 0xc07   : > { %v9068_v46 = vsel %vm1197_vm1, %v9062_v30, 0  ;;  %11356 = vmatprep.subr.msk.bf16.mxu1 %vm1197_vm1, %v9063_v38  ;;  %v9605_v25 = vpop.permute.xlu0 %9604 }
 0xc08   : > { %9074 = vmatpush1.bf16.msra.mxu1 %v9068_v46 }
 0xc09   : > { %v9607_v2 = vpop.permute.xlu1 %9606  ;;  %11345 = vmatmul.mubr.msk.bf16.vlgmr.msra.gmra.mrb[88].mxu0 %vm1193_vm2, %v11343_v3  ;;  %v11364_v3 = vld [vmem:[%s14319_s13 + $0x5e] sm:$0x3] }
 0xc0a   : > { %9402 = vmatpush1.bf16.msra.mxu0 %v9396_v22  ;;  %9433 = vmatprep.mubr.bf16.mxu0 %v12062_v0 }
 0xc0b   : > { %11371 = vmatprep.subr.msk.bf16.mxu0 %vm1197_vm1, %v9450_v29  ;;  %v9137_v47 = vpop.permute.xlu0 %9136 }
 0xc0c   : > { %11357 = vmatmul.mubr.msk.bf16.vlgmr.msra.gmra.mrb[88].mxu1 %vm1193_vm2, %v11355_v15 }
 0xc0d   : > { %v13908_v60 = vpop.permute.xlu1 %9683  ;;  %9185 = vmatprep.mubr.bf16.mxu1 %v12062_v0 }
 0xc0f   : > { %v9141_v11 = vpop.permute.xlu0 %9140 }
 0xc11   : > { %v9139_v7 = vpop.permute.xlu1 %9138  ;;  %11370 = vmatmul.mubr.msk.bf16.vlgmr.msra.gmra.mrb[92].mxu0 %vm1193_vm2, %v11368_v36 }
 0xc12   : > { %v9142_v18 = vsel %vm5202_vm10, %v9137_v47, %v9139_v7  ;;  %v9143_v33 = vsel %vm5202_vm10, %v9139_v7, %v9141_v11  ;;  %9461 = vmatpush1.bf16.msra.mxu0 %v9455_v4  ;;  %9492 = vmatprep.mubr.bf16.mxu0 %v12062_v0  ;;  %vm9608_vm10 = vcmask 1022976   ;;  %v11379_v11 = vld [vmem:[%s14319_s13 + $0x44] sm:$0x3] }
 0xc13   : > { %v9148_v6 = vsel %vm1197_vm1, %v9142_v18, 0  ;;  %11374 = vmatprep.subr.msk.bf16.mxu0 %vm1197_vm1, %v9529_v23  ;;  %11359 = vmatprep.subr.msk.bf16.mxu1 %vm1197_vm1, %v9143_v33  ;;  %v9686_v27 = vpop.permute.xlu0 %9685  ;;  %v9610_v12 = vsel %vm9608_vm10, %v9605_v25, %v9607_v2  ;;  %v9609_v45 = vsel %vm9608_vm10, %v13892_v9, %v9605_v25  ;;  %v11376_v25 = vld [vmem:[%s14319_s13 + $0x36] sm:$0x3]  ;;  %v11382_v33 = vld [vmem:[%s14319_s13 + $0x52] sm:$0x3]  ;;  %vm14361_vm10 = vcmp.lt.s32.totalorder %v12732_v31, 16 }
 0xc14   : > { %9154 = vmatpush1.bf16.msra.mxu1 %v9148_v6  ;;  %v9615_v59 = vsel %vm1197_vm1, %v9609_v45, 0  ;;  %v9690_v46 = vsel %vm9689_vm13, %v13908_v60, %v9686_v27  ;;  %v10656_v6 = vpack.c.bf16 %v12747_v57, %v12747_v57 }
 0xc15   : > { %v9688_v37 = vpop.permute.xlu1 %9687  ;;  %v9696_v2 = vsel %vm1197_vm1, %v9690_v46, 0 }
 0xc16   : > { %v9691_v21 = vsel %vm9689_vm13, %v9686_v27, %v9688_v37  ;;  %v10655_v37 = vpack.c.bf16 %v12745_v55, %v12745_v55  ;;  %v10774_v55 = vpack.c.bf16 %v13155_v19, %v13155_v19  ;;  %v6645_v19 = vadd.s32 4294967293, %v12474_v40 }
 0xc17   : > { %v9217_v56 = vpop.permute.xlu0 %9216  ;;  %vm9974_vm13 = vcmask 64512  }
 0xc18   : > { %11360 = vmatmul.mubr.msk.bf16.vlgmr.msra.gmra.mrb[88].mxu1 %vm1193_vm2, %v11358_v48  ;;  %v11385_v48 = vld [vmem:[%s14319_s13 + $0x60] sm:$0x3]  ;;  %v10666_v57 = vsel %vm1197_vm1, %v10655_v37, 0  ;;  %vm6647_vm6 = vcmp.ge.s32.totalorder %v6645_v19, 0 }
 0xc19   : > { %v9765_v5 = vpop.permute.xlu1 %9764  ;;  %9265 = vmatprep.mubr.bf16.mxu1 %v12062_v0 }
 0xc1b   : > { %v9221_v58 = vpop.permute.xlu0 %9220 }
 0xc1d   : > { %v9219_v43 = vpop.permute.xlu1 %9218  ;;  %11372 = vmatmul.mubr.msk.bf16.vlgmr.msra.gmra.mrb[92].mxu0 %vm1193_vm2, %v11367_v16  ;;  %v11959_v16 = vld [vmem:[%s14355_s11] sm:$0xff]  }
 0xc1e   : > { %v9222_v53 = vsel %vm14352_vm5, %v9217_v56, %v9219_v43  ;;  %v9223_v34 = vsel %vm14353_vm0, %v9219_v43, %v9221_v58  ;;  %9540 = vmatpush1.bf16.msra.mxu0 %v9534_v61  ;;  %9571 = vmatprep.mubr.bf16.mxu0 %v12062_v0  ;;  %v10652_v56 = vpack.c.bf16 %v12506_v20, %v12506_v20  ;;  %v10723_v20 = vsel %vm1197_vm1, %v10651_v49, 0 }
 0xc1f   : > { %v9228_v39 = vsel %vm1197_vm1, %v9222_v53, 0  ;;  %11377 = vmatprep.subr.msk.bf16.mxu0 %vm1197_vm1, %v9610_v12  ;;  %11362 = vmatprep.subr.msk.bf16.mxu1 %vm1197_vm1, %v9223_v34  ;;  %v9767_v24 = vpop.permute.xlu0 %9766  ;;  %v10773_v58 = vpack.c.bf16 %v13153_v14, %v13153_v14  ;;  %v6646_v61 = vadd.s32 4294967293, %v12476_v42  ;;  %vm14362_vm5 = vcmp.lt.s32.totalorder %v12735_v32, 16 }
 0xc20   : > { %9234 = vmatpush1.bf16.msra.mxu1 %v9228_v39  ;;  %v9771_v36 = vsel %vm9770_vm8, %v9765_v5, %v9767_v24  ;;  %v11958_v5 = vld [vmem:[%s14354_s17] sm:$0xff]  }
 0xc21   : > { %v9769_v52 = vpop.permute.xlu1 %9768  ;;  %v9777_v4 = vsel %vm1197_vm1, %v9771_v36, 0  ;;  %v10784_v17 = vsel %vm1197_vm1, %v10773_v58, 0  ;;  %vm6648_vm7 = vcmp.ge.s32.totalorder %v6646_v61, 0 }
 0xc22   : > { %v9772_v29 = vsel %vm9770_vm8, %v9767_v24, %v9769_v52  ;;  %vm10415_vm8 = vcmask 982016  }
 0xc23   : > { %v9297_v1 = vpop.permute.xlu0 %9296 }
 0xc24   : > { %11363 = vmatmul.mubr.msk.bf16.vlgmr.msra.gmra.mrb[88].mxu1 %vm1193_vm2, %v11361_v54 }
 0xc25   : > { %v9846_v44 = vpop.permute.xlu1 %9845  ;;  %9346 = vmatprep.mubr.bf16.mxu1 %v12062_v0 }
 0xc27   : > { %v9301_v26 = vpop.permute.xlu0 %9300 }
 0xc29   : > { %v9299_v8 = vpop.permute.xlu1 %9298  ;;  %11375 = vmatmul.mubr.msk.bf16.vlgmr.msra.gmra.mrb[92].mxu0 %vm1193_vm2, %v11373_v51 }
 0xc2a   : > { %v9303_v30 = vsel %vm9302_vm14, %v9297_v1, %v9299_v8  ;;  %v9304_v38 = vsel %vm9302_vm14, %v9299_v8, %v9301_v26  ;;  %9621 = vmatpush1.bf16.msra.mxu0 %v9615_v59  ;;  %9652 = vmatprep.mubr.bf16.mxu0 %v12062_v0  ;;  %vm9911_vm14 = vcmp.lt.s32.totalorder %v9907_v63, 16 }
 0xc2b   : > { %v9309_v9 = vsel %vm1197_vm1, %v9303_v30, 0  ;;  %11380 = vmatprep.subr.msk.bf16.mxu0 %vm1197_vm1, %v9691_v21  ;;  %11365 = vmatprep.subr.msk.bf16.mxu1 %vm1197_vm1, %v9304_v38  ;;  %v9848_v7 = vpop.permute.xlu0 %9847 }
 0xc2c   : > { %9315 = vmatpush1.bf16.msra.mxu1 %v9309_v9  ;;  %v9852_v18 = vsel %vm9851_vm12, %v9846_v44, %v9848_v7 }
 0xc2d   : > { %v9850_v60 = vpop.permute.xlu1 %9849  ;;  %v9858_v27 = vsel %vm1197_vm1, %v9852_v18, 0 }
 0xc2e   : > { %v9853_v23 = vsel %vm9851_vm12, %v9848_v7, %v9850_v60 }
 0xc30   : > { %11366 = vmatmul.mubr.msk.bf16.vlgmr.msra.gmra.mrb[88].mxu1 %vm1193_vm2, %v11364_v3 }
 0xc31   : > { %10018 = vmatprep.mubr.bf16.mxu1 %v12062_v0 }
 0xc34   : > { %v6636_v22 = vpop.f32.mrb[76].mxu0 }
 0xc35   : > { %v6638_v15 = vpop.f32.mrb[77].mxu0  ;;  %11378 = vmatmul.mubr.msk.bf16.vlgmr.msra.gmra.mrb[92].mxu0 %vm1193_vm2, %v11376_v25  ;;  %v6657_v12 = vsel %vm6647_vm6, %v6636_v22, 0.0 }
 0xc36   : > { %9702 = vmatpush1.bf16.msra.mxu0 %v9696_v2  ;;  %v6640_v47 = vpop.f32.mrb[78].mxu0  ;;  %9733 = vmatprep.mubr.bf16.mxu0 %v12062_v0  ;;  %v6658_v39 = vsel %vm6648_vm7, %v6638_v15, 0.0 }
 0xc37   : > { %11383 = vmatprep.subr.msk.bf16.mxu0 %vm1197_vm1, %v9772_v29  ;;  %v6641_v28 = vpop.f32.mrb[79].mxu0 }
 0xc41   : > { %11381 = vmatmul.mubr.msk.bf16.vlgmr.msra.gmra.mrb[92].mxu0 %vm1193_vm2, %v11379_v11 }
 0xc42   : > { %9783 = vmatpush1.bf16.msra.mxu0 %v9777_v4  ;;  %9814 = vmatprep.mubr.bf16.mxu0 %v12062_v0 }
 0xc43   : > { %11386 = vmatprep.subr.msk.bf16.mxu0 %vm1197_vm1, %v9853_v23 }
 0xc4d   : > { %11384 = vmatmul.mubr.msk.bf16.vlgmr.msra.gmra.mrb[92].mxu0 %vm1193_vm2, %v11382_v33 }
 0xc4e   : > { %9864 = vmatpush1.bf16.msra.mxu0 %v9858_v27  ;;  %9895 = vmatprep.mubr.bf16.mxu0 %v12062_v0 }
 0xc4f   : > { %11420 = vmatprep.subr.msk.bf16.mxu0 %vm1197_vm1, %v10656_v6 }
 0xc59   : > { %11387 = vmatmul.mubr.msk.bf16.vlgmr.msra.gmra.mrb[92].mxu0 %vm1193_vm2, %v11385_v48 }
 0xc5a   : > { %10672 = vmatpush1.bf16.msra.mxu0 %v10666_v57  ;;  %10703 = vmatprep.mubr.bf16.mxu0 %v12062_v0 }
 0xc5b   : > { %11423 = vmatprep.subr.msk.bf16.mxu0 %vm1197_vm1, %v10652_v56 }
 0xc61   : > { %11421 = vmatmul.mubr.msk.bf16.vlgmr.msra.gmra.mrb[96].mxu0 %vm1193_vm2, %v11958_v5 }
 0xc62   : > { %10729 = vmatpush1.bf16.msra.mxu0 %v10723_v20  ;;  %10760 = vmatprep.mubr.bf16.mxu0 %v12062_v0 }
 0xc63   : > { %11426 = vmatprep.subr.msk.bf16.mxu0 %vm1197_vm1, %v10774_v55 }
 0xc6d   : > { %11424 = vmatmul.mubr.msk.bf16.vlgmr.msra.gmra.mrb[96].mxu0 %vm1193_vm2, %v11959_v16 }
 0xc6e   : > { %10790 = vmatpush1.bf16.msra.mxu0 %v10784_v17  ;;  %10821 = vmatprep.mubr.bf16.mxu0 %v12062_v0 }
 0xc83   : > { %v7190_v43 = vpop.f32.mrb[60].mxu1 }
 0xc84   : > { %v7199_v53 = vsel %vm2927_vm11, %v7190_v43, 0.0  ;;  %v7192_v34 = vpop.f32.mrb[61].mxu1  ;;  %v7734_v14 = vpop.f32.mrb[80].mxu0  ;;  %vm14359_vm11 = vcmp.lt.s32.totalorder %v12491_v62, 16 }
 0xc85   : > { %v7201_v24 = vadd.f32 %v7199_v53, %v6657_v12  ;;  %v7200_v52 = vsel %vm14356_vm4, %v7192_v34, 0.0  ;;  %v7194_v54 = vpop.f32.mrb[62].mxu1  ;;  %v7743_v1 = vsel %vm14357_vm15, %v7734_v14, 0.0  ;;  %v7736_v44 = vpop.f32.mrb[81].mxu0 }
 0xc86   : > { %v7202_v45 = vadd.f32 %v7200_v52, %v6658_v39  ;;  %v7195_v51 = vpop.f32.mrb[63].mxu1  ;;  %v7744_v59 = vsel %vm14358_vm3, %v7736_v44, 0.0  ;;  %v7738_v26 = vpop.f32.mrb[82].mxu0 }
 0xc87   : > { %v7745_v10 = vadd.f32 %v7743_v1, %v7201_v24  ;;  %v7739_v8 = vpop.f32.mrb[83].mxu0 }
 0xc88   : > { %v7746_v21 = vadd.f32 %v7744_v59, %v7202_v45 }
 0xc8b   : > { %v7820_v30 = vpop.f32.mrb[64].mxu1 }
 0xc8c   : > { %v8181_v38 = vpop.f32.mrb[84].mxu0  ;;  %v7822_v9 = vpop.f32.mrb[65].mxu1 }
 0xc8d   : > { %v8183_v3 = vpop.f32.mrb[85].mxu0  ;;  %v7824_v13 = vpop.f32.mrb[66].mxu1 }
 0xc8e   : > { %v8185_v46 = vpop.f32.mrb[86].mxu0  ;;  %v7825_v25 = vpop.f32.mrb[67].mxu1 }
 0xc8f   : > { %v8186_v22 = vpop.f32.mrb[87].mxu0 }
 0xc90   : > { %v9926_v22 = vpop.permute.xlu0 %9925 }
 0xc93   : > { %v7879_v50 = vpop.f32.mrb[68].mxu1 }
 0xc94   : > { %v7880_v2 = vadd.f32 %v7879_v50, %v7820_v30  ;;  %v7881_v15 = vpop.f32.mrb[69].mxu1 }
 0xc95   : > { %v7882_v29 = vadd.f32 %v7881_v15, %v7822_v9  ;;  %v7883_v47 = vpop.f32.mrb[70].mxu1 }
 0xc96   : > { %v7884_v28 = vpop.f32.mrb[71].mxu1 }
 0xc9b   : > { %v7957_v35 = vpop.f32.mrb[72].mxu1 }
 0xc9c   : > { %v7964_v36 = vadd.f32 %v7957_v35, %v7880_v2  ;;  %v7959_v11 = vpop.f32.mrb[73].mxu1 }
 0xc9d   : > { %v7965_v60 = vadd.f32 %v7959_v11, %v7882_v29  ;;  %v7961_v4 = vpop.f32.mrb[74].mxu1 }
 0xc9e   : > { %v7962_v7 = vpop.f32.mrb[75].mxu1 }
 0xca3   : > { %v8021_v23 = vpop.f32.mrb[76].mxu1 }
 0xca4   : > { %v8028_v18 = vadd.f32 %v8021_v23, %v7964_v36  ;;  %v8023_v33 = vpop.f32.mrb[77].mxu1 }
 0xca5   : > { %v8029_v6 = vadd.f32 %v8023_v33, %v7965_v60  ;;  %v8025_v27 = vpop.f32.mrb[78].mxu1 }
 0xca6   : > { %v8026_v37 = vpop.f32.mrb[79].mxu1 }
 0xcab   : > { %v8101_v48 = vpop.f32.mrb[80].mxu1 }
 0xcac   : > { %v8108_v56 = vadd.f32 %v8101_v48, %v8028_v18  ;;  %v8103_v57 = vpop.f32.mrb[81].mxu1 }
 0xcad   : > { %v8109_v5 = vadd.f32 %v8103_v57, %v8029_v6  ;;  %v8105_v49 = vpop.f32.mrb[82].mxu1 }
 0xcae   : > { %v8106_v55 = vpop.f32.mrb[83].mxu1  ;;  %v8188_v20 = vadd.f32 %v8181_v38, %v8108_v56  ;;  %v9906_v38 = vadd.s32 3, %v12474_v40 }
 0xcaf   : > { %v8189_v16 = vadd.f32 %v8183_v3, %v8109_v5 }
 0xcb0   : > { %vm9910_vm0 = vcmp.lt.s32.totalorder %v9906_v38, 16 }
 0xcb3   : > { %v8262_v58 = vpop.f32.mrb[84].mxu1 }
 0xcb4   : > { %v8269_v17 = vadd.f32 %v8262_v58, %v8188_v20  ;;  %v8264_v19 = vpop.f32.mrb[85].mxu1 }
 0xcb5   : > { %v8270_v61 = vadd.f32 %v8264_v19, %v8189_v16  ;;  %v8266_v43 = vpop.f32.mrb[86].mxu1 }
 0xcb6   : > { %v8271_v12 = vadd.f32 %v8269_v17, %v7745_v10  ;;  %v8267_v53 = vpop.f32.mrb[87].mxu1 }
 0xcb7   : > { %v8272_v34 = vadd.f32 %v8270_v61, %v7746_v21 }
 0xcdc   : > { %v8804_v14 = vpop.f32.mrb[88].mxu0 }
 0xcdd   : > { %v8813_v39 = vsel %vm14359_vm11, %v8804_v14, 0.0  ;;  %v8806_v24 = vpop.f32.mrb[89].mxu0 }
 0xcde   : > { %v8815_v52 = vadd.f32 %v8813_v39, %v8271_v12  ;;  %v8814_v54 = vsel %vm14360_vm9, %v8806_v24, 0.0  ;;  %v8808_v1 = vpop.f32.mrb[90].mxu0  ;;  %v10639_v24 = vld [vmem:[%s14363_s21] sm:$0xf] }
 0xcdf   : > { %v8816_v44 = vadd.f32 %v8814_v54, %v8272_v34  ;;  %v8809_v45 = vpop.f32.mrb[91].mxu0  ;;  %v10902_v54 = vld [vmem:[%s12274_s4 + $0x8] sm:$0xff] }
 0xd03   : > { %v9348_v51 = vpop.f32.mrb[88].mxu1 }
 0xd04   : > { %v9357_v59 = vsel %vm14361_vm10, %v9348_v51, 0.0  ;;  %v9350_v26 = vpop.f32.mrb[89].mxu1 }
 0xd05   : > { %v9359_v10 = vadd.f32 %v9357_v59, %v8815_v52  ;;  %v9358_v8 = vsel %vm14362_vm5, %v9350_v26, 0.0  ;;  %v9352_v21 = vpop.f32.mrb[90].mxu1  ;;  %v10901_v52 = vld [vmem:[%s12274_s4] sm:$0xff] }
 0xd06   : > { %v9360_v62 = vadd.f32 %v9358_v8, %v8816_v44  ;;  %v9353_v30 = vpop.f32.mrb[91].mxu1 }
 0xd2c   : > { %v9897_v9 = vpop.f32.mrb[92].mxu0 }
 0xd2d   : > { %v9918_v3 = vsel %vm9910_vm0, %v9897_v9, 0.0  ;;  %v9899_v13 = vpop.f32.mrb[93].mxu0 }
 0xd2e   : > { %v9920_v46 = vadd.f32 %v9918_v3, %v9359_v10  ;;  %v9919_v31 = vsel %vm9911_vm14, %v9899_v13, 0.0  ;;  %v9901_v25 = vpop.f32.mrb[94].mxu0  ;;  %v11390_v10 = vld [vmem:[%s14364_s14 + $0x6] sm:$0x3] }
 0xd2f   : > { %v9921_v50 = vadd.f32 %v9919_v31, %v9360_v62  ;;  %v9902_v2 = vpop.f32.mrb[95].mxu0  ;;  %v9947_v31 = vld [vmem:[%s14364_s14] sm:$0x3] }
 0xd30   : > { %v9928_v32 = vadd.f32 %v9926_v22, %v9920_v46  ;;  %v11395_v2 = vld [vmem:[%s14364_s14 + $0xc] sm:$0x3] }
 0xd31   : > { %v9929_v15 = vadd.f32 %v9926_v22, %v9921_v50 }
 0xd32   : > { %v9930_v29 = vmax.f32 %v9928_v32, 0.0 }
 0xd33   : > { %v9931_v47 = vmax.f32 %v9929_v15, 0.0 }
 0xd35   : > { %v11388_v28 = vpack.c.bf16 %v9931_v47, %v9930_v29  ;;  %v11399_v47 = vld [vmem:[%s14364_s14 + $0x8] sm:$0x3] }
 0xd37   : > { %11389 = vst.sshfl [vmem:[#allocation2 + $0x4] sm:$0x33 pattern:$0x76325410] %v11388_v28 }
 0xd3e   : > { %v9948_v35 = vld [vmem:[#allocation2 + $0x2] sm:$0x3f] }
 0xd3f   : > { %v9959_v36 = vrot.slane %v9948_v35, %v12362_v41  ;;  %v9952_v11 = vcombine.high %v9948_v35, %v9948_v35  ;;  %v9946_v60 = vld [vmem:[#allocation2] sm:$0x3f]  ;;  %v10543_v61 = vld [vmem:[#allocation2 + $0x6] sm:$0x3f] }
 0xd40   : > { %v10035_v23 = vrot.slane %v9946_v60, %v12362_v41  ;;  %v10028_v18 = vcombine.high %v9946_v60, %v9946_v60  ;;  %v10102_v33 = vld [vmem:[#allocation2 + $0x4] sm:$0x3f]  ;;  %v10554_v53 = vrot.slane %v10543_v61, %v12362_v41  ;;  %v10547_v34 = vcombine.high %v10543_v61, %v10543_v61 }
 0xd41   : > { %9968 = vrot.lane.b32.xlu1 %v9959_v36, %s12117_s28  ;;  %v9967_v4 = vcombine.high %v9959_v36, %v9959_v36  ;;  %v9966_v7 = vrot.slane %v9952_v11, %v12362_v41  ;;  %v10113_v37 = vrot.slane %v10102_v33, %v12362_v41  ;;  %v10106_v48 = vcombine.high %v10102_v33, %v10102_v33  ;;  %v10389_v56 = vld [vmem:[#allocation2 + $0x4] sm:$0x3f] }
 0xd42   : > { %v10043_v6 = vcombine.high %v10035_v23, %v10035_v23  ;;  %v10042_v27 = vrot.slane %v10028_v18, %v12362_v41  ;;  %v10400_v49 = vrot.slane %v10389_v56, %v12362_v41  ;;  %v10393_v55 = vcombine.high %v10389_v56, %v10389_v56  ;;  %v10386_v20 = vld [vmem:[#allocation2 + $0x2] sm:$0x3f] }
 0xd43   : > { %9970 = vrot.lane.b32.xlu0 %v9967_v4, %s12117_s28  ;;  %v10121_v57 = vcombine.high %v10113_v37, %v10113_v37  ;;  %v10120_v5 = vrot.slane %v10106_v48, %v12362_v41  ;;  %v10476_v17 = vrot.slane %v10386_v20, %v12362_v41  ;;  %v10469_v19 = vcombine.high %v10386_v20, %v10386_v20  ;;  %v11400_v25 = vld.sshfl [vmem:[#allocation2 + $0x4] sm:$0x33 pattern:$0x76325410] }
 0xd44   : > { %v10408_v16 = vcombine.high %v10400_v49, %v10400_v49  ;;  %v10407_v58 = vrot.slane %v10393_v55, %v12362_v41  ;;  %v10562_v14 = vcombine.high %v10554_v53, %v10554_v53  ;;  %v10561_v39 = vrot.slane %v10547_v34, %v12362_v41  ;;  %v11403_v32 = vld.sshfl [vmem:[#allocation2 + $0x2] sm:$0x33 pattern:$0x76325410]  ;;  %v11411_v55 = vld [vmem:[%s14364_s14 + $0xa] sm:$0x3] }
 0xd45   : > { %9972 = vrot.lane.b32.xlu1 %v9966_v7, %s12117_s28  ;;  %v10484_v43 = vcombine.high %v10476_v17, %v10476_v17  ;;  %v10483_v12 = vrot.slane %v10469_v19, %v12362_v41  ;;  %v10210_v50 = vcombine.high %v11400_v25, %v11400_v25  ;;  %v10215_v15 = vsel %vm1197_vm1, %v11400_v25, 0  ;;  %v11407_v28 = vld.sshfl [vmem:[#allocation2 + $0x6] sm:$0x33 pattern:$0x76325410] }
 0xd46   : > { %v10269_v29 = vcombine.high %v11403_v32, %v11403_v32  ;;  %v10274_v36 = vsel %vm1197_vm1, %v11403_v32, 0  ;;  %v10331_v11 = vcombine.high %v11407_v28, %v11407_v28  ;;  %v11398_v7 = vld [vmem:[%s14364_s14 + $0x2] sm:$0x3]  ;;  %v10336_v18 = vsel %vm1197_vm1, %v11407_v28, 0  ;;  %v11410_v61 = vld [vmem:[%s14364_s14 + $0x4] sm:$0x3] }
 0xd47   : > { %10044 = vrot.lane.b32.xlu0 %v10035_v23, %s12117_s28  ;;  %v10623_v25 = vadd.s32 8, %v12474_v40 }
 0xd49   : > { %10046 = vrot.lane.b32.xlu1 %v10043_v6, %s12117_s28  ;;  %vm10627_vm7 = vcmp.lt.s32.totalorder %v10623_v25, 16 }
 0xd4b   : > { %10048 = vrot.lane.b32.xlu0 %v10042_v27, %s12117_s28 }
 0xd4d   : > { %10122 = vrot.lane.b32.xlu1 %v10113_v37, %s12117_s28  ;;  %v11406_v37 = vld [vmem:[%s14364_s14 + $0xe] sm:$0x3] }
 0xd4f   : > { %10124 = vrot.lane.b32.xlu0 %v10121_v57, %s12117_s28 }
 0xd51   : > { %10126 = vrot.lane.b32.xlu1 %v10120_v5, %s12117_s28 }
 0xd53   : > { %10409 = vrot.lane.b32.xlu0 %v10400_v49, %s12118_s9 }
 0xd55   : > { %10411 = vrot.lane.b32.xlu1 %v10408_v16, %s12118_s9 }
 0xd57   : > { %10413 = vrot.lane.b32.xlu0 %v10407_v58, %s12118_s9 }
 0xd59   : > { %10485 = vrot.lane.b32.xlu1 %v10476_v17, %s12118_s9 }
 0xd5b   : > { %10487 = vrot.lane.b32.xlu0 %v10484_v43, %s12118_s9 }
 0xd5d   : > { %10489 = vrot.lane.b32.xlu1 %v10483_v12, %s12118_s9  ;;  %v11416_v12 = vld [vmem:[%s14364_s14 + $0x10] sm:$0x3] }
 0xd5f   : > { %10563 = vrot.lane.b32.xlu0 %v10554_v53, %s12118_s9  ;;  %v11966_v53 = vld [vmem:[%s12264_s29] sm:$0xff]  }
 0xd60   : > { %11427 = vmatmul.mubr.msk.bf16.vlgmr.msra.gmra.mrb[96].mxu0 %vm1193_vm2, %v11966_v53 }
 0xd61   : > { %10565 = vrot.lane.b32.xlu1 %v10562_v14, %s12118_s9  ;;  %10886 = vmatprep.mubr.bf16.mxu0 %v12062_v0 }
 0xd63   : > { %10567 = vrot.lane.b32.xlu0 %v10561_v39, %s12118_s9 }
 0xd65   : > { %10642 = vperm.xlu1 %11866, %v10639_v24  }
 0xd67   : > { %10905 = vperm.xlu0 %11865, %v10901_v52  }
 0xd69   : > { %10910 = vperm.xlu1 %11866, %v10902_v54  }
 0xdb3   : > { %v9969_v1 = vpop.permute.xlu1 %9968 }
 0xdb5   : > { %v9971_v44 = vpop.permute.xlu0 %9970 }
 0xdb6   : > { %v9975_v45 = vsel %vm9974_vm13, %v9969_v1, %v9971_v44 }
 0xdb7   : > { %v9973_v51 = vpop.permute.xlu1 %9972  ;;  %v9981_v26 = vsel %vm1197_vm1, %v9975_v45, 0 }
 0xdb8   : > { %v9976_v59 = vsel %vm9974_vm13, %v9971_v44, %v9973_v51 }
 0xdb9   : > { %11391 = vmatprep.subr.msk.bf16.mxu1 %vm1197_vm1, %v9976_v59  ;;  %v10045_v41 = vpop.permute.xlu0 %10044 }
 0xdba   : > { %9987 = vmatpush1.bf16.msra.mxu1 %v9981_v26 }
 0xdbb   : > { %v10047_v8 = vpop.permute.xlu1 %10046 }
 0xdbc   : > { %v10050_v21 = vsel %vm9974_vm13, %v10045_v41, %v10047_v8 }
 0xdbd   : > { %11392 = vmatmul.mubr.msk.bf16.vlgmr.msra.gmra.mrb[92].mxu1 %vm1193_vm2, %v11390_v10  ;;  %v10049_v62 = vpop.permute.xlu0 %10048  ;;  %v10056_v38 = vsel %vm1197_vm1, %v10050_v21, 0  ;;  %v10182_v10 = vadd.s32 4294967288, %v12474_v40  ;;  %v10183_v21 = vadd.s32 4294967288, %v12476_v42 }
 0xdbe   : > { %v10051_v30 = vsel %vm9974_vm13, %v10047_v8, %v10049_v62  ;;  %10093 = vmatprep.mubr.bf16.mxu1 %v12062_v0 }
 0xdbf   : > { %v10123_v63 = vpop.permute.xlu1 %10122  ;;  %11393 = vmatprep.subr.msk.bf16.mxu1 %vm1197_vm1, %v10051_v30  ;;  %vm10184_vm12 = vcmp.ge.s32.totalorder %v10182_v10, 0  ;;  %vm10185_vm6 = vcmp.ge.s32.totalorder %v10183_v21, 0 }
 0xdc0   : > { %10062 = vmatpush1.bf16.msra.mxu1 %v10056_v38 }
 0xdc1   : > { %v10125_v9 = vpop.permute.xlu0 %10124 }
 0xdc2   : > { %v10128_v46 = vsel %vm9974_vm13, %v10123_v63, %v10125_v9 }
 0xdc3   : > { %v10127_v3 = vpop.permute.xlu1 %10126  ;;  %v10134_v22 = vsel %vm1197_vm1, %v10128_v46, 0 }
 0xdc4   : > { %v10129_v13 = vsel %vm9974_vm13, %v10125_v9, %v10127_v3 }
 0xdc5   : > { %11396 = vmatprep.subr.msk.bf16.mxu1 %vm1197_vm1, %v10129_v13  ;;  %v10410_v35 = vpop.permute.xlu0 %10409 }
 0xdc7   : > { %v10412_v60 = vpop.permute.xlu1 %10411 }
 0xdc8   : > { %v10416_v27 = vsel %vm10415_vm8, %v10410_v35, %v10412_v60 }
 0xdc9   : > { %11394 = vmatmul.mubr.msk.bf16.vlgmr.msra.gmra.mrb[92].mxu1 %vm1193_vm2, %v9947_v31  ;;  %v10414_v4 = vpop.permute.xlu0 %10413  ;;  %v10422_v56 = vsel %vm1197_vm1, %v10416_v27, 0 }
 0xdca   : > { %10140 = vmatpush1.bf16.msra.mxu1 %v10134_v22  ;;  %10171 = vmatprep.mubr.bf16.mxu1 %v12062_v0  ;;  %v10417_v33 = vsel %vm10415_vm8, %v10412_v60, %v10414_v4  ;;  %v10624_v22 = vadd.s32 8, %v12476_v42 }
 0xdcb   : > { %11401 = vmatprep.subr.msk.bf16.mxu1 %vm1197_vm1, %v10210_v50  ;;  %v10486_v23 = vpop.permute.xlu1 %10485 }
 0xdcc   : > { %vm10628_vm4 = vcmp.lt.s32.totalorder %v10624_v22, 16 }
 0xdcd   : > { %v10488_v6 = vpop.permute.xlu0 %10487 }
 0xdce   : > { %v10491_v49 = vsel %vm10415_vm8, %v10486_v23, %v10488_v6 }
 0xdcf   : > { %v10490_v48 = vpop.permute.xlu1 %10489  ;;  %v10497_v16 = vsel %vm1197_vm1, %v10491_v49, 0 }
 0xdd0   : > { %v10492_v5 = vsel %vm10415_vm8, %v10488_v6, %v10490_v48 }
 0xdd1   : > { %v10564_v57 = vpop.permute.xlu0 %10563 }
 0xdd3   : > { %v10566_v58 = vpop.permute.xlu1 %10565 }
 0xdd4   : > { %v10569_v19 = vsel %vm10415_vm8, %v10564_v57, %v10566_v58 }
 0xdd5   : > { %11397 = vmatmul.mubr.msk.bf16.vlgmr.msra.gmra.mrb[92].mxu1 %vm1193_vm2, %v11395_v2  ;;  %v10568_v20 = vpop.permute.xlu0 %10567  ;;  %v10575_v43 = vsel %vm1197_vm1, %v10569_v19, 0 }
 0xdd6   : > { %10221 = vmatpush1.bf16.msra.mxu1 %v10215_v15  ;;  %10252 = vmatprep.mubr.bf16.mxu1 %v12062_v0  ;;  %v10570_v17 = vsel %vm10415_vm8, %v10566_v58, %v10568_v20 }
 0xdd7   : > { %11404 = vmatprep.subr.msk.bf16.mxu1 %vm1197_vm1, %v10269_v29 }
 0xddd   : > { %11402 = vmatmul.mubr.msk.bf16.vlgmr.msra.gmra.mrb[96].mxu1 %vm1193_vm2, %v11399_v47 }
 0xdde   : > { %10280 = vmatpush1.bf16.msra.mxu1 %v10274_v36  ;;  %10311 = vmatprep.mubr.bf16.mxu1 %v12062_v0 }
 0xddf   : > { %11408 = vmatprep.subr.msk.bf16.mxu1 %vm1197_vm1, %v10331_v11 }
 0xde4   : > { %v10643_v28 = vpop.permute.xlu1 %10642 }
 0xde5   : > { %11405 = vmatmul.mubr.msk.bf16.vlgmr.msra.gmra.mrb[100].mxu1 %vm1193_vm2, %v11398_v7 }
 0xde6   : > { %10342 = vmatpush1.bf16.msra.mxu1 %v10336_v18  ;;  %10373 = vmatprep.mubr.bf16.mxu1 %v12062_v0  ;;  %v11967_v18 = vld [vmem:[%s12269_s27] sm:$0xff]  }
 0xde7   : > { %11412 = vmatprep.subr.msk.bf16.mxu1 %vm1197_vm1, %v10417_v33  ;;  %v10906_v33 = vpop.permute.xlu0 %10905 }
 0xde8   : > { %v10911_v48 = vpop.permute.xlu1 %10910 }
 0xded   : > { %11409 = vmatmul.mubr.msk.bf16.vlgmr.msra.gmra.mrb[104].mxu1 %vm1193_vm2, %v11406_v37 }
 0xdee   : > { %10428 = vmatpush1.bf16.msra.mxu1 %v10422_v56  ;;  %10459 = vmatprep.mubr.bf16.mxu1 %v12062_v0 }
 0xdef   : > { %11414 = vmatprep.subr.msk.bf16.mxu1 %vm1197_vm1, %v10492_v5 }
 0xdf5   : > { %11413 = vmatmul.mubr.msk.bf16.vlgmr.msra.gmra.mrb[108].mxu1 %vm1193_vm2, %v11411_v55 }
 0xdf6   : > { %10503 = vmatpush1.bf16.msra.mxu1 %v10497_v16  ;;  %10534 = vmatprep.mubr.bf16.mxu1 %v12062_v0 }
 0xdf7   : > { %11417 = vmatprep.subr.msk.bf16.mxu1 %vm1197_vm1, %v10570_v17 }
 0xe01   : > { %11415 = vmatmul.mubr.msk.bf16.vlgmr.msra.gmra.mrb[108].mxu1 %vm1193_vm2, %v11410_v61 }
 0xe02   : > { %10581 = vmatpush1.bf16.msra.mxu1 %v10575_v43  ;;  %10612 = vmatprep.mubr.bf16.mxu1 %v12062_v0 }
 0xe0d   : > { %11418 = vmatmul.mubr.msk.bf16.vlgmr.msra.gmra.mrb[108].mxu1 %vm1193_vm2, %v11416_v12 }
 0xea8   : > { %v10173_v34 = vpop.f32.mrb[92].mxu1 }
 0xea9   : > { %v10175_v14 = vpop.f32.mrb[93].mxu1  ;;  %v10194_v38 = vsel %vm10184_vm12, %v10173_v34, 0.0 }
 0xeaa   : > { %v10177_v39 = vpop.f32.mrb[94].mxu1  ;;  %v10195_v3 = vsel %vm10185_vm6, %v10175_v14, 0.0 }
 0xeab   : > { %v10178_v24 = vpop.f32.mrb[95].mxu1 }
 0xeb0   : > { %v10254_v52 = vpop.f32.mrb[96].mxu1 }
 0xeb1   : > { %v10256_v54 = vpop.f32.mrb[97].mxu1 }
 0xeb2   : > { %v10258_v1 = vpop.f32.mrb[98].mxu1 }
 0xeb3   : > { %v10259_v44 = vpop.f32.mrb[99].mxu1 }
 0xeb8   : > { %v10313_v45 = vpop.f32.mrb[100].mxu1 }
 0xeb9   : > { %v10314_v51 = vadd.f32 %v10313_v45, %v10254_v52  ;;  %v10315_v59 = vpop.f32.mrb[101].mxu1 }
 0xeba   : > { %v10316_v26 = vadd.f32 %v10315_v59, %v10256_v54  ;;  %v10317_v41 = vpop.f32.mrb[102].mxu1 }
 0xebb   : > { %v10318_v8 = vpop.f32.mrb[103].mxu1 }
 0xec0   : > { %v10375_v0 = vpop.f32.mrb[104].mxu1 }
 0xec1   : > { %v10382_v62 = vadd.f32 %v10375_v0, %v10314_v51  ;;  %v10377_v30 = vpop.f32.mrb[105].mxu1 }
 0xec2   : > { %v10383_v63 = vadd.f32 %v10377_v30, %v10316_v26  ;;  %v10379_v9 = vpop.f32.mrb[106].mxu1 }
 0xec3   : > { %v10384_v13 = vadd.f32 %v10382_v62, %v10194_v38  ;;  %v10380_v46 = vpop.f32.mrb[107].mxu1 }
 0xec4   : > { %v10385_v31 = vadd.f32 %v10383_v63, %v10195_v3 }
 0xee0   : > { %v10614_v50 = vpop.f32.mrb[108].mxu1 }
 0xee1   : > { %v10635_v2 = vsel %vm10627_vm7, %v10614_v50, 0.0  ;;  %v10616_v32 = vpop.f32.mrb[109].mxu1 }
 0xee2   : > { %v10637_v15 = vadd.f32 %v10635_v2, %v10384_v13  ;;  %v10636_v29 = vsel %vm10628_vm4, %v10616_v32, 0.0  ;;  %v10618_v47 = vpop.f32.mrb[110].mxu1 }
 0xee3   : > { %v10638_v35 = vadd.f32 %v10636_v29, %v10385_v31  ;;  %v10619_v36 = vpop.f32.mrb[111].mxu1 }
 0xee4   : > { %v10645_v11 = vadd.f32 %v10643_v28, %v10637_v15 }
 0xee5   : > { %v10646_v60 = vadd.f32 %v10643_v28, %v10638_v35 }
 0xee6   : > { %v10647_v4 = vmax.f32 %v10645_v11, 0.0 }
 0xee7   : > { %v10648_v7 = vmax.f32 %v10646_v60, 0.0 }
 0xee8   : > { %v10838_v40 = vpack.c.bf16 %v10647_v4, %v10647_v4 }
 0xee9   : > { %v10839_v23 = vpack.c.bf16 %v10648_v7, %v10648_v7 }
 0xeea   : > { %v10849_v42 = vsel %vm1197_vm1, %v10838_v40, 0 }
 0xeeb   : > { %11429 = vmatprep.subr.msk.bf16.mxu0 %vm1197_vm1, %v10839_v23 }
 0xeec   : > { %10855 = vmatpush1.bf16.msra.mxu0 %v10849_v42 }
 0xeef   : > { %11430 = vmatmul.mubr.msk.bf16.vlgmr.msra.gmra.mrb[96].mxu0 %vm1193_vm2, %v11967_v18 }
 0xfc2   : > { %v10888_v6 = vpop.f32.mrb[96].mxu0 }
 0xfc3   : > { %v10913_v27 = vadd.f32 %v10906_v33, %v10888_v6  ;;  %v10890_v37 = vpop.f32.mrb[97].mxu0 }
 0xfc4   : > { %v10914_v56 = vadd.f32 %v10906_v33, %v10890_v37  ;;  %v10892_v57 = vpop.f32.mrb[98].mxu0 }
 0xfc5   : > { %v10917_v5 = vmax.f32 %v10913_v27, 0.0  ;;  %v10915_v49 = vadd.f32 %v10911_v48, %v10892_v57  ;;  %v10894_v55 = vpop.f32.mrb[99].mxu0 }
 0xfc6   : > { %v10918_v20 = vmax.f32 %v10914_v56, 0.0  ;;  %v10916_v16 = vadd.f32 %v10911_v48, %v10894_v55 }
 0xfc7   : > { %10921 = vst [vmem:[%s923_s19] sm:$0xff] %v10917_v5  ;;  %v10919_v58 = vmax.f32 %v10915_v49, 0.0 }
 0xfc8   : > { %10922 = vst [vmem:[%s923_s19 + $0x8] sm:$0xff] %v10918_v20  ;;  %v10920_v17 = vmax.f32 %v10916_v16, 0.0 }
 0xfc9   : > { %10923 = vst [vmem:[%s923_s19 + $0x10] sm:$0xff] %v10919_v58 }
 0xfca   : > { %10924 = vst [vmem:[%s923_s19 + $0x18] sm:$0xff] %v10920_v17 }
 0xfcb   : > { %11981 = shalt.err (!%p11978_p3)
}
 0xfcc   : > { %s11982_s2 = scalar_lea.hbm %s14103_s23, 512  ;;  %s11986_s30 = scalar_lea.hbm %s12279_s8, 1024 }
 0xfcd   : > { %p11983_p4 = scmp.ne.s32.totalorder %s14103_s23, %s11982_s2  ;;  %p11987_p9 = scmp.lt.u32.totalorder %s14103_s23, %s12279_s8 }
 0xfce   : > { %p11988_p10 = scmp.lt.u32.totalorder %s11986_s30, %s11982_s2  ;;  %p11990_p12 = scmp.lt.u32.totalorder %s11982_s2, %s14103_s23 }
 0xfcf   : > { %p11984_p7 = pnand %p11983_p4, %p12319_p5 }
 0xfd0   : > { %p11989_p11 = por %p11988_p10, %p11987_p9 }
 0xfd1   : > { %p11985_p8 = pneg %p11984_p7 }
 0xfd2   : > { %p11991_p0 = por %p11990_p12, %p11989_p11 }
 0xfd4   : > { %p11992_p13 = pnand %p11991_p0, %p11985_p8 }
 0xfd6   : > { %11995 = shalt.err (!%p11992_p13)
}
 0xfd7   : > { %s12120_s10 = smov 256  }
 0xfd8   : > { %11738 = dma.vmem_to_hbm [thread:$0]  (%p12319_p5), %s14100_s20, 512, %s14103_s23, %s14105_s12, %s12120_s10, %s12120_s10, %s14285_s6  }
 0xfd9 PF: > { %p11744_p1 = scmp.ge.s32.totalorder %s12030_s22, 2  ;;  %s10954_s11 = sand.u32 1, %s12018_s15  }
 0xfda   : > { %s10955_s28 = scalar_lea.sflag [#allocation4], %s10954_s11 }
 0xfdb   : > { %p11741_p2 = pnand %p11744_p1, %p12323_p6 }
 0xfdd   : > { %12013 = dma.done.wait (!%p11741_p2), %s10955_s28, 512  }
 0xfde   : > { %12015 = vsyncadd (!%p11741_p2), %s10955_s28, 4294966784  ;;  %s14366_s22 = sld [smem:[#allocation34_spill]]  ;;  %s14367_s9 = sld [smem:[#allocation33_spill]] }
 0xfdf   : > { %s14368_s18 = sld [smem:[#allocation35_spill]]  ;;  %s14369_s15 = smov %s12022_s16 }
 0xfe4   : > { %p71_p3 = scmp.ge.s32.totalorder %s14366_s22, 4   ;;  %s14370_s16 = smov %s14367_s9 }
 0xfe6   :  { %73 = sbr.rel (!%p71_p3) target bundleno = 68 (0x44), region = 317 }
 0xfed   :  { %10960 = vsyncpa [#allocation4], 1 }
 0xfee   :  { %10962 = vsyncpa [#allocation4 + $0x1], 1 }

</bundles_post_ra>
